<compile_context>
chip_gen: v5e
topology: v5e:2x2
jax: 0.10.0
libtpu: 0.0.40
codegen_flags: <defaults>
</compile_context>

<pallas_src>
import functools
import math

import jax
import jax.numpy as jnp
from jax.experimental import pallas as pl
from jax.experimental.pallas import tpu as pltpu

NEG_SLOPE = 1.0 / 5.0          # LK = 5  -> nn.LeakyReLU(0.2)
BN_EPS = 1e-5
ACT_DTYPE = jnp.bfloat16       # storage dtype for activations / weights (f32 accumulate)
VMEM_LIMIT = 48 * 1024 * 1024  # <= v7x 64 MiB physical, above the 32 MiB default for v6e

FIRE_CFGS = [(64, 16, 64, 64), (128, 16, 64, 64),
             (128, 32, 128, 128), (256, 32, 128, 128),
             (256, 48, 192, 192), (384, 48, 192, 192),
             (384, 64, 256, 256), (512, 64, 256, 256)]


def _leaky(y):
    return jnp.where(y >= 0, y, y * NEG_SLOPE)


def _cparams(sem):
    return pltpu.CompilerParams(dimension_semantics=sem,
                                vmem_limit_bytes=VMEM_LIMIT)


def _pool_out(n):                       # MaxPool2d(3, stride=2, ceil_mode=True)
    return -(-(n - 3) // 2) + 1


# --------------------------------------------------------------------------
# Kernel 1: fused Fire chain (squeeze -> packed 9-tap expand, repeated n_fires
# times with the intermediate kept on-chip).  Input/output: row-flat layout.
# --------------------------------------------------------------------------

def _fire_chain_kernel(*refs, h, w, n_fires, head):
    wq = w + 2
    l = h * wq
    x_ref = refs[0]
    o_ref = refs[1 + 4 * n_fires]
    spad = refs[2 + 4 * n_fires]                     # (head + l + head, mid) VMEM
    tail0 = head + l
    base = head - wq - 1                              # first tap offset (>= 0)

    # column-validity mask for the squeeze output (zero padding between rows).
    # float floor-div trick avoids vector integer div/mod.
    fidx = jax.lax.broadcasted_iota(jnp.int32, (l, 1), 0).astype(jnp.float32)
    q = jnp.floor((fidx + 0.5) * (1.0 / wq))
    valid = (fidx - q * wq) < (w - 0.5)               # (l, 1) bool

    cur = x_ref[0]                                    # (l, cin) bf16
    for f in range(n_fires):
        sqw_ref, sqb_ref, ew_ref, eb_ref = refs[1 + 4 * f: 5 + 4 * f]
        mid = sqw_ref.shape[1]

        # ---- squeeze: 1x1 conv (BN scale pre-folded) + bias + LeakyReLU ----
        s = jnp.dot(cur, sqw_ref[...], preferred_element_type=jnp.float32)
        s = _leaky(s + sqb_ref[...])
        s = jnp.where(valid, s, 0.0)                  # exact zeros at wrap columns

        # ---- stage into the zero-padded VMEM plane (interior 16-row aligned) ----
        spad[0:head, :] = jnp.zeros((head, mid), spad.dtype)
        spad[head:tail0, :] = s.astype(spad.dtype)
        spad[tail0:, :] = jnp.zeros((spad.shape[0] - tail0, mid), spad.dtype)

        # ---- expand1 (1x1, folded into the centre tap) + expand3 (3x3, pad=1)
        #      as a SINGLE packed matmul with K = 9*mid ----
        taps = [spad[base + ky * wq + kx: base + ky * wq + kx + l, :]
                for ky in range(3) for kx in range(3)]
        cols = jnp.concatenate(taps, axis=-1)         # (l, 9*mid) bf16
        y = jnp.dot(cols, ew_ref[...], preferred_element_type=jnp.float32)
        y = _leaky(y + eb_ref[...])
        cur = y.astype(o_ref.dtype)                   # wrap cols never read as data

    o_ref[0] = cur


def fire_chain(xr, fires, h, w):
    """xr: row-flat (B, h*(w+2), cin) -> row-flat (B, h*(w+2), nout_last)."""
    b, l, cin = xr.shape
    wq = w + 2
    assert l == h * wq
    mid = fires[0]['sq_w'].shape[1]
    for f in fires:
        assert f['sq_w'].shape[1] == mid              # fused fires share `mid`
    head = -(-(wq + 1) // 16) * 16                    # 16-row aligned interior start
    lspad = head + l + head
    nout_last = fires[-1]['exp_w'].shape[1]

    const2 = lambda i: (0, 0)
    in_specs = [pl.BlockSpec((1, l, cin), lambda i: (i, 0, 0))]
    args = [xr]
    for f in fires:
        in_specs += [pl.BlockSpec(f['sq_w'].shape, const2),
                     pl.BlockSpec(f['sq_b'].shape, const2),
                     pl.BlockSpec(f['exp_w'].shape, const2),
                     pl.BlockSpec(f['exp_b'].shape, const2)]
        args += [f['sq_w'], f['sq_b'], f['exp_w'], f['exp_b']]

    kern = functools.partial(_fire_chain_kernel, h=h, w=w,
                             n_fires=len(fires), head=head)
    return pl.pallas_call(
        kern,
        out_shape=jax.ShapeDtypeStruct((b, l, nout_last), ACT_DTYPE),
        grid=(b,),
        in_specs=in_specs,
        out_specs=pl.BlockSpec((1, l, nout_last), lambda i: (i, 0, 0)),
        scratch_shapes=[pltpu.VMEM((lspad, mid), ACT_DTYPE)],
        compiler_params=_cparams(("parallel",)),
    )(*args)


# --------------------------------------------------------------------------
# Kernel 2: MaxPool2d(3, stride=2, ceil_mode=True) -> row-flat output
# --------------------------------------------------------------------------

def _maxpool_kernel(r0_ref, r1_ref, r2_ref, o_ref, *, h, w):
    i = pl.program_id(1)
    wq = w + 2
    ow = o_ref.shape[2] - 2
    c = o_ref.shape[3]
    neg = jnp.float32(-1e30)

    col = jax.lax.broadcasted_iota(jnp.int32, (wq, 1), 0)
    cmask = col < w

    def load(ref):
        v = ref[0, 0, :, :].astype(jnp.float32)       # (wq, C)
        return jnp.where(cmask, v, neg)               # ignore wrap / pad columns

    r0 = load(r0_ref)
    r1 = load(r1_ref)
    r2 = jnp.where(2 * i + 2 < h, load(r2_ref), neg)  # ceil-mode bottom clip
    v = jnp.maximum(jnp.maximum(r0, r1), r2)          # vertical 3-max, (wq, C)

    m1 = jnp.maximum(jnp.maximum(v[0:w, :], v[1:w + 1, :]), v[2:w + 2, :])  # (w, C)

    # stride-2 column selection via a tiny one-hot matmul (robust, no strided loads)
    ri = jax.lax.broadcasted_iota(jnp.int32, (ow, w), 0)
    ci = jax.lax.broadcasted_iota(jnp.int32, (ow, w), 1)
    sel = (ci == 2 * ri).astype(jnp.float32)
    out = jnp.dot(sel, m1, preferred_element_type=jnp.float32)              # (ow, C)

    o_ref[0, 0, 0:ow, :] = out.astype(o_ref.dtype)
    o_ref[0, 0, ow:ow + 2, :] = jnp.zeros((2, c), o_ref.dtype)              # wrap cols


def maxpool_rowflat(x4):
    """x4: (B, h, w+2, C) (last two cols ignored) -> row-flat (B, oh*(ow+2), C)."""
    b, h, wq, c = x4.shape
    w = wq - 2
    oh, ow = _pool_out(h), _pool_out(w)
    kern = functools.partial(_maxpool_kernel, h=h, w=w)
    out = pl.pallas_call(
        kern,
        out_shape=jax.ShapeDtypeStruct((b, oh, ow + 2, c), ACT_DTYPE),
        grid=(b, oh),
        in_specs=[
            pl.BlockSpec((1, 1, wq, c), lambda bi, i: (bi, 2 * i, 0, 0)),
            pl.BlockSpec((1, 1, wq, c), lambda bi, i: (bi, 2 * i + 1, 0, 0)),
            pl.BlockSpec((1, 1, wq, c),
                         lambda bi, i: (bi, jnp.minimum(2 * i + 2, h - 1), 0, 0)),
        ],
        out_specs=pl.BlockSpec((1, 1, ow + 2, c), lambda bi, i: (bi, i, 0, 0)),
        compiler_params=_cparams(("parallel", "parallel")),
    )(x4, x4, x4)
    return out.reshape(b, oh * (ow + 2), c), oh, ow


# --------------------------------------------------------------------------
# Kernel 3: classifier head (Conv1x1 + BN + LeakyReLU + AdaptiveAvgPool2d(1))
# One matmul over the whole batch; per-batch masked mean via segment matmul.
# --------------------------------------------------------------------------

def _classifier_kernel(x_ref, w_ref, b_ref, o_ref, *, bsz, h, w):
    wq = w + 2
    l = h * wq
    m = bsz * l
    y = jnp.dot(x_ref[...], w_ref[...], preferred_element_type=jnp.float32)  # (M, npad)
    y = _leaky(y + b_ref[...])

    mf = jax.lax.broadcasted_iota(jnp.int32, (bsz, m), 1).astype(jnp.float32)
    bi = jax.lax.broadcasted_iota(jnp.int32, (bsz, m), 0).astype(jnp.float32)
    qb = jnp.floor((mf + 0.5) * (1.0 / l))
    qw = jnp.floor((mf + 0.5) * (1.0 / wq))
    colf = mf - qw * wq
    seg = ((jnp.abs(qb - bi) < 0.5) & (colf < (w - 0.5))).astype(jnp.float32)

    o_ref[...] = jnp.dot(seg, y, preferred_element_type=jnp.float32) * (1.0 / (h * w))


def classifier_head(xr, h, w, wmat, bias, cls):
    b, l, cin = xr.shape
    npad = wmat.shape[1]
    x2 = xr.reshape(b * l, cin)                       # free reshape in XLA
    kern = functools.partial(_classifier_kernel, bsz=b, h=h, w=w)
    out = pl.pallas_call(
        kern,
        out_shape=jax.ShapeDtypeStruct((b, npad), jnp.float32),
        grid=(1,),
        in_specs=[
            pl.BlockSpec((b * l, cin), lambda i: (0, 0)),
            pl.BlockSpec((cin, npad), lambda i: (0, 0)),
            pl.BlockSpec((1, npad), lambda i: (0, 0)),
        ],
        out_specs=pl.BlockSpec((b, npad), lambda i: (0, 0)),
        compiler_params=_cparams(("arbitrary",)),
    )(x2, wmat, bias)
    return out[:, :cls]


# --------------------------------------------------------------------------
# Parameters (matching the PyTorch init scheme; BN scale folded into weights)
# --------------------------------------------------------------------------

def _kaiming_uniform(key, fan_in, shape):
    bound = math.sqrt(6.0 / fan_in)                   # kaiming_uniform_ default (a=0)
    return jax.random.uniform(key, shape, jnp.float32, -bound, bound)


def _xavier_uniform(key, fan_in, fan_out, shape):
    bound = math.sqrt(6.0 / (fan_in + fan_out))
    return jax.random.uniform(key, shape, jnp.float32, -bound, bound)


def _bn_affine(n):
    gamma = jnp.ones((n,), jnp.float32)
    beta = jnp.zeros((n,), jnp.float32)
    mean = jnp.zeros((n,), jnp.float32)
    var = jnp.ones((n,), jnp.float32)
    scale = gamma / jnp.sqrt(var + BN_EPS)
    bias = beta - mean * scale
    return scale, bias


def init_params(key, inc=3, cls=1000):
    keys = iter(jax.random.split(key, 32))
    p = {}
    # features[0]: Conv2d(inc, 64, 3, stride=2) + BN(64) + LeakyReLU
    s0, b0 = _bn_affine(64)
    w0 = _kaiming_uniform(next(keys), inc * 9, (3, 3, inc, 64))
    p['conv0_w'] = (w0 * s0).astype(ACT_DTYPE)        # HWIO, BN scale folded
    p['conv0_b'] = b0
    fires = []
    for (cin, mid, e1, e3) in FIRE_CFGS:
        f = {}
        ssc, sbi = _bn_affine(mid)
        f['sq_w'] = (_kaiming_uniform(next(keys), cin, (cin, mid)) * ssc).astype(ACT_DTYPE)
        f['sq_b'] = sbi.reshape(1, mid)
        b1 = _kaiming_uniform(next(keys), mid, (mid, e1))            # 1x1 branch
        b3 = _kaiming_uniform(next(keys), mid * 9, (9, mid, e3))     # 3x3 branch (ky,kx)
        s1, o1 = _bn_affine(e1)
        s3, o3 = _bn_affine(e3)
        nout = e1 + e3
        ew = jnp.zeros((9, mid, nout), jnp.float32)
        ew = ew.at[4, :, :e1].set(b1 * s1)             # 1x1 branch -> centre tap
        ew = ew.at[:, :, e1:].set(b3 * s3)
        f['exp_w'] = ew.reshape(9 * mid, nout).astype(ACT_DTYPE)     # packed K = 9*mid
        f['exp_b'] = jnp.concatenate([o1, o3]).reshape(1, nout)
        fires.append(f)
    p['fires'] = fires
    # classifier: Conv2d(512, cls, 1) (xavier, bias=0) + BN(cls); N padded to 128 mult.
    npad = ((cls + 127) // 128) * 128
    wc = _xavier_uniform(next(keys), 512, cls, (512, cls))
    sc, bc = _bn_affine(cls)
    p['cls_w'] = (jnp.zeros((512, npad), jnp.float32)
                  .at[:, :cls].set(wc * sc)).astype(ACT_DTYPE)
    p['cls_b'] = jnp.zeros((1, npad), jnp.float32).at[0, :cls].set(bc)
    return p


# --------------------------------------------------------------------------
# Forward pass
# --------------------------------------------------------------------------

def squeezenet_forward(params, x_nchw, cls):
    b = x_nchw.shape[0]
    x = jnp.transpose(x_nchw, (0, 2, 3, 1)).astype(ACT_DTYPE)       # NCHW -> NHWC
    # first conv (3 input channels) in XLA, BN + LeakyReLU fused (review-recommended)
    y = jax.lax.conv_general_dilated(
        x, params['conv0_w'], window_strides=(2, 2), padding='VALID',
        dimension_numbers=('NHWC', 'HWIO', 'NHWC'),
        preferred_element_type=jnp.float32)
    y = _leaky(y + params['conv0_b']).astype(ACT_DTYPE)
    y = jnp.pad(y, ((0, 0), (0, 0), (0, 2), (0, 0)))                # add wrap columns

    xr, h, w = maxpool_rowflat(y)
    xr = fire_chain(xr, params['fires'][0:2], h, w)
    xr, h, w = maxpool_rowflat(xr.reshape(b, h, w + 2, xr.shape[-1]))
    xr = fire_chain(xr, params['fires'][2:4], h, w)
    xr, h, w = maxpool_rowflat(xr.reshape(b, h, w + 2, xr.shape[-1]))
    xr = fire_chain(xr, params['fires'][4:6], h, w)
    xr = fire_chain(xr, params['fires'][6:8], h, w)
    # TODO(synk): nn.Dropout(p=0.5) applied as inference-mode identity.
    return classifier_head(xr, h, w, params['cls_w'], params['cls_b'], cls)


# --------------------------------------------------------------------------
# Pure-JAX f32 reference of the PyTorch forward (for a loose numeric check)
# --------------------------------------------------------------------------

def _ref_pool(x):
    bq, hh, ww, cc = x.shape
    oh, ow = _pool_out(hh), _pool_out(ww)
    rows = []
    for i in range(oh):
        cols = []
        for j in range(ow):
            win = x[:, 2 * i:min(2 * i + 3, hh), 2 * j:min(2 * j + 3, ww), :]
            cols.append(jnp.max(win, axis=(1, 2)))
        rows.append(jnp.stack(cols, axis=1))
    return jnp.stack(rows, axis=1)


def _ref_fire(x, f):
    mid = f['sq_w'].shape[1]
    s = _leaky(jnp.einsum('bhwc,cm->bhwm', x, f['sq_w'].astype(jnp.float32))
               + f['sq_b'][0])
    ew = f['exp_w'].astype(jnp.float32).reshape(3, 3, mid, -1)
    y = jax.lax.conv_general_dilated(s, ew, (1, 1), 'SAME',
                                     dimension_numbers=('NHWC', 'HWIO', 'NHWC'))
    return _leaky(y + f['exp_b'][0])


def reference_forward(params, x_nchw, cls):
    x = jnp.transpose(x_nchw, (0, 2, 3, 1)).astype(jnp.float32)
    y = jax.lax.conv_general_dilated(
        x, params['conv0_w'].astype(jnp.float32), (2, 2), 'VALID',
        dimension_numbers=('NHWC', 'HWIO', 'NHWC'))
    y = _leaky(y + params['conv0_b'])
    y = _ref_pool(y)
    y = _ref_fire(y, params['fires'][0]); y = _ref_fire(y, params['fires'][1])
    y = _ref_pool(y)
    y = _ref_fire(y, params['fires'][2]); y = _ref_fire(y, params['fires'][3])
    y = _ref_pool(y)
    for k in range(4, 8):
        y = _ref_fire(y, params['fires'][k])
    w = params['cls_w'].astype(jnp.float32)
    y = _leaky(jnp.einsum('bhwc,cn->bhwn', y, w) + params['cls_b'][0])
    return jnp.mean(y, axis=(1, 2))[:, :cls]


if __name__ == "__main__":
    key = jax.random.PRNGKey(0)
    cls = 16   # small class count for the smoke test (module default is 1000)
    params = init_params(jax.random.fold_in(key, 1), inc=3, cls=cls)
    # 33x33 -> conv s2: 16 -> pool: 8 -> pool: 4 -> pool: 2 -> avgpool(1)
    x = jax.random.normal(jax.random.fold_in(key, 2), (2, 3, 33, 33), jnp.float32)
    fwd = jax.jit(functools.partial(squeezenet_forward, cls=cls))
    out = jax.block_until_ready(fwd(params, x))
    assert out.shape == (2, cls), out.shape
    assert bool(jnp.all(jnp.isfinite(out)))
    # loose tolerance vs an f32 XLA reference (bf16 activations accumulate rounding)
    ref = jax.jit(functools.partial(reference_forward, cls=cls))(params, x)
    err = float(jnp.max(jnp.abs(out - ref)))
    scale = float(jnp.max(jnp.abs(ref)))
    assert err <= 0.15 * (1.0 + scale), (err, scale)
    print("KERNEL_OK")
</pallas_src>

<mosaic_0001>
module attributes {stable_mosaic.version = 11 : i64} {
  func.func @_maxpool_kernel(%arg0: i32, %arg1: i32, %arg2: memref<1x1x18x64xbf16, #tpu.memory_space<vmem>>, %arg3: memref<1x1x18x64xbf16, #tpu.memory_space<vmem>>, %arg4: memref<1x1x18x64xbf16, #tpu.memory_space<vmem>>, %arg5: memref<1x1x10x64xbf16, #tpu.memory_space<vmem>>) attributes {dimension_semantics = [#tpu.dimension_semantics<parallel>, #tpu.dimension_semantics<parallel>], iteration_bounds = array<i64: 2, 8>, scalar_prefetch = 0 : i64, scratch_operands = 0 : i64, tpu.core_type = #tpu.core_type<tc>, window_params = [{transform_indices = @transform_0, window_bounds = array<i64: 1, 1, 18, 64>}, {transform_indices = @transform_1, window_bounds = array<i64: 1, 1, 18, 64>}, {transform_indices = @transform_2, window_bounds = array<i64: 1, 1, 18, 64>}, {transform_indices = @transform_3, window_bounds = array<i64: 1, 1, 10, 64>}]} {
    %0 = tpu.iota {dimensions = array<i32: 0>} : vector<18x1xi32>
    %c16_i32 = arith.constant 16 : i32
    %1 = vector.broadcast %c16_i32 : i32 to vector<18x1xi32>
    %2 = arith.cmpi slt, %0, %1 : vector<18x1xi32>
    %c0 = arith.constant 0 : index
    %c0_0 = arith.constant 0 : index
    %c0_1 = arith.constant 0 : index
    %c0_2 = arith.constant 0 : index
    %3 = vector.load %arg2[%c0, %c0_0, %c0_1, %c0_2] : memref<1x1x18x64xbf16, #tpu.memory_space<vmem>>, vector<1x1x18x64xbf16>
    %4 = vector.shape_cast %3 : vector<1x1x18x64xbf16> to vector<18x64xbf16>
    %5 = arith.extf %4 : vector<18x64xbf16> to vector<18x64xf32>
    %cst = arith.constant -1.000000e+30 : f32
    %6 = vector.shape_cast %2 : vector<18x1xi1> to vector<18x1xi1>
    %7 = vector.broadcast %6 : vector<18x1xi1> to vector<18x64xi1>
    %8 = vector.broadcast %cst : f32 to vector<18x64xf32>
    %9 = arith.select %7, %5, %8 : vector<18x64xi1>, vector<18x64xf32>
    %c0_3 = arith.constant 0 : index
    %c0_4 = arith.constant 0 : index
    %c0_5 = arith.constant 0 : index
    %c0_6 = arith.constant 0 : index
    %10 = vector.load %arg3[%c0_3, %c0_4, %c0_5, %c0_6] : memref<1x1x18x64xbf16, #tpu.memory_space<vmem>>, vector<1x1x18x64xbf16>
    %11 = vector.shape_cast %10 : vector<1x1x18x64xbf16> to vector<18x64xbf16>
    %12 = arith.extf %11 : vector<18x64xbf16> to vector<18x64xf32>
    %cst_7 = arith.constant -1.000000e+30 : f32
    %13 = vector.shape_cast %2 : vector<18x1xi1> to vector<18x1xi1>
    %14 = vector.broadcast %13 : vector<18x1xi1> to vector<18x64xi1>
    %15 = vector.broadcast %cst_7 : f32 to vector<18x64xf32>
    %16 = arith.select %14, %12, %15 : vector<18x64xi1>, vector<18x64xf32>
    %c2_i32 = arith.constant 2 : i32
    %17 = arith.muli %c2_i32, %arg1 : i32
    %c2_i32_8 = arith.constant 2 : i32
    %18 = arith.addi %17, %c2_i32_8 : i32
    %c16_i32_9 = arith.constant 16 : i32
    %19 = arith.cmpi slt, %18, %c16_i32_9 : i32
    %c0_10 = arith.constant 0 : index
    %c0_11 = arith.constant 0 : index
    %c0_12 = arith.constant 0 : index
    %c0_13 = arith.constant 0 : index
    %20 = vector.load %arg4[%c0_10, %c0_11, %c0_12, %c0_13] : memref<1x1x18x64xbf16, #tpu.memory_space<vmem>>, vector<1x1x18x64xbf16>
    %21 = vector.shape_cast %20 : vector<1x1x18x64xbf16> to vector<18x64xbf16>
    %22 = arith.extf %21 : vector<18x64xbf16> to vector<18x64xf32>
    %cst_14 = arith.constant -1.000000e+30 : f32
    %23 = vector.shape_cast %2 : vector<18x1xi1> to vector<18x1xi1>
    %24 = vector.broadcast %23 : vector<18x1xi1> to vector<18x64xi1>
    %25 = vector.broadcast %cst_14 : f32 to vector<18x64xf32>
    %26 = arith.select %24, %22, %25 : vector<18x64xi1>, vector<18x64xf32>
    %cst_15 = arith.constant -1.000000e+30 : f32
    %27 = vector.broadcast %cst_15 : f32 to vector<18x64xf32>
    %28 = arith.select %19, %26, %27 : vector<18x64xf32>
    %29 = arith.maximumf %9, %16 : vector<18x64xf32>
    %30 = arith.maximumf %29, %28 : vector<18x64xf32>
    %31 = vector.extract_strided_slice %30 {offsets = [0, 0], sizes = [16, 64], strides = [1, 1]} : vector<18x64xf32> to vector<16x64xf32>
    %32 = vector.extract_strided_slice %30 {offsets = [1, 0], sizes = [16, 64], strides = [1, 1]} : vector<18x64xf32> to vector<16x64xf32>
    %33 = arith.maximumf %31, %32 : vector<16x64xf32>
    %34 = vector.extract_strided_slice %30 {offsets = [2, 0], sizes = [16, 64], strides = [1, 1]} : vector<18x64xf32> to vector<16x64xf32>
    %35 = arith.maximumf %33, %34 : vector<16x64xf32>
    %36 = tpu.iota {dimensions = array<i32: 0>} : vector<8x16xi32>
    %37 = tpu.iota {dimensions = array<i32: 1>} : vector<8x16xi32>
    %c2_i32_16 = arith.constant 2 : i32
    %38 = vector.broadcast %c2_i32_16 : i32 to vector<8x16xi32>
    %39 = arith.muli %38, %36 : vector<8x16xi32>
    %40 = arith.cmpi eq, %37, %39 : vector<8x16xi32>
    %41 = arith.extui %40 : vector<8x16xi1> to vector<8x16xi32>
    %42 = arith.sitofp %41 : vector<8x16xi32> to vector<8x16xf32>
    %cst_17 = arith.constant dense<0.000000e+00> : vector<8x64xf32>
    %43 = tpu.matmul %42, %35, %cst_17 {dimension_numbers = #tpu.dot_dimension_numbers<[1], [0], [0], [1], [0, 0, 1, 1], [], []>} : vector<8x16xf32>, vector<16x64xf32>, vector<8x64xf32> -> vector<8x64xf32>
    %44 = arith.truncf %43 : vector<8x64xf32> to vector<8x64xbf16>
    %c0_18 = arith.constant 0 : index
    %c0_19 = arith.constant 0 : index
    %c0_20 = arith.constant 0 : index
    %c0_21 = arith.constant 0 : index
    %45 = vector.load %arg5[%c0_18, %c0_19, %c0_20, %c0_21] : memref<1x1x10x64xbf16, #tpu.memory_space<vmem>>, vector<1x1x8x64xbf16>
    %46 = vector.shape_cast %45 : vector<1x1x8x64xbf16> to vector<8x64xbf16>
    %47 = vector.shape_cast %44 : vector<8x64xbf16> to vector<1x1x8x64xbf16>
    tpu.vector_store %arg5[%c0_18, %c0_19, %c0_20, %c0_21], %47 {strides = array<i32>} : memref<1x1x10x64xbf16, #tpu.memory_space<vmem>>, vector<1x1x8x64xbf16>,
    %cst_22 = arith.constant 0.000000e+00 : bf16
    %48 = vector.broadcast %cst_22 : bf16 to vector<2x64xbf16>
    %c0_23 = arith.constant 0 : index
    %c0_24 = arith.constant 0 : index
    %c8 = arith.constant 8 : index
    %c0_25 = arith.constant 0 : index
    %49 = vector.load %arg5[%c0_23, %c0_24, %c8, %c0_25] : memref<1x1x10x64xbf16, #tpu.memory_space<vmem>>, vector<1x1x2x64xbf16>
    %50 = vector.shape_cast %49 : vector<1x1x2x64xbf16> to vector<2x64xbf16>
    %51 = vector.shape_cast %48 : vector<2x64xbf16> to vector<1x1x2x64xbf16>
    tpu.vector_store %arg5[%c0_23, %c0_24, %c8, %c0_25], %51 {strides = array<i32>} : memref<1x1x10x64xbf16, #tpu.memory_space<vmem>>, vector<1x1x2x64xbf16>,
    return
  }
  func.func @transform_0(%arg0: i32, %arg1: i32) -> (i32, i32, i32, i32) {
    %c2_i32 = arith.constant 2 : i32
    %0 = arith.muli %c2_i32, %arg1 : i32
    %c0_i32 = arith.constant 0 : i32
    %c0_i32_0 = arith.constant 0 : i32
    %c0_i32_1 = arith.constant 0 : i32
    return %arg0, %0, %c0_i32, %c0_i32_0 : i32, i32, i32, i32
  }
  func.func @transform_1(%arg0: i32, %arg1: i32) -> (i32, i32, i32, i32) {
    %c2_i32 = arith.constant 2 : i32
    %0 = arith.muli %c2_i32, %arg1 : i32
    %c1_i32 = arith.constant 1 : i32
    %1 = arith.addi %0, %c1_i32 : i32
    %c0_i32 = arith.constant 0 : i32
    %c0_i32_0 = arith.constant 0 : i32
    %c0_i32_1 = arith.constant 0 : i32
    return %arg0, %1, %c0_i32, %c0_i32_0 : i32, i32, i32, i32
  }
  func.func @transform_2(%arg0: i32, %arg1: i32) -> (i32, i32, i32, i32) {
    %c2_i32 = arith.constant 2 : i32
    %0 = arith.muli %c2_i32, %arg1 : i32
    %c2_i32_0 = arith.constant 2 : i32
    %1 = arith.addi %0, %c2_i32_0 : i32
    %c15_i32 = arith.constant 15 : i32
    %2 = arith.minsi %1, %c15_i32 : i32
    %c0_i32 = arith.constant 0 : i32
    %c0_i32_1 = arith.constant 0 : i32
    %c0_i32_2 = arith.constant 0 : i32
    return %arg0, %2, %c0_i32, %c0_i32_1 : i32, i32, i32, i32
  }
  func.func @transform_3(%arg0: i32, %arg1: i32) -> (i32, i32, i32, i32) {
    %c0_i32 = arith.constant 0 : i32
    %c0_i32_0 = arith.constant 0 : i32
    %c0_i32_1 = arith.constant 0 : i32
    return %arg0, %arg1, %c0_i32, %c0_i32_0 : i32, i32, i32, i32
  }
}

module attributes {stable_mosaic.version = 11 : i64} {
  func.func @_fire_chain_kernel(%arg0: i32, %arg1: memref<1x80x64xbf16, #tpu.memory_space<vmem>>, %arg2: memref<64x16xbf16, #tpu.memory_space<vmem>>, %arg3: memref<1x16xf32, #tpu.memory_space<vmem>>, %arg4: memref<144x128xbf16, #tpu.memory_space<vmem>>, %arg5: memref<1x128xf32, #tpu.memory_space<vmem>>, %arg6: memref<128x16xbf16, #tpu.memory_space<vmem>>, %arg7: memref<1x16xf32, #tpu.memory_space<vmem>>, %arg8: memref<144x128xbf16, #tpu.memory_space<vmem>>, %arg9: memref<1x128xf32, #tpu.memory_space<vmem>>, %arg10: memref<1x80x128xbf16, #tpu.memory_space<vmem>>, %arg11: memref<112x16xbf16, #tpu.memory_space<vmem>>) attributes {dimension_semantics = [#tpu.dimension_semantics<parallel>], iteration_bounds = array<i64: 2>, scalar_prefetch = 0 : i64, scratch_operands = 1 : i64, tpu.core_type = #tpu.core_type<tc>, window_params = [{transform_indices = @transform_0, window_bounds = array<i64: 1, 80, 64>}, {pipeline_mode = #tpu.pipeline_mode<synchronous>, transform_indices = @transform_1, window_bounds = array<i64: 64, 16>}, {pipeline_mode = #tpu.pipeline_mode<synchronous>, transform_indices = @transform_2, window_bounds = array<i64: 1, 16>}, {pipeline_mode = #tpu.pipeline_mode<synchronous>, transform_indices = @transform_3, window_bounds = array<i64: 144, 128>}, {pipeline_mode = #tpu.pipeline_mode<synchronous>, transform_indices = @transform_4, window_bounds = array<i64: 1, 128>}, {pipeline_mode = #tpu.pipeline_mode<synchronous>, transform_indices = @transform_5, window_bounds = array<i64: 128, 16>}, {pipeline_mode = #tpu.pipeline_mode<synchronous>, transform_indices = @transform_6, window_bounds = array<i64: 1, 16>}, {pipeline_mode = #tpu.pipeline_mode<synchronous>, transform_indices = @transform_7, window_bounds = array<i64: 144, 128>}, {pipeline_mode = #tpu.pipeline_mode<synchronous>, transform_indices = @transform_8, window_bounds = array<i64: 1, 128>}, {transform_indices = @transform_9, window_bounds = array<i64: 1, 80, 128>}]} {
    %0 = tpu.iota {dimensions = array<i32: 0>} : vector<80x1xi32>
    %1 = arith.sitofp %0 : vector<80x1xi32> to vector<80x1xf32>
    %cst = arith.constant 5.000000e-01 : f32
    %2 = vector.broadcast %cst : f32 to vector<80x1xf32>
    %3 = arith.addf %1, %2 : vector<80x1xf32>
    %cst_0 = arith.constant 1.000000e-01 : f32
    %4 = vector.broadcast %cst_0 : f32 to vector<80x1xf32>
    %5 = arith.mulf %3, %4 : vector<80x1xf32>
    %6 = math.floor %5 : vector<80x1xf32>
    %cst_1 = arith.constant 1.000000e+01 : f32
    %7 = vector.broadcast %cst_1 : f32 to vector<80x1xf32>
    %8 = arith.mulf %6, %7 : vector<80x1xf32>
    %9 = arith.subf %1, %8 : vector<80x1xf32>
    %cst_2 = arith.constant 7.500000e+00 : f32
    %10 = vector.broadcast %cst_2 : f32 to vector<80x1xf32>
    %11 = arith.cmpf olt, %9, %10 : vector<80x1xf32>
    %c0 = arith.constant 0 : index
    %c0_3 = arith.constant 0 : index
    %c0_4 = arith.constant 0 : index
    %12 = vector.load %arg1[%c0, %c0_3, %c0_4] : memref<1x80x64xbf16, #tpu.memory_space<vmem>>, vector<1x80x64xbf16>
    %13 = vector.shape_cast %12 : vector<1x80x64xbf16> to vector<80x64xbf16>
    %c0_5 = arith.constant 0 : index
    %c0_6 = arith.constant 0 : index
    %14 = vector.load %arg2[%c0_5, %c0_6] : memref<64x16xbf16, #tpu.memory_space<vmem>>, vector<64x16xbf16>
    %cst_7 = arith.constant dense<0.000000e+00> : vector<80x16xf32>
    %15 = tpu.matmul %13, %14, %cst_7 {dimension_numbers = #tpu.dot_dimension_numbers<[1], [0], [0], [1], [0, 0, 1, 1], [], []>} : vector<80x64xbf16>, vector<64x16xbf16>, vector<80x16xf32> -> vector<80x16xf32>
    %c0_8 = arith.constant 0 : index
    %c0_9 = arith.constant 0 : index
    %16 = vector.load %arg3[%c0_8, %c0_9] : memref<1x16xf32, #tpu.memory_space<vmem>>, vector<1x16xf32>
    %17 = vector.broadcast %16 : vector<1x16xf32> to vector<80x16xf32>
    %18 = arith.addf %15, %17 : vector<80x16xf32>
    %cst_10 = arith.constant 0.000000e+00 : f32
    %19 = vector.broadcast %cst_10 : f32 to vector<80x16xf32>
    %20 = arith.cmpf oge, %18, %19 : vector<80x16xf32>
    %cst_11 = arith.constant 2.000000e-01 : f32
    %21 = vector.broadcast %cst_11 : f32 to vector<80x16xf32>
    %22 = arith.mulf %18, %21 : vector<80x16xf32>
    %23 = arith.select %20, %18, %22 : vector<80x16xi1>, vector<80x16xf32>
    %cst_12 = arith.constant 0.000000e+00 : f32
    %24 = vector.shape_cast %11 : vector<80x1xi1> to vector<80x1xi1>
    %25 = vector.broadcast %24 : vector<80x1xi1> to vector<80x16xi1>
    %26 = vector.broadcast %cst_12 : f32 to vector<80x16xf32>
    %27 = arith.select %25, %23, %26 : vector<80x16xi1>, vector<80x16xf32>
    %cst_13 = arith.constant 0.000000e+00 : bf16
    %28 = vector.broadcast %cst_13 : bf16 to vector<16x16xbf16>
    %c0_14 = arith.constant 0 : index
    %c0_15 = arith.constant 0 : index
    %29 = vector.load %arg11[%c0_14, %c0_15] : memref<112x16xbf16, #tpu.memory_space<vmem>>, vector<16x16xbf16>
    tpu.vector_store %arg11[%c0_14, %c0_15], %28 {strides = array<i32>} : memref<112x16xbf16, #tpu.memory_space<vmem>>, vector<16x16xbf16>,
    %30 = arith.truncf %27 : vector<80x16xf32> to vector<80x16xbf16>
    %c16 = arith.constant 16 : index
    %c0_16 = arith.constant 0 : index
    %31 = vector.load %arg11[%c16, %c0_16] : memref<112x16xbf16, #tpu.memory_space<vmem>>, vector<80x16xbf16>
    tpu.vector_store %arg11[%c16, %c0_16], %30 {strides = array<i32>} : memref<112x16xbf16, #tpu.memory_space<vmem>>, vector<80x16xbf16>,
    %cst_17 = arith.constant 0.000000e+00 : bf16
    %32 = vector.broadcast %cst_17 : bf16 to vector<16x16xbf16>
    %c96 = arith.constant 96 : index
    %c0_18 = arith.constant 0 : index
    %33 = vector.load %arg11[%c96, %c0_18] : memref<112x16xbf16, #tpu.memory_space<vmem>>, vector<16x16xbf16>
    tpu.vector_store %arg11[%c96, %c0_18], %32 {strides = array<i32>} : memref<112x16xbf16, #tpu.memory_space<vmem>>, vector<16x16xbf16>,
    %c5 = arith.constant 5 : index
    %c0_19 = arith.constant 0 : index
    %34 = vector.load %arg11[%c5, %c0_19] : memref<112x16xbf16, #tpu.memory_space<vmem>>, vector<80x16xbf16>
    %c6 = arith.constant 6 : index
    %c0_20 = arith.constant 0 : index
    %35 = vector.load %arg11[%c6, %c0_20] : memref<112x16xbf16, #tpu.memory_space<vmem>>, vector<80x16xbf16>
    %c7 = arith.constant 7 : index
    %c0_21 = arith.constant 0 : index
    %36 = vector.load %arg11[%c7, %c0_21] : memref<112x16xbf16, #tpu.memory_space<vmem>>, vector<80x16xbf16>
    %c15 = arith.constant 15 : index
    %c0_22 = arith.constant 0 : index
    %37 = vector.load %arg11[%c15, %c0_22] : memref<112x16xbf16, #tpu.memory_space<vmem>>, vector<80x16xbf16>
    %c16_23 = arith.constant 16 : index
    %c0_24 = arith.constant 0 : index
    %38 = vector.load %arg11[%c16_23, %c0_24] : memref<112x16xbf16, #tpu.memory_space<vmem>>, vector<80x16xbf16>
    %c17 = arith.constant 17 : index
    %c0_25 = arith.constant 0 : index
    %39 = vector.load %arg11[%c17, %c0_25] : memref<112x16xbf16, #tpu.memory_space<vmem>>, vector<80x16xbf16>
    %c25 = arith.constant 25 : index
    %c0_26 = arith.constant 0 : index
    %40 = vector.load %arg11[%c25, %c0_26] : memref<112x16xbf16, #tpu.memory_space<vmem>>, vector<80x16xbf16>
    %c26 = arith.constant 26 : index
    %c0_27 = arith.constant 0 : index
    %41 = vector.load %arg11[%c26, %c0_27] : memref<112x16xbf16, #tpu.memory_space<vmem>>, vector<80x16xbf16>
    %c27 = arith.constant 27 : index
    %c0_28 = arith.constant 0 : index
    %42 = vector.load %arg11[%c27, %c0_28] : memref<112x16xbf16, #tpu.memory_space<vmem>>, vector<80x16xbf16>
    %43 = tpu.concatenate %34, %35, %36, %37, %38, %39, %40, %41, %42 in 1 : vector<80x16xbf16>, vector<80x16xbf16>, vector<80x16xbf16>, vector<80x16xbf16>, vector<80x16xbf16>, vector<80x16xbf16>, vector<80x16xbf16>, vector<80x16xbf16>, vector<80x16xbf16> -> vector<80x144xbf16>
    %c0_29 = arith.constant 0 : index
    %c0_30 = arith.constant 0 : index
    %44 = vector.load %arg4[%c0_29, %c0_30] : memref<144x128xbf16, #tpu.memory_space<vmem>>, vector<144x128xbf16>
    %cst_31 = arith.constant dense<0.000000e+00> : vector<80x128xf32>
    %45 = tpu.matmul %43, %44, %cst_31 {dimension_numbers = #tpu.dot_dimension_numbers<[1], [0], [0], [1], [0, 0, 1, 1], [], []>} : vector<80x144xbf16>, vector<144x128xbf16>, vector<80x128xf32> -> vector<80x128xf32>
    %c0_32 = arith.constant 0 : index
    %c0_33 = arith.constant 0 : index
    %46 = vector.load %arg5[%c0_32, %c0_33] : memref<1x128xf32, #tpu.memory_space<vmem>>, vector<1x128xf32>
    %47 = vector.broadcast %46 : vector<1x128xf32> to vector<80x128xf32>
    %48 = arith.addf %45, %47 : vector<80x128xf32>
    %cst_34 = arith.constant 0.000000e+00 : f32
    %49 = vector.broadcast %cst_34 : f32 to vector<80x128xf32>
    %50 = arith.cmpf oge, %48, %49 : vector<80x128xf32>
    %cst_35 = arith.constant 2.000000e-01 : f32
    %51 = vector.broadcast %cst_35 : f32 to vector<80x128xf32>
    %52 = arith.mulf %48, %51 : vector<80x128xf32>
    %53 = arith.select %50, %48, %52 : vector<80x128xi1>, vector<80x128xf32>
    %54 = arith.truncf %53 : vector<80x128xf32> to vector<80x128xbf16>
    %c0_36 = arith.constant 0 : index
    %c0_37 = arith.constant 0 : index
    %55 = vector.load %arg6[%c0_36, %c0_37] : memref<128x16xbf16, #tpu.memory_space<vmem>>, vector<128x16xbf16>
    %cst_38 = arith.constant dense<0.000000e+00> : vector<80x16xf32>
    %56 = tpu.matmul %54, %55, %cst_38 {dimension_numbers = #tpu.dot_dimension_numbers<[1], [0], [0], [1], [0, 0, 1, 1], [], []>} : vector<80x128xbf16>, vector<128x16xbf16>, vector<80x16xf32> -> vector<80x16xf32>
    %c0_39 = arith.constant 0 : index
    %c0_40 = arith.constant 0 : index
    %57 = vector.load %arg7[%c0_39, %c0_40] : memref<1x16xf32, #tpu.memory_space<vmem>>, vector<1x16xf32>
    %58 = vector.broadcast %57 : vector<1x16xf32> to vector<80x16xf32>
    %59 = arith.addf %56, %58 : vector<80x16xf32>
    %cst_41 = arith.constant 0.000000e+00 : f32
    %60 = vector.broadcast %cst_41 : f32 to vector<80x16xf32>
    %61 = arith.cmpf oge, %59, %60 : vector<80x16xf32>
    %cst_42 = arith.constant 2.000000e-01 : f32
    %62 = vector.broadcast %cst_42 : f32 to vector<80x16xf32>
    %63 = arith.mulf %59, %62 : vector<80x16xf32>
    %64 = arith.select %61, %59, %63 : vector<80x16xi1>, vector<80x16xf32>
    %cst_43 = arith.constant 0.000000e+00 : f32
    %65 = vector.shape_cast %11 : vector<80x1xi1> to vector<80x1xi1>
    %66 = vector.broadcast %65 : vector<80x1xi1> to vector<80x16xi1>
    %67 = vector.broadcast %cst_43 : f32 to vector<80x16xf32>
    %68 = arith.select %66, %64, %67 : vector<80x16xi1>, vector<80x16xf32>
    %cst_44 = arith.constant 0.000000e+00 : bf16
    %69 = vector.broadcast %cst_44 : bf16 to vector<16x16xbf16>
    %c0_45 = arith.constant 0 : index
    %c0_46 = arith.constant 0 : index
    %70 = vector.load %arg11[%c0_45, %c0_46] : memref<112x16xbf16, #tpu.memory_space<vmem>>, vector<16x16xbf16>
    tpu.vector_store %arg11[%c0_45, %c0_46], %69 {strides = array<i32>} : memref<112x16xbf16, #tpu.memory_space<vmem>>, vector<16x16xbf16>,
    %71 = arith.truncf %68 : vector<80x16xf32> to vector<80x16xbf16>
    %c16_47 = arith.constant 16 : index
    %c0_48 = arith.constant 0 : index
    %72 = vector.load %arg11[%c16_47, %c0_48] : memref<112x16xbf16, #tpu.memory_space<vmem>>, vector<80x16xbf16>
    tpu.vector_store %arg11[%c16_47, %c0_48], %71 {strides = array<i32>} : memref<112x16xbf16, #tpu.memory_space<vmem>>, vector<80x16xbf16>,
    %cst_49 = arith.constant 0.000000e+00 : bf16
    %73 = vector.broadcast %cst_49 : bf16 to vector<16x16xbf16>
    %c96_50 = arith.constant 96 : index
    %c0_51 = arith.constant 0 : index
    %74 = vector.load %arg11[%c96_50, %c0_51] : memref<112x16xbf16, #tpu.memory_space<vmem>>, vector<16x16xbf16>
    tpu.vector_store %arg11[%c96_50, %c0_51], %73 {strides = array<i32>} : memref<112x16xbf16, #tpu.memory_space<vmem>>, vector<16x16xbf16>,
    %c5_52 = arith.constant 5 : index
    %c0_53 = arith.constant 0 : index
    %75 = vector.load %arg11[%c5_52, %c0_53] : memref<112x16xbf16, #tpu.memory_space<vmem>>, vector<80x16xbf16>
    %c6_54 = arith.constant 6 : index
    %c0_55 = arith.constant 0 : index
    %76 = vector.load %arg11[%c6_54, %c0_55] : memref<112x16xbf16, #tpu.memory_space<vmem>>, vector<80x16xbf16>
    %c7_56 = arith.constant 7 : index
    %c0_57 = arith.constant 0 : index
    %77 = vector.load %arg11[%c7_56, %c0_57] : memref<112x16xbf16, #tpu.memory_space<vmem>>, vector<80x16xbf16>
    %c15_58 = arith.constant 15 : index
    %c0_59 = arith.constant 0 : index
    %78 = vector.load %arg11[%c15_58, %c0_59] : memref<112x16xbf16, #tpu.memory_space<vmem>>, vector<80x16xbf16>
    %c16_60 = arith.constant 16 : index
    %c0_61 = arith.constant 0 : index
    %79 = vector.load %arg11[%c16_60, %c0_61] : memref<112x16xbf16, #tpu.memory_space<vmem>>, vector<80x16xbf16>
    %c17_62 = arith.constant 17 : index
    %c0_63 = arith.constant 0 : index
    %80 = vector.load %arg11[%c17_62, %c0_63] : memref<112x16xbf16, #tpu.memory_space<vmem>>, vector<80x16xbf16>
    %c25_64 = arith.constant 25 : index
    %c0_65 = arith.constant 0 : index
    %81 = vector.load %arg11[%c25_64, %c0_65] : memref<112x16xbf16, #tpu.memory_space<vmem>>, vector<80x16xbf16>
    %c26_66 = arith.constant 26 : index
    %c0_67 = arith.constant 0 : index
    %82 = vector.load %arg11[%c26_66, %c0_67] : memref<112x16xbf16, #tpu.memory_space<vmem>>, vector<80x16xbf16>
    %c27_68 = arith.constant 27 : index
    %c0_69 = arith.constant 0 : index
    %83 = vector.load %arg11[%c27_68, %c0_69] : memref<112x16xbf16, #tpu.memory_space<vmem>>, vector<80x16xbf16>
    %84 = tpu.concatenate %75, %76, %77, %78, %79, %80, %81, %82, %83 in 1 : vector<80x16xbf16>, vector<80x16xbf16>, vector<80x16xbf16>, vector<80x16xbf16>, vector<80x16xbf16>, vector<80x16xbf16>, vector<80x16xbf16>, vector<80x16xbf16>, vector<80x16xbf16> -> vector<80x144xbf16>
    %c0_70 = arith.constant 0 : index
    %c0_71 = arith.constant 0 : index
    %85 = vector.load %arg8[%c0_70, %c0_71] : memref<144x128xbf16, #tpu.memory_space<vmem>>, vector<144x128xbf16>
    %cst_72 = arith.constant dense<0.000000e+00> : vector<80x128xf32>
    %86 = tpu.matmul %84, %85, %cst_72 {dimension_numbers = #tpu.dot_dimension_numbers<[1], [0], [0], [1], [0, 0, 1, 1], [], []>} : vector<80x144xbf16>, vector<144x128xbf16>, vector<80x128xf32> -> vector<80x128xf32>
    %c0_73 = arith.constant 0 : index
    %c0_74 = arith.constant 0 : index
    %87 = vector.load %arg9[%c0_73, %c0_74] : memref<1x128xf32, #tpu.memory_space<vmem>>, vector<1x128xf32>
    %88 = vector.broadcast %87 : vector<1x128xf32> to vector<80x128xf32>
    %89 = arith.addf %86, %88 : vector<80x128xf32>
    %cst_75 = arith.constant 0.000000e+00 : f32
    %90 = vector.broadcast %cst_75 : f32 to vector<80x128xf32>
    %91 = arith.cmpf oge, %89, %90 : vector<80x128xf32>
    %cst_76 = arith.constant 2.000000e-01 : f32
    %92 = vector.broadcast %cst_76 : f32 to vector<80x128xf32>
    %93 = arith.mulf %89, %92 : vector<80x128xf32>
    %94 = arith.select %91, %89, %93 : vector<80x128xi1>, vector<80x128xf32>
    %95 = arith.truncf %94 : vector<80x128xf32> to vector<80x128xbf16>
    %c0_77 = arith.constant 0 : index
    %c0_78 = arith.constant 0 : index
    %c0_79 = arith.constant 0 : index
    %96 = vector.load %arg10[%c0_77, %c0_78, %c0_79] : memref<1x80x128xbf16, #tpu.memory_space<vmem>>, vector<1x80x128xbf16>
    %97 = vector.shape_cast %96 : vector<1x80x128xbf16> to vector<80x128xbf16>
    %98 = vector.shape_cast %95 : vector<80x128xbf16> to vector<1x80x128xbf16>
    tpu.vector_store %arg10[%c0_77, %c0_78, %c0_79], %98 {strides = array<i32>} : memref<1x80x128xbf16, #tpu.memory_space<vmem>>, vector<1x80x128xbf16>,
    return
  }
  func.func @transform_0(%arg0: i32) -> (i32, i32, i32) {
    %c0_i32 = arith.constant 0 : i32
    %c0_i32_0 = arith.constant 0 : i32
    %c0_i32_1 = arith.constant 0 : i32
    return %arg0, %c0_i32, %c0_i32_0 : i32, i32, i32
  }
  func.func @transform_1(%arg0: i32) -> (i32, i32) {
    %c0_i32 = arith.constant 0 : i32
    %c0_i32_0 = arith.constant 0 : i32
    %c0_i32_1 = arith.constant 0 : i32
    return %c0_i32, %c0_i32_0 : i32, i32
  }
  func.func @transform_2(%arg0: i32) -> (i32, i32) {
    %c0_i32 = arith.constant 0 : i32
    %c0_i32_0 = arith.constant 0 : i32
    %c0_i32_1 = arith.constant 0 : i32
    return %c0_i32, %c0_i32_0 : i32, i32
  }
  func.func @transform_3(%arg0: i32) -> (i32, i32) {
    %c0_i32 = arith.constant 0 : i32
    %c0_i32_0 = arith.constant 0 : i32
    %c0_i32_1 = arith.constant 0 : i32
    return %c0_i32, %c0_i32_0 : i32, i32
  }
  func.func @transform_4(%arg0: i32) -> (i32, i32) {
    %c0_i32 = arith.constant 0 : i32
    %c0_i32_0 = arith.constant 0 : i32
    %c0_i32_1 = arith.constant 0 : i32
    return %c0_i32, %c0_i32_0 : i32, i32
  }
  func.func @transform_5(%arg0: i32) -> (i32, i32) {
    %c0_i32 = arith.constant 0 : i32
    %c0_i32_0 = arith.constant 0 : i32
    %c0_i32_1 = arith.constant 0 : i32
    return %c0_i32, %c0_i32_0 : i32, i32
  }
  func.func @transform_6(%arg0: i32) -> (i32, i32) {
    %c0_i32 = arith.constant 0 : i32
    %c0_i32_0 = arith.constant 0 : i32
    %c0_i32_1 = arith.constant 0 : i32
    return %c0_i32, %c0_i32_0 : i32, i32
  }
  func.func @transform_7(%arg0: i32) -> (i32, i32) {
    %c0_i32 = arith.constant 0 : i32
    %c0_i32_0 = arith.constant 0 : i32
    %c0_i32_1 = arith.constant 0 : i32
    return %c0_i32, %c0_i32_0 : i32, i32
  }
  func.func @transform_8(%arg0: i32) -> (i32, i32) {
    %c0_i32 = arith.constant 0 : i32
    %c0_i32_0 = arith.constant 0 : i32
    %c0_i32_1 = arith.constant 0 : i32
    return %c0_i32, %c0_i32_0 : i32, i32
  }
  func.func @transform_9(%arg0: i32) -> (i32, i32, i32) {
    %c0_i32 = arith.constant 0 : i32
    %c0_i32_0 = arith.constant 0 : i32
    %c0_i32_1 = arith.constant 0 : i32
    return %arg0, %c0_i32, %c0_i32_0 : i32, i32, i32
  }
}

module attributes {stable_mosaic.version = 11 : i64} {
  func.func @_maxpool_kernel(%arg0: i32, %arg1: i32, %arg2: memref<1x1x10x128xbf16, #tpu.memory_space<vmem>>, %arg3: memref<1x1x10x128xbf16, #tpu.memory_space<vmem>>, %arg4: memref<1x1x10x128xbf16, #tpu.memory_space<vmem>>, %arg5: memref<1x1x6x128xbf16, #tpu.memory_space<vmem>>) attributes {dimension_semantics = [#tpu.dimension_semantics<parallel>, #tpu.dimension_semantics<parallel>], iteration_bounds = array<i64: 2, 4>, scalar_prefetch = 0 : i64, scratch_operands = 0 : i64, tpu.core_type = #tpu.core_type<tc>, window_params = [{transform_indices = @transform_0, window_bounds = array<i64: 1, 1, 10, 128>}, {transform_indices = @transform_1, window_bounds = array<i64: 1, 1, 10, 128>}, {transform_indices = @transform_2, window_bounds = array<i64: 1, 1, 10, 128>}, {transform_indices = @transform_3, window_bounds = array<i64: 1, 1, 6, 128>}]} {
    %0 = tpu.iota {dimensions = array<i32: 0>} : vector<10x1xi32>
    %c8_i32 = arith.constant 8 : i32
    %1 = vector.broadcast %c8_i32 : i32 to vector<10x1xi32>
    %2 = arith.cmpi slt, %0, %1 : vector<10x1xi32>
    %c0 = arith.constant 0 : index
    %c0_0 = arith.constant 0 : index
    %c0_1 = arith.constant 0 : index
    %c0_2 = arith.constant 0 : index
    %3 = vector.load %arg2[%c0, %c0_0, %c0_1, %c0_2] : memref<1x1x10x128xbf16, #tpu.memory_space<vmem>>, vector<1x1x10x128xbf16>
    %4 = vector.shape_cast %3 : vector<1x1x10x128xbf16> to vector<10x128xbf16>
    %5 = arith.extf %4 : vector<10x128xbf16> to vector<10x128xf32>
    %cst = arith.constant -1.000000e+30 : f32
    %6 = vector.shape_cast %2 : vector<10x1xi1> to vector<10x1xi1>
    %7 = vector.broadcast %6 : vector<10x1xi1> to vector<10x128xi1>
    %8 = vector.broadcast %cst : f32 to vector<10x128xf32>
    %9 = arith.select %7, %5, %8 : vector<10x128xi1>, vector<10x128xf32>
    %c0_3 = arith.constant 0 : index
    %c0_4 = arith.constant 0 : index
    %c0_5 = arith.constant 0 : index
    %c0_6 = arith.constant 0 : index
    %10 = vector.load %arg3[%c0_3, %c0_4, %c0_5, %c0_6] : memref<1x1x10x128xbf16, #tpu.memory_space<vmem>>, vector<1x1x10x128xbf16>
    %11 = vector.shape_cast %10 : vector<1x1x10x128xbf16> to vector<10x128xbf16>
    %12 = arith.extf %11 : vector<10x128xbf16> to vector<10x128xf32>
    %cst_7 = arith.constant -1.000000e+30 : f32
    %13 = vector.shape_cast %2 : vector<10x1xi1> to vector<10x1xi1>
    %14 = vector.broadcast %13 : vector<10x1xi1> to vector<10x128xi1>
    %15 = vector.broadcast %cst_7 : f32 to vector<10x128xf32>
    %16 = arith.select %14, %12, %15 : vector<10x128xi1>, vector<10x128xf32>
    %c2_i32 = arith.constant 2 : i32
    %17 = arith.muli %c2_i32, %arg1 : i32
    %c2_i32_8 = arith.constant 2 : i32
    %18 = arith.addi %17, %c2_i32_8 : i32
    %c8_i32_9 = arith.constant 8 : i32
    %19 = arith.cmpi slt, %18, %c8_i32_9 : i32
    %c0_10 = arith.constant 0 : index
    %c0_11 = arith.constant 0 : index
    %c0_12 = arith.constant 0 : index
    %c0_13 = arith.constant 0 : index
    %20 = vector.load %arg4[%c0_10, %c0_11, %c0_12, %c0_13] : memref<1x1x10x128xbf16, #tpu.memory_space<vmem>>, vector<1x1x10x128xbf16>
    %21 = vector.shape_cast %20 : vector<1x1x10x128xbf16> to vector<10x128xbf16>
    %22 = arith.extf %21 : vector<10x128xbf16> to vector<10x128xf32>
    %cst_14 = arith.constant -1.000000e+30 : f32
    %23 = vector.shape_cast %2 : vector<10x1xi1> to vector<10x1xi1>
    %24 = vector.broadcast %23 : vector<10x1xi1> to vector<10x128xi1>
    %25 = vector.broadcast %cst_14 : f32 to vector<10x128xf32>
    %26 = arith.select %24, %22, %25 : vector<10x128xi1>, vector<10x128xf32>
    %cst_15 = arith.constant -1.000000e+30 : f32
    %27 = vector.broadcast %cst_15 : f32 to vector<10x128xf32>
    %28 = arith.select %19, %26, %27 : vector<10x128xf32>
    %29 = arith.maximumf %9, %16 : vector<10x128xf32>
    %30 = arith.maximumf %29, %28 : vector<10x128xf32>
    %31 = vector.extract_strided_slice %30 {offsets = [0, 0], sizes = [8, 128], strides = [1, 1]} : vector<10x128xf32> to vector<8x128xf32>
    %32 = vector.extract_strided_slice %30 {offsets = [1, 0], sizes = [8, 128], strides = [1, 1]} : vector<10x128xf32> to vector<8x128xf32>
    %33 = arith.maximumf %31, %32 : vector<8x128xf32>
    %34 = vector.extract_strided_slice %30 {offsets = [2, 0], sizes = [8, 128], strides = [1, 1]} : vector<10x128xf32> to vector<8x128xf32>
    %35 = arith.maximumf %33, %34 : vector<8x128xf32>
    %36 = tpu.iota {dimensions = array<i32: 0>} : vector<4x8xi32>
    %37 = tpu.iota {dimensions = array<i32: 1>} : vector<4x8xi32>
    %c2_i32_16 = arith.constant 2 : i32
    %38 = vector.broadcast %c2_i32_16 : i32 to vector<4x8xi32>
    %39 = arith.muli %38, %36 : vector<4x8xi32>
    %40 = arith.cmpi eq, %37, %39 : vector<4x8xi32>
    %41 = arith.extui %40 : vector<4x8xi1> to vector<4x8xi32>
    %42 = arith.sitofp %41 : vector<4x8xi32> to vector<4x8xf32>
    %cst_17 = arith.constant dense<0.000000e+00> : vector<4x128xf32>
    %43 = tpu.matmul %42, %35, %cst_17 {dimension_numbers = #tpu.dot_dimension_numbers<[1], [0], [0], [1], [0, 0, 1, 1], [], []>} : vector<4x8xf32>, vector<8x128xf32>, vector<4x128xf32> -> vector<4x128xf32>
    %44 = arith.truncf %43 : vector<4x128xf32> to vector<4x128xbf16>
    %c0_18 = arith.constant 0 : index
    %c0_19 = arith.constant 0 : index
    %c0_20 = arith.constant 0 : index
    %c0_21 = arith.constant 0 : index
    %45 = vector.load %arg5[%c0_18, %c0_19, %c0_20, %c0_21] : memref<1x1x6x128xbf16, #tpu.memory_space<vmem>>, vector<1x1x4x128xbf16>
    %46 = vector.shape_cast %45 : vector<1x1x4x128xbf16> to vector<4x128xbf16>
    %47 = vector.shape_cast %44 : vector<4x128xbf16> to vector<1x1x4x128xbf16>
    tpu.vector_store %arg5[%c0_18, %c0_19, %c0_20, %c0_21], %47 {strides = array<i32>} : memref<1x1x6x128xbf16, #tpu.memory_space<vmem>>, vector<1x1x4x128xbf16>,
    %cst_22 = arith.constant 0.000000e+00 : bf16
    %48 = vector.broadcast %cst_22 : bf16 to vector<2x128xbf16>
    %c0_23 = arith.constant 0 : index
    %c0_24 = arith.constant 0 : index
    %c4 = arith.constant 4 : index
    %c0_25 = arith.constant 0 : index
    %49 = vector.load %arg5[%c0_23, %c0_24, %c4, %c0_25] : memref<1x1x6x128xbf16, #tpu.memory_space<vmem>>, vector<1x1x2x128xbf16>
    %50 = vector.shape_cast %49 : vector<1x1x2x128xbf16> to vector<2x128xbf16>
    %51 = vector.shape_cast %48 : vector<2x128xbf16> to vector<1x1x2x128xbf16>
    tpu.vector_store %arg5[%c0_23, %c0_24, %c4, %c0_25], %51 {strides = array<i32>} : memref<1x1x6x128xbf16, #tpu.memory_space<vmem>>, vector<1x1x2x128xbf16>,
    return
  }
  func.func @transform_0(%arg0: i32, %arg1: i32) -> (i32, i32, i32, i32) {
    %c2_i32 = arith.constant 2 : i32
    %0 = arith.muli %c2_i32, %arg1 : i32
    %c0_i32 = arith.constant 0 : i32
    %c0_i32_0 = arith.constant 0 : i32
    %c0_i32_1 = arith.constant 0 : i32
    return %arg0, %0, %c0_i32, %c0_i32_0 : i32, i32, i32, i32
  }
  func.func @transform_1(%arg0: i32, %arg1: i32) -> (i32, i32, i32, i32) {
    %c2_i32 = arith.constant 2 : i32
    %0 = arith.muli %c2_i32, %arg1 : i32
    %c1_i32 = arith.constant 1 : i32
    %1 = arith.addi %0, %c1_i32 : i32
    %c0_i32 = arith.constant 0 : i32
    %c0_i32_0 = arith.constant 0 : i32
    %c0_i32_1 = arith.constant 0 : i32
    return %arg0, %1, %c0_i32, %c0_i32_0 : i32, i32, i32, i32
  }
  func.func @transform_2(%arg0: i32, %arg1: i32) -> (i32, i32, i32, i32) {
    %c2_i32 = arith.constant 2 : i32
    %0 = arith.muli %c2_i32, %arg1 : i32
    %c2_i32_0 = arith.constant 2 : i32
    %1 = arith.addi %0, %c2_i32_0 : i32
    %c7_i32 = arith.constant 7 : i32
    %2 = arith.minsi %1, %c7_i32 : i32
    %c0_i32 = arith.constant 0 : i32
    %c0_i32_1 = arith.constant 0 : i32
    %c0_i32_2 = arith.constant 0 : i32
    return %arg0, %2, %c0_i32, %c0_i32_1 : i32, i32, i32, i32
  }
  func.func @transform_3(%arg0: i32, %arg1: i32) -> (i32, i32, i32, i32) {
    %c0_i32 = arith.constant 0 : i32
    %c0_i32_0 = arith.constant 0 : i32
    %c0_i32_1 = arith.constant 0 : i32
    return %arg0, %arg1, %c0_i32, %c0_i32_0 : i32, i32, i32, i32
  }
}

module attributes {stable_mosaic.version = 11 : i64} {
  func.func @_fire_chain_kernel(%arg0: i32, %arg1: memref<1x24x128xbf16, #tpu.memory_space<vmem>>, %arg2: memref<128x32xbf16, #tpu.memory_space<vmem>>, %arg3: memref<1x32xf32, #tpu.memory_space<vmem>>, %arg4: memref<288x256xbf16, #tpu.memory_space<vmem>>, %arg5: memref<1x256xf32, #tpu.memory_space<vmem>>, %arg6: memref<256x32xbf16, #tpu.memory_space<vmem>>, %arg7: memref<1x32xf32, #tpu.memory_space<vmem>>, %arg8: memref<288x256xbf16, #tpu.memory_space<vmem>>, %arg9: memref<1x256xf32, #tpu.memory_space<vmem>>, %arg10: memref<1x24x256xbf16, #tpu.memory_space<vmem>>, %arg11: memref<56x32xbf16, #tpu.memory_space<vmem>>) attributes {dimension_semantics = [#tpu.dimension_semantics<parallel>], iteration_bounds = array<i64: 2>, scalar_prefetch = 0 : i64, scratch_operands = 1 : i64, tpu.core_type = #tpu.core_type<tc>, window_params = [{transform_indices = @transform_0, window_bounds = array<i64: 1, 24, 128>}, {pipeline_mode = #tpu.pipeline_mode<synchronous>, transform_indices = @transform_1, window_bounds = array<i64: 128, 32>}, {pipeline_mode = #tpu.pipeline_mode<synchronous>, transform_indices = @transform_2, window_bounds = array<i64: 1, 32>}, {pipeline_mode = #tpu.pipeline_mode<synchronous>, transform_indices = @transform_3, window_bounds = array<i64: 288, 256>}, {pipeline_mode = #tpu.pipeline_mode<synchronous>, transform_indices = @transform_4, window_bounds = array<i64: 1, 256>}, {pipeline_mode = #tpu.pipeline_mode<synchronous>, transform_indices = @transform_5, window_bounds = array<i64: 256, 32>}, {pipeline_mode = #tpu.pipeline_mode<synchronous>, transform_indices = @transform_6, window_bounds = array<i64: 1, 32>}, {pipeline_mode = #tpu.pipeline_mode<synchronous>, transform_indices = @transform_7, window_bounds = array<i64: 288, 256>}, {pipeline_mode = #tpu.pipeline_mode<synchronous>, transform_indices = @transform_8, window_bounds = array<i64: 1, 256>}, {transform_indices = @transform_9, window_bounds = array<i64: 1, 24, 256>}]} {
    %0 = tpu.iota {dimensions = array<i32: 0>} : vector<24x1xi32>
    %1 = arith.sitofp %0 : vector<24x1xi32> to vector<24x1xf32>
    %cst = arith.constant 5.000000e-01 : f32
    %2 = vector.broadcast %cst : f32 to vector<24x1xf32>
    %3 = arith.addf %1, %2 : vector<24x1xf32>
    %cst_0 = arith.constant 0.166666672 : f32
    %4 = vector.broadcast %cst_0 : f32 to vector<24x1xf32>
    %5 = arith.mulf %3, %4 : vector<24x1xf32>
    %6 = math.floor %5 : vector<24x1xf32>
    %cst_1 = arith.constant 6.000000e+00 : f32
    %7 = vector.broadcast %cst_1 : f32 to vector<24x1xf32>
    %8 = arith.mulf %6, %7 : vector<24x1xf32>
    %9 = arith.subf %1, %8 : vector<24x1xf32>
    %cst_2 = arith.constant 3.500000e+00 : f32
    %10 = vector.broadcast %cst_2 : f32 to vector<24x1xf32>
    %11 = arith.cmpf olt, %9, %10 : vector<24x1xf32>
    %c0 = arith.constant 0 : index
    %c0_3 = arith.constant 0 : index
    %c0_4 = arith.constant 0 : index
    %12 = vector.load %arg1[%c0, %c0_3, %c0_4] : memref<1x24x128xbf16, #tpu.memory_space<vmem>>, vector<1x24x128xbf16>
    %13 = vector.shape_cast %12 : vector<1x24x128xbf16> to vector<24x128xbf16>
    %c0_5 = arith.constant 0 : index
    %c0_6 = arith.constant 0 : index
    %14 = vector.load %arg2[%c0_5, %c0_6] : memref<128x32xbf16, #tpu.memory_space<vmem>>, vector<128x32xbf16>
    %cst_7 = arith.constant dense<0.000000e+00> : vector<24x32xf32>
    %15 = tpu.matmul %13, %14, %cst_7 {dimension_numbers = #tpu.dot_dimension_numbers<[1], [0], [0], [1], [0, 0, 1, 1], [], []>} : vector<24x128xbf16>, vector<128x32xbf16>, vector<24x32xf32> -> vector<24x32xf32>
    %c0_8 = arith.constant 0 : index
    %c0_9 = arith.constant 0 : index
    %16 = vector.load %arg3[%c0_8, %c0_9] : memref<1x32xf32, #tpu.memory_space<vmem>>, vector<1x32xf32>
    %17 = vector.broadcast %16 : vector<1x32xf32> to vector<24x32xf32>
    %18 = arith.addf %15, %17 : vector<24x32xf32>
    %cst_10 = arith.constant 0.000000e+00 : f32
    %19 = vector.broadcast %cst_10 : f32 to vector<24x32xf32>
    %20 = arith.cmpf oge, %18, %19 : vector<24x32xf32>
    %cst_11 = arith.constant 2.000000e-01 : f32
    %21 = vector.broadcast %cst_11 : f32 to vector<24x32xf32>
    %22 = arith.mulf %18, %21 : vector<24x32xf32>
    %23 = arith.select %20, %18, %22 : vector<24x32xi1>, vector<24x32xf32>
    %cst_12 = arith.constant 0.000000e+00 : f32
    %24 = vector.shape_cast %11 : vector<24x1xi1> to vector<24x1xi1>
    %25 = vector.broadcast %24 : vector<24x1xi1> to vector<24x32xi1>
    %26 = vector.broadcast %cst_12 : f32 to vector<24x32xf32>
    %27 = arith.select %25, %23, %26 : vector<24x32xi1>, vector<24x32xf32>
    %cst_13 = arith.constant 0.000000e+00 : bf16
    %28 = vector.broadcast %cst_13 : bf16 to vector<16x32xbf16>
    %c0_14 = arith.constant 0 : index
    %c0_15 = arith.constant 0 : index
    %29 = vector.load %arg11[%c0_14, %c0_15] : memref<56x32xbf16, #tpu.memory_space<vmem>>, vector<16x32xbf16>
    tpu.vector_store %arg11[%c0_14, %c0_15], %28 {strides = array<i32>} : memref<56x32xbf16, #tpu.memory_space<vmem>>, vector<16x32xbf16>,
    %30 = arith.truncf %27 : vector<24x32xf32> to vector<24x32xbf16>
    %c16 = arith.constant 16 : index
    %c0_16 = arith.constant 0 : index
    %31 = vector.load %arg11[%c16, %c0_16] : memref<56x32xbf16, #tpu.memory_space<vmem>>, vector<24x32xbf16>
    tpu.vector_store %arg11[%c16, %c0_16], %30 {strides = array<i32>} : memref<56x32xbf16, #tpu.memory_space<vmem>>, vector<24x32xbf16>,
    %cst_17 = arith.constant 0.000000e+00 : bf16
    %32 = vector.broadcast %cst_17 : bf16 to vector<16x32xbf16>
    %c40 = arith.constant 40 : index
    %c0_18 = arith.constant 0 : index
    %33 = vector.load %arg11[%c40, %c0_18] : memref<56x32xbf16, #tpu.memory_space<vmem>>, vector<16x32xbf16>
    tpu.vector_store %arg11[%c40, %c0_18], %32 {strides = array<i32>} : memref<56x32xbf16, #tpu.memory_space<vmem>>, vector<16x32xbf16>,
    %c9 = arith.constant 9 : index
    %c0_19 = arith.constant 0 : index
    %34 = vector.load %arg11[%c9, %c0_19] : memref<56x32xbf16, #tpu.memory_space<vmem>>, vector<24x32xbf16>
    %c10 = arith.constant 10 : index
    %c0_20 = arith.constant 0 : index
    %35 = vector.load %arg11[%c10, %c0_20] : memref<56x32xbf16, #tpu.memory_space<vmem>>, vector<24x32xbf16>
    %c11 = arith.constant 11 : index
    %c0_21 = arith.constant 0 : index
    %36 = vector.load %arg11[%c11, %c0_21] : memref<56x32xbf16, #tpu.memory_space<vmem>>, vector<24x32xbf16>
    %c15 = arith.constant 15 : index
    %c0_22 = arith.constant 0 : index
    %37 = vector.load %arg11[%c15, %c0_22] : memref<56x32xbf16, #tpu.memory_space<vmem>>, vector<24x32xbf16>
    %c16_23 = arith.constant 16 : index
    %c0_24 = arith.constant 0 : index
    %38 = vector.load %arg11[%c16_23, %c0_24] : memref<56x32xbf16, #tpu.memory_space<vmem>>, vector<24x32xbf16>
    %c17 = arith.constant 17 : index
    %c0_25 = arith.constant 0 : index
    %39 = vector.load %arg11[%c17, %c0_25] : memref<56x32xbf16, #tpu.memory_space<vmem>>, vector<24x32xbf16>
    %c21 = arith.constant 21 : index
    %c0_26 = arith.constant 0 : index
    %40 = vector.load %arg11[%c21, %c0_26] : memref<56x32xbf16, #tpu.memory_space<vmem>>, vector<24x32xbf16>
    %c22 = arith.constant 22 : index
    %c0_27 = arith.constant 0 : index
    %41 = vector.load %arg11[%c22, %c0_27] : memref<56x32xbf16, #tpu.memory_space<vmem>>, vector<24x32xbf16>
    %c23 = arith.constant 23 : index
    %c0_28 = arith.constant 0 : index
    %42 = vector.load %arg11[%c23, %c0_28] : memref<56x32xbf16, #tpu.memory_space<vmem>>, vector<24x32xbf16>
    %43 = tpu.concatenate %34, %35, %36, %37, %38, %39, %40, %41, %42 in 1 : vector<24x32xbf16>, vector<24x32xbf16>, vector<24x32xbf16>, vector<24x32xbf16>, vector<24x32xbf16>, vector<24x32xbf16>, vector<24x32xbf16>, vector<24x32xbf16>, vector<24x32xbf16> -> vector<24x288xbf16>
    %c0_29 = arith.constant 0 : index
    %c0_30 = arith.constant 0 : index
    %44 = vector.load %arg4[%c0_29, %c0_30] : memref<288x256xbf16, #tpu.memory_space<vmem>>, vector<288x256xbf16>
    %cst_31 = arith.constant dense<0.000000e+00> : vector<24x256xf32>
    %45 = tpu.matmul %43, %44, %cst_31 {dimension_numbers = #tpu.dot_dimension_numbers<[1], [0], [0], [1], [0, 0, 1, 1], [], []>} : vector<24x288xbf16>, vector<288x256xbf16>, vector<24x256xf32> -> vector<24x256xf32>
    %c0_32 = arith.constant 0 : index
    %c0_33 = arith.constant 0 : index
    %46 = vector.load %arg5[%c0_32, %c0_33] : memref<1x256xf32, #tpu.memory_space<vmem>>, vector<1x256xf32>
    %47 = vector.broadcast %46 : vector<1x256xf32> to vector<24x256xf32>
    %48 = arith.addf %45, %47 : vector<24x256xf32>
    %cst_34 = arith.constant 0.000000e+00 : f32
    %49 = vector.broadcast %cst_34 : f32 to vector<24x256xf32>
    %50 = arith.cmpf oge, %48, %49 : vector<24x256xf32>
    %cst_35 = arith.constant 2.000000e-01 : f32
    %51 = vector.broadcast %cst_35 : f32 to vector<24x256xf32>
    %52 = arith.mulf %48, %51 : vector<24x256xf32>
    %53 = arith.select %50, %48, %52 : vector<24x256xi1>, vector<24x256xf32>
    %54 = arith.truncf %53 : vector<24x256xf32> to vector<24x256xbf16>
    %c0_36 = arith.constant 0 : index
    %c0_37 = arith.constant 0 : index
    %55 = vector.load %arg6[%c0_36, %c0_37] : memref<256x32xbf16, #tpu.memory_space<vmem>>, vector<256x32xbf16>
    %cst_38 = arith.constant dense<0.000000e+00> : vector<24x32xf32>
    %56 = tpu.matmul %54, %55, %cst_38 {dimension_numbers = #tpu.dot_dimension_numbers<[1], [0], [0], [1], [0, 0, 1, 1], [], []>} : vector<24x256xbf16>, vector<256x32xbf16>, vector<24x32xf32> -> vector<24x32xf32>
    %c0_39 = arith.constant 0 : index
    %c0_40 = arith.constant 0 : index
    %57 = vector.load %arg7[%c0_39, %c0_40] : memref<1x32xf32, #tpu.memory_space<vmem>>, vector<1x32xf32>
    %58 = vector.broadcast %57 : vector<1x32xf32> to vector<24x32xf32>
    %59 = arith.addf %56, %58 : vector<24x32xf32>
    %cst_41 = arith.constant 0.000000e+00 : f32
    %60 = vector.broadcast %cst_41 : f32 to vector<24x32xf32>
    %61 = arith.cmpf oge, %59, %60 : vector<24x32xf32>
    %cst_42 = arith.constant 2.000000e-01 : f32
    %62 = vector.broadcast %cst_42 : f32 to vector<24x32xf32>
    %63 = arith.mulf %59, %62 : vector<24x32xf32>
    %64 = arith.select %61, %59, %63 : vector<24x32xi1>, vector<24x32xf32>
    %cst_43 = arith.constant 0.000000e+00 : f32
    %65 = vector.shape_cast %11 : vector<24x1xi1> to vector<24x1xi1>
    %66 = vector.broadcast %65 : vector<24x1xi1> to vector<24x32xi1>
    %67 = vector.broadcast %cst_43 : f32 to vector<24x32xf32>
    %68 = arith.select %66, %64, %67 : vector<24x32xi1>, vector<24x32xf32>
    %cst_44 = arith.constant 0.000000e+00 : bf16
    %69 = vector.broadcast %cst_44 : bf16 to vector<16x32xbf16>
    %c0_45 = arith.constant 0 : index
    %c0_46 = arith.constant 0 : index
    %70 = vector.load %arg11[%c0_45, %c0_46] : memref<56x32xbf16, #tpu.memory_space<vmem>>, vector<16x32xbf16>
    tpu.vector_store %arg11[%c0_45, %c0_46], %69 {strides = array<i32>} : memref<56x32xbf16, #tpu.memory_space<vmem>>, vector<16x32xbf16>,
    %71 = arith.truncf %68 : vector<24x32xf32> to vector<24x32xbf16>
    %c16_47 = arith.constant 16 : index
    %c0_48 = arith.constant 0 : index
    %72 = vector.load %arg11[%c16_47, %c0_48] : memref<56x32xbf16, #tpu.memory_space<vmem>>, vector<24x32xbf16>
    tpu.vector_store %arg11[%c16_47, %c0_48], %71 {strides = array<i32>} : memref<56x32xbf16, #tpu.memory_space<vmem>>, vector<24x32xbf16>,
    %cst_49 = arith.constant 0.000000e+00 : bf16
    %73 = vector.broadcast %cst_49 : bf16 to vector<16x32xbf16>
    %c40_50 = arith.constant 40 : index
    %c0_51 = arith.constant 0 : index
    %74 = vector.load %arg11[%c40_50, %c0_51] : memref<56x32xbf16, #tpu.memory_space<vmem>>, vector<16x32xbf16>
    tpu.vector_store %arg11[%c40_50, %c0_51], %73 {strides = array<i32>} : memref<56x32xbf16, #tpu.memory_space<vmem>>, vector<16x32xbf16>,
    %c9_52 = arith.constant 9 : index
    %c0_53 = arith.constant 0 : index
    %75 = vector.load %arg11[%c9_52, %c0_53] : memref<56x32xbf16, #tpu.memory_space<vmem>>, vector<24x32xbf16>
    %c10_54 = arith.constant 10 : index
    %c0_55 = arith.constant 0 : index
    %76 = vector.load %arg11[%c10_54, %c0_55] : memref<56x32xbf16, #tpu.memory_space<vmem>>, vector<24x32xbf16>
    %c11_56 = arith.constant 11 : index
    %c0_57 = arith.constant 0 : index
    %77 = vector.load %arg11[%c11_56, %c0_57] : memref<56x32xbf16, #tpu.memory_space<vmem>>, vector<24x32xbf16>
    %c15_58 = arith.constant 15 : index
    %c0_59 = arith.constant 0 : index
    %78 = vector.load %arg11[%c15_58, %c0_59] : memref<56x32xbf16, #tpu.memory_space<vmem>>, vector<24x32xbf16>
    %c16_60 = arith.constant 16 : index
    %c0_61 = arith.constant 0 : index
    %79 = vector.load %arg11[%c16_60, %c0_61] : memref<56x32xbf16, #tpu.memory_space<vmem>>, vector<24x32xbf16>
    %c17_62 = arith.constant 17 : index
    %c0_63 = arith.constant 0 : index
    %80 = vector.load %arg11[%c17_62, %c0_63] : memref<56x32xbf16, #tpu.memory_space<vmem>>, vector<24x32xbf16>
    %c21_64 = arith.constant 21 : index
    %c0_65 = arith.constant 0 : index
    %81 = vector.load %arg11[%c21_64, %c0_65] : memref<56x32xbf16, #tpu.memory_space<vmem>>, vector<24x32xbf16>
    %c22_66 = arith.constant 22 : index
    %c0_67 = arith.constant 0 : index
    %82 = vector.load %arg11[%c22_66, %c0_67] : memref<56x32xbf16, #tpu.memory_space<vmem>>, vector<24x32xbf16>
    %c23_68 = arith.constant 23 : index
    %c0_69 = arith.constant 0 : index
    %83 = vector.load %arg11[%c23_68, %c0_69] : memref<56x32xbf16, #tpu.memory_space<vmem>>, vector<24x32xbf16>
    %84 = tpu.concatenate %75, %76, %77, %78, %79, %80, %81, %82, %83 in 1 : vector<24x32xbf16>, vector<24x32xbf16>, vector<24x32xbf16>, vector<24x32xbf16>, vector<24x32xbf16>, vector<24x32xbf16>, vector<24x32xbf16>, vector<24x32xbf16>, vector<24x32xbf16> -> vector<24x288xbf16>
    %c0_70 = arith.constant 0 : index
    %c0_71 = arith.constant 0 : index
    %85 = vector.load %arg8[%c0_70, %c0_71] : memref<288x256xbf16, #tpu.memory_space<vmem>>, vector<288x256xbf16>
    %cst_72 = arith.constant dense<0.000000e+00> : vector<24x256xf32>
    %86 = tpu.matmul %84, %85, %cst_72 {dimension_numbers = #tpu.dot_dimension_numbers<[1], [0], [0], [1], [0, 0, 1, 1], [], []>} : vector<24x288xbf16>, vector<288x256xbf16>, vector<24x256xf32> -> vector<24x256xf32>
    %c0_73 = arith.constant 0 : index
    %c0_74 = arith.constant 0 : index
    %87 = vector.load %arg9[%c0_73, %c0_74] : memref<1x256xf32, #tpu.memory_space<vmem>>, vector<1x256xf32>
    %88 = vector.broadcast %87 : vector<1x256xf32> to vector<24x256xf32>
    %89 = arith.addf %86, %88 : vector<24x256xf32>
    %cst_75 = arith.constant 0.000000e+00 : f32
    %90 = vector.broadcast %cst_75 : f32 to vector<24x256xf32>
    %91 = arith.cmpf oge, %89, %90 : vector<24x256xf32>
    %cst_76 = arith.constant 2.000000e-01 : f32
    %92 = vector.broadcast %cst_76 : f32 to vector<24x256xf32>
    %93 = arith.mulf %89, %92 : vector<24x256xf32>
    %94 = arith.select %91, %89, %93 : vector<24x256xi1>, vector<24x256xf32>
    %95 = arith.truncf %94 : vector<24x256xf32> to vector<24x256xbf16>
    %c0_77 = arith.constant 0 : index
    %c0_78 = arith.constant 0 : index
    %c0_79 = arith.constant 0 : index
    %96 = vector.load %arg10[%c0_77, %c0_78, %c0_79] : memref<1x24x256xbf16, #tpu.memory_space<vmem>>, vector<1x24x256xbf16>
    %97 = vector.shape_cast %96 : vector<1x24x256xbf16> to vector<24x256xbf16>
    %98 = vector.shape_cast %95 : vector<24x256xbf16> to vector<1x24x256xbf16>
    tpu.vector_store %arg10[%c0_77, %c0_78, %c0_79], %98 {strides = array<i32>} : memref<1x24x256xbf16, #tpu.memory_space<vmem>>, vector<1x24x256xbf16>,
    return
  }
  func.func @transform_0(%arg0: i32) -> (i32, i32, i32) {
    %c0_i32 = arith.constant 0 : i32
    %c0_i32_0 = arith.constant 0 : i32
    %c0_i32_1 = arith.constant 0 : i32
    return %arg0, %c0_i32, %c0_i32_0 : i32, i32, i32
  }
  func.func @transform_1(%arg0: i32) -> (i32, i32) {
    %c0_i32 = arith.constant 0 : i32
    %c0_i32_0 = arith.constant 0 : i32
    %c0_i32_1 = arith.constant 0 : i32
    return %c0_i32, %c0_i32_0 : i32, i32
  }
  func.func @transform_2(%arg0: i32) -> (i32, i32) {
    %c0_i32 = arith.constant 0 : i32
    %c0_i32_0 = arith.constant 0 : i32
    %c0_i32_1 = arith.constant 0 : i32
    return %c0_i32, %c0_i32_0 : i32, i32
  }
  func.func @transform_3(%arg0: i32) -> (i32, i32) {
    %c0_i32 = arith.constant 0 : i32
    %c0_i32_0 = arith.constant 0 : i32
    %c0_i32_1 = arith.constant 0 : i32
    return %c0_i32, %c0_i32_0 : i32, i32
  }
  func.func @transform_4(%arg0: i32) -> (i32, i32) {
    %c0_i32 = arith.constant 0 : i32
    %c0_i32_0 = arith.constant 0 : i32
    %c0_i32_1 = arith.constant 0 : i32
    return %c0_i32, %c0_i32_0 : i32, i32
  }
  func.func @transform_5(%arg0: i32) -> (i32, i32) {
    %c0_i32 = arith.constant 0 : i32
    %c0_i32_0 = arith.constant 0 : i32
    %c0_i32_1 = arith.constant 0 : i32
    return %c0_i32, %c0_i32_0 : i32, i32
  }
  func.func @transform_6(%arg0: i32) -> (i32, i32) {
    %c0_i32 = arith.constant 0 : i32
    %c0_i32_0 = arith.constant 0 : i32
    %c0_i32_1 = arith.constant 0 : i32
    return %c0_i32, %c0_i32_0 : i32, i32
  }
  func.func @transform_7(%arg0: i32) -> (i32, i32) {
    %c0_i32 = arith.constant 0 : i32
    %c0_i32_0 = arith.constant 0 : i32
    %c0_i32_1 = arith.constant 0 : i32
    return %c0_i32, %c0_i32_0 : i32, i32
  }
  func.func @transform_8(%arg0: i32) -> (i32, i32) {
    %c0_i32 = arith.constant 0 : i32
    %c0_i32_0 = arith.constant 0 : i32
    %c0_i32_1 = arith.constant 0 : i32
    return %c0_i32, %c0_i32_0 : i32, i32
  }
  func.func @transform_9(%arg0: i32) -> (i32, i32, i32) {
    %c0_i32 = arith.constant 0 : i32
    %c0_i32_0 = arith.constant 0 : i32
    %c0_i32_1 = arith.constant 0 : i32
    return %arg0, %c0_i32, %c0_i32_0 : i32, i32, i32
  }
}

module attributes {stable_mosaic.version = 11 : i64} {
  func.func @_maxpool_kernel(%arg0: i32, %arg1: i32, %arg2: memref<1x1x6x256xbf16, #tpu.memory_space<vmem>>, %arg3: memref<1x1x6x256xbf16, #tpu.memory_space<vmem>>, %arg4: memref<1x1x6x256xbf16, #tpu.memory_space<vmem>>, %arg5: memref<1x1x4x256xbf16, #tpu.memory_space<vmem>>) attributes {dimension_semantics = [#tpu.dimension_semantics<parallel>, #tpu.dimension_semantics<parallel>], iteration_bounds = array<i64: 2, 2>, scalar_prefetch = 0 : i64, scratch_operands = 0 : i64, tpu.core_type = #tpu.core_type<tc>, window_params = [{transform_indices = @transform_0, window_bounds = array<i64: 1, 1, 6, 256>}, {transform_indices = @transform_1, window_bounds = array<i64: 1, 1, 6, 256>}, {transform_indices = @transform_2, window_bounds = array<i64: 1, 1, 6, 256>}, {transform_indices = @transform_3, window_bounds = array<i64: 1, 1, 4, 256>}]} {
    %0 = tpu.iota {dimensions = array<i32: 0>} : vector<6x1xi32>
    %c4_i32 = arith.constant 4 : i32
    %1 = vector.broadcast %c4_i32 : i32 to vector<6x1xi32>
    %2 = arith.cmpi slt, %0, %1 : vector<6x1xi32>
    %c0 = arith.constant 0 : index
    %c0_0 = arith.constant 0 : index
    %c0_1 = arith.constant 0 : index
    %c0_2 = arith.constant 0 : index
    %3 = vector.load %arg2[%c0, %c0_0, %c0_1, %c0_2] : memref<1x1x6x256xbf16, #tpu.memory_space<vmem>>, vector<1x1x6x256xbf16>
    %4 = vector.shape_cast %3 : vector<1x1x6x256xbf16> to vector<6x256xbf16>
    %5 = arith.extf %4 : vector<6x256xbf16> to vector<6x256xf32>
    %cst = arith.constant -1.000000e+30 : f32
    %6 = vector.shape_cast %2 : vector<6x1xi1> to vector<6x1xi1>
    %7 = vector.broadcast %6 : vector<6x1xi1> to vector<6x256xi1>
    %8 = vector.broadcast %cst : f32 to vector<6x256xf32>
    %9 = arith.select %7, %5, %8 : vector<6x256xi1>, vector<6x256xf32>
    %c0_3 = arith.constant 0 : index
    %c0_4 = arith.constant 0 : index
    %c0_5 = arith.constant 0 : index
    %c0_6 = arith.constant 0 : index
    %10 = vector.load %arg3[%c0_3, %c0_4, %c0_5, %c0_6] : memref<1x1x6x256xbf16, #tpu.memory_space<vmem>>, vector<1x1x6x256xbf16>
    %11 = vector.shape_cast %10 : vector<1x1x6x256xbf16> to vector<6x256xbf16>
    %12 = arith.extf %11 : vector<6x256xbf16> to vector<6x256xf32>
    %cst_7 = arith.constant -1.000000e+30 : f32
    %13 = vector.shape_cast %2 : vector<6x1xi1> to vector<6x1xi1>
    %14 = vector.broadcast %13 : vector<6x1xi1> to vector<6x256xi1>
    %15 = vector.broadcast %cst_7 : f32 to vector<6x256xf32>
    %16 = arith.select %14, %12, %15 : vector<6x256xi1>, vector<6x256xf32>
    %c2_i32 = arith.constant 2 : i32
    %17 = arith.muli %c2_i32, %arg1 : i32
    %c2_i32_8 = arith.constant 2 : i32
    %18 = arith.addi %17, %c2_i32_8 : i32
    %c4_i32_9 = arith.constant 4 : i32
    %19 = arith.cmpi slt, %18, %c4_i32_9 : i32
    %c0_10 = arith.constant 0 : index
    %c0_11 = arith.constant 0 : index
    %c0_12 = arith.constant 0 : index
    %c0_13 = arith.constant 0 : index
    %20 = vector.load %arg4[%c0_10, %c0_11, %c0_12, %c0_13] : memref<1x1x6x256xbf16, #tpu.memory_space<vmem>>, vector<1x1x6x256xbf16>
    %21 = vector.shape_cast %20 : vector<1x1x6x256xbf16> to vector<6x256xbf16>
    %22 = arith.extf %21 : vector<6x256xbf16> to vector<6x256xf32>
    %cst_14 = arith.constant -1.000000e+30 : f32
    %23 = vector.shape_cast %2 : vector<6x1xi1> to vector<6x1xi1>
    %24 = vector.broadcast %23 : vector<6x1xi1> to vector<6x256xi1>
    %25 = vector.broadcast %cst_14 : f32 to vector<6x256xf32>
    %26 = arith.select %24, %22, %25 : vector<6x256xi1>, vector<6x256xf32>
    %cst_15 = arith.constant -1.000000e+30 : f32
    %27 = vector.broadcast %cst_15 : f32 to vector<6x256xf32>
    %28 = arith.select %19, %26, %27 : vector<6x256xf32>
    %29 = arith.maximumf %9, %16 : vector<6x256xf32>
    %30 = arith.maximumf %29, %28 : vector<6x256xf32>
    %31 = vector.extract_strided_slice %30 {offsets = [0, 0], sizes = [4, 256], strides = [1, 1]} : vector<6x256xf32> to vector<4x256xf32>
    %32 = vector.extract_strided_slice %30 {offsets = [1, 0], sizes = [4, 256], strides = [1, 1]} : vector<6x256xf32> to vector<4x256xf32>
    %33 = arith.maximumf %31, %32 : vector<4x256xf32>
    %34 = vector.extract_strided_slice %30 {offsets = [2, 0], sizes = [4, 256], strides = [1, 1]} : vector<6x256xf32> to vector<4x256xf32>
    %35 = arith.maximumf %33, %34 : vector<4x256xf32>
    %36 = tpu.iota {dimensions = array<i32: 0>} : vector<2x4xi32>
    %37 = tpu.iota {dimensions = array<i32: 1>} : vector<2x4xi32>
    %c2_i32_16 = arith.constant 2 : i32
    %38 = vector.broadcast %c2_i32_16 : i32 to vector<2x4xi32>
    %39 = arith.muli %38, %36 : vector<2x4xi32>
    %40 = arith.cmpi eq, %37, %39 : vector<2x4xi32>
    %41 = arith.extui %40 : vector<2x4xi1> to vector<2x4xi32>
    %42 = arith.sitofp %41 : vector<2x4xi32> to vector<2x4xf32>
    %cst_17 = arith.constant dense<0.000000e+00> : vector<2x256xf32>
    %43 = tpu.matmul %42, %35, %cst_17 {dimension_numbers = #tpu.dot_dimension_numbers<[1], [0], [0], [1], [0, 0, 1, 1], [], []>} : vector<2x4xf32>, vector<4x256xf32>, vector<2x256xf32> -> vector<2x256xf32>
    %44 = arith.truncf %43 : vector<2x256xf32> to vector<2x256xbf16>
    %c0_18 = arith.constant 0 : index
    %c0_19 = arith.constant 0 : index
    %c0_20 = arith.constant 0 : index
    %c0_21 = arith.constant 0 : index
    %45 = vector.load %arg5[%c0_18, %c0_19, %c0_20, %c0_21] : memref<1x1x4x256xbf16, #tpu.memory_space<vmem>>, vector<1x1x2x256xbf16>
    %46 = vector.shape_cast %45 : vector<1x1x2x256xbf16> to vector<2x256xbf16>
    %47 = vector.shape_cast %44 : vector<2x256xbf16> to vector<1x1x2x256xbf16>
    tpu.vector_store %arg5[%c0_18, %c0_19, %c0_20, %c0_21], %47 {strides = array<i32>} : memref<1x1x4x256xbf16, #tpu.memory_space<vmem>>, vector<1x1x2x256xbf16>,
    %cst_22 = arith.constant 0.000000e+00 : bf16
    %48 = vector.broadcast %cst_22 : bf16 to vector<2x256xbf16>
    %c0_23 = arith.constant 0 : index
    %c0_24 = arith.constant 0 : index
    %c2 = arith.constant 2 : index
    %c0_25 = arith.constant 0 : index
    %49 = vector.load %arg5[%c0_23, %c0_24, %c2, %c0_25] : memref<1x1x4x256xbf16, #tpu.memory_space<vmem>>, vector<1x1x2x256xbf16>
    %50 = vector.shape_cast %49 : vector<1x1x2x256xbf16> to vector<2x256xbf16>
    %51 = vector.shape_cast %48 : vector<2x256xbf16> to vector<1x1x2x256xbf16>
    tpu.vector_store %arg5[%c0_23, %c0_24, %c2, %c0_25], %51 {strides = array<i32>} : memref<1x1x4x256xbf16, #tpu.memory_space<vmem>>, vector<1x1x2x256xbf16>,
    return
  }
  func.func @transform_0(%arg0: i32, %arg1: i32) -> (i32, i32, i32, i32) {
    %c2_i32 = arith.constant 2 : i32
    %0 = arith.muli %c2_i32, %arg1 : i32
    %c0_i32 = arith.constant 0 : i32
    %c0_i32_0 = arith.constant 0 : i32
    %c0_i32_1 = arith.constant 0 : i32
    return %arg0, %0, %c0_i32, %c0_i32_0 : i32, i32, i32, i32
  }
  func.func @transform_1(%arg0: i32, %arg1: i32) -> (i32, i32, i32, i32) {
    %c2_i32 = arith.constant 2 : i32
    %0 = arith.muli %c2_i32, %arg1 : i32
    %c1_i32 = arith.constant 1 : i32
    %1 = arith.addi %0, %c1_i32 : i32
    %c0_i32 = arith.constant 0 : i32
    %c0_i32_0 = arith.constant 0 : i32
    %c0_i32_1 = arith.constant 0 : i32
    return %arg0, %1, %c0_i32, %c0_i32_0 : i32, i32, i32, i32
  }
  func.func @transform_2(%arg0: i32, %arg1: i32) -> (i32, i32, i32, i32) {
    %c2_i32 = arith.constant 2 : i32
    %0 = arith.muli %c2_i32, %arg1 : i32
    %c2_i32_0 = arith.constant 2 : i32
    %1 = arith.addi %0, %c2_i32_0 : i32
    %c3_i32 = arith.constant 3 : i32
    %2 = arith.minsi %1, %c3_i32 : i32
    %c0_i32 = arith.constant 0 : i32
    %c0_i32_1 = arith.constant 0 : i32
    %c0_i32_2 = arith.constant 0 : i32
    return %arg0, %2, %c0_i32, %c0_i32_1 : i32, i32, i32, i32
  }
  func.func @transform_3(%arg0: i32, %arg1: i32) -> (i32, i32, i32, i32) {
    %c0_i32 = arith.constant 0 : i32
    %c0_i32_0 = arith.constant 0 : i32
    %c0_i32_1 = arith.constant 0 : i32
    return %arg0, %arg1, %c0_i32, %c0_i32_0 : i32, i32, i32, i32
  }
}

module attributes {stable_mosaic.version = 11 : i64} {
  func.func @_fire_chain_kernel(%arg0: i32, %arg1: memref<1x8x256xbf16, #tpu.memory_space<vmem>>, %arg2: memref<256x48xbf16, #tpu.memory_space<vmem>>, %arg3: memref<1x48xf32, #tpu.memory_space<vmem>>, %arg4: memref<432x384xbf16, #tpu.memory_space<vmem>>, %arg5: memref<1x384xf32, #tpu.memory_space<vmem>>, %arg6: memref<384x48xbf16, #tpu.memory_space<vmem>>, %arg7: memref<1x48xf32, #tpu.memory_space<vmem>>, %arg8: memref<432x384xbf16, #tpu.memory_space<vmem>>, %arg9: memref<1x384xf32, #tpu.memory_space<vmem>>, %arg10: memref<1x8x384xbf16, #tpu.memory_space<vmem>>, %arg11: memref<40x48xbf16, #tpu.memory_space<vmem>>) attributes {dimension_semantics = [#tpu.dimension_semantics<parallel>], iteration_bounds = array<i64: 2>, scalar_prefetch = 0 : i64, scratch_operands = 1 : i64, tpu.core_type = #tpu.core_type<tc>, window_params = [{transform_indices = @transform_0, window_bounds = array<i64: 1, 8, 256>}, {pipeline_mode = #tpu.pipeline_mode<synchronous>, transform_indices = @transform_1, window_bounds = array<i64: 256, 48>}, {pipeline_mode = #tpu.pipeline_mode<synchronous>, transform_indices = @transform_2, window_bounds = array<i64: 1, 48>}, {pipeline_mode = #tpu.pipeline_mode<synchronous>, transform_indices = @transform_3, window_bounds = array<i64: 432, 384>}, {pipeline_mode = #tpu.pipeline_mode<synchronous>, transform_indices = @transform_4, window_bounds = array<i64: 1, 384>}, {pipeline_mode = #tpu.pipeline_mode<synchronous>, transform_indices = @transform_5, window_bounds = array<i64: 384, 48>}, {pipeline_mode = #tpu.pipeline_mode<synchronous>, transform_indices = @transform_6, window_bounds = array<i64: 1, 48>}, {pipeline_mode = #tpu.pipeline_mode<synchronous>, transform_indices = @transform_7, window_bounds = array<i64: 432, 384>}, {pipeline_mode = #tpu.pipeline_mode<synchronous>, transform_indices = @transform_8, window_bounds = array<i64: 1, 384>}, {transform_indices = @transform_9, window_bounds = array<i64: 1, 8, 384>}]} {
    %0 = tpu.iota {dimensions = array<i32: 0>} : vector<8x1xi32>
    %1 = arith.sitofp %0 : vector<8x1xi32> to vector<8x1xf32>
    %cst = arith.constant 5.000000e-01 : f32
    %2 = vector.broadcast %cst : f32 to vector<8x1xf32>
    %3 = arith.addf %1, %2 : vector<8x1xf32>
    %cst_0 = arith.constant 2.500000e-01 : f32
    %4 = vector.broadcast %cst_0 : f32 to vector<8x1xf32>
    %5 = arith.mulf %3, %4 : vector<8x1xf32>
    %6 = math.floor %5 : vector<8x1xf32>
    %cst_1 = arith.constant 4.000000e+00 : f32
    %7 = vector.broadcast %cst_1 : f32 to vector<8x1xf32>
    %8 = arith.mulf %6, %7 : vector<8x1xf32>
    %9 = arith.subf %1, %8 : vector<8x1xf32>
    %cst_2 = arith.constant 1.500000e+00 : f32
    %10 = vector.broadcast %cst_2 : f32 to vector<8x1xf32>
    %11 = arith.cmpf olt, %9, %10 : vector<8x1xf32>
    %c0 = arith.constant 0 : index
    %c0_3 = arith.constant 0 : index
    %c0_4 = arith.constant 0 : index
    %12 = vector.load %arg1[%c0, %c0_3, %c0_4] : memref<1x8x256xbf16, #tpu.memory_space<vmem>>, vector<1x8x256xbf16>
    %13 = vector.shape_cast %12 : vector<1x8x256xbf16> to vector<8x256xbf16>
    %c0_5 = arith.constant 0 : index
    %c0_6 = arith.constant 0 : index
    %14 = vector.load %arg2[%c0_5, %c0_6] : memref<256x48xbf16, #tpu.memory_space<vmem>>, vector<256x48xbf16>
    %cst_7 = arith.constant dense<0.000000e+00> : vector<8x48xf32>
    %15 = tpu.matmul %13, %14, %cst_7 {dimension_numbers = #tpu.dot_dimension_numbers<[1], [0], [0], [1], [0, 0, 1, 1], [], []>} : vector<8x256xbf16>, vector<256x48xbf16>, vector<8x48xf32> -> vector<8x48xf32>
    %c0_8 = arith.constant 0 : index
    %c0_9 = arith.constant 0 : index
    %16 = vector.load %arg3[%c0_8, %c0_9] : memref<1x48xf32, #tpu.memory_space<vmem>>, vector<1x48xf32>
    %17 = vector.broadcast %16 : vector<1x48xf32> to vector<8x48xf32>
    %18 = arith.addf %15, %17 : vector<8x48xf32>
    %cst_10 = arith.constant 0.000000e+00 : f32
    %19 = vector.broadcast %cst_10 : f32 to vector<8x48xf32>
    %20 = arith.cmpf oge, %18, %19 : vector<8x48xf32>
    %cst_11 = arith.constant 2.000000e-01 : f32
    %21 = vector.broadcast %cst_11 : f32 to vector<8x48xf32>
    %22 = arith.mulf %18, %21 : vector<8x48xf32>
    %23 = arith.select %20, %18, %22 : vector<8x48xi1>, vector<8x48xf32>
    %cst_12 = arith.constant 0.000000e+00 : f32
    %24 = vector.shape_cast %11 : vector<8x1xi1> to vector<8x1xi1>
    %25 = vector.broadcast %24 : vector<8x1xi1> to vector<8x48xi1>
    %26 = vector.broadcast %cst_12 : f32 to vector<8x48xf32>
    %27 = arith.select %25, %23, %26 : vector<8x48xi1>, vector<8x48xf32>
    %cst_13 = arith.constant 0.000000e+00 : bf16
    %28 = vector.broadcast %cst_13 : bf16 to vector<16x48xbf16>
    %c0_14 = arith.constant 0 : index
    %c0_15 = arith.constant 0 : index
    %29 = vector.load %arg11[%c0_14, %c0_15] : memref<40x48xbf16, #tpu.memory_space<vmem>>, vector<16x48xbf16>
    tpu.vector_store %arg11[%c0_14, %c0_15], %28 {strides = array<i32>} : memref<40x48xbf16, #tpu.memory_space<vmem>>, vector<16x48xbf16>,
    %30 = arith.truncf %27 : vector<8x48xf32> to vector<8x48xbf16>
    %c16 = arith.constant 16 : index
    %c0_16 = arith.constant 0 : index
    %31 = vector.load %arg11[%c16, %c0_16] : memref<40x48xbf16, #tpu.memory_space<vmem>>, vector<8x48xbf16>
    tpu.vector_store %arg11[%c16, %c0_16], %30 {strides = array<i32>} : memref<40x48xbf16, #tpu.memory_space<vmem>>, vector<8x48xbf16>,
    %cst_17 = arith.constant 0.000000e+00 : bf16
    %32 = vector.broadcast %cst_17 : bf16 to vector<16x48xbf16>
    %c24 = arith.constant 24 : index
    %c0_18 = arith.constant 0 : index
    %33 = vector.load %arg11[%c24, %c0_18] : memref<40x48xbf16, #tpu.memory_space<vmem>>, vector<16x48xbf16>
    tpu.vector_store %arg11[%c24, %c0_18], %32 {strides = array<i32>} : memref<40x48xbf16, #tpu.memory_space<vmem>>, vector<16x48xbf16>,
    %c11 = arith.constant 11 : index
    %c0_19 = arith.constant 0 : index
    %34 = vector.load %arg11[%c11, %c0_19] : memref<40x48xbf16, #tpu.memory_space<vmem>>, vector<8x48xbf16>
    %c12 = arith.constant 12 : index
    %c0_20 = arith.constant 0 : index
    %35 = vector.load %arg11[%c12, %c0_20] : memref<40x48xbf16, #tpu.memory_space<vmem>>, vector<8x48xbf16>
    %c13 = arith.constant 13 : index
    %c0_21 = arith.constant 0 : index
    %36 = vector.load %arg11[%c13, %c0_21] : memref<40x48xbf16, #tpu.memory_space<vmem>>, vector<8x48xbf16>
    %c15 = arith.constant 15 : index
    %c0_22 = arith.constant 0 : index
    %37 = vector.load %arg11[%c15, %c0_22] : memref<40x48xbf16, #tpu.memory_space<vmem>>, vector<8x48xbf16>
    %c16_23 = arith.constant 16 : index
    %c0_24 = arith.constant 0 : index
    %38 = vector.load %arg11[%c16_23, %c0_24] : memref<40x48xbf16, #tpu.memory_space<vmem>>, vector<8x48xbf16>
    %c17 = arith.constant 17 : index
    %c0_25 = arith.constant 0 : index
    %39 = vector.load %arg11[%c17, %c0_25] : memref<40x48xbf16, #tpu.memory_space<vmem>>, vector<8x48xbf16>
    %c19 = arith.constant 19 : index
    %c0_26 = arith.constant 0 : index
    %40 = vector.load %arg11[%c19, %c0_26] : memref<40x48xbf16, #tpu.memory_space<vmem>>, vector<8x48xbf16>
    %c20 = arith.constant 20 : index
    %c0_27 = arith.constant 0 : index
    %41 = vector.load %arg11[%c20, %c0_27] : memref<40x48xbf16, #tpu.memory_space<vmem>>, vector<8x48xbf16>
    %c21 = arith.constant 21 : index
    %c0_28 = arith.constant 0 : index
    %42 = vector.load %arg11[%c21, %c0_28] : memref<40x48xbf16, #tpu.memory_space<vmem>>, vector<8x48xbf16>
    %43 = tpu.concatenate %34, %35, %36, %37, %38, %39, %40, %41, %42 in 1 : vector<8x48xbf16>, vector<8x48xbf16>, vector<8x48xbf16>, vector<8x48xbf16>, vector<8x48xbf16>, vector<8x48xbf16>, vector<8x48xbf16>, vector<8x48xbf16>, vector<8x48xbf16> -> vector<8x432xbf16>
    %c0_29 = arith.constant 0 : index
    %c0_30 = arith.constant 0 : index
    %44 = vector.load %arg4[%c0_29, %c0_30] : memref<432x384xbf16, #tpu.memory_space<vmem>>, vector<432x384xbf16>
    %cst_31 = arith.constant dense<0.000000e+00> : vector<8x384xf32>
    %45 = tpu.matmul %43, %44, %cst_31 {dimension_numbers = #tpu.dot_dimension_numbers<[1], [0], [0], [1], [0, 0, 1, 1], [], []>} : vector<8x432xbf16>, vector<432x384xbf16>, vector<8x384xf32> -> vector<8x384xf32>
    %c0_32 = arith.constant 0 : index
    %c0_33 = arith.constant 0 : index
    %46 = vector.load %arg5[%c0_32, %c0_33] : memref<1x384xf32, #tpu.memory_space<vmem>>, vector<1x384xf32>
    %47 = vector.broadcast %46 : vector<1x384xf32> to vector<8x384xf32>
    %48 = arith.addf %45, %47 : vector<8x384xf32>
    %cst_34 = arith.constant 0.000000e+00 : f32
    %49 = vector.broadcast %cst_34 : f32 to vector<8x384xf32>
    %50 = arith.cmpf oge, %48, %49 : vector<8x384xf32>
    %cst_35 = arith.constant 2.000000e-01 : f32
    %51 = vector.broadcast %cst_35 : f32 to vector<8x384xf32>
    %52 = arith.mulf %48, %51 : vector<8x384xf32>
    %53 = arith.select %50, %48, %52 : vector<8x384xi1>, vector<8x384xf32>
    %54 = arith.truncf %53 : vector<8x384xf32> to vector<8x384xbf16>
    %c0_36 = arith.constant 0 : index
    %c0_37 = arith.constant 0 : index
    %55 = vector.load %arg6[%c0_36, %c0_37] : memref<384x48xbf16, #tpu.memory_space<vmem>>, vector<384x48xbf16>
    %cst_38 = arith.constant dense<0.000000e+00> : vector<8x48xf32>
    %56 = tpu.matmul %54, %55, %cst_38 {dimension_numbers = #tpu.dot_dimension_numbers<[1], [0], [0], [1], [0, 0, 1, 1], [], []>} : vector<8x384xbf16>, vector<384x48xbf16>, vector<8x48xf32> -> vector<8x48xf32>
    %c0_39 = arith.constant 0 : index
    %c0_40 = arith.constant 0 : index
    %57 = vector.load %arg7[%c0_39, %c0_40] : memref<1x48xf32, #tpu.memory_space<vmem>>, vector<1x48xf32>
    %58 = vector.broadcast %57 : vector<1x48xf32> to vector<8x48xf32>
    %59 = arith.addf %56, %58 : vector<8x48xf32>
    %cst_41 = arith.constant 0.000000e+00 : f32
    %60 = vector.broadcast %cst_41 : f32 to vector<8x48xf32>
    %61 = arith.cmpf oge, %59, %60 : vector<8x48xf32>
    %cst_42 = arith.constant 2.000000e-01 : f32
    %62 = vector.broadcast %cst_42 : f32 to vector<8x48xf32>
    %63 = arith.mulf %59, %62 : vector<8x48xf32>
    %64 = arith.select %61, %59, %63 : vector<8x48xi1>, vector<8x48xf32>
    %cst_43 = arith.constant 0.000000e+00 : f32
    %65 = vector.shape_cast %11 : vector<8x1xi1> to vector<8x1xi1>
    %66 = vector.broadcast %65 : vector<8x1xi1> to vector<8x48xi1>
    %67 = vector.broadcast %cst_43 : f32 to vector<8x48xf32>
    %68 = arith.select %66, %64, %67 : vector<8x48xi1>, vector<8x48xf32>
    %cst_44 = arith.constant 0.000000e+00 : bf16
    %69 = vector.broadcast %cst_44 : bf16 to vector<16x48xbf16>
    %c0_45 = arith.constant 0 : index
    %c0_46 = arith.constant 0 : index
    %70 = vector.load %arg11[%c0_45, %c0_46] : memref<40x48xbf16, #tpu.memory_space<vmem>>, vector<16x48xbf16>
    tpu.vector_store %arg11[%c0_45, %c0_46], %69 {strides = array<i32>} : memref<40x48xbf16, #tpu.memory_space<vmem>>, vector<16x48xbf16>,
    %71 = arith.truncf %68 : vector<8x48xf32> to vector<8x48xbf16>
    %c16_47 = arith.constant 16 : index
    %c0_48 = arith.constant 0 : index
    %72 = vector.load %arg11[%c16_47, %c0_48] : memref<40x48xbf16, #tpu.memory_space<vmem>>, vector<8x48xbf16>
    tpu.vector_store %arg11[%c16_47, %c0_48], %71 {strides = array<i32>} : memref<40x48xbf16, #tpu.memory_space<vmem>>, vector<8x48xbf16>,
    %cst_49 = arith.constant 0.000000e+00 : bf16
    %73 = vector.broadcast %cst_49 : bf16 to vector<16x48xbf16>
    %c24_50 = arith.constant 24 : index
    %c0_51 = arith.constant 0 : index
    %74 = vector.load %arg11[%c24_50, %c0_51] : memref<40x48xbf16, #tpu.memory_space<vmem>>, vector<16x48xbf16>
    tpu.vector_store %arg11[%c24_50, %c0_51], %73 {strides = array<i32>} : memref<40x48xbf16, #tpu.memory_space<vmem>>, vector<16x48xbf16>,
    %c11_52 = arith.constant 11 : index
    %c0_53 = arith.constant 0 : index
    %75 = vector.load %arg11[%c11_52, %c0_53] : memref<40x48xbf16, #tpu.memory_space<vmem>>, vector<8x48xbf16>
    %c12_54 = arith.constant 12 : index
    %c0_55 = arith.constant 0 : index
    %76 = vector.load %arg11[%c12_54, %c0_55] : memref<40x48xbf16, #tpu.memory_space<vmem>>, vector<8x48xbf16>
    %c13_56 = arith.constant 13 : index
    %c0_57 = arith.constant 0 : index
    %77 = vector.load %arg11[%c13_56, %c0_57] : memref<40x48xbf16, #tpu.memory_space<vmem>>, vector<8x48xbf16>
    %c15_58 = arith.constant 15 : index
    %c0_59 = arith.constant 0 : index
    %78 = vector.load %arg11[%c15_58, %c0_59] : memref<40x48xbf16, #tpu.memory_space<vmem>>, vector<8x48xbf16>
    %c16_60 = arith.constant 16 : index
    %c0_61 = arith.constant 0 : index
    %79 = vector.load %arg11[%c16_60, %c0_61] : memref<40x48xbf16, #tpu.memory_space<vmem>>, vector<8x48xbf16>
    %c17_62 = arith.constant 17 : index
    %c0_63 = arith.constant 0 : index
    %80 = vector.load %arg11[%c17_62, %c0_63] : memref<40x48xbf16, #tpu.memory_space<vmem>>, vector<8x48xbf16>
    %c19_64 = arith.constant 19 : index
    %c0_65 = arith.constant 0 : index
    %81 = vector.load %arg11[%c19_64, %c0_65] : memref<40x48xbf16, #tpu.memory_space<vmem>>, vector<8x48xbf16>
    %c20_66 = arith.constant 20 : index
    %c0_67 = arith.constant 0 : index
    %82 = vector.load %arg11[%c20_66, %c0_67] : memref<40x48xbf16, #tpu.memory_space<vmem>>, vector<8x48xbf16>
    %c21_68 = arith.constant 21 : index
    %c0_69 = arith.constant 0 : index
    %83 = vector.load %arg11[%c21_68, %c0_69] : memref<40x48xbf16, #tpu.memory_space<vmem>>, vector<8x48xbf16>
    %84 = tpu.concatenate %75, %76, %77, %78, %79, %80, %81, %82, %83 in 1 : vector<8x48xbf16>, vector<8x48xbf16>, vector<8x48xbf16>, vector<8x48xbf16>, vector<8x48xbf16>, vector<8x48xbf16>, vector<8x48xbf16>, vector<8x48xbf16>, vector<8x48xbf16> -> vector<8x432xbf16>
    %c0_70 = arith.constant 0 : index
    %c0_71 = arith.constant 0 : index
    %85 = vector.load %arg8[%c0_70, %c0_71] : memref<432x384xbf16, #tpu.memory_space<vmem>>, vector<432x384xbf16>
    %cst_72 = arith.constant dense<0.000000e+00> : vector<8x384xf32>
    %86 = tpu.matmul %84, %85, %cst_72 {dimension_numbers = #tpu.dot_dimension_numbers<[1], [0], [0], [1], [0, 0, 1, 1], [], []>} : vector<8x432xbf16>, vector<432x384xbf16>, vector<8x384xf32> -> vector<8x384xf32>
    %c0_73 = arith.constant 0 : index
    %c0_74 = arith.constant 0 : index
    %87 = vector.load %arg9[%c0_73, %c0_74] : memref<1x384xf32, #tpu.memory_space<vmem>>, vector<1x384xf32>
    %88 = vector.broadcast %87 : vector<1x384xf32> to vector<8x384xf32>
    %89 = arith.addf %86, %88 : vector<8x384xf32>
    %cst_75 = arith.constant 0.000000e+00 : f32
    %90 = vector.broadcast %cst_75 : f32 to vector<8x384xf32>
    %91 = arith.cmpf oge, %89, %90 : vector<8x384xf32>
    %cst_76 = arith.constant 2.000000e-01 : f32
    %92 = vector.broadcast %cst_76 : f32 to vector<8x384xf32>
    %93 = arith.mulf %89, %92 : vector<8x384xf32>
    %94 = arith.select %91, %89, %93 : vector<8x384xi1>, vector<8x384xf32>
    %95 = arith.truncf %94 : vector<8x384xf32> to vector<8x384xbf16>
    %c0_77 = arith.constant 0 : index
    %c0_78 = arith.constant 0 : index
    %c0_79 = arith.constant 0 : index
    %96 = vector.load %arg10[%c0_77, %c0_78, %c0_79] : memref<1x8x384xbf16, #tpu.memory_space<vmem>>, vector<1x8x384xbf16>
    %97 = vector.shape_cast %96 : vector<1x8x384xbf16> to vector<8x384xbf16>
    %98 = vector.shape_cast %95 : vector<8x384xbf16> to vector<1x8x384xbf16>
    tpu.vector_store %arg10[%c0_77, %c0_78, %c0_79], %98 {strides = array<i32>} : memref<1x8x384xbf16, #tpu.memory_space<vmem>>, vector<1x8x384xbf16>,
    return
  }
  func.func @transform_0(%arg0: i32) -> (i32, i32, i32) {
    %c0_i32 = arith.constant 0 : i32
    %c0_i32_0 = arith.constant 0 : i32
    %c0_i32_1 = arith.constant 0 : i32
    return %arg0, %c0_i32, %c0_i32_0 : i32, i32, i32
  }
  func.func @transform_1(%arg0: i32) -> (i32, i32) {
    %c0_i32 = arith.constant 0 : i32
    %c0_i32_0 = arith.constant 0 : i32
    %c0_i32_1 = arith.constant 0 : i32
    return %c0_i32, %c0_i32_0 : i32, i32
  }
  func.func @transform_2(%arg0: i32) -> (i32, i32) {
    %c0_i32 = arith.constant 0 : i32
    %c0_i32_0 = arith.constant 0 : i32
    %c0_i32_1 = arith.constant 0 : i32
    return %c0_i32, %c0_i32_0 : i32, i32
  }
  func.func @transform_3(%arg0: i32) -> (i32, i32) {
    %c0_i32 = arith.constant 0 : i32
    %c0_i32_0 = arith.constant 0 : i32
    %c0_i32_1 = arith.constant 0 : i32
    return %c0_i32, %c0_i32_0 : i32, i32
  }
  func.func @transform_4(%arg0: i32) -> (i32, i32) {
    %c0_i32 = arith.constant 0 : i32
    %c0_i32_0 = arith.constant 0 : i32
    %c0_i32_1 = arith.constant 0 : i32
    return %c0_i32, %c0_i32_0 : i32, i32
  }
  func.func @transform_5(%arg0: i32) -> (i32, i32) {
    %c0_i32 = arith.constant 0 : i32
    %c0_i32_0 = arith.constant 0 : i32
    %c0_i32_1 = arith.constant 0 : i32
    return %c0_i32, %c0_i32_0 : i32, i32
  }
  func.func @transform_6(%arg0: i32) -> (i32, i32) {
    %c0_i32 = arith.constant 0 : i32
    %c0_i32_0 = arith.constant 0 : i32
    %c0_i32_1 = arith.constant 0 : i32
    return %c0_i32, %c0_i32_0 : i32, i32
  }
  func.func @transform_7(%arg0: i32) -> (i32, i32) {
    %c0_i32 = arith.constant 0 : i32
    %c0_i32_0 = arith.constant 0 : i32
    %c0_i32_1 = arith.constant 0 : i32
    return %c0_i32, %c0_i32_0 : i32, i32
  }
  func.func @transform_8(%arg0: i32) -> (i32, i32) {
    %c0_i32 = arith.constant 0 : i32
    %c0_i32_0 = arith.constant 0 : i32
    %c0_i32_1 = arith.constant 0 : i32
    return %c0_i32, %c0_i32_0 : i32, i32
  }
  func.func @transform_9(%arg0: i32) -> (i32, i32, i32) {
    %c0_i32 = arith.constant 0 : i32
    %c0_i32_0 = arith.constant 0 : i32
    %c0_i32_1 = arith.constant 0 : i32
    return %arg0, %c0_i32, %c0_i32_0 : i32, i32, i32
  }
}

module attributes {stable_mosaic.version = 11 : i64} {
  func.func @_fire_chain_kernel(%arg0: i32, %arg1: memref<1x8x384xbf16, #tpu.memory_space<vmem>>, %arg2: memref<384x64xbf16, #tpu.memory_space<vmem>>, %arg3: memref<1x64xf32, #tpu.memory_space<vmem>>, %arg4: memref<576x512xbf16, #tpu.memory_space<vmem>>, %arg5: memref<1x512xf32, #tpu.memory_space<vmem>>, %arg6: memref<512x64xbf16, #tpu.memory_space<vmem>>, %arg7: memref<1x64xf32, #tpu.memory_space<vmem>>, %arg8: memref<576x512xbf16, #tpu.memory_space<vmem>>, %arg9: memref<1x512xf32, #tpu.memory_space<vmem>>, %arg10: memref<1x8x512xbf16, #tpu.memory_space<vmem>>, %arg11: memref<40x64xbf16, #tpu.memory_space<vmem>>) attributes {dimension_semantics = [#tpu.dimension_semantics<parallel>], iteration_bounds = array<i64: 2>, scalar_prefetch = 0 : i64, scratch_operands = 1 : i64, tpu.core_type = #tpu.core_type<tc>, window_params = [{transform_indices = @transform_0, window_bounds = array<i64: 1, 8, 384>}, {pipeline_mode = #tpu.pipeline_mode<synchronous>, transform_indices = @transform_1, window_bounds = array<i64: 384, 64>}, {pipeline_mode = #tpu.pipeline_mode<synchronous>, transform_indices = @transform_2, window_bounds = array<i64: 1, 64>}, {pipeline_mode = #tpu.pipeline_mode<synchronous>, transform_indices = @transform_3, window_bounds = array<i64: 576, 512>}, {pipeline_mode = #tpu.pipeline_mode<synchronous>, transform_indices = @transform_4, window_bounds = array<i64: 1, 512>}, {pipeline_mode = #tpu.pipeline_mode<synchronous>, transform_indices = @transform_5, window_bounds = array<i64: 512, 64>}, {pipeline_mode = #tpu.pipeline_mode<synchronous>, transform_indices = @transform_6, window_bounds = array<i64: 1, 64>}, {pipeline_mode = #tpu.pipeline_mode<synchronous>, transform_indices = @transform_7, window_bounds = array<i64: 576, 512>}, {pipeline_mode = #tpu.pipeline_mode<synchronous>, transform_indices = @transform_8, window_bounds = array<i64: 1, 512>}, {transform_indices = @transform_9, window_bounds = array<i64: 1, 8, 512>}]} {
    %0 = tpu.iota {dimensions = array<i32: 0>} : vector<8x1xi32>
    %1 = arith.sitofp %0 : vector<8x1xi32> to vector<8x1xf32>
    %cst = arith.constant 5.000000e-01 : f32
    %2 = vector.broadcast %cst : f32 to vector<8x1xf32>
    %3 = arith.addf %1, %2 : vector<8x1xf32>
    %cst_0 = arith.constant 2.500000e-01 : f32
    %4 = vector.broadcast %cst_0 : f32 to vector<8x1xf32>
    %5 = arith.mulf %3, %4 : vector<8x1xf32>
    %6 = math.floor %5 : vector<8x1xf32>
    %cst_1 = arith.constant 4.000000e+00 : f32
    %7 = vector.broadcast %cst_1 : f32 to vector<8x1xf32>
    %8 = arith.mulf %6, %7 : vector<8x1xf32>
    %9 = arith.subf %1, %8 : vector<8x1xf32>
    %cst_2 = arith.constant 1.500000e+00 : f32
    %10 = vector.broadcast %cst_2 : f32 to vector<8x1xf32>
    %11 = arith.cmpf olt, %9, %10 : vector<8x1xf32>
    %c0 = arith.constant 0 : index
    %c0_3 = arith.constant 0 : index
    %c0_4 = arith.constant 0 : index
    %12 = vector.load %arg1[%c0, %c0_3, %c0_4] : memref<1x8x384xbf16, #tpu.memory_space<vmem>>, vector<1x8x384xbf16>
    %13 = vector.shape_cast %12 : vector<1x8x384xbf16> to vector<8x384xbf16>
    %c0_5 = arith.constant 0 : index
    %c0_6 = arith.constant 0 : index
    %14 = vector.load %arg2[%c0_5, %c0_6] : memref<384x64xbf16, #tpu.memory_space<vmem>>, vector<384x64xbf16>
    %cst_7 = arith.constant dense<0.000000e+00> : vector<8x64xf32>
    %15 = tpu.matmul %13, %14, %cst_7 {dimension_numbers = #tpu.dot_dimension_numbers<[1], [0], [0], [1], [0, 0, 1, 1], [], []>} : vector<8x384xbf16>, vector<384x64xbf16>, vector<8x64xf32> -> vector<8x64xf32>
    %c0_8 = arith.constant 0 : index
    %c0_9 = arith.constant 0 : index
    %16 = vector.load %arg3[%c0_8, %c0_9] : memref<1x64xf32, #tpu.memory_space<vmem>>, vector<1x64xf32>
    %17 = vector.broadcast %16 : vector<1x64xf32> to vector<8x64xf32>
    %18 = arith.addf %15, %17 : vector<8x64xf32>
    %cst_10 = arith.constant 0.000000e+00 : f32
    %19 = vector.broadcast %cst_10 : f32 to vector<8x64xf32>
    %20 = arith.cmpf oge, %18, %19 : vector<8x64xf32>
    %cst_11 = arith.constant 2.000000e-01 : f32
    %21 = vector.broadcast %cst_11 : f32 to vector<8x64xf32>
    %22 = arith.mulf %18, %21 : vector<8x64xf32>
    %23 = arith.select %20, %18, %22 : vector<8x64xi1>, vector<8x64xf32>
    %cst_12 = arith.constant 0.000000e+00 : f32
    %24 = vector.shape_cast %11 : vector<8x1xi1> to vector<8x1xi1>
    %25 = vector.broadcast %24 : vector<8x1xi1> to vector<8x64xi1>
    %26 = vector.broadcast %cst_12 : f32 to vector<8x64xf32>
    %27 = arith.select %25, %23, %26 : vector<8x64xi1>, vector<8x64xf32>
    %cst_13 = arith.constant 0.000000e+00 : bf16
    %28 = vector.broadcast %cst_13 : bf16 to vector<16x64xbf16>
    %c0_14 = arith.constant 0 : index
    %c0_15 = arith.constant 0 : index
    %29 = vector.load %arg11[%c0_14, %c0_15] : memref<40x64xbf16, #tpu.memory_space<vmem>>, vector<16x64xbf16>
    tpu.vector_store %arg11[%c0_14, %c0_15], %28 {strides = array<i32>} : memref<40x64xbf16, #tpu.memory_space<vmem>>, vector<16x64xbf16>,
    %30 = arith.truncf %27 : vector<8x64xf32> to vector<8x64xbf16>
    %c16 = arith.constant 16 : index
    %c0_16 = arith.constant 0 : index
    %31 = vector.load %arg11[%c16, %c0_16] : memref<40x64xbf16, #tpu.memory_space<vmem>>, vector<8x64xbf16>
    tpu.vector_store %arg11[%c16, %c0_16], %30 {strides = array<i32>} : memref<40x64xbf16, #tpu.memory_space<vmem>>, vector<8x64xbf16>,
    %cst_17 = arith.constant 0.000000e+00 : bf16
    %32 = vector.broadcast %cst_17 : bf16 to vector<16x64xbf16>
    %c24 = arith.constant 24 : index
    %c0_18 = arith.constant 0 : index
    %33 = vector.load %arg11[%c24, %c0_18] : memref<40x64xbf16, #tpu.memory_space<vmem>>, vector<16x64xbf16>
    tpu.vector_store %arg11[%c24, %c0_18], %32 {strides = array<i32>} : memref<40x64xbf16, #tpu.memory_space<vmem>>, vector<16x64xbf16>,
    %c11 = arith.constant 11 : index
    %c0_19 = arith.constant 0 : index
    %34 = vector.load %arg11[%c11, %c0_19] : memref<40x64xbf16, #tpu.memory_space<vmem>>, vector<8x64xbf16>
    %c12 = arith.constant 12 : index
    %c0_20 = arith.constant 0 : index
    %35 = vector.load %arg11[%c12, %c0_20] : memref<40x64xbf16, #tpu.memory_space<vmem>>, vector<8x64xbf16>
    %c13 = arith.constant 13 : index
    %c0_21 = arith.constant 0 : index
    %36 = vector.load %arg11[%c13, %c0_21] : memref<40x64xbf16, #tpu.memory_space<vmem>>, vector<8x64xbf16>
    %c15 = arith.constant 15 : index
    %c0_22 = arith.constant 0 : index
    %37 = vector.load %arg11[%c15, %c0_22] : memref<40x64xbf16, #tpu.memory_space<vmem>>, vector<8x64xbf16>
    %c16_23 = arith.constant 16 : index
    %c0_24 = arith.constant 0 : index
    %38 = vector.load %arg11[%c16_23, %c0_24] : memref<40x64xbf16, #tpu.memory_space<vmem>>, vector<8x64xbf16>
    %c17 = arith.constant 17 : index
    %c0_25 = arith.constant 0 : index
    %39 = vector.load %arg11[%c17, %c0_25] : memref<40x64xbf16, #tpu.memory_space<vmem>>, vector<8x64xbf16>
    %c19 = arith.constant 19 : index
    %c0_26 = arith.constant 0 : index
    %40 = vector.load %arg11[%c19, %c0_26] : memref<40x64xbf16, #tpu.memory_space<vmem>>, vector<8x64xbf16>
    %c20 = arith.constant 20 : index
    %c0_27 = arith.constant 0 : index
    %41 = vector.load %arg11[%c20, %c0_27] : memref<40x64xbf16, #tpu.memory_space<vmem>>, vector<8x64xbf16>
    %c21 = arith.constant 21 : index
    %c0_28 = arith.constant 0 : index
    %42 = vector.load %arg11[%c21, %c0_28] : memref<40x64xbf16, #tpu.memory_space<vmem>>, vector<8x64xbf16>
    %43 = tpu.concatenate %34, %35, %36, %37, %38, %39, %40, %41, %42 in 1 : vector<8x64xbf16>, vector<8x64xbf16>, vector<8x64xbf16>, vector<8x64xbf16>, vector<8x64xbf16>, vector<8x64xbf16>, vector<8x64xbf16>, vector<8x64xbf16>, vector<8x64xbf16> -> vector<8x576xbf16>
    %c0_29 = arith.constant 0 : index
    %c0_30 = arith.constant 0 : index
    %44 = vector.load %arg4[%c0_29, %c0_30] : memref<576x512xbf16, #tpu.memory_space<vmem>>, vector<576x512xbf16>
    %cst_31 = arith.constant dense<0.000000e+00> : vector<8x512xf32>
    %45 = tpu.matmul %43, %44, %cst_31 {dimension_numbers = #tpu.dot_dimension_numbers<[1], [0], [0], [1], [0, 0, 1, 1], [], []>} : vector<8x576xbf16>, vector<576x512xbf16>, vector<8x512xf32> -> vector<8x512xf32>
    %c0_32 = arith.constant 0 : index
    %c0_33 = arith.constant 0 : index
    %46 = vector.load %arg5[%c0_32, %c0_33] : memref<1x512xf32, #tpu.memory_space<vmem>>, vector<1x512xf32>
    %47 = vector.broadcast %46 : vector<1x512xf32> to vector<8x512xf32>
    %48 = arith.addf %45, %47 : vector<8x512xf32>
    %cst_34 = arith.constant 0.000000e+00 : f32
    %49 = vector.broadcast %cst_34 : f32 to vector<8x512xf32>
    %50 = arith.cmpf oge, %48, %49 : vector<8x512xf32>
    %cst_35 = arith.constant 2.000000e-01 : f32
    %51 = vector.broadcast %cst_35 : f32 to vector<8x512xf32>
    %52 = arith.mulf %48, %51 : vector<8x512xf32>
    %53 = arith.select %50, %48, %52 : vector<8x512xi1>, vector<8x512xf32>
    %54 = arith.truncf %53 : vector<8x512xf32> to vector<8x512xbf16>
    %c0_36 = arith.constant 0 : index
    %c0_37 = arith.constant 0 : index
    %55 = vector.load %arg6[%c0_36, %c0_37] : memref<512x64xbf16, #tpu.memory_space<vmem>>, vector<512x64xbf16>
    %cst_38 = arith.constant dense<0.000000e+00> : vector<8x64xf32>
    %56 = tpu.matmul %54, %55, %cst_38 {dimension_numbers = #tpu.dot_dimension_numbers<[1], [0], [0], [1], [0, 0, 1, 1], [], []>} : vector<8x512xbf16>, vector<512x64xbf16>, vector<8x64xf32> -> vector<8x64xf32>
    %c0_39 = arith.constant 0 : index
    %c0_40 = arith.constant 0 : index
    %57 = vector.load %arg7[%c0_39, %c0_40] : memref<1x64xf32, #tpu.memory_space<vmem>>, vector<1x64xf32>
    %58 = vector.broadcast %57 : vector<1x64xf32> to vector<8x64xf32>
    %59 = arith.addf %56, %58 : vector<8x64xf32>
    %cst_41 = arith.constant 0.000000e+00 : f32
    %60 = vector.broadcast %cst_41 : f32 to vector<8x64xf32>
    %61 = arith.cmpf oge, %59, %60 : vector<8x64xf32>
    %cst_42 = arith.constant 2.000000e-01 : f32
    %62 = vector.broadcast %cst_42 : f32 to vector<8x64xf32>
    %63 = arith.mulf %59, %62 : vector<8x64xf32>
    %64 = arith.select %61, %59, %63 : vector<8x64xi1>, vector<8x64xf32>
    %cst_43 = arith.constant 0.000000e+00 : f32
    %65 = vector.shape_cast %11 : vector<8x1xi1> to vector<8x1xi1>
    %66 = vector.broadcast %65 : vector<8x1xi1> to vector<8x64xi1>
    %67 = vector.broadcast %cst_43 : f32 to vector<8x64xf32>
    %68 = arith.select %66, %64, %67 : vector<8x64xi1>, vector<8x64xf32>
    %cst_44 = arith.constant 0.000000e+00 : bf16
    %69 = vector.broadcast %cst_44 : bf16 to vector<16x64xbf16>
    %c0_45 = arith.constant 0 : index
    %c0_46 = arith.constant 0 : index
    %70 = vector.load %arg11[%c0_45, %c0_46] : memref<40x64xbf16, #tpu.memory_space<vmem>>, vector<16x64xbf16>
    tpu.vector_store %arg11[%c0_45, %c0_46], %69 {strides = array<i32>} : memref<40x64xbf16, #tpu.memory_space<vmem>>, vector<16x64xbf16>,
    %71 = arith.truncf %68 : vector<8x64xf32> to vector<8x64xbf16>
    %c16_47 = arith.constant 16 : index
    %c0_48 = arith.constant 0 : index
    %72 = vector.load %arg11[%c16_47, %c0_48] : memref<40x64xbf16, #tpu.memory_space<vmem>>, vector<8x64xbf16>
    tpu.vector_store %arg11[%c16_47, %c0_48], %71 {strides = array<i32>} : memref<40x64xbf16, #tpu.memory_space<vmem>>, vector<8x64xbf16>,
    %cst_49 = arith.constant 0.000000e+00 : bf16
    %73 = vector.broadcast %cst_49 : bf16 to vector<16x64xbf16>
    %c24_50 = arith.constant 24 : index
    %c0_51 = arith.constant 0 : index
    %74 = vector.load %arg11[%c24_50, %c0_51] : memref<40x64xbf16, #tpu.memory_space<vmem>>, vector<16x64xbf16>
    tpu.vector_store %arg11[%c24_50, %c0_51], %73 {strides = array<i32>} : memref<40x64xbf16, #tpu.memory_space<vmem>>, vector<16x64xbf16>,
    %c11_52 = arith.constant 11 : index
    %c0_53 = arith.constant 0 : index
    %75 = vector.load %arg11[%c11_52, %c0_53] : memref<40x64xbf16, #tpu.memory_space<vmem>>, vector<8x64xbf16>
    %c12_54 = arith.constant 12 : index
    %c0_55 = arith.constant 0 : index
    %76 = vector.load %arg11[%c12_54, %c0_55] : memref<40x64xbf16, #tpu.memory_space<vmem>>, vector<8x64xbf16>
    %c13_56 = arith.constant 13 : index
    %c0_57 = arith.constant 0 : index
    %77 = vector.load %arg11[%c13_56, %c0_57] : memref<40x64xbf16, #tpu.memory_space<vmem>>, vector<8x64xbf16>
    %c15_58 = arith.constant 15 : index
    %c0_59 = arith.constant 0 : index
    %78 = vector.load %arg11[%c15_58, %c0_59] : memref<40x64xbf16, #tpu.memory_space<vmem>>, vector<8x64xbf16>
    %c16_60 = arith.constant 16 : index
    %c0_61 = arith.constant 0 : index
    %79 = vector.load %arg11[%c16_60, %c0_61] : memref<40x64xbf16, #tpu.memory_space<vmem>>, vector<8x64xbf16>
    %c17_62 = arith.constant 17 : index
    %c0_63 = arith.constant 0 : index
    %80 = vector.load %arg11[%c17_62, %c0_63] : memref<40x64xbf16, #tpu.memory_space<vmem>>, vector<8x64xbf16>
    %c19_64 = arith.constant 19 : index
    %c0_65 = arith.constant 0 : index
    %81 = vector.load %arg11[%c19_64, %c0_65] : memref<40x64xbf16, #tpu.memory_space<vmem>>, vector<8x64xbf16>
    %c20_66 = arith.constant 20 : index
    %c0_67 = arith.constant 0 : index
    %82 = vector.load %arg11[%c20_66, %c0_67] : memref<40x64xbf16, #tpu.memory_space<vmem>>, vector<8x64xbf16>
    %c21_68 = arith.constant 21 : index
    %c0_69 = arith.constant 0 : index
    %83 = vector.load %arg11[%c21_68, %c0_69] : memref<40x64xbf16, #tpu.memory_space<vmem>>, vector<8x64xbf16>
    %84 = tpu.concatenate %75, %76, %77, %78, %79, %80, %81, %82, %83 in 1 : vector<8x64xbf16>, vector<8x64xbf16>, vector<8x64xbf16>, vector<8x64xbf16>, vector<8x64xbf16>, vector<8x64xbf16>, vector<8x64xbf16>, vector<8x64xbf16>, vector<8x64xbf16> -> vector<8x576xbf16>
    %c0_70 = arith.constant 0 : index
    %c0_71 = arith.constant 0 : index
    %85 = vector.load %arg8[%c0_70, %c0_71] : memref<576x512xbf16, #tpu.memory_space<vmem>>, vector<576x512xbf16>
    %cst_72 = arith.constant dense<0.000000e+00> : vector<8x512xf32>
    %86 = tpu.matmul %84, %85, %cst_72 {dimension_numbers = #tpu.dot_dimension_numbers<[1], [0], [0], [1], [0, 0, 1, 1], [], []>} : vector<8x576xbf16>, vector<576x512xbf16>, vector<8x512xf32> -> vector<8x512xf32>
    %c0_73 = arith.constant 0 : index
    %c0_74 = arith.constant 0 : index
    %87 = vector.load %arg9[%c0_73, %c0_74] : memref<1x512xf32, #tpu.memory_space<vmem>>, vector<1x512xf32>
    %88 = vector.broadcast %87 : vector<1x512xf32> to vector<8x512xf32>
    %89 = arith.addf %86, %88 : vector<8x512xf32>
    %cst_75 = arith.constant 0.000000e+00 : f32
    %90 = vector.broadcast %cst_75 : f32 to vector<8x512xf32>
    %91 = arith.cmpf oge, %89, %90 : vector<8x512xf32>
    %cst_76 = arith.constant 2.000000e-01 : f32
    %92 = vector.broadcast %cst_76 : f32 to vector<8x512xf32>
    %93 = arith.mulf %89, %92 : vector<8x512xf32>
    %94 = arith.select %91, %89, %93 : vector<8x512xi1>, vector<8x512xf32>
    %95 = arith.truncf %94 : vector<8x512xf32> to vector<8x512xbf16>
    %c0_77 = arith.constant 0 : index
    %c0_78 = arith.constant 0 : index
    %c0_79 = arith.constant 0 : index
    %96 = vector.load %arg10[%c0_77, %c0_78, %c0_79] : memref<1x8x512xbf16, #tpu.memory_space<vmem>>, vector<1x8x512xbf16>
    %97 = vector.shape_cast %96 : vector<1x8x512xbf16> to vector<8x512xbf16>
    %98 = vector.shape_cast %95 : vector<8x512xbf16> to vector<1x8x512xbf16>
    tpu.vector_store %arg10[%c0_77, %c0_78, %c0_79], %98 {strides = array<i32>} : memref<1x8x512xbf16, #tpu.memory_space<vmem>>, vector<1x8x512xbf16>,
    return
  }
  func.func @transform_0(%arg0: i32) -> (i32, i32, i32) {
    %c0_i32 = arith.constant 0 : i32
    %c0_i32_0 = arith.constant 0 : i32
    %c0_i32_1 = arith.constant 0 : i32
    return %arg0, %c0_i32, %c0_i32_0 : i32, i32, i32
  }
  func.func @transform_1(%arg0: i32) -> (i32, i32) {
    %c0_i32 = arith.constant 0 : i32
    %c0_i32_0 = arith.constant 0 : i32
    %c0_i32_1 = arith.constant 0 : i32
    return %c0_i32, %c0_i32_0 : i32, i32
  }
  func.func @transform_2(%arg0: i32) -> (i32, i32) {
    %c0_i32 = arith.constant 0 : i32
    %c0_i32_0 = arith.constant 0 : i32
    %c0_i32_1 = arith.constant 0 : i32
    return %c0_i32, %c0_i32_0 : i32, i32
  }
  func.func @transform_3(%arg0: i32) -> (i32, i32) {
    %c0_i32 = arith.constant 0 : i32
    %c0_i32_0 = arith.constant 0 : i32
    %c0_i32_1 = arith.constant 0 : i32
    return %c0_i32, %c0_i32_0 : i32, i32
  }
  func.func @transform_4(%arg0: i32) -> (i32, i32) {
    %c0_i32 = arith.constant 0 : i32
    %c0_i32_0 = arith.constant 0 : i32
    %c0_i32_1 = arith.constant 0 : i32
    return %c0_i32, %c0_i32_0 : i32, i32
  }
  func.func @transform_5(%arg0: i32) -> (i32, i32) {
    %c0_i32 = arith.constant 0 : i32
    %c0_i32_0 = arith.constant 0 : i32
    %c0_i32_1 = arith.constant 0 : i32
    return %c0_i32, %c0_i32_0 : i32, i32
  }
  func.func @transform_6(%arg0: i32) -> (i32, i32) {
    %c0_i32 = arith.constant 0 : i32
    %c0_i32_0 = arith.constant 0 : i32
    %c0_i32_1 = arith.constant 0 : i32
    return %c0_i32, %c0_i32_0 : i32, i32
  }
  func.func @transform_7(%arg0: i32) -> (i32, i32) {
    %c0_i32 = arith.constant 0 : i32
    %c0_i32_0 = arith.constant 0 : i32
    %c0_i32_1 = arith.constant 0 : i32
    return %c0_i32, %c0_i32_0 : i32, i32
  }
  func.func @transform_8(%arg0: i32) -> (i32, i32) {
    %c0_i32 = arith.constant 0 : i32
    %c0_i32_0 = arith.constant 0 : i32
    %c0_i32_1 = arith.constant 0 : i32
    return %c0_i32, %c0_i32_0 : i32, i32
  }
  func.func @transform_9(%arg0: i32) -> (i32, i32, i32) {
    %c0_i32 = arith.constant 0 : i32
    %c0_i32_0 = arith.constant 0 : i32
    %c0_i32_1 = arith.constant 0 : i32
    return %arg0, %c0_i32, %c0_i32_0 : i32, i32, i32
  }
}

module attributes {stable_mosaic.version = 11 : i64} {
  func.func @_classifier_kernel(%arg0: i32, %arg1: memref<16x512xbf16, #tpu.memory_space<vmem>>, %arg2: memref<512x128xbf16, #tpu.memory_space<vmem>>, %arg3: memref<1x128xf32, #tpu.memory_space<vmem>>, %arg4: memref<2x128xf32, #tpu.memory_space<vmem>>) attributes {dimension_semantics = [#tpu.dimension_semantics<arbitrary>], iteration_bounds = array<i64: 1>, scalar_prefetch = 0 : i64, scratch_operands = 0 : i64, tpu.core_type = #tpu.core_type<tc>, window_params = [{pipeline_mode = #tpu.pipeline_mode<synchronous>, transform_indices = @transform_0, window_bounds = array<i64: 16, 512>}, {pipeline_mode = #tpu.pipeline_mode<synchronous>, transform_indices = @transform_1, window_bounds = array<i64: 512, 128>}, {pipeline_mode = #tpu.pipeline_mode<synchronous>, transform_indices = @transform_2, window_bounds = array<i64: 1, 128>}, {pipeline_mode = #tpu.pipeline_mode<synchronous>, transform_indices = @transform_3, window_bounds = array<i64: 2, 128>}]} {
    %c0 = arith.constant 0 : index
    %c0_0 = arith.constant 0 : index
    %0 = vector.load %arg1[%c0, %c0_0] : memref<16x512xbf16, #tpu.memory_space<vmem>>, vector<16x512xbf16>
    %c0_1 = arith.constant 0 : index
    %c0_2 = arith.constant 0 : index
    %1 = vector.load %arg2[%c0_1, %c0_2] : memref<512x128xbf16, #tpu.memory_space<vmem>>, vector<512x128xbf16>
    %cst = arith.constant dense<0.000000e+00> : vector<16x128xf32>
    %2 = tpu.matmul %0, %1, %cst {dimension_numbers = #tpu.dot_dimension_numbers<[1], [0], [0], [1], [0, 0, 1, 1], [], []>} : vector<16x512xbf16>, vector<512x128xbf16>, vector<16x128xf32> -> vector<16x128xf32>
    %c0_3 = arith.constant 0 : index
    %c0_4 = arith.constant 0 : index
    %3 = vector.load %arg3[%c0_3, %c0_4] : memref<1x128xf32, #tpu.memory_space<vmem>>, vector<1x128xf32>
    %4 = vector.broadcast %3 : vector<1x128xf32> to vector<16x128xf32>
    %5 = arith.addf %2, %4 : vector<16x128xf32>
    %cst_5 = arith.constant 0.000000e+00 : f32
    %6 = vector.broadcast %cst_5 : f32 to vector<16x128xf32>
    %7 = arith.cmpf oge, %5, %6 : vector<16x128xf32>
    %cst_6 = arith.constant 2.000000e-01 : f32
    %8 = vector.broadcast %cst_6 : f32 to vector<16x128xf32>
    %9 = arith.mulf %5, %8 : vector<16x128xf32>
    %10 = arith.select %7, %5, %9 : vector<16x128xi1>, vector<16x128xf32>
    %11 = tpu.iota {dimensions = array<i32: 1>} : vector<2x16xi32>
    %12 = arith.sitofp %11 : vector<2x16xi32> to vector<2x16xf32>
    %13 = tpu.iota {dimensions = array<i32: 0>} : vector<2x16xi32>
    %14 = arith.sitofp %13 : vector<2x16xi32> to vector<2x16xf32>
    %cst_7 = arith.constant 5.000000e-01 : f32
    %15 = vector.broadcast %cst_7 : f32 to vector<2x16xf32>
    %16 = arith.addf %12, %15 : vector<2x16xf32>
    %cst_8 = arith.constant 1.250000e-01 : f32
    %17 = vector.broadcast %cst_8 : f32 to vector<2x16xf32>
    %18 = arith.mulf %16, %17 : vector<2x16xf32>
    %19 = math.floor %18 : vector<2x16xf32>
    %cst_9 = arith.constant 5.000000e-01 : f32
    %20 = vector.broadcast %cst_9 : f32 to vector<2x16xf32>
    %21 = arith.addf %12, %20 : vector<2x16xf32>
    %cst_10 = arith.constant 2.500000e-01 : f32
    %22 = vector.broadcast %cst_10 : f32 to vector<2x16xf32>
    %23 = arith.mulf %21, %22 : vector<2x16xf32>
    %24 = math.floor %23 : vector<2x16xf32>
    %cst_11 = arith.constant 4.000000e+00 : f32
    %25 = vector.broadcast %cst_11 : f32 to vector<2x16xf32>
    %26 = arith.mulf %24, %25 : vector<2x16xf32>
    %27 = arith.subf %12, %26 : vector<2x16xf32>
    %28 = arith.subf %19, %14 : vector<2x16xf32>
    %29 = math.absf %28 : vector<2x16xf32>
    %cst_12 = arith.constant 5.000000e-01 : f32
    %30 = vector.broadcast %cst_12 : f32 to vector<2x16xf32>
    %31 = arith.cmpf olt, %29, %30 : vector<2x16xf32>
    %cst_13 = arith.constant 1.500000e+00 : f32
    %32 = vector.broadcast %cst_13 : f32 to vector<2x16xf32>
    %33 = arith.cmpf olt, %27, %32 : vector<2x16xf32>
    %34 = arith.andi %31, %33 : vector<2x16xi1>
    %35 = arith.extui %34 : vector<2x16xi1> to vector<2x16xi32>
    %36 = arith.sitofp %35 : vector<2x16xi32> to vector<2x16xf32>
    %cst_14 = arith.constant dense<0.000000e+00> : vector<2x128xf32>
    %37 = tpu.matmul %36, %10, %cst_14 {dimension_numbers = #tpu.dot_dimension_numbers<[1], [0], [0], [1], [0, 0, 1, 1], [], []>} : vector<2x16xf32>, vector<16x128xf32>, vector<2x128xf32> -> vector<2x128xf32>
    %cst_15 = arith.constant 2.500000e-01 : f32
    %38 = vector.broadcast %cst_15 : f32 to vector<2x128xf32>
    %39 = arith.mulf %37, %38 : vector<2x128xf32>
    %c0_16 = arith.constant 0 : index
    %c0_17 = arith.constant 0 : index
    %40 = vector.load %arg4[%c0_16, %c0_17] : memref<2x128xf32, #tpu.memory_space<vmem>>, vector<2x128xf32>
    tpu.vector_store %arg4[%c0_16, %c0_17], %39 {strides = array<i32>} : memref<2x128xf32, #tpu.memory_space<vmem>>, vector<2x128xf32>,
    return
  }
  func.func @transform_0(%arg0: i32) -> (i32, i32) {
    %c0_i32 = arith.constant 0 : i32
    %c0_i32_0 = arith.constant 0 : i32
    %c0_i32_1 = arith.constant 0 : i32
    return %c0_i32, %c0_i32_0 : i32, i32
  }
  func.func @transform_1(%arg0: i32) -> (i32, i32) {
    %c0_i32 = arith.constant 0 : i32
    %c0_i32_0 = arith.constant 0 : i32
    %c0_i32_1 = arith.constant 0 : i32
    return %c0_i32, %c0_i32_0 : i32, i32
  }
  func.func @transform_2(%arg0: i32) -> (i32, i32) {
    %c0_i32 = arith.constant 0 : i32
    %c0_i32_0 = arith.constant 0 : i32
    %c0_i32_1 = arith.constant 0 : i32
    return %c0_i32, %c0_i32_0 : i32, i32
  }
  func.func @transform_3(%arg0: i32) -> (i32, i32) {
    %c0_i32 = arith.constant 0 : i32
    %c0_i32_0 = arith.constant 0 : i32
    %c0_i32_1 = arith.constant 0 : i32
    return %c0_i32, %c0_i32_0 : i32, i32
  }
}

</mosaic_0001>

<bundles_post_ra>
// kernel: squeezenet_forward.8
= control target key start
LH: loop header
LB: loop body
LE: loop exit
PB: predicated region body
PF: predicated region fallthrough
CT: control target
= control target key end

     0   :  { %s725_s12 = smov 0   ;;  %s727_s13 = smov 0   ;;  %s791_s0 = inlined_call_operand.vmem [shape: bf16[2,16,18,64], index: 0, kind: input, shape index: {}, may-alias: {0,1,2}]   ;;  %s792_s1 = inlined_call_operand.vmem [shape: bf16[2,16,18,64], index: 1, kind: input, shape index: {}, may-alias: {0,1,2}]   ;;  %s793_s2 = inlined_call_operand.vmem [shape: bf16[2,16,18,64], index: 2, kind: input, shape index: {}, may-alias: {0,1,2}]   ;;  %s794_s3 = inlined_call_operand.vmem [shape: bf16[2,8,10,64], index: 3, kind: output, shape index: {}]  }
   0x1   :  { %s729_s14 = smov 0   ;;  %s731_s15 = smov 0  }
   0x2   :  { %s733_s16 = smov 0  }
   0x3 LB: > { %s22_s17 = sadd.s32 1, %s692_s14  ;;  %s25_s18 = sadd.s32 1, %s696_s15  ;;  %s700_s16 = sphi %s733_s16, %s13_s16   ;;  %s696_s15 = sphi %s731_s15, %s798_s15   ;;  %s692_s14 = sphi %s729_s14, %s797_s14   ;;  %s688_s13 = sphi %s727_s13, %s796_s13   ;;  %s684_s12 = sphi %s725_s12, %s795_s12  }
   0x4   : > { %p23_p0 = scmp.ge.s32.totalorder %s22_s17, 8  ;;  %p585_p1 = scmp.ge.s32.totalorder %s700_s16, 1 }
   0x5   : > { %p217_p2 = scmp.lt.s32.totalorder %s700_s16, 17 }
   0x6   : > { %s800_s17 = smov (%p23_p0, %s22_s17), 0  ;;  %s802_s18 = smov (!%p23_p0, %s25_s18), %s696_s15 }
   0x7   : > { %p218_p3 = pnand %p585_p1, %p217_p2  ;;  %p27_p4 = scmp.ge.s32.totalorder %s802_s18, 2 }
   0x8   : > { %s586_s19 = sshll.u32 (!%p218_p3), %s684_s12, 1  ;;  %p275_p5 = scmp.lt.s32.totalorder (!%p218_p3), %s688_s13, 1 }
   0x9   : > { %s804_s18 = smov (%p27_p4, %s802_s18), 0  ;;  %221 = sbr.rel (%p218_p3) target bundleno = 171 (0xab), region = 32 }
   0xa   : > { %p277_p6 = scmp.lt.s32.totalorder (!%p218_p3), %s586_s19, 15  ;;  %s286_s20 = sadd.s32 (!%p218_p3), 1, %s586_s19 }
   0xb   : > { %p289_p7 = scmp.lt.s32.totalorder (!%p218_p3), %s286_s20, 15  ;;  %s299_s24 = sadd.s32 (!%p218_p3), 2, %s586_s19 }
   0xc   : > { %p300_p8 = scmp.lt.s32.totalorder (!%p218_p3), %s299_s24, 15  ;;  %p358_p9 = scmp.lt.s32.totalorder (!%p218_p3), %s299_s24, 16 }
   0xd   : > { %p317_p10 = scmp.lt.s32.totalorder (!%p218_p3), %s684_s12, 7 }
   0xe   : > { %s806_s13 = smov (!%p275_p5, %s688_s13), 1  ;;  %s808_s20 = smov (!%p289_p7, %s286_s20), 15  ;;  %v325_v7 = vlaneseq  ;;  %v702_v17 = vmov -1e+30   ;;  %vm383_vm1 = vcmask 1046528   ;;  %vm393_vm2 = vcmask 1045504  }
   0xf   : > { %s278_s21 = scalar_select %p277_p6, %s586_s19, 15  ;;  %v387_v18 = vrot.slane %v702_v17, 1  ;;  %v397_v19 = vrot.slane %v702_v17, 2  ;;  %v703_v35 = vmov 0.0   ;;  %vm409_vm4 = vcmask 130048  }
  0x10   : > { %s616_s22 = smul.u32 48, %s806_s13  ;;  %s810_s24 = smov (!%p300_p8, %s299_s24), 15  ;;  %v326_v13 = vshrl.u32 %v325_v7, 7  ;;  %v404_v21 = vand.u32 127, %v325_v7  ;;  %vm436_vm5 = vcmask 516096   ;;  %v704_v37 = vmov 0  }
  0x11   : > { %s615_s23 = smul.u32 3, %s278_s21  ;;  %s812_s24 = smov (!%p300_p8, %s810_s24), 15  ;;  %vm434_vm6 = vcmask 519168  }
  0x12   : > { %s617_s26 = smul.u32 3, %s808_s20  ;;  %v405_v22 = vmul.u32 2, %v326_v13  ;;  %s814_s12 = smov (!%p317_p10, %s684_s12), 7 }
  0x13   : > { %s281_s25 = sadd.s32 %s616_s22, %s615_s23  ;;  %s618_s10 = smul.u32 3, %s812_s24 }
  0x14   : > { %s587_s27 = sshll.u32 %s281_s25, 2  ;;  %s293_s28 = sadd.s32 %s617_s26, %s616_s22  ;;  %vm406_vm3 = vcmp.eq.s32.totalorder %v404_v21, %v405_v22 }
  0x15   : > { %s589_s29 = sshll.u32 %s293_s28, 2  ;;  %s283_s5 = scalar_lea.vmem %s791_s0, %s587_s27  ;;  %v599_v36 = vsel %vm406_vm3, 1.0, %v703_v35 }
  0x16   : > { %s295_s8 = scalar_lea.vmem %s792_s1, %s589_s29  ;;  %v604_v0 = vld [vmem:[%s283_s5] sm:$0xff]   ;;  %s308_s11 = sadd.s32 %s618_s10, %s616_s22 }
  0x17   : > { %s368_s9 = scalar_select %p358_p9, 1, 0  ;;  %v608_v1 = vld [vmem:[%s295_s8] sm:$0xff]   ;;  %v606_v2 = vunpack.c.h.bf16 %v604_v0  ;;  %v605_v4 = vunpack.c.l.bf16 %v604_v0 }
  0x18   : > { %v610_v3 = vunpack.c.h.bf16 %v608_v1  ;;  %v609_v5 = vunpack.c.l.bf16 %v608_v1  ;;  %s594_s19 = sshll.u32 %s308_s11, 2  ;;  %s595_s22 = sshll.u32 %s814_s12, 1 }
  0x19   : > { %v369_v6 = vstv %s368_s9  ;;  %s310_s23 = scalar_lea.vmem %s793_s2, %s594_s19  ;;  %s596_s24 = sshll.u32 %s806_s13, 4 }
  0x1a   : > { %v612_v8 = vld [vmem:[%s310_s23] sm:$0xff]   ;;  %vm370_vm0 = vcmp.eq.s32.totalorder %v369_v6, 1  ;;  %v375_v9 = vmax.f32 %v606_v2, %v610_v3  ;;  %v374_v10 = vmax.f32 %v605_v4, %v609_v5  ;;  %s321_s25 = sadd.s32 %s596_s24, %s595_s22 }
  0x1b   : > { %v614_v11 = vunpack.c.h.bf16 %v612_v8  ;;  %v613_v12 = vunpack.c.l.bf16 %v612_v8  ;;  %s597_s26 = sshll.u32 %s321_s25, 2 }
  0x1c   : > { %s323_s29 = scalar_lea.vmem %s794_s3, %s597_s26 }
  0x1d   : > { %v372_v14 = vsel %vm370_vm0, %v614_v11, -1e+30  ;;  %v371_v15 = vsel %vm370_vm0, %v613_v12, -1e+30  ;;  %437 = vst.msk [vmem:[%s323_s29 + $0x4] sm:$0x1] %vm436_vm5, %v704_v37 }
  0x1e   : > { %v378_v16 = vmax.f32 %v375_v9, %v372_v14  ;;  %v377_v20 = vmax.f32 %v374_v10, %v371_v15 }
  0x20   : > { %v385_v23 = vrot.slane %v378_v16, 1  ;;  %v395_v24 = vrot.slane %v378_v16, 2  ;;  %v384_v25 = vrot.slane %v377_v20, 1  ;;  %v394_v26 = vrot.slane %v377_v20, 2 }
  0x22   : > { %v388_v27 = vsel %vm383_vm1, %v385_v23, %v387_v18  ;;  %v398_v28 = vsel %vm393_vm2, %v395_v24, %v397_v19  ;;  %v386_v29 = vsel %vm383_vm1, %v384_v25, %v385_v23  ;;  %v396_v30 = vsel %vm393_vm2, %v394_v26, %v395_v24 }
  0x23   : > { %v392_v31 = vmax.f32 %v378_v16, %v388_v27  ;;  %v391_v32 = vmax.f32 %v377_v20, %v386_v29 }
  0x25   : > { %v402_v33 = vmax.f32 %v392_v31, %v398_v28  ;;  %v401_v34 = vmax.f32 %v391_v32, %v396_v30 }
  0x27   : > { %427 = vmatpush.msra.mxu0 %v402_v33 }
  0x29   : > { %428 = vmatpush.msra.mxu0 %v401_v34 }
  0x2a   : > { %600 = vmatmul.msk.f32.vlgmr.msra.gmra.mxu0 %vm409_vm4, %v599_v36 }
  0xa7   : > { %v430_v38 = vpop.f32.mrf.mxu0 }
  0xa8   : > { %v433_v39 = vpack.c.bf16 %v430_v38, %v430_v38 }
  0xaa   : > { %435 = vst.msk [vmem:[%s323_s29] sm:$0xf] %vm434_vm6, %v433_v39 }
  0xab PF: > { %s13_s16 = sadd.s32 1, %s700_s16   ;;  %s795_s12 = smov %s692_s14 }
  0xac   : > { %p10_p11 = scmp.ge.s32.totalorder %s13_s16, 18   ;;  %s796_s13 = smov %s696_s15 }
  0xad   : > { %s797_s14 = smov %s800_s17  ;;  %s798_s15 = smov %s804_s18 }
  0xae   :  { %12 = sbr.rel (!%p10_p11) target bundleno = 3 (0x3), region = 68 }

// kernel: squeezenet_forward.10
= control target key start
LH: loop header
LB: loop body
LE: loop exit
PB: predicated region body
PF: predicated region fallthrough
CT: control target
= control target key end

     0   :  { %s679_s12 = smov 0   ;;  %s681_s13 = smov 0   ;;  %s745_s0 = inlined_call_operand.vmem [shape: bf16[2,8,10,128], index: 0, kind: input, shape index: {}, may-alias: {0,1,2}]   ;;  %s746_s1 = inlined_call_operand.vmem [shape: bf16[2,8,10,128], index: 1, kind: input, shape index: {}, may-alias: {0,1,2}]   ;;  %s747_s2 = inlined_call_operand.vmem [shape: bf16[2,8,10,128], index: 2, kind: input, shape index: {}, may-alias: {0,1,2}]   ;;  %s748_s3 = inlined_call_operand.vmem [shape: bf16[2,4,6,128], index: 3, kind: output, shape index: {}]  }
   0x1   :  { %s683_s14 = smov 0   ;;  %s685_s15 = smov 0  }
   0x2   :  { %s687_s16 = smov 0  }
   0x3 LB: > { %s22_s17 = sadd.s32 1, %s646_s14  ;;  %s25_s18 = sadd.s32 1, %s650_s15  ;;  %s654_s16 = sphi %s687_s16, %s13_s16   ;;  %s650_s15 = sphi %s685_s15, %s752_s15   ;;  %s646_s14 = sphi %s683_s14, %s751_s14   ;;  %s642_s13 = sphi %s681_s13, %s750_s13   ;;  %s638_s12 = sphi %s679_s12, %s749_s12  }
   0x4   : > { %p23_p0 = scmp.ge.s32.totalorder %s22_s17, 4  ;;  %p550_p1 = scmp.ge.s32.totalorder %s654_s16, 1 }
   0x5   : > { %p217_p2 = scmp.lt.s32.totalorder %s654_s16, 9 }
   0x6   : > { %s754_s17 = smov (%p23_p0, %s22_s17), 0  ;;  %s756_s18 = smov (!%p23_p0, %s25_s18), %s650_s15 }
   0x7   : > { %p218_p3 = pnand %p550_p1, %p217_p2  ;;  %p27_p4 = scmp.ge.s32.totalorder %s756_s18, 2 }
   0x8   : > { %s551_s19 = sshll.u32 (!%p218_p3), %s638_s12, 1  ;;  %p274_p5 = scmp.lt.s32.totalorder (!%p218_p3), %s642_s13, 1 }
   0x9   : > { %s758_s18 = smov (%p27_p4, %s756_s18), 0  ;;  %221 = sbr.rel (%p218_p3) target bundleno = 171 (0xab), region = 32 }
   0xa   : > { %p276_p6 = scmp.lt.s32.totalorder (!%p218_p3), %s551_s19, 7  ;;  %s285_s20 = sadd.s32 (!%p218_p3), 1, %s551_s19 }
   0xb   : > { %p288_p7 = scmp.lt.s32.totalorder (!%p218_p3), %s285_s20, 7  ;;  %s298_s24 = sadd.s32 (!%p218_p3), 2, %s551_s19 }
   0xc   : > { %p299_p8 = scmp.lt.s32.totalorder (!%p218_p3), %s298_s24, 7  ;;  %p346_p9 = scmp.lt.s32.totalorder (!%p218_p3), %s298_s24, 8 }
   0xd   : > { %p316_p10 = scmp.lt.s32.totalorder (!%p218_p3), %s638_s12, 3 }
   0xe   : > { %s760_s13 = smov (!%p274_p5, %s642_s13), 1  ;;  %s762_s20 = smov (!%p288_p7, %s285_s20), 7  ;;  %v323_v4 = vlaneseq  ;;  %v656_v11 = vmov -1e+30   ;;  %vm364_vm1 = vcmask 1046528   ;;  %vm370_vm2 = vcmask 1045504  }
   0xf   : > { %s277_s21 = scalar_select %p276_p6, %s551_s19, 7  ;;  %v366_v12 = vrot.slane %v656_v11, 1  ;;  %v372_v14 = vrot.slane %v656_v11, 2  ;;  %v657_v23 = vmov 0.0   ;;  %vm382_vm4 = vcmask 64512  }
  0x10   : > { %s553_s22 = sshll.u32 %s760_s13, 4  ;;  %s556_s4 = sshll.u32 %s762_s20, 1  ;;  %v324_v8 = vshrl.u32 %v323_v4, 7  ;;  %v377_v15 = vand.u32 127, %v323_v4  ;;  %v658_v25 = vmov 0  }
  0x11   : > { %s552_s23 = sshll.u32 %s277_s21, 1  ;;  %s292_s5 = sadd.s32 %s556_s4, %s553_s22 }
  0x12   : > { %s280_s25 = sadd.s32 %s553_s22, %s552_s23  ;;  %s558_s6 = sshll.u32 %s292_s5, 2  ;;  %v378_v16 = vmul.u32 2, %v324_v8 }
  0x13   : > { %s554_s26 = sshll.u32 %s280_s25, 2  ;;  %s294_s9 = scalar_lea.vmem %s746_s1, %s558_s6 }
  0x14   : > { %s300_s27 = scalar_select %p299_p8, %s298_s24, 7  ;;  %v338_v1 = vld [vmem:[%s294_s9] sm:$0xf]  ;;  %vm379_vm3 = vcmp.eq.s32.totalorder %v377_v15, %v378_v16 }
  0x15   : > { %s282_s30 = scalar_lea.vmem %s745_s0, %s554_s26  ;;  %v340_v3 = vunpack.c.l.bf16 %v338_v1  ;;  %v569_v24 = vsel %vm379_vm3, 1.0, %v657_v23  ;;  %s766_s12 = smov (!%p316_p10, %s638_s12), 3 }
  0x16   : > { %v328_v0 = vld [vmem:[%s282_s30] sm:$0xf]  ;;  %s764_s27 = smov (!%p299_p8, %s300_s27), 7 }
  0x17   : > { %s353_s10 = scalar_select %p346_p9, 1, 0  ;;  %v330_v2 = vunpack.c.l.bf16 %v328_v0 }
  0x18   : > { %s563_s11 = sshll.u32 %s764_s27, 1 }
  0x19   : > { %s307_s19 = sadd.s32 %s563_s11, %s553_s22  ;;  %v354_v5 = vstv %s353_s10  ;;  %v358_v7 = vmax.f32 %v330_v2, %v340_v3  ;;  %s566_s22 = sshll.u32 %s760_s13, 2 }
  0x1a   : > { %s565_s21 = sshll.u32 %s307_s19, 2  ;;  %vm355_vm0 = vcmp.eq.s32.totalorder %v354_v5, 1  ;;  %s319_s25 = sadd.s32 %s566_s22, %s766_s12 }
  0x1b   : > { %s309_s24 = scalar_lea.vmem %s747_s2, %s565_s21  ;;  %s567_s26 = sshll.u32 %s319_s25, 2 }
  0x1c   : > { %v347_v6 = vld [vmem:[%s309_s24] sm:$0xf]  ;;  %s321_s29 = scalar_lea.vmem %s748_s3, %s567_s26 }
  0x1d   : > { %v349_v9 = vunpack.c.l.bf16 %v347_v6  ;;  %408 = vst [vmem:[%s321_s29] sm:$0x4] %v658_v25 }
  0x1f   : > { %v356_v10 = vsel %vm355_vm0, %v349_v9, -1e+30 }
  0x20   : > { %v360_v13 = vmax.f32 %v358_v7, %v356_v10 }
  0x22   : > { %v365_v17 = vrot.slane %v360_v13, 1  ;;  %v371_v18 = vrot.slane %v360_v13, 2 }
  0x24   : > { %v367_v19 = vsel %vm364_vm1, %v365_v17, %v366_v12  ;;  %v373_v20 = vsel %vm370_vm2, %v371_v18, %v372_v14 }
  0x25   : > { %v369_v21 = vmax.f32 %v360_v13, %v367_v19 }
  0x27   : > { %v375_v22 = vmax.f32 %v369_v21, %v373_v20 }
  0x29   : > { %401 = vmatpush.msra.mxu0 %v375_v22 }
  0x2a   : > { %570 = vmatmul.msk.f32.vlgmr.msra.gmra.mxu0 %vm382_vm4, %v569_v24 }
  0xa7   : > { %v403_v26 = vpop.f32.mrf.mxu0 }
  0xa8   : > { %v406_v27 = vpack.c.bf16 %v403_v26, %v403_v26 }
  0xaa   : > { %407 = vst [vmem:[%s321_s29] sm:$0x3] %v406_v27 }
  0xab PF: > { %s13_s16 = sadd.s32 1, %s654_s16   ;;  %s749_s12 = smov %s646_s14 }
  0xac   : > { %p10_p11 = scmp.ge.s32.totalorder %s13_s16, 10   ;;  %s750_s13 = smov %s650_s15 }
  0xad   : > { %s751_s14 = smov %s754_s17  ;;  %s752_s15 = smov %s758_s18 }
  0xae   :  { %12 = sbr.rel (!%p10_p11) target bundleno = 3 (0x3), region = 68 }

// kernel: squeezenet_forward.9
= control target key start
LH: loop header
LB: loop body
LE: loop exit
PB: predicated region body
PF: predicated region fallthrough
CT: control target
= control target key end

     0   :  { %s2732_s30 = smov 0   ;;  %s3676_s0 = inlined_call_operand.vmem [shape: bf16[2,80,64], index: 0, kind: input, shape index: {}]   ;;  %s3677_s1 = inlined_call_operand.vmem [shape: bf16[64,16], index: 1, kind: input, shape index: {}]   ;;  %s3678_s2 = inlined_call_operand.vmem [shape: f32[1,16], index: 2, kind: input, shape index: {}]   ;;  %s3679_s3 = inlined_call_operand.vmem [shape: bf16[144,128], index: 3, kind: input, shape index: {}]   ;;  %s3680_s4 = inlined_call_operand.vmem [shape: f32[1,128], index: 4, kind: input, shape index: {}]   ;;  %s3681_s5 = inlined_call_operand.vmem [shape: bf16[128,16], index: 5, kind: input, shape index: {}]   ;;  %s3682_s6 = inlined_call_operand.vmem [shape: f32[1,16], index: 6, kind: input, shape index: {}]   ;;  %s3683_s7 = inlined_call_operand.vmem [shape: bf16[144,128], index: 7, kind: input, shape index: {}]   ;;  %s3684_s8 = inlined_call_operand.vmem [shape: f32[1,128], index: 8, kind: input, shape index: {}]   ;;  %s3685_s9 = inlined_call_operand.vmem [shape: bf16[2,80,128], index: 9, kind: output, shape index: {}]  }
   0x1 LB: > { %s2324_s10 = sadd.s32 4294967295, %s2672_s30   ;;  %p2328_p0 = scmp.ge.s32.totalorder %s2672_s30, 1  ;;  %s2672_s30 = sphi %s2732_s30, %s19_s30  }
   0x2   : > { %p287_p1 = scmp.lt.s32.totalorder %s2672_s30, 3 }
   0x4   : > { %p288_p2 = pnand %p2328_p0, %p287_p1 }
   0x5   : > { %p323_p3 = scmp.lt.s32.totalorder (!%p288_p2), %s2324_s10, 1  ;;  %s2675_s27 = smov (!%p288_p2), 80  }
   0x6   : > { %291 = sbr.rel (%p288_p2) target bundleno = 1050 (0x41a), region = 56  ;;  %s2676_s28 = smov (!%p288_p2), 32  }
   0x7   : > { %s2677_s29 = smov (!%p288_p2), 16   ;;  %s2678_s11 = smov (!%p288_p2), 64  }
   0x8   : > { %s2679_s12 = smov (!%p288_p2), 48   ;;  %s2680_s13 = smov (!%p288_p2), 96  }
   0x9   : > { %s2681_s14 = smov (!%p288_p2), 112  }
   0xb   : > { %v2496_v0 = vld [vmem:[%s3677_s1 + $0x18] sm:$0xff]  ;;  %v2495_v1 = vld [vmem:[%s3677_s1 + $0x10] sm:$0xff]  ;;  %s3748_s10 = smov (!%p323_p3, %s2324_s10), 1  ;;  %v2494_v2 = vld [vmem:[%s3677_s1 + $0x8] sm:$0xff]  ;;  %vm3698_vm0 = vcmask 523264   ;;  %v334_v9 = vlaneseq  ;;  %vm596_vm1 = vcmask 125952  }
   0xc   : > { %506 = vmatpush.bf16.msra.mxu0 %v2496_v0  ;;  %2640 = vmatpush.bf16.msra.mxu1 %v2496_v0  ;;  %s2645_s17 = smul.u32 40, %s3748_s10  ;;  %v2493_v3 = vld [vmem:[%s3677_s1] sm:$0xff]  ;;  %v2674_v11 = vmov 0   ;;  %vm735_vm14 = vcmask 1046528   ;;  %vm672_vm15 = vsmask.f32 7424 }
   0xd   : > { %v2765_v10 = vshrl.u32 %v334_v9, 7  ;;  %597 = vst.msk [vmem:[#allocation2] sm:$0xf] %vm596_vm1, %v2674_v11  ;;  %v2797_v36 = vld [vmem:[%s3678_s2] ss:$0 sm:$0xff] }
   0xe   : > { %s327_s22 = scalar_lea.vmem %s3676_s0, %s2645_s17  ;;  %598 = vst.msk [vmem:[#allocation2 + $0x4] sm:$0xf] %vm596_vm1, %v2674_v11  ;;  %s3658_s21 = scalar_lea.vmem %s3685_s9, %s2645_s17 }
   0xf   : > { %v2488_v4 = vld [vmem:[%s327_s22] sm:$0xff]  ;;  %v2491_v5 = vld [vmem:[%s327_s22 + $0x18] sm:$0xff]  ;;  %v2489_v6 = vld [vmem:[%s327_s22 + $0x8] sm:$0xff]  ;;  %v345_v12 = vcvt.s32.f32 %v2765_v10  ;;  %619 = vst.msk [vmem:[#allocation2 + $0x30] sm:$0xf] %vm596_vm1, %v2674_v11  ;;  %v336_v13 = vadd.s32 8, %v2765_v10 }
  0x10   : > { %507 = vmatpush.bf16.msra.mxu0 %v2495_v1  ;;  %2641 = vmatpush.bf16.msra.mxu1 %v2495_v1  ;;  %v2492_v7 = vld [vmem:[%s327_s22 + $0x20] sm:$0xff]  ;;  %v2490_v8 = vld [vmem:[%s327_s22 + $0x10] sm:$0xff]  ;;  %620 = vst.msk [vmem:[#allocation2 + $0x34] sm:$0xf] %vm596_vm1, %v2674_v11  ;;  %v341_v16 = vadd.s32 48, %v2765_v10  ;;  %v2785_v22 = vadd.s32 16, %v2765_v10 }
  0x11   : > { %v355_v14 = vadd.f32 0.5, %v345_v12  ;;  %v346_v15 = vcvt.s32.f32 %v336_v13  ;;  %v342_v29 = vadd.s32 56, %v2765_v10  ;;  %v2792_v35 = vadd.s32 64, %v2765_v10 }
  0x12   : > { %v351_v20 = vcvt.s32.f32 %v341_v16  ;;  %v347_v27 = vcvt.s32.f32 %v2785_v22  ;;  %v2800_v38 = vadd.s32 24, %v2765_v10  ;;  %v2808_v48 = vadd.s32 72, %v2765_v10 }
  0x13   : > { %v365_v17 = vmul.f32 0.1, %v355_v14  ;;  %v356_v21 = vadd.f32 0.5, %v346_v15  ;;  %v352_v32 = vcvt.s32.f32 %v342_v29  ;;  %v353_v41 = vcvt.s32.f32 %v2792_v35 }
  0x14   : > { %508 = vmatpush.bf16.msra.mxu0 %v2494_v2  ;;  %2642 = vmatpush.bf16.msra.mxu1 %v2494_v2  ;;  %v361_v23 = vadd.f32 0.5, %v351_v20  ;;  %v357_v34 = vadd.f32 0.5, %v347_v27  ;;  %v348_v52 = vcvt.s32.f32 %v2800_v38  ;;  %v354_v59 = vcvt.s32.f32 %v2808_v48  ;;  %v632_v63 = vld [vmem:[#allocation2] sm:$0x8] }
  0x15   : > { %v2778_v18 = vld [vmem:[#allocation2 + $0x4] sm:$0xf]  ;;  %v375_v24 = vfloor.f32 %v365_v17  ;;  %v366_v26 = vmul.f32 0.1, %v356_v21  ;;  %v362_v37 = vadd.f32 0.5, %v352_v32  ;;  %v363_v47 = vadd.f32 0.5, %v353_v41 }
  0x16   : > { %v2780_v19 = vld [vmem:[#allocation2 + $0x4] sm:$0x8]  ;;  %v371_v25 = vmul.f32 0.1, %v361_v23  ;;  %v367_v46 = vmul.f32 0.1, %v357_v34  ;;  %v670_v13 = vunpack.c.l.b16 %v632_v63 }
  0x17   : > { %1504 = vst.msk [vmem:[#allocation2 + $0x4] sm:$0xf] %vm596_vm1, %v2674_v11  ;;  %v385_v30 = vmul.f32 10.0, %v375_v24  ;;  %v376_v33 = vfloor.f32 %v366_v26  ;;  %v372_v42 = vmul.f32 0.1, %v362_v37  ;;  %v358_v62 = vadd.f32 0.5, %v348_v52 }
  0x18   : > { %509 = vmatpush.bf16.msra.mxu0 %v2493_v3  ;;  %2643 = vmatpush.bf16.msra.mxu1 %v2493_v3  ;;  %v381_v28 = vfloor.f32 %v371_v25  ;;  %v373_v53 = vmul.f32 0.1, %v363_v47  ;;  %v377_v57 = vfloor.f32 %v367_v46  ;;  %v2821_v0 = vadd.s32 32, %v2765_v10 }
  0x19   : > { %v2802_v39 = vsub.f32 %v345_v12, %v385_v30  ;;  %v386_v44 = vmul.f32 10.0, %v376_v33  ;;  %v382_v51 = vfloor.f32 %v372_v42  ;;  %v653_v12 = vunpack.c.l.b16 %v2778_v18 }
  0x1a   : > { %v391_v31 = vmul.f32 10.0, %v381_v28  ;;  %v364_v14 = vadd.f32 0.5, %v354_v59  ;;  %v368_v17 = vmul.f32 0.1, %v358_v62 }
  0x1b   : > { %2367 = vmatmul.msk.bf16.vlgmr.msra.gmra.mxu0 %vm3698_vm0, %v2488_v4  ;;  %2370 = vmatmul.msk.bf16.vlgmr.msra.gmra.mxu1 %vm3698_vm0, %v2491_v5  ;;  %vm405_vm2 = vcmp.lt.f32.partialorder %v2802_v39, 7.5  ;;  %v2815_v56 = vsub.f32 %v346_v15, %v386_v44  ;;  %v392_v58 = vmul.f32 10.0, %v382_v51  ;;  %v383_v4 = vfloor.f32 %v373_v53 }
  0x1c   : > { %v2804_v40 = vsub.f32 %v351_v20, %v391_v31  ;;  %v349_v20 = vcvt.s32.f32 %v2821_v0  ;;  %v2845_v26 = vpack.c.b16 %v653_v12, %v670_v13  ;;  %v374_v28 = vmul.f32 0.1, %v364_v14 }
  0x1d   : > { %v2827_v3 = vsub.f32 %v352_v32, %v392_v58  ;;  %vm406_vm6 = vcmp.lt.f32.partialorder %v2815_v56, 7.5  ;;  %v393_v21 = vmul.f32 10.0, %v383_v4  ;;  %v378_v31 = vfloor.f32 %v368_v17 }
  0x1e   : > { %vm3689_vm3 = vcmp.lt.f32.partialorder %v2804_v40, 7.5  ;;  %v359_v32 = vadd.f32 0.5, %v349_v20  ;;  %v676_v44 = vshll.u32 %v2845_v26, 16  ;;  %v674_v53 = vshrl.u32 %v2845_v26, 16 }
  0x1f   : > { %vm3688_vm7 = vcmp.lt.f32.partialorder %v2827_v3, 7.5  ;;  %v2853_v22 = vsub.f32 %v353_v41, %v393_v21  ;;  %v388_v47 = vmul.f32 10.0, %v378_v31  ;;  %v736_v4 = vrot.slane %v2845_v26, 1 }
  0x21   : > { %vm3687_vm11 = vcmp.lt.f32.partialorder %v2853_v22, 7.5  ;;  %v2869_v58 = vsub.f32 %v348_v52, %v388_v47 }
  0x2b   : > { %2368 = vmatmul.msk.bf16.gmra.mxu0 %vm3698_vm0, %v2489_v6  ;;  %2371 = vmatmul.msk.bf16.gmra.mxu1 %vm3698_vm0, %v2492_v7 }
  0x3b   : > { %2369 = vmatmul.msk.bf16.gmra.mxu0 %vm3698_vm0, %v2490_v8  ;;  %v387_v8 = vmul.f32 10.0, %v377_v57 }
  0x3d   : > { %v2841_v25 = vsub.f32 %v347_v27, %v387_v8  ;;  %v2856_v27 = vadd.s32 40, %v2765_v10  ;;  %v369_v10 = vmul.f32 0.1, %v359_v32 }
  0x3f   : > { %vm407_vm10 = vcmp.lt.f32.partialorder %v2841_v25, 7.5  ;;  %v350_v41 = vcvt.s32.f32 %v2856_v27  ;;  %v379_v63 = vfloor.f32 %v369_v10 }
  0x41   : > { %v389_v48 = vmul.f32 10.0, %v379_v63 }
  0x98   : > { %v511_v43 = vpop.f32.mrf.mxu0  ;;  %v526_v45 = vpop.f32.mrf.mxu1 }
  0x99   : > { %v512_v49 = vadd.f32 %v2797_v36, %v511_v43  ;;  %v527_v50 = vadd.f32 %v2797_v36, %v526_v45  ;;  %v384_v45 = vfloor.f32 %v374_v28 }
  0x9b   : > { %vm536_vm4 = vcmp.ge.f32.partialorder %v512_v49, 0.0  ;;  %v546_v54 = vmul.f32 0.2, %v512_v49  ;;  %vm542_vm5 = vcmp.ge.f32.partialorder %v527_v50, 0.0  ;;  %v552_v55 = vmul.f32 0.2, %v527_v50 }
  0x9d   : > { %v556_v60 = vsel %vm536_vm4, %v512_v49, %v546_v54  ;;  %v562_v61 = vsel %vm542_vm5, %v527_v50, %v552_v55  ;;  %v678_v54 = vrot.slane %v676_v44, 1  ;;  %v394_v55 = vmul.f32 10.0, %v384_v45 }
  0x9e   : > { %v586_v1 = vsel %vm405_vm2, %v556_v60, 0.0  ;;  %v592_v2 = vsel %vm3689_vm3, %v562_v61, 0.0  ;;  %vm408_vm4 = vcmp.lt.f32.partialorder %v2869_v58, 7.5  ;;  %vm3690_vm3 = vsmask.f32 1280 }
  0x9f   : > { %v599_v5 = vpack.c.bf16 %v586_v1, %v586_v1  ;;  %v605_v6 = vpack.c.bf16 %v592_v2, %v592_v2  ;;  %v360_v1 = vadd.f32 0.5, %v350_v41  ;;  %v679_v38 = vor.u32 %v678_v54, %v674_v53 }
  0xa0   : > { %v513_v7 = vpop.f32.mrf.mxu0  ;;  %v528_v9 = vpop.f32.mrf.mxu1  ;;  %v2882_v52 = vsub.f32 %v354_v59, %v394_v55 }
  0xa1   : > { %609 = vst.msk [vmem:[#allocation2 + $0x8] sm:$0xf] %vm596_vm1, %v599_v5  ;;  %v514_v15 = vadd.f32 %v2797_v36, %v513_v7  ;;  %v529_v16 = vadd.f32 %v2797_v36, %v528_v9  ;;  %v2505_v9 = vld [vmem:[%s3679_s3 + $0x40] sm:$0xff]  ;;  %v370_v17 = vmul.f32 0.1, %v360_v1 }
  0xa2   : > { %615 = vst.msk [vmem:[#allocation2 + $0x20] sm:$0xf] %vm596_vm1, %v605_v6  ;;  %1299 = vmatpush.bf16.msra.mxu2 %v2505_v9  ;;  %2644 = vmatpush.bf16.msra.mxu3 %v2505_v9 }
  0xa3   : > { %vm537_vm8 = vcmp.ge.f32.partialorder %v514_v15, 0.0  ;;  %v547_v23 = vmul.f32 0.2, %v514_v15  ;;  %vm543_vm9 = vcmp.ge.f32.partialorder %v529_v16, 0.0  ;;  %v553_v24 = vmul.f32 0.2, %v529_v16 }
  0xa5   : > { %v557_v29 = vsel %vm537_vm8, %v514_v15, %v547_v23  ;;  %v563_v30 = vsel %vm543_vm9, %v529_v16, %v553_v24  ;;  %vm3686_vm8 = vcmp.lt.f32.partialorder %v2882_v52, 7.5 }
  0xa6   : > { %v587_v33 = vsel %vm406_vm6, %v557_v29, 0.0  ;;  %v593_v34 = vsel %vm3688_vm7, %v563_v30, 0.0  ;;  %vm970_vm7 = vcmask 130048  }
  0xa7   : > { %v600_v35 = vpack.c.bf16 %v587_v33, %v587_v33  ;;  %v606_v37 = vpack.c.bf16 %v593_v34, %v593_v34  ;;  %v380_v33 = vfloor.f32 %v370_v17 }
  0xa8   : > { %v516_v42 = vpop.f32.mrf.mxu0  ;;  %v531_v43 = vpop.f32.mrf.mxu1  ;;  %v2630_v10 = vld [vmem:[#allocation2 + $0x4] sm:$0xf0]  }
  0xa9   : > { %610 = vst.msk [vmem:[#allocation2 + $0xc] sm:$0xf] %vm596_vm1, %v600_v35  ;;  %v517_v46 = vadd.f32 %v2797_v36, %v516_v42  ;;  %v532_v49 = vadd.f32 %v2797_v36, %v531_v43  ;;  %v2913_v35 = vsub.f32 %v349_v20, %v389_v48  ;;  %v390_v47 = vmul.f32 10.0, %v380_v33 }
  0xaa   : > { %616 = vst.msk [vmem:[#allocation2 + $0x24] sm:$0xf] %vm596_vm1, %v606_v37 }
  0xab   : > { %vm538_vm12 = vcmp.ge.f32.partialorder %v517_v46, 0.0  ;;  %v548_v50 = vmul.f32 0.2, %v517_v46  ;;  %vm544_vm13 = vcmp.ge.f32.partialorder %v532_v49, 0.0  ;;  %v554_v51 = vmul.f32 0.2, %v532_v49 }
  0xad   : > { %v558_v57 = vsel %vm538_vm12, %v517_v46, %v548_v50  ;;  %v564_v60 = vsel %vm544_vm13, %v532_v49, %v554_v51  ;;  %vm409_vm12 = vcmp.lt.f32.partialorder %v2913_v35, 7.5  ;;  %v2931_v51 = vsub.f32 %v350_v41, %v390_v47 }
  0xae   : > { %v588_v61 = vsel %vm407_vm10, %v558_v57, 0.0  ;;  %v594_v62 = vsel %vm3687_vm11, %v564_v60, 0.0  ;;  %v2596_v60 = vor.u32 %v2630_v10, %v2780_v19  ;;  %vm1083_vm11 = vsmask.f32 5376 }
  0xaf   : > { %v601_v2 = vpack.c.bf16 %v588_v61, %v588_v61  ;;  %v607_v5 = vpack.c.bf16 %v594_v62, %v594_v62 }
  0xb0   : > { %v518_v6 = vpop.f32.mrf.mxu0  ;;  %v2878_v7 = vld [vmem:[#allocation2 + $0x8] sm:$0xff]   ;;  %v533_v8 = vpop.f32.mrf.mxu1 }
  0xb1   : > { %611 = vst.msk [vmem:[#allocation2 + $0x10] sm:$0xf] %vm596_vm1, %v601_v2  ;;  %v519_v13 = vadd.f32 %v2797_v36, %v518_v6  ;;  %v834_v14 = vrot.slane %v2878_v7, 6  ;;  %v737_v15 = vrot.slane %v2878_v7, 1  ;;  %v681_v16 = vshll.u32 %v2878_v7, 16  ;;  %v2943_v2 = vld [vmem:[#allocation2 + $0x20] sm:$0xff]  }
  0xb2   : > { %617 = vst.msk [vmem:[#allocation2 + $0x28] sm:$0xf] %vm596_vm1, %v607_v5  ;;  %v534_v59 = vadd.f32 %v2797_v36, %v533_v8  ;;  %v685_v28 = vshrl.u32 %v2878_v7, 16  ;;  %v639_v54 = vld [vmem:[#allocation2 + $0xc] sm:$0xe]  ;;  %v2526_v27 = vunpack.c.h.b16 %v2878_v7 }
  0xb3   : > { %vm539_vm5 = vcmp.ge.f32.partialorder %v519_v13, 0.0  ;;  %v549_v21 = vmul.f32 0.2, %v519_v13  ;;  %845 = vrot.lane.b32.xlu2 %v834_v14, %s2675_s27  ;;  %v738_v23 = vsel %vm735_vm14, %v736_v4, %v737_v15  ;;  %v2901_v24 = vrot.slane %v681_v16, 1 }
  0xb4   : > { %747 = vrot.lane.b32.xlu1 %v738_v23, %s2676_s28  ;;  %vm545_vm9 = vcmp.ge.f32.partialorder %v534_v59, 0.0  ;;  %v555_v26 = vmul.f32 0.2, %v534_v59  ;;  %v794_v44 = vrot.slane %v685_v28, 5  ;;  %v795_v45 = vrot.slane %v681_v16, 6 }
  0xb5   : > { %v559_v29 = vsel %vm539_vm5, %v519_v13, %v549_v21  ;;  %v684_v30 = vsel %vm672_vm15, %v679_v38, %v2901_v24  ;;  %vm3694_vm5 = vcmp.lt.f32.partialorder %v2931_v51, 7.5  ;;  %v887_v41 = vunpack.c.l.b16 %v639_v54 }
  0xb6   : > { %v589_v31 = vsel %vm408_vm4, %v559_v29, 0.0  ;;  %720 = vrot.lane.b32.xlu0 %v684_v30, %s2677_s29  ;;  %v565_v32 = vsel %vm545_vm9, %v534_v59, %v555_v26  ;;  %v2923_v20 = vor.u32 %v795_v45, %v794_v44  ;;  %vm3693_vm9 = vcmask 1041408   ;;  %v637_v45 = vld [vmem:[#allocation2 + $0x30] sm:$0xf] }
  0xb7   : > { %v602_v34 = vpack.c.bf16 %v589_v31, %v589_v31  ;;  %v595_v37 = vsel %vm3686_vm8, %v565_v32, 0.0  ;;  %v769_v13 = vrot.slane %v2596_v60, 1  ;;  %v2538_v59 = vunpack.c.h.b16 %v2943_v2 }
  0xb8   : > { %v521_v42 = vpop.f32.mrf.mxu0  ;;  %v608_v43 = vpack.c.bf16 %v595_v37, %v595_v37  ;;  %v687_v30 = vor.u32 %v685_v28, %v2901_v24  ;;  %vm3691_vm8 = vsmask.f32 2304 }
  0xb9   : > { %612 = vst.msk [vmem:[#allocation2 + $0x14] sm:$0xf] %vm596_vm1, %v602_v34  ;;  %v522_v46 = vadd.f32 %v2797_v36, %v521_v42 }
  0xba   : > { %618 = vst.msk [vmem:[#allocation2 + $0x2c] sm:$0xf] %vm596_vm1, %v608_v43 }
  0xbb   : > { %vm540_vm13 = vcmp.ge.f32.partialorder %v522_v46, 0.0  ;;  %v550_v0 = vmul.f32 0.2, %v522_v46 }
  0xbd   : > { %v560_v49 = vsel %vm540_vm13, %v522_v46, %v550_v0 }
  0xbe   : > { %v590_v50 = vsel %vm409_vm12, %v560_v49, 0.0  ;;  %818 = vrot.lane.b32.xlu0 %v2923_v20, %s2678_s11 }
  0xbf   : > { %v603_v53 = vpack.c.bf16 %v590_v50, %v590_v50 }
  0xc0   : > { %v523_v55 = vpop.f32.mrf.mxu0  ;;  %v2933_v57 = vld [vmem:[#allocation2 + $0x10] sm:$0xff]  }
  0xc1   : > { %613 = vst.msk [vmem:[#allocation2 + $0x18] sm:$0xf] %vm596_vm1, %v603_v53  ;;  %v524_v61 = vadd.f32 %v2797_v36, %v523_v55  ;;  %v739_v62 = vrot.slane %v2933_v57, 1  ;;  %v835_v63 = vrot.slane %v2933_v57, 6  ;;  %v2529_v1 = vunpack.c.l.b16 %v2933_v57  ;;  %v2951_v5 = vld [vmem:[#allocation2 + $0x28] sm:$0xff]  }
  0xc2   : > { %v689_v4 = vshll.u32 %v2933_v57, 16  ;;  %v693_v48 = vshrl.u32 %v2933_v57, 16  ;;  %v2970_v26 = vunpack.c.l.b16 %v2951_v5  ;;  %v859_v55 = vunpack.c.l.b16 %v637_v45 }
  0xc3   : > { %vm541_vm13 = vcmp.ge.f32.partialorder %v524_v61, 0.0  ;;  %v551_v19 = vmul.f32 0.2, %v524_v61  ;;  %v740_v36 = vsel %vm735_vm14, %v737_v15, %v739_v62  ;;  %v2954_v6 = vpack.c.b16 %v2529_v1, %v2526_v27 }
  0xc4   : > { %749 = vrot.lane.b32.xlu1 %v740_v36, %s2676_s28  ;;  %v888_v38 = vpack.c.b16 %v2529_v1, %v887_v41  ;;  %v836_v9 = vsel %vm3693_vm9, %v834_v14, %v835_v63  ;;  %v2967_v21 = vrot.slane %v689_v4, 1  ;;  %v797_v42 = vrot.slane %v693_v48, 5 }
  0xc5   : > { %v561_v8 = vsel %vm541_vm13, %v524_v61, %v551_v19  ;;  %v770_v16 = vrot.slane %v2954_v6, 1  ;;  %vm3692_vm13 = vcmask 1040384   ;;  %v863_v33 = vrot.slane %v2954_v6, 6 }
  0xc6   : > { %v591_v15 = vsel %vm3694_vm5, %v561_v8, 0.0  ;;  %847 = vrot.lane.b32.xlu0 %v836_v9, %s2675_s27  ;;  %v959_v23 = vrot.slane %v888_v38, 7  ;;  %v692_v37 = vsel %vm672_vm15, %v687_v30, %v2967_v21  ;;  %v798_v43 = vrot.slane %v689_v4, 6 }
  0xc7   : > { %v604_v17 = vpack.c.bf16 %v591_v15, %v591_v15  ;;  %v771_v14 = vsel %vm735_vm14, %v769_v13, %v770_v16  ;;  %v2987_v44 = vpack.c.b16 %v2970_v26, %v2538_v59  ;;  %v891_v46 = vshrl.u32 %v888_v38, 16 }
  0xc8   : > { %v2973_v29 = vld [vmem:[#allocation2 + $0x14] sm:$0xff]   ;;  %780 = vrot.lane.b32.xlu2 %v771_v14, %s2679_s12  ;;  %v1100_v31 = vshrl.u32 %v959_v23, 16  ;;  %v1103_v32 = vshll.u32 %v959_v23, 16  ;;  %v894_v47 = vshll.u32 %v888_v38, 16  ;;  %v2997_v60 = vor.u32 %v798_v43, %v797_v42  ;;  %v3024_v42 = vld [vmem:[#allocation2 + $0x30] sm:$0x1] }
  0xc9   : > { %614 = vst.msk [vmem:[#allocation2 + $0x1c] sm:$0xf] %vm596_vm1, %v604_v17  ;;  %v960_v34 = vrot.slane %v2973_v29, 7  ;;  %v772_v24 = vrot.slane %v2973_v29, 1  ;;  %v899_v53 = vshrl.u32 %v2973_v29, 16  ;;  %v902_v54 = vshll.u32 %v2973_v29, 16 }
  0xca   : > { %v1102_v0 = vrot.slane %v1100_v31, 2  ;;  %v1105_v49 = vrot.slane %v1103_v32, 3  ;;  %v3000_v27 = vunpack.c.h.b16 %v2951_v5  ;;  %v893_v19 = vrot.slane %v891_v46, 6  ;;  %1525 = vst.msk [vmem:[#allocation2 + $0x30] sm:$0xf] %vm596_vm1, %v2674_v11 }
  0xcb   : > { %v961_v28 = vsel %vm3692_vm13, %v959_v23, %v960_v34  ;;  %v773_v41 = vsel %vm735_vm14, %v770_v16, %v772_v24  ;;  %v896_v36 = vrot.slane %v894_v47, 7  ;;  %v964_v38 = vrot.slane %v2987_v44, 7  ;;  %v640_v47 = vld [vmem:[#allocation2 + $0x34] sm:$0x3] }
  0xcc   : > { %874 = vrot.lane.b32.xlu1 %v863_v33, %s2680_s13  ;;  %v1108_v10 = vshrl.u32 %v961_v28, 16  ;;  %v1111_v50 = vshll.u32 %v961_v28, 16  ;;  %v1106_v8 = vor.u32 %v1105_v49, %v1102_v0  ;;  %v901_v13 = vrot.slane %v899_v53, 6 }
  0xcd   : > { %v904_v15 = vrot.slane %v902_v54, 7  ;;  %v800_v17 = vsel %vm3691_vm8, %v2923_v20, %v2997_v60  ;;  %v3015_v23 = vpack.c.b16 %v859_v55, %v3000_v27  ;;  %v897_v14 = vor.u32 %v896_v36, %v893_v19 }
  0xce   : > { %722 = vrot.lane.b32.xlu0 %v692_v37, %s2677_s29  ;;  %v1110_v61 = vrot.slane %v1108_v10, 2  ;;  %v1113_v1 = vrot.slane %v1111_v50, 3  ;;  %v864_v30 = vrot.slane %v2973_v29, 6  ;;  %v3031_v50 = vld [vmem:[#allocation2 + $0x34] sm:$0x1]  ;;  %vm3695_vm5 = vcmask 916480  }
  0xcf   : > { %v3029_v46 = vor.u32 %v904_v15, %v901_v13  ;;  %v966_v55 = vrot.slane %v3015_v23, 7  ;;  %1526 = vst.msk [vmem:[#allocation2 + $0x34] sm:$0xf] %vm596_vm1, %v2674_v11  ;;  %v695_v13 = vor.u32 %v693_v48, %v2967_v21  ;;  %v743_v15 = vrot.slane %v2943_v2, 1 }
  0xd0   : > { %v3005_v4 = vld [vmem:[#allocation2 + $0x1c] sm:$0xff]   ;;  %782 = vrot.lane.b32.xlu2 %v773_v41, %s2679_s12  ;;  %v1114_v9 = vor.u32 %v1113_v1, %v1110_v61  ;;  %v865_v53 = vsel %vm3693_vm9, %v863_v33, %v864_v30  ;;  %v776_v21 = vrot.slane %v2987_v44, 1 }
  0xd1   : > { %v962_v59 = vrot.slane %v3005_v4, 7  ;;  %v3022_v37 = vld [vmem:[#allocation2 + $0x18] sm:$0xff]   ;;  %v906_v19 = vsel %vm3690_vm3, %v897_v14, %v3029_v46  ;;  %v967_v36 = vsel %vm3692_vm13, %v964_v38, %v966_v55  ;;  %v774_v48 = vrot.slane %v3005_v4, 1 }
  0xd2   : > { %v1115_v16 = vsel %vm1083_vm11, %v1106_v8, %v1114_v9  ;;  %v697_v54 = vshll.u32 %v3022_v37, 16  ;;  %v741_v41 = vrot.slane %v3022_v37, 1 }
  0xd3   : > { %2408 = vmatmul.msk.bf16.vlgmr.msra.gmra.mxu2 %vm970_vm7, %v1115_v16  ;;  %v963_v31 = vsel %vm3692_vm13, %v960_v34, %v962_v59  ;;  %v965_v32 = vsel %vm3692_vm13, %v962_v59, %v964_v38  ;;  %v1159_v59 = vshrl.u32 %v967_v36, 16  ;;  %v837_v38 = vrot.slane %v3022_v37, 6 }
  0xd4   : > { %820 = vrot.lane.b32.xlu1 %v800_v17, %s2678_s11  ;;  %v1125_v20 = vshrl.u32 %v963_v31, 16  ;;  %v1128_v43 = vshll.u32 %v963_v31, 16  ;;  %v1142_v45 = vshrl.u32 %v965_v32, 16  ;;  %v1145_v28 = vshll.u32 %v965_v32, 16 }
  0xd5   : > { %v699_v33 = vrot.slane %v697_v54, 1  ;;  %v742_v8 = vsel %vm735_vm14, %v739_v62, %v741_v41  ;;  %v1162_v17 = vshll.u32 %v967_v36, 16  ;;  %v744_v62 = vsel %vm735_vm14, %v741_v41, %v743_v15 }
  0xd6   : > { %943 = vrot.lane.b32.xlu0 %v897_v14, %s2681_s14  ;;  %v1127_v34 = vrot.slane %v1125_v20, 2  ;;  %v1130_v0 = vrot.slane %v1128_v43, 3  ;;  %v1144_v49 = vrot.slane %v1142_v45, 2  ;;  %v1147_v10 = vrot.slane %v1145_v28, 3 }
  0xd7   : > { %v700_v16 = vsel %vm672_vm15, %v695_v13, %v699_v33  ;;  %v956_v14 = vunpack.c.l.b16 %v640_v47  ;;  %v1161_v32 = vrot.slane %v1159_v59, 2  ;;  %v1164_v20 = vrot.slane %v1162_v17, 3 }
  0xd8   : > { %876 = vrot.lane.b32.xlu2 %v865_v53, %s2680_s13  ;;  %v1131_v61 = vor.u32 %v1130_v0, %v1127_v34  ;;  %v1148_v1 = vor.u32 %v1147_v10, %v1144_v49  ;;  %v701_v43 = vshrl.u32 %v3022_v37, 16  ;;  %v838_v28 = vsel %vm3693_vm9, %v835_v63, %v837_v38 }
  0xd9   : > { %v957_v45 = vpack.c.b16 %v956_v14, %v956_v14  ;;  %v1165_v47 = vor.u32 %v1164_v20, %v1161_v32  ;;  %v777_v34 = vsel %vm735_vm14, %v774_v48, %v776_v21  ;;  %v802_v49 = vrot.slane %v697_v54, 6 }
  0xda   : > { %v1149_v6 = vsel %vm1083_vm11, %v1131_v61, %v1148_v1  ;;  %v1132_v31 = vsel %vm1083_vm11, %v1114_v9, %v1131_v61  ;;  %v705_v9 = vshll.u32 %v2943_v2, 16  ;;  %v801_v0 = vrot.slane %v701_v43, 5 }
  0xdb   : > { %2410 = vmatmul.msk.bf16.vlgmr.msra.gmra.mxu3 %vm970_vm7, %v1149_v6  ;;  %v968_v10 = vrot.slane %v957_v45, 7  ;;  %v703_v53 = vor.u32 %v701_v43, %v699_v33  ;;  %v709_v41 = vshrl.u32 %v2943_v2, 16  ;;  %v775_v63 = vsel %vm735_vm14, %v772_v24, %v774_v48 }
  0xdc   : > { %945 = vrot.lane.b32.xlu1 %v906_v19, %s2681_s14  ;;  %v707_v61 = vrot.slane %v705_v9, 1  ;;  %v1166_v19 = vsel %vm1083_vm11, %v1148_v1, %v1165_v47  ;;  %v803_v6 = vor.u32 %v802_v49, %v801_v0  ;;  %v908_v54 = vshrl.u32 %v3005_v4, 16 }
  0xdd   : > { %v911_v36 = vshll.u32 %v3005_v4, 16  ;;  %v969_v33 = vsel %vm3692_vm13, %v966_v55, %v968_v10  ;;  %v805_v13 = vrot.slane %v709_v41, 5  ;;  %v806_v59 = vrot.slane %v705_v9, 6 }
  0xde   : > { %751 = vrot.lane.b32.xlu0 %v742_v8, %s2676_s28  ;;  %v708_v8 = vsel %vm672_vm15, %v703_v53, %v707_v61  ;;  %v866_v24 = vrot.slane %v3005_v4, 6  ;;  %v1176_v1 = vshrl.u32 %v969_v33, 16  ;;  %v1179_v17 = vshll.u32 %v969_v33, 16 }
  0xdf   : > { %v910_v14 = vrot.slane %v908_v54, 6  ;;  %v807_v32 = vor.u32 %v806_v59, %v805_v13  ;;  %v917_v55 = vshrl.u32 %v2987_v44, 16  ;;  %v920_v20 = vshll.u32 %v2987_v44, 16 }
  0xe0   : > { %724 = vrot.lane.b32.xlu2 %v700_v16, %s2677_s29  ;;  %v804_v16 = vsel %vm3691_vm8, %v2997_v60, %v803_v6  ;;  %v867_v48 = vsel %vm3693_vm9, %v864_v30, %v866_v24  ;;  %v1178_v4 = vrot.slane %v1176_v1, 2  ;;  %v1181_v43 = vrot.slane %v1179_v17, 3 }
  0xe1   : > { %v919_v9 = vrot.slane %v917_v55, 6  ;;  %v839_v0 = vrot.slane %v2943_v2, 6  ;;  %v734_v13 = vpack.c.b16 %v2970_v26, %v2970_v26  ;;  %v926_v26 = vshrl.u32 %v3015_v23, 16 }
  0xe2   : > { %v1182_v49 = vor.u32 %v1181_v43, %v1178_v4  ;;  %v860_v43 = vunpack.c.l.b16 %v3031_v50  ;;  %v2503_v50 = vld [vmem:[%s3679_s3 + $0x30] sm:$0xff]  ;;  %vm3697_vm13 = vcmask 654336  }
  0xe3   : > { %2409 = vmatmul.msk.bf16.gmra.mxu2 %vm970_vm7, %v1132_v31  ;;  %v631_v31 = vld [vmem:[#allocation2 + $0x28] sm:$0x7]  ;;  %v840_v53 = vsel %vm3693_vm9, %v837_v38, %v839_v0  ;;  %v810_v38 = vshrl.u32 %v2951_v5, 16 }
  0xe4   : > { %753 = vrot.lane.b32.xlu1 %v744_v62, %s2676_s28  ;;  %v913_v62 = vrot.slane %v911_v36, 7  ;;  %v662_v45 = vunpack.c.l.b16 %v631_v31  ;;  %v711_v36 = vor.u32 %v709_v41, %v707_v61  ;;  %v745_v61 = vrot.slane %v734_v13, 1  ;;  %v2499_v13 = vld [vmem:[%s3679_s3 + $0x10] sm:$0xff] }
  0xe5   : > { %v812_v17 = vrot.slane %v810_v38, 5  ;;  %v928_v31 = vrot.slane %v926_v26, 6  ;;  %v2500_v38 = vld [vmem:[%s3679_s3 + $0x18] sm:$0xff] }
  0xe6   : > { %849 = vrot.lane.b32.xlu0 %v838_v28, %s2675_s27  ;;  %v914_v60 = vor.u32 %v913_v62, %v910_v14  ;;  %v808_v28 = vsel %vm3691_vm8, %v803_v6, %v807_v32  ;;  %v3106_v10 = vpack.c.b16 %v662_v45, %v662_v45  ;;  %v868_v6 = vrot.slane %v2987_v44, 6  ;;  %v2504_v45 = vld [vmem:[%s3679_s3 + $0x38] sm:$0xff] }
  0xe7   : > { %v929_v14 = vshll.u32 %v3015_v23, 16  ;;  %v746_v62 = vsel %vm735_vm14, %v743_v15, %v745_v61  ;;  %v870_v44 = vrot.slane %v3015_v23, 6  ;;  %v831_v15 = vunpack.c.l.b16 %v3024_v42  ;;  %1258 = vmatpush.bf16.msrb.mxu1 %v2504_v45 }
  0xe8   : > { %786 = vrot.lane.b32.xlu2 %v777_v34, %s2679_s12  ;;  %v922_v34 = vrot.slane %v920_v20, 7  ;;  %v915_v29 = vsel %vm3690_vm3, %v3029_v46, %v914_v60  ;;  %v768_v46 = vpack.c.b16 %v3000_v27, %v3000_v27  ;;  %v841_v20 = vrot.slane %v2951_v5, 6 }
  0xe9   : > { %v931_v55 = vrot.slane %v929_v14, 7 }
  0xea   : > { %v923_v30 = vor.u32 %v922_v34, %v919_v9  ;;  %v778_v59 = vrot.slane %v768_v46, 1  ;;  %v842_v4 = vsel %vm3693_vm9, %v839_v0, %v841_v20 }
  0xeb   : > { %2411 = vmatmul.msk.bf16.gmra.mxu3 %vm970_vm7, %v1166_v19  ;;  %v713_v19 = vshll.u32 %v3106_v10, 16  ;;  %1259 = vmatpush.bf16.msrb.mxu1 %v2503_v50 }
  0xec   : > { %784 = vrot.lane.b32.xlu1 %v775_v63, %s2679_s12  ;;  %v1183_v63 = vsel %vm1083_vm11, %v1165_v47, %v1182_v49  ;;  %v924_v54 = vsel %vm3690_vm3, %v914_v60, %v923_v30  ;;  %v813_v47 = vshll.u32 %v2951_v5, 16  ;;  %v779_v41 = vsel %vm735_vm14, %v776_v21, %v778_v59 }
  0xed   : > { %v715_v33 = vrot.slane %v713_v19, 1  ;;  %v832_v5 = vpack.c.b16 %v831_v15, %v831_v15 }
  0xee   : > { %726 = vrot.lane.b32.xlu0 %v708_v8, %s2677_s29  ;;  %v869_v8 = vsel %vm3693_vm9, %v866_v24, %v868_v6  ;;  %v815_v27 = vrot.slane %v813_v47, 6  ;;  %v3135_v24 = vld [vmem:[#allocation2] sm:$0xc] }
  0xef   : > { %v716_v1 = vsel %vm672_vm15, %v711_v36, %v715_v33  ;;  %1503 = vst.msk [vmem:[#allocation2] sm:$0xf] %vm596_vm1, %v2674_v11  ;;  %v932_v11 = vor.u32 %v931_v55, %v928_v31  ;;  %v843_v42 = vrot.slane %v832_v5, 6 }
  0xf0   : > { %822 = vrot.lane.b32.xlu2 %v804_v16, %s2678_s11  ;;  %v816_v16 = vor.u32 %v815_v27, %v812_v17  ;;  %v2498_v17 = vld [vmem:[%s3679_s3 + $0x8] sm:$0xff]  ;;  %v652_v27 = vunpack.c.l.b16 %v3135_v24 }
  0xf1   : > { %v933_v23 = vsel %vm3690_vm3, %v923_v30, %v932_v11  ;;  %v844_v49 = vsel %vm3693_vm9, %v841_v20, %v843_v42  ;;  %v2502_v30 = vld [vmem:[%s3679_s3 + $0x28] sm:$0xff] }
  0xf2   : > { %v817_v21 = vsel %vm3691_vm8, %v807_v32, %v816_v16  ;;  %v717_v32 = vshrl.u32 %v3106_v10, 16  ;;  %1260 = vmatpush.bf16.msrb.mxu1 %v2502_v30  ;;  %v663_v26 = vpack.c.b16 %v653_v12, %v652_v27  ;;  %vm997_vm8 = vcmask 392192  }
  0xf4   : > { %878 = vrot.lane.b32.xlu1 %v867_v48, %s2680_s13  ;;  %v871_v48 = vsel %vm3693_vm9, %v868_v6, %v870_v44  ;;  %v719_v60 = vor.u32 %v717_v32, %v715_v33 }
  0xf6   : > { %824 = vrot.lane.b32.xlu0 %v808_v28, %s2678_s11  ;;  %v862_v28 = vpack.c.b16 %v860_v43, %v860_v43 }
  0xf8   : > { %947 = vrot.lane.b32.xlu2 %v915_v29, %s2681_s14  ;;  %v935_v34 = vshrl.u32 %v862_v28, 16  ;;  %v938_v0 = vshll.u32 %v862_v28, 16  ;;  %v872_v29 = vrot.slane %v862_v28, 6 }
  0xfa   : > { %v873_v6 = vsel %vm3693_vm9, %v870_v44, %v872_v29  ;;  %vm3696_vm9 = vcmask 785408  }
  0xfb   : > { %2412 = vmatmul.msk.bf16.gmra.mxu3 %vm970_vm7, %v1183_v63  ;;  %v940_v63 = vrot.slane %v938_v0, 7 }
  0xfc   : > { %851 = vrot.lane.b32.xlu1 %v840_v53, %s2675_s27  ;;  %v937_v53 = vrot.slane %v935_v34, 6 }
  0xfe   : > { %949 = vrot.lane.b32.xlu0 %v924_v54, %s2681_s14  ;;  %v2501_v54 = vld [vmem:[%s3679_s3 + $0x20] sm:$0xff]  ;;  %v941_v46 = vor.u32 %v940_v63, %v937_v53 }
  0xff   : > { %1261 = vmatpush.bf16.msrb.mxu1 %v2501_v54 }
 0x100   : > { %880 = vrot.lane.b32.xlu2 %v869_v8, %s2680_s13  ;;  %v942_v33 = vsel %vm3690_vm3, %v932_v11, %v941_v46  ;;  %vm984_vm3 = vcmask 261120  }
 0x103   : > { %1262 = vmatpush.bf16.msrb.mxu1 %v2500_v38 }
 0x104   : > { %728 = vrot.lane.b32.xlu1 %v716_v1, %s2677_s29 }
 0x106   : > { %788 = vrot.lane.b32.xlu0 %v779_v41, %s2679_s12  ;;  %v2497_v41 = vld [vmem:[%s3679_s3] sm:$0xff] }
 0x107   : > { %1263 = vmatpush.bf16.msrb.mxu1 %v2499_v13 }
 0x108   : > { %755 = vrot.lane.b32.xlu2 %v746_v62, %s2676_s28 }
 0x10b   : > { %1264 = vmatpush.bf16.msrb.mxu1 %v2498_v17 }
 0x10c   : > { %826 = vrot.lane.b32.xlu1 %v817_v21, %s2678_s11 }
 0x10d   : > { %v846_v9 = vpop.permute.xlu2 %845 }
 0x10e   : > { %882 = vrot.lane.b32.xlu0 %v871_v48, %s2680_s13 }
 0x10f   : > { %1265 = vmatpush.bf16.msrb.mxu1 %v2497_v41 }
 0x110   : > { %853 = vrot.lane.b32.xlu2 %v842_v4, %s2675_s27 }
 0x114   : > { %951 = vrot.lane.b32.xlu1 %v933_v23, %s2681_s14 }
 0x116   : > { %757 = vrot.lane.b32.xlu0 %v745_v61, %s2676_s28 }
 0x118   : > { %730 = vrot.lane.b32.xlu2 %v719_v60, %s2677_s29 }
 0x11c   : > { %790 = vrot.lane.b32.xlu1 %v778_v59, %s2679_s12 }
 0x11e   : > { %855 = vrot.lane.b32.xlu0 %v844_v49, %s2675_s27 }
 0x120   : > { %828 = vrot.lane.b32.xlu2 %v816_v16, %s2678_s11 }
 0x122   : > { %v781_v19 = vpop.permute.xlu2 %780 }
 0x124   : > { %884 = vrot.lane.b32.xlu1 %v873_v6, %s2680_s13 }
 0x126   : > { %v748_v8 = vpop.permute.xlu1 %747 }
 0x128   : > { %v721_v36 = vpop.permute.xlu0 %720  ;;  %953 = vrot.lane.b32.xlu2 %v942_v33, %s2681_s14 }
 0x129   : > { %v973_v14 = vsel %vm970_vm7, %v663_v26, %v721_v36 }
 0x12a   : > { %v783_v47 = vpop.permute.xlu2 %782  ;;  %v986_v21 = vsel %vm984_vm3, %v973_v14, %v748_v8 }
 0x12b   : > { %v999_v55 = vsel %vm997_vm8, %v986_v21, %v781_v19 }
 0x130   : > { %v819_v59 = vpop.permute.xlu0 %818 }
 0x131   : > { %v1011_v20 = vsel %vm3698_vm0, %v999_v55, %v819_v59 }
 0x132   : > { %v877_v1 = vpop.permute.xlu2 %876  ;;  %v1024_v48 = vsel %vm3697_vm13, %v1011_v20, %v846_v9 }
 0x136   : > { %v750_v61 = vpop.permute.xlu1 %749 }
 0x138   : > { %v848_v16 = vpop.permute.xlu0 %847 }
 0x13a   : > { %v725_v62 = vpop.permute.xlu2 %724 }
 0x13b   : > { %v977_v33 = vsel %vm970_vm7, %v2933_v57, %v725_v62 }
 0x13e   : > { %v875_v44 = vpop.permute.xlu1 %874 }
 0x13f   : > { %v1037_v15 = vsel %vm3696_vm9, %v1024_v48, %v875_v44 }
 0x140   : > { %v723_v24 = vpop.permute.xlu0 %722 }
 0x141   : > { %v975_v31 = vsel %vm970_vm7, %v2878_v7, %v723_v24 }
 0x142   : > { %v988_v18 = vsel %vm984_vm3, %v975_v31, %v750_v61  ;;  %v787_v11 = vpop.permute.xlu2 %786 }
 0x143   : > { %v1001_v4 = vsel %vm997_vm8, %v988_v18, %v783_v47 }
 0x146   : > { %v821_v12 = vpop.permute.xlu1 %820 }
 0x147   : > { %v1013_v23 = vsel %vm3698_vm0, %v1001_v4, %v821_v12 }
 0x148   : > { %v944_v7 = vpop.permute.xlu0 %943  ;;  %v1026_v43 = vsel %vm3697_vm13, %v1013_v23, %v848_v16 }
 0x149   : > { %v1050_v32 = vsel %vm3695_vm5, %v1037_v15, %v944_v7  ;;  %v1039_v28 = vsel %vm3696_vm9, %v1026_v43, %v877_v1 }
 0x14a   : > { %v1084_v5 = vshrl.u32 %v1050_v32, 16  ;;  %v1087_v45 = vshll.u32 %v1050_v32, 16  ;;  %v823_v29 = vpop.permute.xlu2 %822 }
 0x14c   : > { %v1086_v9 = vrot.slane %v1084_v5, 2  ;;  %v1089_v34 = vrot.slane %v1087_v45, 3 }
 0x14e   : > { %v946_v60 = vpop.permute.xlu1 %945  ;;  %v1090_v63 = vor.u32 %v1089_v34, %v1086_v9 }
 0x14f   : > { %v1052_v42 = vsel %vm3695_vm5, %v1039_v28, %v946_v60 }
 0x150   : > { %v1091_v0 = vshrl.u32 %v1052_v42, 16  ;;  %v1094_v50 = vshll.u32 %v1052_v42, 16  ;;  %v752_v49 = vpop.permute.xlu0 %751 }
 0x151   : > { %v990_v47 = vsel %vm984_vm3, %v977_v33, %v752_v49 }
 0x152   : > { %v1093_v30 = vrot.slane %v1091_v0, 2  ;;  %v1096_v53 = vrot.slane %v1094_v50, 3  ;;  %v948_v36 = vpop.permute.xlu2 %947 }
 0x154   : > { %v1097_v19 = vor.u32 %v1096_v53, %v1093_v30 }
 0x156   : > { %v754_v6 = vpop.permute.xlu1 %753  ;;  %v1098_v54 = vsel %vm1083_vm11, %v1090_v63, %v1097_v19 }
 0x157   : > { %1266 = vmatmul.bf16.vlgmr.msrb.gmra.mxu1 %v1098_v54 }
 0x158   : > { %v850_v46 = vpop.permute.xlu0 %849 }
 0x15a   : > { %v881_v1 = vpop.permute.xlu2 %880 }
 0x15e   : > { %v785_v38 = vpop.permute.xlu1 %784 }
 0x15f   : > { %v1003_v8 = vsel %vm997_vm8, %v990_v47, %v785_v38 }
 0x160   : > { %v727_v13 = vpop.permute.xlu0 %726  ;;  %v1015_v59 = vsel %vm3698_vm0, %v1003_v8, %v823_v29  ;;  %v2513_v29 = vld [vmem:[%s3681_s5 + $0x38] sm:$0xff]  ;;  %v2510_v8 = vld [vmem:[%s3681_s5 + $0x20] sm:$0xff] }
 0x161   : > { %v1028_v27 = vsel %vm3697_vm13, %v1015_v59, %v850_v46  ;;  %v979_v61 = vsel %vm970_vm7, %v3022_v37, %v727_v13  ;;  %1429 = vmatpush.bf16.msrb.mxu3 %v2513_v29 }
 0x162   : > { %v992_v62 = vsel %vm984_vm3, %v979_v61, %v754_v6  ;;  %v756_v18 = vpop.permute.xlu2 %755  ;;  %v2511_v6 = vld [vmem:[%s3681_s5 + $0x28] sm:$0xff] }
 0x163   : > { %v1005_v24 = vsel %vm997_vm8, %v992_v62, %v787_v11 }
 0x166   : > { %v879_v17 = vpop.permute.xlu1 %878 }
 0x167   : > { %v1041_v41 = vsel %vm3696_vm9, %v1028_v27, %v879_v17 }
 0x168   : > { %v1054_v16 = vsel %vm3695_vm5, %v1041_v41, %v948_v36  ;;  %v825_v57 = vpop.permute.xlu0 %824 }
 0x169   : > { %v1116_v26 = vshrl.u32 %v1054_v16, 16  ;;  %v1119_v14 = vshll.u32 %v1054_v16, 16  ;;  %v1017_v55 = vsel %vm3698_vm0, %v1005_v24, %v825_v57 }
 0x16a   : > { %v854_v45 = vpop.permute.xlu2 %853 }
 0x16b   : > { %v1118_v44 = vrot.slane %v1116_v26, 2  ;;  %v1121_v21 = vrot.slane %v1119_v14, 3 }
 0x16d   : > { %v1122_v31 = vor.u32 %v1121_v21, %v1118_v44 }
 0x16e   : > { %v852_v20 = vpop.permute.xlu1 %851 }
 0x16f   : > { %v1030_v37 = vsel %vm3697_vm13, %v1017_v55, %v852_v20  ;;  %v1123_v12 = vsel %vm1083_vm11, %v1097_v19, %v1122_v31 }
 0x170   : > { %v950_v48 = vpop.permute.xlu0 %949  ;;  %v1043_v4 = vsel %vm3696_vm9, %v1030_v37, %v881_v1  ;;  %1271 = vmatmul.bf16.gmra.mxu1 %v1123_v12  ;;  %v2509_v37 = vld [vmem:[%s3681_s5 + $0x18] sm:$0xff]  ;;  %v2508_v12 = vld [vmem:[%s3681_s5 + $0x10] sm:$0xff] }
 0x171   : > { %v1056_v15 = vsel %vm3695_vm5, %v1043_v4, %v950_v48  ;;  %v2507_v48 = vld [vmem:[%s3681_s5 + $0x8] sm:$0xff]  ;;  %v2506_v4 = vld [vmem:[%s3681_s5] sm:$0xff] }
 0x172   : > { %v1133_v23 = vshrl.u32 %v1056_v15, 16  ;;  %v1136_v7 = vshll.u32 %v1056_v15, 16  ;;  %v731_v30 = vpop.permute.xlu2 %730  ;;  %v3274_v15 = vld [vmem:[%s3680_s4] ss:$0 sm:$0xff] }
 0x173   : > { %v983_v1 = vsel %vm970_vm7, %v3106_v10, %v731_v30  ;;  %v1311_v30 = vpop.f32.mrf.mxu3 }
 0x174   : > { %v1135_v43 = vrot.slane %v1133_v23, 2  ;;  %v1138_v11 = vrot.slane %v1136_v7, 3  ;;  %v1301_v23 = vpop.f32.mrf.mxu2 }
 0x176   : > { %v729_v32 = vpop.permute.xlu1 %728  ;;  %v1139_v28 = vor.u32 %v1138_v11, %v1135_v43 }
 0x177   : > { %v981_v60 = vsel %vm970_vm7, %v2943_v2, %v729_v32  ;;  %v2512_v2 = vld [vmem:[%s3681_s5 + $0x30] sm:$0xff] }
 0x178   : > { %v789_v5 = vpop.permute.xlu0 %788  ;;  %v994_v42 = vsel %vm984_vm3, %v981_v60, %v756_v18  ;;  %v1140_v0 = vsel %vm1083_vm11, %v1122_v31, %v1139_v28  ;;  %1430 = vmatpush.bf16.msrb.mxu3 %v2512_v2 }
 0x179   : > { %v1007_v34 = vsel %vm997_vm8, %v994_v42, %v789_v5 }
 0x17a   : > { %v829_v59 = vpop.permute.xlu2 %828 }
 0x17c   : > { %1431 = vmatpush.bf16.msrb.mxu3 %v2511_v6 }
 0x17e   : > { %v827_v9 = vpop.permute.xlu1 %826 }
 0x17f   : > { %v1019_v50 = vsel %vm3698_vm0, %v1007_v34, %v827_v9 }
 0x180   : > { %v883_v49 = vpop.permute.xlu0 %882  ;;  %1276 = vmatmul.bf16.gmra.mxu1 %v1140_v0  ;;  %v1032_v53 = vsel %vm3697_vm13, %v1019_v50, %v854_v45  ;;  %1432 = vmatpush.bf16.msrb.mxu3 %v2510_v8  ;;  %v1303_v45 = vpop.f32.mrf.mxu2 }
 0x181   : > { %v1045_v63 = vsel %vm3696_vm9, %v1032_v53, %v883_v49  ;;  %v1313_v8 = vpop.f32.mrf.mxu3 }
 0x182   : > { %v954_v62 = vpop.permute.xlu2 %953 }
 0x184   : > { %1433 = vmatpush.bf16.msrb.mxu3 %v2509_v37 }
 0x186   : > { %v952_v19 = vpop.permute.xlu1 %951 }
 0x187   : > { %v1058_v54 = vsel %vm3695_vm5, %v1045_v63, %v952_v19 }
 0x188   : > { %v1150_v46 = vshrl.u32 %v1058_v54, 16  ;;  %v1153_v36 = vshll.u32 %v1058_v54, 16  ;;  %v758_v33 = vpop.permute.xlu0 %757  ;;  %1434 = vmatpush.bf16.msrb.mxu3 %v2508_v12  ;;  %v1306_v50 = vpop.f32.mrf.mxu2 }
 0x189   : > { %v996_v61 = vsel %vm984_vm3, %v983_v1, %v758_v33 }
 0x18a   : > { %v1152_v38 = vrot.slane %v1150_v46, 2  ;;  %v1155_v47 = vrot.slane %v1153_v36, 3 }
 0x18c   : > { %v1156_v13 = vor.u32 %v1155_v47, %v1152_v38  ;;  %1435 = vmatpush.bf16.msrb.mxu3 %v2507_v48 }
 0x18e   : > { %v791_v17 = vpop.permute.xlu1 %790  ;;  %v1157_v27 = vsel %vm1083_vm11, %v1139_v28, %v1156_v13 }
 0x18f   : > { %v1009_v41 = vsel %vm997_vm8, %v996_v61, %v791_v17 }
 0x190   : > { %1281 = vmatmul.bf16.gmra.mxu1 %v1157_v27  ;;  %v856_v16 = vpop.permute.xlu0 %855  ;;  %v1021_v57 = vsel %vm3698_vm0, %v1009_v41, %v829_v59  ;;  %1436 = vmatpush.bf16.msrb.mxu3 %v2506_v4  ;;  %v1308_v19 = vpop.f32.mrf.mxu2 }
 0x191   : > { %v1034_v26 = vsel %vm3697_vm13, %v1021_v57, %v856_v16  ;;  %v1316_v41 = vpop.f32.mrf.mxu3 }
 0x196   : > { %v885_v14 = vpop.permute.xlu1 %884 }
 0x197   : > { %v1047_v44 = vsel %vm3696_vm9, %v1034_v26, %v885_v14 }
 0x198   : > { %v1060_v10 = vsel %vm3695_vm5, %v1047_v44, %v954_v62 }
 0x199   : > { %v1167_v21 = vshrl.u32 %v1060_v10, 16  ;;  %v1170_v24 = vshll.u32 %v1060_v10, 16  ;;  %v1318_v10 = vpop.f32.mrf.mxu3 }
 0x19b   : > { %v1169_v31 = vrot.slane %v1167_v21, 2  ;;  %v1172_v55 = vrot.slane %v1170_v24, 3 }
 0x19d   : > { %v1173_v20 = vor.u32 %v1172_v55, %v1169_v31 }
 0x19f   : > { %v1174_v18 = vsel %vm1083_vm11, %v1156_v13, %v1173_v20 }
 0x1a0   : > { %1286 = vmatmul.bf16.gmra.mxu1 %v1174_v18 }
 0x1a1   : > { %v1321_v48 = vpop.f32.mrf.mxu3 }
 0x1d4   : > { %v1267_v7 = vpop.f32.mrf.mxu1 }
 0x1d5   : > { %v1268_v32 = vadd.f32 %v3274_v15, %v1267_v7 }
 0x1d7   : > { %v1302_v43 = vadd.f32 %v1301_v23, %v1268_v32 }
 0x1d9   : > { %v1336_v60 = vmul.f32 0.2, %v1302_v43  ;;  %vm1326_vm5 = vcmp.ge.f32.partialorder %v1302_v43, 0.0 }
 0x1db   : > { %v1346_v9 = vsel %vm1326_vm5, %v1302_v43, %v1336_v60 }
 0x1dc   : > { %v1269_v11 = vpop.f32.mrf.mxu1 }
 0x1dd   : > { %v1270_v5 = vadd.f32 %v3274_v15, %v1269_v11 }
 0x1df   : > { %v1304_v28 = vadd.f32 %v1303_v45, %v1270_v5  ;;  %v1323_v5 = vpop.f32.mrf.mxu3 }
 0x1e1   : > { %vm1327_vm9 = vcmp.ge.f32.partialorder %v1304_v28, 0.0  ;;  %v1337_v42 = vmul.f32 0.2, %v1304_v28 }
 0x1e3   : > { %v1347_v34 = vsel %vm1327_vm9, %v1304_v28, %v1337_v42 }
 0x1e4   : > { %v1356_v0 = vpack.c.bf16 %v1347_v34, %v1346_v9 }
 0x1e6   : > { %1437 = vmatmul.bf16.vlgmr.msrb.gmra.mxu3 %v1356_v0  ;;  %v3289_v0 = vld [vmem:[%s3682_s6] ss:$0 sm:$0xff] }
 0x1ed   : > { %v1272_v49 = vpop.f32.mrf.mxu1 }
 0x1ee   : > { %v1273_v29 = vadd.f32 %v3274_v15, %v1272_v49 }
 0x1f0   : > { %v1307_v2 = vadd.f32 %v1306_v50, %v1273_v29 }
 0x1f2   : > { %v1338_v54 = vmul.f32 0.2, %v1307_v2  ;;  %vm1328_vm13 = vcmp.ge.f32.partialorder %v1307_v2, 0.0 }
 0x1f4   : > { %v1348_v36 = vsel %vm1328_vm13, %v1307_v2, %v1338_v54 }
 0x1f5   : > { %v1274_v53 = vpop.f32.mrf.mxu1 }
 0x1f6   : > { %v1275_v63 = vadd.f32 %v3274_v15, %v1274_v53  ;;  %v1538_v53 = vld [vmem:[#allocation2] sm:$0x8] }
 0x1f8   : > { %v1309_v6 = vadd.f32 %v1308_v19, %v1275_v63 }
 0x1fa   : > { %vm1329_vm0 = vcmp.ge.f32.partialorder %v1309_v6, 0.0  ;;  %v1339_v46 = vmul.f32 0.2, %v1309_v6 }
 0x1fc   : > { %v1349_v33 = vsel %vm1329_vm0, %v1309_v6, %v1339_v46  ;;  %v1576_v46 = vunpack.c.l.b16 %v1538_v53 }
 0x1fd   : > { %v1277_v38 = vpop.f32.mrf.mxu1  ;;  %v1357_v47 = vpack.c.bf16 %v1349_v33, %v1348_v36 }
 0x1fe   : > { %v1278_v13 = vadd.f32 %v3274_v15, %v1277_v38 }
 0x1ff   : > { %1442 = vmatmul.bf16.gmra.mxu3 %v1357_v47 }
 0x200   : > { %v1312_v59 = vadd.f32 %v1311_v30, %v1278_v13  ;;  %v3294_v30 = vld [vmem:[#allocation2 + $0x4] sm:$0xf] }
 0x201   : > { %v1559_v54 = vunpack.c.l.b16 %v3294_v30 }
 0x202   : > { %v1340_v61 = vmul.f32 0.2, %v1312_v59  ;;  %vm1330_vm5 = vcmp.ge.f32.partialorder %v1312_v59, 0.0 }
 0x203   : > { %v1577_v38 = vpack.c.b16 %v1559_v54, %v1576_v46 }
 0x204   : > { %v1350_v57 = vsel %vm1330_vm5, %v1312_v59, %v1340_v61 }
 0x205   : > { %v1279_v1 = vpop.f32.mrf.mxu1  ;;  %v1579_v13 = vshrl.u32 %v1577_v38, 16 }
 0x206   : > { %v1280_v17 = vadd.f32 %v3274_v15, %v1279_v1 }
 0x208   : > { %v1314_v27 = vadd.f32 %v1313_v8, %v1280_v17  ;;  %v1581_v8 = vshll.u32 %v1577_v38, 16 }
 0x20a   : > { %vm1331_vm9 = vcmp.ge.f32.partialorder %v1314_v27, 0.0  ;;  %v1341_v16 = vmul.f32 0.2, %v1314_v27  ;;  %v1583_v59 = vrot.slane %v1581_v8, 1 }
 0x20c   : > { %v1351_v26 = vsel %vm1331_vm9, %v1314_v27, %v1341_v16  ;;  %v1584_v61 = vor.u32 %v1583_v59, %v1579_v13 }
 0x20d   : > { %v1282_v14 = vpop.f32.mrf.mxu1  ;;  %v1358_v62 = vpack.c.bf16 %v1351_v26, %v1350_v57 }
 0x20e   : > { %v1283_v44 = vadd.f32 %v3274_v15, %v1282_v14 }
 0x20f   : > { %1447 = vmatmul.bf16.gmra.mxu3 %v1358_v62 }
 0x210   : > { %v1317_v21 = vadd.f32 %v1316_v41, %v1283_v44  ;;  %v1640_v44 = vrot.slane %v1577_v38, 1 }
 0x212   : > { %v1342_v20 = vmul.f32 0.2, %v1317_v21  ;;  %vm1332_vm0 = vcmp.ge.f32.partialorder %v1317_v21, 0.0 }
 0x214   : > { %v1352_v37 = vsel %vm1332_vm0, %v1317_v21, %v1342_v20 }
 0x215   : > { %v1284_v24 = vpop.f32.mrf.mxu1 }
 0x216   : > { %v1285_v31 = vadd.f32 %v3274_v15, %v1284_v24 }
 0x218   : > { %v1319_v55 = vadd.f32 %v1318_v10, %v1285_v31 }
 0x21a   : > { %vm1333_vm13 = vcmp.ge.f32.partialorder %v1319_v55, 0.0  ;;  %v1343_v18 = vmul.f32 0.2, %v1319_v55 }
 0x21c   : > { %v1353_v12 = vsel %vm1333_vm13, %v1319_v55, %v1343_v18 }
 0x21d   : > { %v1287_v4 = vpop.f32.mrf.mxu1  ;;  %v1359_v23 = vpack.c.bf16 %v1353_v12, %v1352_v37 }
 0x21e   : > { %v1288_v7 = vadd.f32 %v3274_v15, %v1287_v4 }
 0x21f   : > { %1452 = vmatmul.bf16.gmra.mxu3 %v1359_v23 }
 0x220   : > { %v1322_v32 = vadd.f32 %v1321_v48, %v1288_v7 }
 0x222   : > { %v1344_v60 = vmul.f32 0.2, %v1322_v32  ;;  %vm1334_vm5 = vcmp.ge.f32.partialorder %v1322_v32, 0.0 }
 0x224   : > { %v1354_v42 = vsel %vm1334_vm5, %v1322_v32, %v1344_v60 }
 0x225   : > { %v1289_v43 = vpop.f32.mrf.mxu1 }
 0x226   : > { %v1290_v11 = vadd.f32 %v3274_v15, %v1289_v43  ;;  %v2522_v43 = vld [vmem:[%s3683_s7 + $0x40] sm:$0xff] }
 0x227   : > { %2192 = vmatpush.bf16.msrb.mxu0 %v2522_v43 }
 0x228   : > { %v1324_v45 = vadd.f32 %v1323_v5, %v1290_v11 }
 0x22a   : > { %vm1335_vm9 = vcmp.ge.f32.partialorder %v1324_v45, 0.0  ;;  %v1345_v28 = vmul.f32 0.2, %v1324_v45 }
 0x22c   : > { %v1355_v9 = vsel %vm1335_vm9, %v1324_v45, %v1345_v28  ;;  %vm3700_vm9 = vcmask 1041408  }
 0x22d   : > { %v1360_v34 = vpack.c.bf16 %v1355_v9, %v1354_v42 }
 0x22f   : > { %1457 = vmatmul.bf16.gmra.mxu3 %v1360_v34 }
 0x269   : > { %v1438_v50 = vpop.f32.mrf.mxu3 }
 0x26a   : > { %v1439_v49 = vadd.f32 %v3289_v0, %v1438_v50 }
 0x26c   : > { %vm1463_vm0 = vcmp.ge.f32.partialorder %v1439_v49, 0.0  ;;  %v1473_v15 = vmul.f32 0.2, %v1439_v49 }
 0x26e   : > { %v1483_v29 = vsel %vm1463_vm0, %v1439_v49, %v1473_v15  ;;  %vm3701_vm0 = vcmask 1040384  }
 0x26f   : > { %v1493_v2 = vsel %vm405_vm2, %v1483_v29, 0.0 }
 0x270   : > { %v1505_v63 = vpack.c.bf16 %v1493_v2, %v1493_v2 }
 0x271   : > { %v1440_v19 = vpop.f32.mrf.mxu3 }
 0x272   : > { %1515 = vst.msk [vmem:[#allocation2 + $0x8] sm:$0xf] %vm596_vm1, %v1505_v63  ;;  %v1441_v6 = vadd.f32 %v3289_v0, %v1440_v19 }
 0x274   : > { %vm1464_vm13 = vcmp.ge.f32.partialorder %v1441_v6, 0.0  ;;  %v1474_v36 = vmul.f32 0.2, %v1441_v6 }
 0x276   : > { %v1484_v33 = vsel %vm1464_vm13, %v1441_v6, %v1474_v36  ;;  %vm3702_vm13 = vcmp.lt.f32.partialorder %v2804_v40, 7.5 }
 0x277   : > { %v1494_v39 = vsel %vm406_vm6, %v1484_v33, 0.0 }
 0x278   : > { %v1506_v47 = vpack.c.bf16 %v1494_v39, %v1494_v39 }
 0x27a   : > { %1516 = vst.msk [vmem:[#allocation2 + $0xc] sm:$0xf] %vm596_vm1, %v1506_v47 }
 0x281   : > { %v3304_v1 = vld [vmem:[#allocation2 + $0x8] sm:$0xff]  }
 0x282   : > { %v1443_v17 = vpop.f32.mrf.mxu3  ;;  %v1736_v27 = vrot.slane %v3304_v1, 6  ;;  %v1586_v41 = vshll.u32 %v3304_v1, 16  ;;  %v1590_v26 = vshrl.u32 %v3304_v1, 16  ;;  %v1641_v10 = vrot.slane %v3304_v1, 1  ;;  %v1545_v58 = vld [vmem:[#allocation2 + $0xc] sm:$0xe] }
 0x283   : > { %v1444_v16 = vadd.f32 %v3289_v0, %v1443_v17  ;;  %v2546_v15 = vunpack.c.h.b16 %v3304_v1  ;;  %v1789_v35 = vunpack.c.l.b16 %v1545_v58 }
 0x284   : > { %1747 = vrot.lane.b32.xlu2 %v1736_v27, %s2675_s27  ;;  %v1588_v56 = vrot.slane %v1586_v41, 1  ;;  %v1697_v31 = vrot.slane %v1590_v26, 5  ;;  %v1698_v55 = vrot.slane %v1586_v41, 6  ;;  %v1642_v37 = vsel %vm735_vm14, %v1640_v44, %v1641_v10 }
 0x285   : > { %vm1465_vm2 = vcmp.ge.f32.partialorder %v1444_v16, 0.0  ;;  %v1475_v57 = vmul.f32 0.2, %v1444_v16 }
 0x286   : > { %v1589_v14 = vsel %vm672_vm15, %v1584_v61, %v1588_v56  ;;  %v3322_v48 = vor.u32 %v1698_v55, %v1697_v31  ;;  %v1592_v49 = vor.u32 %v1590_v26, %v1588_v56  ;;  %v2614_v31 = vld [vmem:[#allocation2 + $0x4] sm:$0x8] }
 0x287   : > { %v1485_v62 = vsel %vm1465_vm2, %v1444_v16, %v1475_v57  ;;  %1625 = vrot.lane.b32.xlu0 %v1589_v14, %s2677_s29 }
 0x288   : > { %v1495_v21 = vsel %vm407_vm10, %v1485_v62, 0.0 }
 0x289   : > { %v1507_v24 = vpack.c.bf16 %v1495_v21, %v1495_v21 }
 0x28a   : > { %v1445_v20 = vpop.f32.mrf.mxu3 }
 0x28b   : > { %1517 = vst.msk [vmem:[#allocation2 + $0x10] sm:$0xf] %vm596_vm1, %v1507_v24  ;;  %v1446_v18 = vadd.f32 %v3289_v0, %v1445_v20  ;;  %v2635_v24 = vld [vmem:[#allocation2 + $0x4] sm:$0xf0]  }
 0x28c   : > { %1651 = vrot.lane.b32.xlu2 %v1642_v37, %s2676_s28  ;;  %v2615_v43 = vor.u32 %v2635_v24, %v2614_v31 }
 0x28d   : > { %vm1466_vm6 = vcmp.ge.f32.partialorder %v1446_v18, 0.0  ;;  %v1476_v12 = vmul.f32 0.2, %v1446_v18 }
 0x28f   : > { %v1486_v4 = vsel %vm1466_vm6, %v1446_v18, %v1476_v12  ;;  %1721 = vrot.lane.b32.xlu0 %v3322_v48, %s2678_s11  ;;  %vm3703_vm6 = vmmov %vm3700_vm9 }
 0x290   : > { %v1496_v25 = vsel %vm408_vm4, %v1486_v4, 0.0 }
 0x291   : > { %v1508_v23 = vpack.c.bf16 %v1496_v25, %v1496_v25 }
 0x292   : > { %v1448_v7 = vpop.f32.mrf.mxu3 }
 0x293   : > { %1518 = vst.msk [vmem:[#allocation2 + $0x14] sm:$0xf] %vm596_vm1, %v1508_v23  ;;  %v1449_v32 = vadd.f32 %v3289_v0, %v1448_v7 }
 0x295   : > { %vm1467_vm10 = vcmp.ge.f32.partialorder %v1449_v32, 0.0  ;;  %v1477_v11 = vmul.f32 0.2, %v1449_v32 }
 0x297   : > { %v1487_v5 = vsel %vm1467_vm10, %v1449_v32, %v1477_v11  ;;  %vm3704_vm10 = vcmp.lt.f32.partialorder %v2827_v3, 7.5 }
 0x298   : > { %v1497_v45 = vsel %vm409_vm12, %v1487_v5, 0.0  ;;  %vm3699_vm12 = vcmp.lt.f32.partialorder %v2931_v51, 7.5 }
 0x299   : > { %v1509_v60 = vpack.c.bf16 %v1497_v45, %v1497_v45 }
 0x29a   : > { %v1450_v28 = vpop.f32.mrf.mxu3  ;;  %v3335_v42 = vld [vmem:[#allocation2 + $0x10] sm:$0xff]  }
 0x29b   : > { %1519 = vst.msk [vmem:[#allocation2 + $0x18] sm:$0xf] %vm596_vm1, %v1509_v60  ;;  %v1451_v9 = vadd.f32 %v3289_v0, %v1450_v28  ;;  %v1643_v34 = vrot.slane %v3335_v42, 1  ;;  %v1594_v50 = vshll.u32 %v3335_v42, 16  ;;  %v2549_v29 = vunpack.c.l.b16 %v3335_v42 }
 0x29c   : > { %v1737_v47 = vrot.slane %v3335_v42, 6  ;;  %v1598_v25 = vshrl.u32 %v3335_v42, 16 }
 0x29d   : > { %vm1468_vm4 = vcmp.ge.f32.partialorder %v1451_v9, 0.0  ;;  %v1478_v2 = vmul.f32 0.2, %v1451_v9  ;;  %v1644_v53 = vsel %vm735_vm14, %v1641_v10, %v1643_v34  ;;  %v3346_v63 = vrot.slane %v1594_v50, 1 }
 0x29e   : > { %1653 = vrot.lane.b32.xlu0 %v1644_v53, %s2676_s28  ;;  %v1790_v19 = vpack.c.b16 %v2549_v29, %v1789_v35  ;;  %v1668_v36 = vpack.c.b16 %v2549_v29, %v2546_v15  ;;  %v1738_v14 = vsel %vm3700_vm9, %v1736_v27, %v1737_v47  ;;  %v1673_v35 = vrot.slane %v2615_v43, 1 }
 0x29f   : > { %v1488_v6 = vsel %vm1468_vm4, %v1451_v9, %v1478_v2  ;;  %v1597_v46 = vsel %vm672_vm15, %v1592_v49, %v3346_v63  ;;  %v1700_v9 = vrot.slane %v1598_v25, 5  ;;  %v1701_v49 = vrot.slane %v1594_v50, 6 }
 0x2a0   : > { %v1498_v33 = vsel %vm3699_vm12, %v1488_v6, 0.0  ;;  %1627 = vrot.lane.b32.xlu1 %v1597_v46, %s2677_s29  ;;  %v1859_v38 = vrot.slane %v1790_v19, 7  ;;  %v1674_v61 = vrot.slane %v1668_v36, 1  ;;  %v1792_v51 = vshrl.u32 %v1790_v19, 16 }
 0x2a1   : > { %v1510_v39 = vpack.c.bf16 %v1498_v33, %v1498_v33  ;;  %v1795_v56 = vshll.u32 %v1790_v19, 16  ;;  %v1765_v62 = vrot.slane %v1668_v36, 6  ;;  %v1702_v46 = vor.u32 %v1701_v49, %v1700_v9 }
 0x2a2   : > { %v1453_v8 = vpop.f32.mrf.mxu3  ;;  %v3355_v13 = vld [vmem:[#allocation2 + $0x14] sm:$0xff]   ;;  %v1993_v59 = vshrl.u32 %v1859_v38, 16  ;;  %v1996_v41 = vshll.u32 %v1859_v38, 16  ;;  %v1794_v12 = vrot.slane %v1792_v51, 6  ;;  %v1675_v50 = vsel %vm735_vm14, %v1673_v35, %v1674_v61 }
 0x2a3   : > { %1520 = vst.msk [vmem:[#allocation2 + $0x1c] sm:$0xf] %vm596_vm1, %v1510_v39  ;;  %v1454_v17 = vadd.f32 %v3289_v0, %v1453_v8  ;;  %v1676_v16 = vrot.slane %v3355_v13, 1  ;;  %v1860_v57 = vrot.slane %v3355_v13, 7  ;;  %v1797_v4 = vrot.slane %v1795_v56, 7 }
 0x2a4   : > { %v1995_v21 = vrot.slane %v1993_v59, 2  ;;  %v1998_v20 = vrot.slane %v1996_v41, 3  ;;  %v1766_v5 = vrot.slane %v3355_v13, 6  ;;  %v1803_v3 = vshll.u32 %v3355_v13, 16 }
 0x2a5   : > { %vm1469_vm5 = vcmp.ge.f32.partialorder %v1454_v17, 0.0  ;;  %v1479_v26 = vmul.f32 0.2, %v1454_v17  ;;  %v1677_v44 = vsel %vm735_vm14, %v1674_v61, %v1676_v16  ;;  %v1861_v10 = vsel %vm3701_vm0, %v1859_v38, %v1860_v57 }
 0x2a6   : > { %1749 = vrot.lane.b32.xlu0 %v1738_v14, %s2675_s27  ;;  %1686 = vrot.lane.b32.xlu2 %v1677_v44, %s2679_s12  ;;  %v2001_v18 = vshrl.u32 %v1861_v10, 16  ;;  %v2004_v27 = vshll.u32 %v1861_v10, 16  ;;  %v1999_v60 = vor.u32 %v1998_v20, %v1995_v21  ;;  %v3385_v28 = vor.u32 %v1797_v4, %v1794_v12 }
 0x2a7   : > { %v1489_v55 = vsel %vm1469_vm5, %v1454_v17, %v1479_v26  ;;  %v1767_v2 = vsel %vm3703_vm6, %v1765_v62, %v1766_v5  ;;  %v1800_v38 = vshrl.u32 %v3355_v13, 16  ;;  %vm3705_vm4 = vsmask.f32 2304  ;;  %vm3706_vm5 = vmmov %vm3701_vm0 }
 0x2a8   : > { %v1499_v37 = vsel %vm3702_vm13, %v1489_v55, 0.0  ;;  %1776 = vrot.lane.b32.xlu1 %v1765_v62, %s2680_s13  ;;  %v2003_v7 = vrot.slane %v2001_v18, 2  ;;  %v2006_v32 = vrot.slane %v2004_v27, 3  ;;  %v1703_v41 = vsel %vm3705_vm4, %v3322_v48, %v1702_v46  ;;  %vm3708_vm0 = vmmov %vm3703_vm6 }
 0x2a9   : > { %v1511_v23 = vpack.c.bf16 %v1499_v37, %v1499_v37  ;;  %v1600_v51 = vor.u32 %v1598_v25, %v3346_v63  ;;  %v1802_v62 = vrot.slane %v1800_v38, 6  ;;  %v1805_v55 = vrot.slane %v1803_v3, 7 }
 0x2aa   : > { %v1455_v11 = vpop.f32.mrf.mxu3  ;;  %v3381_v40 = vor.u32 %v2006_v32, %v2003_v7  ;;  %v3383_v58 = vld [vmem:[#allocation2 + $0x18] sm:$0xff]   ;;  %vm3707_vm9 = vcmp.lt.f32.partialorder %v2853_v22, 7.5  ;;  %vm3710_vm6 = vsmask.f32 1280 }
 0x2ab   : > { %1521 = vst.msk [vmem:[#allocation2 + $0x20] sm:$0xf] %vm596_vm1, %v1511_v23  ;;  %v1456_v45 = vadd.f32 %v3289_v0, %v1455_v11  ;;  %v1602_v53 = vshll.u32 %v3383_v58, 16  ;;  %v1645_v33 = vrot.slane %v3383_v58, 1  ;;  %v1606_v17 = vshrl.u32 %v3383_v58, 16 }
 0x2ac   : > { %v2008_v29 = vsel %vm1083_vm11, %v1999_v60, %v3381_v40  ;;  %v1739_v20 = vrot.slane %v3383_v58, 6  ;;  %v1806_v32 = vor.u32 %v1805_v55, %v1802_v62 }
 0x2ad   : > { %vm1470_vm2 = vcmp.ge.f32.partialorder %v1456_v45, 0.0  ;;  %v1480_v15 = vmul.f32 0.2, %v1456_v45  ;;  %2481 = vmatmul.msk.bf16.vlgmr.msrb.gmra.mxu0 %vm970_vm7, %v2008_v29  ;;  %v1604_v8 = vrot.slane %v1602_v53, 1  ;;  %v1646_v14 = vsel %vm735_vm14, %v1643_v34, %v1645_v33 }
 0x2ae   : > { %1844 = vrot.lane.b32.xlu0 %v3385_v28, %s2681_s14  ;;  %1778 = vrot.lane.b32.xlu2 %v1767_v2, %s2680_s13  ;;  %v1704_v63 = vrot.slane %v1606_v17, 5  ;;  %v1705_v10 = vrot.slane %v1602_v53, 6  ;;  %v1740_v43 = vsel %vm3708_vm0, %v1737_v47, %v1739_v20  ;;  %v1807_v47 = vsel %vm3710_vm6, %v3385_v28, %v1806_v32 }
 0x2af   : > { %v1490_v19 = vsel %vm1470_vm2, %v1456_v45, %v1480_v15  ;;  %v1605_v44 = vsel %vm672_vm15, %v1600_v51, %v1604_v8  ;;  %vm3709_vm2 = vmmov %vm3705_vm4 }
 0x2b0   : > { %v1500_v6 = vsel %vm3704_vm10, %v1490_v19, 0.0  ;;  %1684 = vrot.lane.b32.xlu1 %v1675_v50, %s2679_s12  ;;  %vm3711_vm10 = vcmp.lt.f32.partialorder %v2882_v52, 7.5  ;;  %v1608_v19 = vor.u32 %v1606_v17, %v1604_v8  ;;  %vm3712_vm4 = vmmov %vm3710_vm6 }
 0x2b1   : > { %v1512_v36 = vpack.c.bf16 %v1500_v6, %v1500_v6  ;;  %vm3718_vm6 = vmmov %vm3708_vm0 }
 0x2b2   : > { %v1458_v39 = vpop.f32.mrf.mxu3  ;;  %v3403_v59 = vld [vmem:[#allocation2 + $0x1c] sm:$0xff]  }
 0x2b3   : > { %1522 = vst.msk [vmem:[#allocation2 + $0x24] sm:$0xf] %vm596_vm1, %v1512_v36  ;;  %v1459_v61 = vadd.f32 %v3289_v0, %v1458_v39  ;;  %v1862_v56 = vrot.slane %v3403_v59, 7  ;;  %v1809_v25 = vshrl.u32 %v3403_v59, 16  ;;  %v1812_v23 = vshll.u32 %v3403_v59, 16 }
 0x2b4   : > { %v1678_v50 = vrot.slane %v3403_v59, 1  ;;  %v1543_v39 = vld [vmem:[#allocation2 + $0x30] sm:$0xf]  ;;  %v1768_v8 = vrot.slane %v3403_v59, 6 }
 0x2b5   : > { %vm1471_vm12 = vcmp.ge.f32.partialorder %v1459_v61, 0.0  ;;  %v1481_v26 = vmul.f32 0.2, %v1459_v61  ;;  %v1863_v48 = vsel %vm3706_vm5, %v1860_v57, %v1862_v56  ;;  %v1706_v57 = vor.u32 %v1705_v10, %v1704_v63 }
 0x2b6   : > { %1655 = vrot.lane.b32.xlu0 %v1646_v14, %s2676_s28  ;;  %1629 = vrot.lane.b32.xlu2 %v1605_v44, %s2677_s29  ;;  %v2018_v24 = vshrl.u32 %v1863_v48, 16  ;;  %v2021_v31 = vshll.u32 %v1863_v48, 16  ;;  %v1811_v9 = vrot.slane %v1809_v25, 6  ;;  %v1814_v49 = vrot.slane %v1812_v23, 7 }
 0x2b7   : > { %v1491_v21 = vsel %vm1471_vm12, %v1459_v61, %v1481_v26  ;;  %v1679_v36 = vsel %vm735_vm14, %v1676_v16, %v1678_v50  ;;  %v1761_v51 = vunpack.c.l.b16 %v1543_v39  ;;  %vm3714_vm12 = vmmov %vm3708_vm0 }
 0x2b8   : > { %v1501_v34 = vsel %vm3707_vm9, %v1491_v21, 0.0  ;;  %1723 = vrot.lane.b32.xlu1 %v1703_v41, %s2678_s11  ;;  %v2020_v27 = vrot.slane %v2018_v24, 2  ;;  %v2023_v37 = vrot.slane %v2021_v31, 3  ;;  %v1815_v53 = vor.u32 %v1814_v49, %v1811_v9  ;;  %vm3715_vm9 = vmmov %vm3712_vm4  ;;  %v1546_v9 = vld [vmem:[#allocation2 + $0x34] sm:$0x3] }
 0x2b9   : > { %v1513_v18 = vpack.c.bf16 %v1501_v34, %v1501_v34  ;;  %v1769_v14 = vsel %vm3714_vm12, %v1766_v5, %v1768_v8 }
 0x2ba   : > { %v1460_v12 = vpop.f32.mrf.mxu3  ;;  %v3430_v4 = vld [vmem:[#allocation2 + $0x20] sm:$0xff]   ;;  %v3436_v7 = vor.u32 %v2023_v37, %v2020_v27 }
 0x2bb   : > { %1523 = vst.msk [vmem:[#allocation2 + $0x28] sm:$0xf] %vm596_vm1, %v1513_v18  ;;  %v1461_v22 = vadd.f32 %v3289_v0, %v1460_v12  ;;  %v1610_v60 = vshll.u32 %v3430_v4, 16  ;;  %v1707_v0 = vsel %vm3709_vm2, %v1702_v46, %v1706_v57  ;;  %v1614_v2 = vshrl.u32 %v3430_v4, 16 }
 0x2bc   : > { %v2025_v45 = vsel %vm1083_vm11, %v3381_v40, %v3436_v7  ;;  %v1816_v46 = vsel %vm3712_vm4, %v1806_v32, %v1815_v53  ;;  %v2558_v61 = vunpack.c.h.b16 %v3430_v4  ;;  %v1647_v18 = vrot.slane %v3430_v4, 1  ;;  %vm3722_vm4 = vmmov %vm3708_vm0 }
 0x2bd   : > { %vm1472_vm13 = vcmp.ge.f32.partialorder %v1461_v22, 0.0  ;;  %v1482_v11 = vmul.f32 0.2, %v1461_v22  ;;  %2482 = vmatmul.msk.bf16.gmra.mxu0 %vm970_vm7, %v2025_v45  ;;  %v3456_v35 = vrot.slane %v1610_v60, 1  ;;  %v1708_v52 = vrot.slane %v1614_v2, 5 }
 0x2be   : > { %1751 = vrot.lane.b32.xlu0 %v1740_v43, %s2675_s27  ;;  %1725 = vrot.lane.b32.xlu2 %v1707_v0, %s2678_s11  ;;  %v1709_v6 = vrot.slane %v1610_v60, 6 }
 0x2bf   : > { %v1492_v15 = vsel %vm1472_vm13, %v1461_v22, %v1482_v11  ;;  %v1613_v28 = vsel %vm672_vm15, %v1608_v19, %v3456_v35  ;;  %v1648_v22 = vsel %vm735_vm14, %v1645_v33, %v1647_v18  ;;  %vm3716_vm13 = vmmov %vm3706_vm5  ;;  %v1741_v33 = vrot.slane %v3430_v4, 6 }
 0x2c0   : > { %v1502_v29 = vsel %vm3711_vm10, %v1492_v15, 0.0  ;;  %1846 = vrot.lane.b32.xlu1 %v1807_v47, %s2681_s14  ;;  %v3472_v38 = vor.u32 %v1709_v6, %v1708_v52  ;;  %vm3720_vm10 = vmmov %vm3706_vm5 }
 0x2c1   : > { %v1514_v40 = vpack.c.bf16 %v1502_v29, %v1502_v29 }
 0x2c2   : > { %v1537_v12 = vld [vmem:[#allocation2 + $0x28] sm:$0x7] }
 0x2c3   : > { %1524 = vst.msk [vmem:[#allocation2 + $0x2c] sm:$0xf] %vm596_vm1, %v1514_v40  ;;  %vm3713_vm1 = vmmov %vm3709_vm2  ;;  %v1568_v32 = vunpack.c.l.b16 %v1537_v12  ;;  %v1857_v40 = vunpack.c.l.b16 %v1546_v9 }
 0x2c4   : > { %v1711_v26 = vsel %vm3713_vm1, %v1706_v57, %v3472_v38  ;;  %vm3717_vm2 = vmmov %vm3708_vm0 }
 0x2c5   : > { %v3514_v49 = vpack.c.b16 %v1568_v32, %v1568_v32 }
 0x2c6   : > { %1631 = vrot.lane.b32.xlu0 %v1613_v28, %s2677_s29  ;;  %1848 = vrot.lane.b32.xlu2 %v1816_v46, %s2681_s14  ;;  %v1858_v46 = vpack.c.b16 %v1857_v40, %v1857_v40 }
 0x2c7   : > { %v1618_v19 = vshll.u32 %v3514_v49, 16 }
 0x2c8   : > { %1688 = vrot.lane.b32.xlu1 %v1679_v36, %s2679_s12 }
 0x2c9   : > { %v1620_v36 = vrot.slane %v1618_v19, 1  ;;  %v2519_v19 = vld [vmem:[%s3683_s7 + $0x28] sm:$0xff] }
 0x2ca   : > { %v3475_v17 = vld [vmem:[#allocation2 + $0x28] sm:$0xff]  }
 0x2cb   : > { %v2561_v3 = vunpack.c.l.b16 %v3475_v17  ;;  %v2562_v41 = vunpack.c.h.b16 %v3475_v17  ;;  %v1713_v39 = vshrl.u32 %v3475_v17, 16 }
 0x2cd   : > { %v1671_v16 = vpack.c.b16 %v2561_v3, %v2558_v61  ;;  %v3487_v10 = vpack.c.b16 %v1761_v51, %v2562_v41  ;;  %v1672_v23 = vpack.c.b16 %v2562_v41, %v2562_v41  ;;  %v1639_v60 = vpack.c.b16 %v2561_v3, %v2561_v3 }
 0x2ce   : > { %1727 = vrot.lane.b32.xlu0 %v1711_v26, %s2678_s11  ;;  %v1616_v3 = vor.u32 %v1614_v2, %v3456_v35  ;;  %v1743_v41 = vrot.slane %v3475_v17, 6  ;;  %v1868_v51 = vrot.slane %v1858_v46, 7  ;;  %v1542_v26 = vld [vmem:[#allocation2 + $0x30] sm:$0x1]  ;;  %v1544_v2 = vld [vmem:[#allocation2 + $0x34] sm:$0x1] }
 0x2cf   : > { %v1680_v62 = vrot.slane %v1671_v16, 1  ;;  %v1818_v44 = vshrl.u32 %v1671_v16, 16  ;;  %v1821_v48 = vshll.u32 %v1671_v16, 16  ;;  %v1864_v63 = vrot.slane %v1671_v16, 7  ;;  %v2517_v46 = vld [vmem:[%s3683_s7 + $0x18] sm:$0xff] }
 0x2d0   : > { %1780 = vrot.lane.b32.xlu1 %v1769_v14, %s2680_s13  ;;  %v1770_v25 = vrot.slane %v1671_v16, 6  ;;  %v1866_v59 = vrot.slane %v3487_v10, 7  ;;  %v3509_v45 = vrot.slane %v1672_v23, 1  ;;  %v1649_v29 = vrot.slane %v1639_v60, 1 }
 0x2d1   : > { %v1681_v21 = vsel %vm735_vm14, %v1678_v50, %v1680_v62  ;;  %v1820_v24 = vrot.slane %v1818_v44, 6  ;;  %v1823_v31 = vrot.slane %v1821_v48, 7  ;;  %v1865_v55 = vsel %vm3706_vm5, %v1862_v56, %v1864_v63  ;;  %vm3725_vm5 = vmmov %vm3708_vm0 }
 0x2d2   : > { %1690 = vrot.lane.b32.xlu2 %v1681_v21, %s2679_s12  ;;  %v2035_v13 = vshrl.u32 %v1865_v55, 16  ;;  %v2038_v5 = vshll.u32 %v1865_v55, 16  ;;  %v1771_v11 = vsel %vm3708_vm0, %v1768_v8, %v1770_v25  ;;  %v1867_v0 = vsel %vm3716_vm13, %v1864_v63, %v1866_v59 }
 0x2d3   : > { %v3494_v34 = vor.u32 %v1823_v31, %v1820_v24  ;;  %v2052_v15 = vshrl.u32 %v1867_v0, 16  ;;  %v2055_v47 = vshll.u32 %v1867_v0, 16  ;;  %v1650_v52 = vsel %vm735_vm14, %v1647_v18, %v1649_v29 }
 0x2d4   : > { %v2037_v27 = vrot.slane %v2035_v13, 2  ;;  %v2040_v37 = vrot.slane %v2038_v5, 3  ;;  %v1772_v6 = vrot.slane %v3487_v10, 6  ;;  %v1716_v8 = vshll.u32 %v3475_v17, 16 }
 0x2d5   : > { %v1825_v57 = vsel %vm3715_vm9, %v1815_v53, %v3494_v34  ;;  %v1742_v53 = vsel %vm3717_vm2, %v1739_v20, %v1741_v33  ;;  %v2054_v50 = vrot.slane %v2052_v15, 2  ;;  %v2057_v28 = vrot.slane %v2055_v47, 3  ;;  %v2521_v15 = vld [vmem:[%s3683_s7 + $0x38] sm:$0xff]  ;;  %v2520_v47 = vld [vmem:[%s3683_s7 + $0x30] sm:$0xff] }
 0x2d6   : > { %1850 = vrot.lane.b32.xlu0 %v1825_v57, %s2681_s14  ;;  %v2041_v56 = vor.u32 %v2040_v37, %v2037_v27  ;;  %v1773_v20 = vsel %vm3718_vm6, %v1770_v25, %v1772_v6  ;;  %v1621_v16 = vsel %vm672_vm15, %v1616_v3, %v1620_v36  ;;  %v1715_v14 = vrot.slane %v1713_v39, 5  ;;  %vm3721_vm15 = vmmov %vm3713_vm1  ;;  %2151 = vmatpush.bf16.msrb.mxu2 %v2521_v15  ;;  %v2515_v3 = vld [vmem:[%s3683_s7 + $0x8] sm:$0xff] }
 0x2d7   : > { %v2058_v61 = vor.u32 %v2057_v28, %v2054_v50  ;;  %v1734_v63 = vunpack.c.l.b16 %v1542_v26  ;;  %v1869_v35 = vsel %vm3720_vm10, %v1866_v59, %v1868_v51  ;;  %v1827_v21 = vshrl.u32 %v3487_v10, 16  ;;  %vm3723_vm1 = vmmov %vm3715_vm9  ;;  %v2514_v26 = vld [vmem:[%s3683_s7] sm:$0xff] }
 0x2d8   : > { %1657 = vrot.lane.b32.xlu1 %v1648_v22, %s2676_s28  ;;  %v2042_v43 = vsel %vm1083_vm11, %v3436_v7, %v2041_v56  ;;  %v1683_v7 = vsel %vm735_vm14, %v1680_v62, %v3509_v45  ;;  %v1718_v62 = vrot.slane %v1716_v8, 6  ;;  %vm3719_vm14 = vmmov %vm3708_vm0  ;;  %v1830_v24 = vshll.u32 %v3487_v10, 16  ;;  %v2516_v10 = vld [vmem:[%s3683_s7 + $0x10] sm:$0xff]  ;;  %v1527_v8 = vld [vmem:[#allocation2] sm:$0xc] }
 0x2d9   : > { %2483 = vmatmul.msk.bf16.gmra.mxu0 %vm970_vm7, %v2042_v43  ;;  %v2059_v44 = vsel %vm1083_vm11, %v2041_v56, %v2058_v61  ;;  %v1744_v48 = vsel %vm3719_vm14, %v1741_v33, %v1743_v41  ;;  %v2069_v31 = vshrl.u32 %v1869_v35, 16  ;;  %v2072_v55 = vshll.u32 %v1869_v35, 16  ;;  %vm3724_vm12 = vmmov %vm3723_vm1 }
 0x2da   : > { %1782 = vrot.lane.b32.xlu2 %v1771_v11, %s2680_s13  ;;  %v1719_v17 = vor.u32 %v1718_v62, %v1715_v14  ;;  %v1735_v13 = vpack.c.b16 %v1734_v63, %v1734_v63  ;;  %v1762_v5 = vunpack.c.l.b16 %v1544_v2  ;;  %v1622_v18 = vshrl.u32 %v3514_v49, 16  ;;  %2152 = vmatpush.bf16.msrb.mxu2 %v2520_v47 }
 0x2db   : > { %v1829_v37 = vrot.slane %v1827_v21, 6  ;;  %v1832_v12 = vrot.slane %v1830_v24, 7  ;;  %v2071_v25 = vrot.slane %v2069_v31, 2  ;;  %v2074_v23 = vrot.slane %v2072_v55, 3 }
 0x2dc   : > { %v1720_v27 = vsel %vm3721_vm15, %v3472_v38, %v1719_v17  ;;  %v1624_v57 = vor.u32 %v1622_v18, %v1620_v36  ;;  %v1745_v59 = vrot.slane %v1735_v13, 6  ;;  %v1764_v56 = vpack.c.b16 %v1762_v5, %v1762_v5 }
 0x2dd   : > { %v1833_v22 = vor.u32 %v1832_v12, %v1829_v37  ;;  %v2075_v32 = vor.u32 %v2074_v23, %v2071_v25  ;;  %vm3726_vm9 = vcmask 523264   ;;  %vm3727_vm0 = vcmask 654336  }
 0x2de   : > { %1692 = vrot.lane.b32.xlu0 %v1683_v7, %s2679_s12  ;;  %v1746_v43 = vsel %vm3722_vm4, %v1743_v41, %v1745_v59  ;;  %v1836_v11 = vshrl.u32 %v1764_v56, 16  ;;  %v1839_v60 = vshll.u32 %v1764_v56, 16  ;;  %2153 = vmatpush.bf16.msrb.mxu2 %v2519_v19  ;;  %vm3728_vm13 = vcmask 785408   ;;  %vm3729_vm2 = vmmov %vm3726_vm9 }
 0x2df   : > { %v1834_v38 = vsel %vm3723_vm1, %v3494_v34, %v1833_v22  ;;  %v2076_v0 = vsel %vm1083_vm11, %v2058_v61, %v2075_v32  ;;  %v1748_v34 = vpop.permute.xlu2 %1747  ;;  %v1558_v61 = vunpack.c.l.b16 %v1527_v8  ;;  %vm3730_vm6 = vcmask 916480   ;;  %vm3731_vm14 = vmmov %vm3727_vm0 }
 0x2e0   : > { %1753 = vrot.lane.b32.xlu1 %v1742_v53, %s2675_s27  ;;  %v1838_v9 = vrot.slane %v1836_v11, 6  ;;  %v1841_v33 = vrot.slane %v1839_v60, 7  ;;  %v1774_v53 = vrot.slane %v1764_v56, 6  ;;  %vm3732_vm10 = vmmov %vm3728_vm13 }
 0x2e1   : > { %vm3733_vm15 = vmmov %vm3730_vm6 }
 0x2e2   : > { %1659 = vrot.lane.b32.xlu2 %v1650_v52, %s2676_s28  ;;  %v1842_v7 = vor.u32 %v1841_v33, %v1838_v9  ;;  %v1775_v28 = vsel %vm3725_vm5, %v1772_v6, %v1774_v53  ;;  %vm3734_vm4 = vmmov %vm3729_vm2 }
 0x2e3   : > { %vm3735_vm1 = vmmov %vm3727_vm0 }
 0x2e4   : > { %v1843_v40 = vsel %vm3724_vm12, %v1833_v22, %v1842_v7  ;;  %vm3736_vm12 = vmmov %vm3732_vm10 }
 0x2e5   : > { %vm3737_vm5 = vmmov %vm3730_vm6 }
 0x2e6   : > { %1784 = vrot.lane.b32.xlu0 %v1773_v20, %s2680_s13 }
 0x2e7   : > { %v1652_v50 = vpop.permute.xlu2 %1651 }
 0x2e8   : > { %1633 = vrot.lane.b32.xlu1 %v1621_v16, %s2677_s29  ;;  %v1569_v16 = vpack.c.b16 %v1559_v54, %v1558_v61 }
 0x2e9   : > { %2484 = vmatmul.msk.bf16.gmra.mxu0 %vm970_vm7, %v2059_v44 }
 0x2ea   : > { %1755 = vrot.lane.b32.xlu2 %v1744_v48, %s2675_s27 }
 0x2ee   : > { %1661 = vrot.lane.b32.xlu0 %v1649_v29, %s2676_s28 }
 0x2f0   : > { %1729 = vrot.lane.b32.xlu1 %v1720_v27, %s2678_s11 }
 0x2f2   : > { %1635 = vrot.lane.b32.xlu2 %v1624_v57, %s2677_s29 }
 0x2f6   : > { %1757 = vrot.lane.b32.xlu0 %v1746_v43, %s2675_s27 }
 0x2f8   : > { %1852 = vrot.lane.b32.xlu1 %v1834_v38, %s2681_s14 }
 0x2f9   : > { %2485 = vmatmul.msk.bf16.gmra.mxu0 %vm970_vm7, %v2076_v0  ;;  %v1626_v29 = vpop.permute.xlu0 %1625 }
 0x2fa   : > { %1731 = vrot.lane.b32.xlu2 %v1719_v17, %s2678_s11  ;;  %v1872_v14 = vsel %vm970_vm7, %v1569_v16, %v1626_v29 }
 0x2fb   : > { %v1884_v48 = vsel %vm984_vm3, %v1872_v14, %v1652_v50 }
 0x300   : > { %1694 = vrot.lane.b32.xlu1 %v3509_v45, %s2679_s12  ;;  %v2518_v45 = vld [vmem:[%s3683_s7 + $0x20] sm:$0xff]  ;;  %v1687_v36 = vpop.permute.xlu2 %1686 }
 0x301   : > { %v1722_v52 = vpop.permute.xlu0 %1721  ;;  %2154 = vmatpush.bf16.msrb.mxu2 %v2518_v45 }
 0x302   : > { %1854 = vrot.lane.b32.xlu2 %v1843_v40, %s2681_s14 }
 0x305   : > { %2155 = vmatpush.bf16.msrb.mxu2 %v2517_v46 }
 0x308   : > { %1786 = vrot.lane.b32.xlu1 %v1775_v28, %s2680_s13  ;;  %v1779_v41 = vpop.permute.xlu2 %1778 }
 0x309   : > { %2156 = vmatpush.bf16.msrb.mxu2 %v2516_v10 }
 0x30d   : > { %2157 = vmatpush.bf16.msrb.mxu2 %v2515_v3 }
 0x310   : > { %v1654_v39 = vpop.permute.xlu0 %1653  ;;  %v1630_v63 = vpop.permute.xlu2 %1629 }
 0x311   : > { %2158 = vmatpush.bf16.msrb.mxu2 %v2514_v26  ;;  %v1876_v9 = vsel %vm970_vm7, %v3335_v42, %v1630_v63 }
 0x312   : > { %v1628_v6 = vpop.permute.xlu1 %1627 }
 0x313   : > { %v1874_v17 = vsel %vm970_vm7, %v3304_v1, %v1628_v6 }
 0x314   : > { %v1886_v30 = vsel %vm984_vm3, %v1874_v17, %v1654_v39 }
 0x315   : > { %v1898_v55 = vsel %vm997_vm8, %v1886_v30, %v1687_v36 }
 0x318   : > { %v1750_v20 = vpop.permute.xlu0 %1749  ;;  %v1726_v5 = vpop.permute.xlu2 %1725 }
 0x31a   : > { %v1777_v51 = vpop.permute.xlu1 %1776 }
 0x320   : > { %v1845_v62 = vpop.permute.xlu0 %1844  ;;  %v1849_v60 = vpop.permute.xlu2 %1848 }
 0x322   : > { %v1685_v44 = vpop.permute.xlu1 %1684 }
 0x323   : > { %v1896_v35 = vsel %vm997_vm8, %v1884_v48, %v1685_v44 }
 0x324   : > { %v1908_v2 = vsel %vm3726_vm9, %v1896_v35, %v1722_v52  ;;  %vm3738_vm9 = vmmov %vm3729_vm2 }
 0x325   : > { %v1920_v21 = vsel %vm3727_vm0, %v1908_v2, %v1748_v34 }
 0x326   : > { %v1932_v24 = vsel %vm3728_vm13, %v1920_v21, %v1777_v51  ;;  %vm3739_vm13 = vmmov %vm3732_vm10 }
 0x327   : > { %v1944_v18 = vsel %vm3730_vm6, %v1932_v24, %v1845_v62  ;;  %vm3741_vm6 = vmmov %vm3734_vm4 }
 0x328   : > { %v1656_v54 = vpop.permute.xlu0 %1655  ;;  %v1977_v37 = vshrl.u32 %v1944_v18, 16  ;;  %v1980_v12 = vshll.u32 %v1944_v18, 16 }
 0x329   : > { %v1888_v47 = vsel %vm984_vm3, %v1876_v9, %v1656_v54 }
 0x32a   : > { %v1724_v31 = vpop.permute.xlu1 %1723  ;;  %v1979_v22 = vrot.slane %v1977_v37, 2  ;;  %v1982_v32 = vrot.slane %v1980_v12, 3 }
 0x32b   : > { %v1910_v13 = vsel %vm3729_vm2, %v1898_v55, %v1724_v31  ;;  %vm3740_vm2 = vmmov %vm3737_vm5 }
 0x32c   : > { %v1922_v27 = vsel %vm3731_vm14, %v1910_v13, %v1750_v20  ;;  %v1983_v0 = vor.u32 %v1982_v32, %v1979_v22  ;;  %v1691_v29 = vpop.permute.xlu2 %1690  ;;  %vm3742_vm14 = vmmov %vm3727_vm0 }
 0x32d   : > { %v1934_v57 = vsel %vm3732_vm10, %v1922_v27, %v1779_v41 }
 0x330   : > { %v1752_v25 = vpop.permute.xlu0 %1751 }
 0x332   : > { %v1847_v1 = vpop.permute.xlu1 %1846 }
 0x333   : > { %v1946_v23 = vsel %vm3733_vm15, %v1934_v57, %v1847_v1  ;;  %vm3743_vm15 = vmmov %vm3740_vm2 }
 0x334   : > { %v1984_v59 = vshrl.u32 %v1946_v23, 16  ;;  %v1987_v56 = vshll.u32 %v1946_v23, 16  ;;  %v1783_v39 = vpop.permute.xlu2 %1782 }
 0x336   : > { %v1986_v43 = vrot.slane %v1984_v59, 2  ;;  %v1989_v11 = vrot.slane %v1987_v56, 3 }
 0x338   : > { %v1990_v38 = vor.u32 %v1989_v11, %v1986_v43  ;;  %v1632_v7 = vpop.permute.xlu0 %1631 }
 0x339   : > { %v1878_v8 = vsel %vm970_vm7, %v3383_v58, %v1632_v7 }
 0x33a   : > { %v1689_v33 = vpop.permute.xlu1 %1688  ;;  %v1991_v15 = vsel %vm1083_vm11, %v1983_v0, %v1990_v38 }
 0x33b   : > { %2159 = vmatmul.bf16.vlgmr.msrb.gmra.mxu2 %v1991_v15  ;;  %v1900_v34 = vsel %vm997_vm8, %v1888_v47, %v1689_v33 }
 0x33c   : > { %v1912_v40 = vsel %vm3734_vm4, %v1900_v34, %v1726_v5  ;;  %v1660_v16 = vpop.permute.xlu2 %1659 }
 0x33d   : > { %v1924_v19 = vsel %vm3735_vm1, %v1912_v40, %v1752_v25  ;;  %vm3744_vm1 = vmmov %vm3727_vm0 }
 0x340   : > { %v1728_v45 = vpop.permute.xlu0 %1727 }
 0x342   : > { %v1781_v53 = vpop.permute.xlu1 %1780 }
 0x343   : > { %v1936_v50 = vsel %vm3736_vm12, %v1924_v19, %v1781_v53  ;;  %vm3745_vm12 = vmmov %vm3732_vm10 }
 0x344   : > { %v1948_v28 = vsel %vm3737_vm5, %v1936_v50, %v1849_v60  ;;  %v1756_v54 = vpop.permute.xlu2 %1755  ;;  %vm3746_vm5 = vmmov %vm3740_vm2 }
 0x345   : > { %v2009_v42 = vshrl.u32 %v1948_v28, 16  ;;  %v2012_v52 = vshll.u32 %v1948_v28, 16 }
 0x347   : > { %v2011_v46 = vrot.slane %v2009_v42, 2  ;;  %v2014_v36 = vrot.slane %v2012_v52, 3  ;;  %v2194_v42 = vpop.f32.mrf.mxu0  ;;  %v3649_v52 = vld [vmem:[%s3684_s8] ss:$0 sm:$0xff] }
 0x348   : > { %v1851_v41 = vpop.permute.xlu0 %1850 }
 0x349   : > { %v2015_v10 = vor.u32 %v2014_v36, %v2011_v46 }
 0x34a   : > { %v1658_v6 = vpop.permute.xlu1 %1657 }
 0x34b   : > { %v2016_v61 = vsel %vm1083_vm11, %v1990_v38, %v2015_v10  ;;  %v1890_v20 = vsel %vm984_vm3, %v1878_v8, %v1658_v6 }
 0x34c   : > { %2164 = vmatmul.bf16.gmra.mxu2 %v2016_v61  ;;  %v1902_v3 = vsel %vm997_vm8, %v1890_v20, %v1691_v29  ;;  %v1636_v27 = vpop.permute.xlu2 %1635 }
 0x34d   : > { %v1914_v26 = vsel %vm3738_vm9, %v1902_v3, %v1728_v45  ;;  %v1882_v43 = vsel %vm970_vm7, %v3514_v49, %v1636_v27 }
 0x34f   : > { %v2196_v36 = vpop.f32.mrf.mxu0 }
 0x350   : > { %v1693_v21 = vpop.permute.xlu0 %1692 }
 0x352   : > { %v1754_v51 = vpop.permute.xlu1 %1753 }
 0x353   : > { %v1926_v14 = vsel %vm3727_vm0, %v1914_v26, %v1754_v51 }
 0x354   : > { %v1938_v62 = vsel %vm3739_vm13, %v1926_v14, %v1783_v39  ;;  %v1732_v32 = vpop.permute.xlu2 %1731 }
 0x355   : > { %v1950_v44 = vsel %vm3740_vm2, %v1938_v62, %v1851_v41 }
 0x356   : > { %v2026_v48 = vshrl.u32 %v1950_v44, 16  ;;  %v2029_v58 = vshll.u32 %v1950_v44, 16 }
 0x357   : > { %v2199_v3 = vpop.f32.mrf.mxu0 }
 0x358   : > { %v2028_v63 = vrot.slane %v2026_v48, 2  ;;  %v2031_v35 = vrot.slane %v2029_v58, 3  ;;  %v1785_v18 = vpop.permute.xlu0 %1784 }
 0x35a   : > { %v1634_v2 = vpop.permute.xlu1 %1633  ;;  %v2032_v17 = vor.u32 %v2031_v35, %v2028_v63 }
 0x35b   : > { %v1880_v24 = vsel %vm970_vm7, %v3430_v4, %v1634_v2 }
 0x35c   : > { %v2033_v30 = vsel %vm1083_vm11, %v2015_v10, %v2032_v17  ;;  %v1892_v31 = vsel %vm984_vm3, %v1880_v24, %v1660_v16  ;;  %v1855_v34 = vpop.permute.xlu2 %1854 }
 0x35d   : > { %2169 = vmatmul.bf16.gmra.mxu2 %v2033_v30  ;;  %v1904_v13 = vsel %vm997_vm8, %v1892_v31, %v1693_v21 }
 0x35f   : > { %v2201_v44 = vpop.f32.mrf.mxu0 }
 0x360   : > { %v1662_v56 = vpop.permute.xlu0 %1661 }
 0x361   : > { %v1894_v38 = vsel %vm984_vm3, %v1882_v43, %v1662_v56 }
 0x362   : > { %v1730_v55 = vpop.permute.xlu1 %1729 }
 0x363   : > { %v1916_v5 = vsel %vm3741_vm6, %v1904_v13, %v1730_v55 }
 0x364   : > { %v1928_v37 = vsel %vm3742_vm14, %v1916_v5, %v1756_v54 }
 0x365   : > { %v1940_v1 = vsel %vm3732_vm10, %v1928_v37, %v1785_v18 }
 0x367   : > { %v2204_v30 = vpop.f32.mrf.mxu0 }
 0x368   : > { %v1758_v33 = vpop.permute.xlu0 %1757 }
 0x36a   : > { %v1853_v12 = vpop.permute.xlu1 %1852 }
 0x36b   : > { %v1952_v57 = vsel %vm3743_vm15, %v1940_v1, %v1853_v12 }
 0x36c   : > { %v2043_v25 = vshrl.u32 %v1952_v57, 16  ;;  %v2046_v23 = vshll.u32 %v1952_v57, 16 }
 0x36e   : > { %v2045_v4 = vrot.slane %v2043_v25, 2  ;;  %v2048_v59 = vrot.slane %v2046_v23, 3 }
 0x36f   : > { %v2206_v5 = vpop.f32.mrf.mxu0 }
 0x370   : > { %v2049_v22 = vor.u32 %v2048_v59, %v2045_v4 }
 0x372   : > { %v1695_v11 = vpop.permute.xlu1 %1694  ;;  %v2050_v60 = vsel %vm1083_vm11, %v2032_v17, %v2049_v22 }
 0x373   : > { %2174 = vmatmul.bf16.gmra.mxu2 %v2050_v60  ;;  %v1906_v0 = vsel %vm997_vm8, %v1894_v38, %v1695_v11 }
 0x374   : > { %v1918_v9 = vsel %vm3734_vm4, %v1906_v0, %v1732_v32 }
 0x375   : > { %v1930_v47 = vsel %vm3744_vm1, %v1918_v9, %v1758_v33 }
 0x377   : > { %v2209_v23 = vpop.f32.mrf.mxu0 }
 0x37a   : > { %v1787_v15 = vpop.permute.xlu1 %1786 }
 0x37b   : > { %v1942_v7 = vsel %vm3745_vm12, %v1930_v47, %v1787_v15 }
 0x37c   : > { %v1954_v29 = vsel %vm3746_vm5, %v1942_v7, %v1855_v34 }
 0x37d   : > { %v2060_v49 = vshrl.u32 %v1954_v29, 16  ;;  %v2063_v40 = vshll.u32 %v1954_v29, 16 }
 0x37f   : > { %v2062_v53 = vrot.slane %v2060_v49, 2  ;;  %v2065_v19 = vrot.slane %v2063_v40, 3  ;;  %v2211_v56 = vpop.f32.mrf.mxu0 }
 0x381   : > { %v2066_v50 = vor.u32 %v2065_v19, %v2062_v53 }
 0x383   : > { %v2067_v28 = vsel %vm1083_vm11, %v2049_v22, %v2066_v50 }
 0x384   : > { %2179 = vmatmul.bf16.gmra.mxu2 %v2067_v28 }
 0x387   : > { %v2214_v15 = vpop.f32.mrf.mxu0 }
 0x38f   : > { %v2216_v40 = vpop.f32.mrf.mxu0 }
 0x3be   : > { %v2160_v45 = vpop.f32.mrf.mxu2 }
 0x3bf   : > { %v2161_v46 = vadd.f32 %v3649_v52, %v2160_v45 }
 0x3c1   : > { %v2195_v39 = vadd.f32 %v2194_v42, %v2161_v46 }
 0x3c3   : > { %v2229_v8 = vmul.f32 0.2, %v2195_v39  ;;  %vm2219_vm3 = vcmp.ge.f32.partialorder %v2195_v39, 0.0 }
 0x3c5   : > { %v2239_v41 = vsel %vm2219_vm3, %v2195_v39, %v2229_v8 }
 0x3c6   : > { %v2162_v10 = vpop.f32.mrf.mxu2 }
 0x3c7   : > { %v2163_v6 = vadd.f32 %v3649_v52, %v2162_v10 }
 0x3c9   : > { %v2197_v61 = vadd.f32 %v2196_v36, %v2163_v6 }
 0x3cb   : > { %vm2220_vm7 = vcmp.ge.f32.partialorder %v2197_v61, 0.0  ;;  %v2230_v20 = vmul.f32 0.2, %v2197_v61 }
 0x3cd   : > { %v2240_v51 = vsel %vm2220_vm7, %v2197_v61, %v2230_v20 }
 0x3ce   : > { %v2566_v26 = vpack.c.bf16 %v2240_v51, %v2239_v41 }
 0x3cf   : > { %v2165_v16 = vpop.f32.mrf.mxu2 }
 0x3d0   : > { %2567 = vst [vmem:[%s3658_s21] sm:$0xff] %v2566_v26   ;;  %v2166_v14 = vadd.f32 %v3649_v52, %v2165_v16 }
 0x3d2   : > { %v2200_v62 = vadd.f32 %v2199_v3, %v2166_v14 }
 0x3d4   : > { %v2231_v63 = vmul.f32 0.2, %v2200_v62  ;;  %vm2221_vm11 = vcmp.ge.f32.partialorder %v2200_v62, 0.0 }
 0x3d6   : > { %v2241_v17 = vsel %vm2221_vm11, %v2200_v62, %v2231_v63 }
 0x3d7   : > { %v2167_v48 = vpop.f32.mrf.mxu2 }
 0x3d8   : > { %v2168_v58 = vadd.f32 %v3649_v52, %v2167_v48 }
 0x3da   : > { %v2202_v35 = vadd.f32 %v2201_v44, %v2168_v58 }
 0x3dc   : > { %vm2222_vm8 = vcmp.ge.f32.partialorder %v2202_v35, 0.0  ;;  %v2232_v2 = vmul.f32 0.2, %v2202_v35 }
 0x3de   : > { %v2242_v21 = vsel %vm2222_vm8, %v2202_v35, %v2232_v2 }
 0x3df   : > { %v2571_v54 = vpack.c.bf16 %v2242_v21, %v2241_v17 }
 0x3e0   : > { %v2170_v24 = vpop.f32.mrf.mxu2 }
 0x3e1   : > { %2626 = vst [vmem:[%s3658_s21 + $0x8] sm:$0xff] %v2571_v54   ;;  %v2171_v31 = vadd.f32 %v3649_v52, %v2170_v24 }
 0x3e3   : > { %v2205_v55 = vadd.f32 %v2204_v30, %v2171_v31 }
 0x3e5   : > { %v2233_v27 = vmul.f32 0.2, %v2205_v55  ;;  %vm2223_vm9 = vcmp.ge.f32.partialorder %v2205_v55, 0.0 }
 0x3e7   : > { %v2243_v1 = vsel %vm2223_vm9, %v2205_v55, %v2233_v27 }
 0x3e8   : > { %v2172_v13 = vpop.f32.mrf.mxu2 }
 0x3e9   : > { %v2173_v18 = vadd.f32 %v3649_v52, %v2172_v13 }
 0x3eb   : > { %v2207_v37 = vadd.f32 %v2206_v5, %v2173_v18 }
 0x3ed   : > { %vm2224_vm0 = vcmp.ge.f32.partialorder %v2207_v37, 0.0  ;;  %v2234_v12 = vmul.f32 0.2, %v2207_v37 }
 0x3ef   : > { %v2244_v57 = vsel %vm2224_vm0, %v2207_v37, %v2234_v12 }
 0x3f0   : > { %v2576_v25 = vpack.c.bf16 %v2244_v57, %v2243_v1 }
 0x3f2   : > { %2627 = vst [vmem:[%s3658_s21 + $0x10] sm:$0xff] %v2576_v25  }
 0x3f6   : > { %v2175_v4 = vpop.f32.mrf.mxu2 }
 0x3f7   : > { %v2176_v59 = vadd.f32 %v3649_v52, %v2175_v4 }
 0x3f9   : > { %v2210_v22 = vadd.f32 %v2209_v23, %v2176_v59 }
 0x3fb   : > { %v2235_v11 = vmul.f32 0.2, %v2210_v22  ;;  %vm2225_vm13 = vcmp.ge.f32.partialorder %v2210_v22, 0.0 }
 0x3fd   : > { %v2245_v0 = vsel %vm2225_vm13, %v2210_v22, %v2235_v11 }
 0x3fe   : > { %v2177_v32 = vpop.f32.mrf.mxu2 }
 0x3ff   : > { %v2178_v43 = vadd.f32 %v3649_v52, %v2177_v32 }
 0x401   : > { %v2212_v60 = vadd.f32 %v2211_v56, %v2178_v43 }
 0x403   : > { %vm2226_vm2 = vcmp.ge.f32.partialorder %v2212_v60, 0.0  ;;  %v2236_v38 = vmul.f32 0.2, %v2212_v60 }
 0x405   : > { %v2246_v9 = vsel %vm2226_vm2, %v2212_v60, %v2236_v38 }
 0x406   : > { %v2581_v33 = vpack.c.bf16 %v2246_v9, %v2245_v0 }
 0x407   : > { %v2180_v47 = vpop.f32.mrf.mxu2 }
 0x408   : > { %2628 = vst [vmem:[%s3658_s21 + $0x18] sm:$0xff] %v2581_v33   ;;  %v2181_v34 = vadd.f32 %v3649_v52, %v2180_v47 }
 0x40a   : > { %v2215_v7 = vadd.f32 %v2214_v15, %v2181_v34 }
 0x40c   : > { %v2237_v53 = vmul.f32 0.2, %v2215_v7  ;;  %vm2227_vm6 = vcmp.ge.f32.partialorder %v2215_v7, 0.0 }
 0x40e   : > { %v2247_v28 = vsel %vm2227_vm6, %v2215_v7, %v2237_v53 }
 0x40f   : > { %v2182_v29 = vpop.f32.mrf.mxu2 }
 0x410   : > { %v2183_v49 = vadd.f32 %v3649_v52, %v2182_v29 }
 0x412   : > { %v2217_v19 = vadd.f32 %v2216_v40, %v2183_v49 }
 0x414   : > { %vm2228_vm14 = vcmp.ge.f32.partialorder %v2217_v19, 0.0  ;;  %v2238_v50 = vmul.f32 0.2, %v2217_v19 }
 0x416   : > { %v2248_v42 = vsel %vm2228_vm14, %v2217_v19, %v2238_v50 }
 0x417   : > { %v2586_v45 = vpack.c.bf16 %v2248_v42, %v2247_v28 }
 0x419   : > { %2629 = vst [vmem:[%s3658_s21 + $0x20] sm:$0xff] %v2586_v45  }
 0x41a PF: > { %s19_s30 = sadd.s32 1, %s2672_s30  }
 0x41b   : > { %p16_p4 = scmp.ge.s32.totalorder %s19_s30, 4  }
 0x41d   :  { %18 = sbr.rel (!%p16_p4) target bundleno = 1 (0x1), region = 86 }

// kernel: squeezenet_forward.12
= control target key start
LH: loop header
LB: loop body
LE: loop exit
PB: predicated region body
PF: predicated region fallthrough
CT: control target
= control target key end

     0   :  { %s716_s12 = smov 0   ;;  %s718_s13 = smov 0   ;;  %s790_s0 = inlined_call_operand.vmem [shape: bf16[2,4,6,256], index: 0, kind: input, shape index: {}, may-alias: {0,1,2}]   ;;  %s791_s1 = inlined_call_operand.vmem [shape: bf16[2,4,6,256], index: 1, kind: input, shape index: {}, may-alias: {0,1,2}]   ;;  %s792_s2 = inlined_call_operand.vmem [shape: bf16[2,4,6,256], index: 2, kind: input, shape index: {}, may-alias: {0,1,2}]   ;;  %s793_s3 = inlined_call_operand.vmem [shape: bf16[2,2,4,256], index: 3, kind: output, shape index: {}]  }
   0x1   :  { %s720_s14 = smov 0   ;;  %s722_s15 = smov 0  }
   0x2   :  { %s724_s16 = smov 0  }
   0x3 LB: > { %s22_s17 = sadd.s32 1, %s684_s14  ;;  %s25_s18 = sadd.s32 1, %s688_s15  ;;  %s692_s16 = sphi %s724_s16, %s13_s16   ;;  %s688_s15 = sphi %s722_s15, %s797_s15   ;;  %s684_s14 = sphi %s720_s14, %s796_s14   ;;  %s680_s13 = sphi %s718_s13, %s795_s13   ;;  %s676_s12 = sphi %s716_s12, %s794_s12  }
   0x4   : > { %p23_p0 = scmp.ge.s32.totalorder %s22_s17, 2  ;;  %p585_p1 = scmp.ge.s32.totalorder %s692_s16, 1 }
   0x5   : > { %p217_p2 = scmp.lt.s32.totalorder %s692_s16, 5 }
   0x6   : > { %s799_s17 = smov (%p23_p0, %s22_s17), 0  ;;  %s801_s18 = smov (!%p23_p0, %s25_s18), %s688_s15 }
   0x7   : > { %p218_p3 = pnand %p585_p1, %p217_p2  ;;  %p27_p4 = scmp.ge.s32.totalorder %s801_s18, 2 }
   0x8   : > { %s586_s19 = sshll.u32 (!%p218_p3), %s676_s12, 1  ;;  %p275_p5 = scmp.lt.s32.totalorder (!%p218_p3), %s680_s13, 1 }
   0x9   : > { %s803_s18 = smov (%p27_p4, %s801_s18), 0  ;;  %221 = sbr.rel (%p218_p3) target bundleno = 174 (0xae), region = 32 }
   0xa   : > { %p277_p6 = scmp.lt.s32.totalorder (!%p218_p3), %s586_s19, 3  ;;  %s286_s20 = sadd.s32 (!%p218_p3), 1, %s586_s19 }
   0xb   : > { %p289_p7 = scmp.lt.s32.totalorder (!%p218_p3), %s286_s20, 3  ;;  %s299_s24 = sadd.s32 (!%p218_p3), 2, %s586_s19 }
   0xc   : > { %p300_p8 = scmp.lt.s32.totalorder (!%p218_p3), %s299_s24, 3  ;;  %p342_p9 = scmp.lt.s32.totalorder (!%p218_p3), %s299_s24, 4 }
   0xd   : > { %p317_p10 = scmp.lt.s32.totalorder (!%p218_p3), %s676_s12, 1 }
   0xe   : > { %s805_s13 = smov (!%p275_p5, %s680_s13), 1  ;;  %v325_v0 = vlaneseq  ;;  %s807_s20 = smov (!%p289_p7, %s286_s20), 3  ;;  %vm381_vm3 = vcmask 1043456   ;;  %v694_v34 = vmov 0.0   ;;  %vm377_vm4 = vcmask 31744  }
   0xf   : > { %s278_s21 = scalar_select %p277_p6, %s586_s19, 3  ;;  %v695_v36 = vmov 0   ;;  %vm431_vm5 = vcmask 1041408  }
  0x10   : > { %s588_s22 = sshll.u32 %s805_s13, 3  ;;  %s591_s4 = sshll.u32 %s807_s20, 1  ;;  %v326_v1 = vshrl.u32 %v325_v0, 7  ;;  %v372_v22 = vand.u32 127, %v325_v0 }
  0x11   : > { %s587_s23 = sshll.u32 %s278_s21, 1  ;;  %s293_s5 = sadd.s32 %s591_s4, %s588_s22 }
  0x12   : > { %s281_s25 = sadd.s32 %s588_s22, %s587_s23  ;;  %s593_s6 = sshll.u32 %s293_s5, 2  ;;  %vm327_vm0 = vcmp.lt.s32.totalorder %v326_v1, 4  ;;  %v373_v23 = vmul.u32 2, %v326_v1 }
  0x13   : > { %s589_s26 = sshll.u32 %s281_s25, 2  ;;  %s295_s9 = scalar_lea.vmem %s791_s1, %s593_s6 }
  0x14   : > { %s283_s29 = scalar_lea.vmem %s790_s0, %s589_s26  ;;  %v335_v5 = vld [vmem:[%s295_s9] sm:$0x77]  ;;  %vm374_vm2 = vcmp.eq.s32.totalorder %v372_v22, %v373_v23  ;;  %s811_s12 = smov (!%p317_p10, %s676_s12), 1 }
  0x15   : > { %s301_s30 = scalar_select %p300_p8, %s299_s24, 3  ;;  %v328_v2 = vld [vmem:[%s283_s29] sm:$0x77]  ;;  %v336_v6 = vunpack.c.l.bf16 %v335_v5  ;;  %v337_v7 = vunpack.c.h.bf16 %v335_v5  ;;  %v605_v35 = vsel %vm374_vm2, 1.0, %v694_v34 }
  0x16   : > { %v329_v3 = vunpack.c.l.bf16 %v328_v2  ;;  %v330_v4 = vunpack.c.h.bf16 %v328_v2  ;;  %s348_s10 = scalar_select %p342_p9, 1, 0 }
  0x17   : > { %s809_s30 = smov (!%p300_p8, %s301_s30), 3  ;;  %v338_v11 = vsel %vm327_vm0, %v336_v6, -1e+30  ;;  %v339_v12 = vsel %vm327_vm0, %v337_v7, -1e+30  ;;  %s602_s25 = sshll.u32 %s805_s13, 2 }
  0x18   : > { %s598_s11 = sshll.u32 %s809_s30, 1  ;;  %v333_v8 = vsel %vm327_vm0, %v329_v3, -1e+30  ;;  %v349_v9 = vstv %s348_s10  ;;  %v334_v10 = vsel %vm327_vm0, %v330_v4, -1e+30 }
  0x19   : > { %s308_s19 = sadd.s32 %s598_s11, %s588_s22  ;;  %vm350_vm1 = vcmp.eq.s32.totalorder %v349_v9, 1  ;;  %v353_v15 = vmax.f32 %v333_v8, %v338_v11  ;;  %v354_v17 = vmax.f32 %v334_v10, %v339_v12  ;;  %s601_s22 = sshll.u32 %s811_s12, 1 }
  0x1a   : > { %s600_s20 = sshll.u32 %s308_s19, 2  ;;  %s321_s26 = sadd.s32 %s602_s25, %s601_s22 }
  0x1b   : > { %s310_s24 = scalar_lea.vmem %s792_s2, %s600_s20  ;;  %s603_s27 = sshll.u32 %s321_s26, 1 }
  0x1c   : > { %v343_v13 = vld [vmem:[%s310_s24] sm:$0x77]  ;;  %s323_s30 = scalar_lea.vmem %s793_s3, %s603_s27 }
  0x1d   : > { %v344_v14 = vunpack.c.l.bf16 %v343_v13  ;;  %v345_v16 = vunpack.c.h.bf16 %v343_v13  ;;  %437 = vst [vmem:[%s323_s30] sm:$0xa] %v695_v36 }
  0x1f   : > { %v346_v18 = vsel %vm327_vm0, %v344_v14, -1e+30  ;;  %v347_v19 = vsel %vm327_vm0, %v345_v16, -1e+30 }
  0x20   : > { %v351_v20 = vsel %vm350_vm1, %v346_v18, -1e+30  ;;  %v352_v21 = vsel %vm350_vm1, %v347_v19, -1e+30 }
  0x21   : > { %v355_v24 = vmax.f32 %v353_v15, %v351_v20  ;;  %v356_v25 = vmax.f32 %v354_v17, %v352_v21 }
  0x23   : > { %v359_v26 = vrot.slane %v355_v24, 1  ;;  %v365_v27 = vrot.slane %v355_v24, 2  ;;  %v360_v28 = vrot.slane %v356_v25, 1  ;;  %v366_v29 = vrot.slane %v356_v25, 2 }
  0x25   : > { %v363_v30 = vmax.f32 %v355_v24, %v359_v26  ;;  %v364_v31 = vmax.f32 %v356_v25, %v360_v28 }
  0x27   : > { %v369_v32 = vmax.f32 %v363_v30, %v365_v27  ;;  %v370_v33 = vmax.f32 %v364_v31, %v366_v29 }
  0x29   : > { %606 = vmatpush.msk.msra.mxu0 %vm381_vm3, %v369_v32  ;;  %608 = vmatpush.msk.msra.mxu1 %vm381_vm3, %v370_v33 }
  0x2a   : > { %607 = vmatmul.msk.f32.vlgmr.msra.gmra.mxu0 %vm377_vm4, %v605_v35  ;;  %609 = vmatmul.msk.f32.vlgmr.msra.gmra.mxu1 %vm377_vm4, %v605_v35 }
  0xa7   : > { %v405_v37 = vpop.f32.mrf.mxu0  ;;  %v425_v38 = vpop.f32.mrf.mxu1 }
  0xa8   : > { %v428_v39 = vpack.c.bf16 %v425_v38, %v405_v37 }
  0xaa   : > { %v430_v40 = vrot.slane %v428_v39, 2 }
  0xac   : > { %v434_v41 = vsel %vm431_vm5, %v428_v39, %v430_v40 }
  0xad   : > { %436 = vst [vmem:[%s323_s30] sm:$0x5] %v434_v41 }
  0xae PF: > { %s13_s16 = sadd.s32 1, %s692_s16   ;;  %s794_s12 = smov %s684_s14 }
  0xaf   : > { %p10_p11 = scmp.ge.s32.totalorder %s13_s16, 6   ;;  %s795_s13 = smov %s688_s15 }
  0xb0   : > { %s796_s14 = smov %s799_s17  ;;  %s797_s15 = smov %s803_s18 }
  0xb1   :  { %12 = sbr.rel (!%p10_p11) target bundleno = 3 (0x3), region = 68 }

// kernel: squeezenet_forward.11
= control target key start
LH: loop header
LB: loop body
LE: loop exit
PB: predicated region body
PF: predicated region fallthrough
CT: control target
= control target key end

     0   :  { %s2473_s30 = smov 0   ;;  %s3243_s0 = inlined_call_operand.vmem [shape: bf16[2,24,128], index: 0, kind: input, shape index: {}]   ;;  %s3244_s1 = inlined_call_operand.vmem [shape: bf16[128,32], index: 1, kind: input, shape index: {}]   ;;  %s3245_s2 = inlined_call_operand.vmem [shape: f32[1,32], index: 2, kind: input, shape index: {}]   ;;  %s3246_s3 = inlined_call_operand.vmem [shape: bf16[288,256], index: 3, kind: input, shape index: {}]   ;;  %s3247_s4 = inlined_call_operand.vmem [shape: f32[1,256], index: 4, kind: input, shape index: {}]   ;;  %s3248_s5 = inlined_call_operand.vmem [shape: bf16[256,32], index: 5, kind: input, shape index: {}]   ;;  %s3249_s6 = inlined_call_operand.vmem [shape: f32[1,32], index: 6, kind: input, shape index: {}]   ;;  %s3250_s7 = inlined_call_operand.vmem [shape: bf16[288,256], index: 7, kind: input, shape index: {}]   ;;  %s3251_s8 = inlined_call_operand.vmem [shape: f32[1,256], index: 8, kind: input, shape index: {}]   ;;  %s3252_s9 = inlined_call_operand.vmem [shape: bf16[2,24,256], index: 9, kind: output, shape index: {}]  }
   0x1 LB: > { %s1873_s10 = sadd.s32 4294967295, %s2417_s30   ;;  %p1877_p0 = scmp.ge.s32.totalorder %s2417_s30, 1  ;;  %s2417_s30 = sphi %s2473_s30, %s19_s30  }
   0x2   : > { %p287_p1 = scmp.lt.s32.totalorder %s2417_s30, 3 }
   0x4   : > { %p288_p2 = pnand %p1877_p0, %p287_p1 }
   0x5   : > { %p323_p3 = scmp.lt.s32.totalorder (!%p288_p2), %s1873_s10, 1  ;;  %s2420_s22 = smov (!%p288_p2), 64  }
   0x6   : > { %291 = sbr.rel (%p288_p2) target bundleno = 1008 (0x3f0), region = 56  ;;  %s2421_s23 = smov (!%p288_p2), 32  }
   0x7   : > { %s2422_s24 = smov (!%p288_p2), 96  }
   0xb   : > { %v2286_v0 = vld [vmem:[%s3244_s1 + $0x38] sm:$0xff]  ;;  %v2285_v1 = vld [vmem:[%s3244_s1 + $0x30] sm:$0xff]  ;;  %v2284_v2 = vld [vmem:[%s3244_s1 + $0x28] sm:$0xff]  ;;  %s3259_s10 = smov (!%p323_p3, %s1873_s10), 1  ;;  %v334_v12 = vlaneseq  ;;  %vm476_vm0 = vcmask 257024   ;;  %v2419_v18 = vmov 0  }
   0xc   : > { %440 = vmatpush.bf16.msra.mxu0 %v2286_v0  ;;  %v2283_v3 = vld [vmem:[%s3244_s1 + $0x20] sm:$0xff]  ;;  %v2282_v4 = vld [vmem:[%s3244_s1 + $0x18] sm:$0xff]  ;;  %v2281_v5 = vld [vmem:[%s3244_s1 + $0x10] sm:$0xff]  ;;  %s2395_s25 = smul.u32 12, %s3259_s10  ;;  %478 = vst.msk [vmem:[#allocation2 + $0x4] sm:$0xf] %vm476_vm0, %v2419_v18 }
   0xd   : > { %v2280_v6 = vld [vmem:[%s3244_s1 + $0x8] sm:$0xff]  ;;  %v2279_v7 = vld [vmem:[%s3244_s1] sm:$0xff]  ;;  %v335_v13 = vshrl.u32 %v334_v12, 7  ;;  %485 = vst.msk [vmem:[#allocation2 + $0x14] sm:$0xf] %vm476_vm0, %v2419_v18  ;;  %vm550_vm7 = vcmask 1044480  }
   0xe   : > { %s327_s11 = scalar_lea.vmem %s3243_s0, %s2395_s25  ;;  %v2409_v26 = vld [vmem:[%s3245_s2] ss:$0 sm:$0xff]  ;;  %v2054_v39 = vld [vmem:[%s3246_s3 + $0x110] sm:$0xf]  ;;  %v2322_v40 = vld [vmem:[%s3246_s3 + $0x114] sm:$0xf0] }
   0xf   : > { %v2278_v8 = vld [vmem:[%s327_s11] sm:$0xff]  ;;  %v361_v9 = vld [vmem:[%s327_s11 + $0x8] sm:$0xf]  ;;  %v338_v14 = vcvt.s32.f32 %v335_v13  ;;  %v336_v16 = vadd.s32 8, %v335_v13  ;;  %v337_v22 = vadd.s32 16, %v335_v13  ;;  %v2055_v42 = vor.u32 %v2322_v40, %v2054_v39  ;;  %s2396_s13 = smul.u32 24, %s3259_s10 }
  0x10   : > { %441 = vmatpush.bf16.msra.mxu0 %v2285_v1  ;;  %v387_v10 = vunpack.c.l.b16 %v361_v9  ;;  %v2046_v48 = vld [vmem:[%s3246_s3 + $0x100] sm:$0xf]  ;;  %v2320_v49 = vld [vmem:[%s3246_s3 + $0x104] sm:$0xf0]  ;;  %vm513_vm8 = vsmask.f32 7424 }
  0x11   : > { %v341_v15 = vadd.f32 0.5, %v338_v14  ;;  %v339_v19 = vcvt.s32.f32 %v336_v16  ;;  %v340_v25 = vcvt.s32.f32 %v337_v22  ;;  %973 = vmatpush.bf16.msra.mxu3 %v2055_v42  ;;  %v2047_v50 = vor.u32 %v2320_v49, %v2046_v48  ;;  %s332_s16 = scalar_lea.vmem %s3252_s9, %s2396_s13 }
  0x12   : > { %v389_v11 = vpack.c.b16 %v387_v10, %v387_v10  ;;  %vm628_vm9 = vcmask 261120   ;;  %vm536_vm10 = vcmask 1046528   ;;  %vm589_vm11 = vcmask 1045504  }
  0x13   : > { %v344_v17 = vmul.f32 0.16666667, %v341_v15  ;;  %v342_v21 = vadd.f32 0.5, %v339_v19  ;;  %v491_v28 = vld [vmem:[#allocation2 + $0x4] sm:$0xe]  ;;  %v343_v32 = vadd.f32 0.5, %v340_v25 }
  0x14   : > { %442 = vmatpush.bf16.msra.mxu0 %v2284_v2  ;;  %v2520_v29 = vld [vmem:[#allocation2 + $0x4] sm:$0x8]  ;;  %v511_v63 = vunpack.c.l.b16 %v491_v28  ;;  %v495_v9 = vld [vmem:[#allocation2 + $0x14] sm:$0x1]  ;;  %vm600_vm12 = vsmask.f32 5376 }
  0x15   : > { %v347_v20 = vfloor.f32 %v344_v17  ;;  %v345_v24 = vmul.f32 0.16666667, %v342_v21  ;;  %v487_v30 = vld [vmem:[#allocation2 + $0x4] sm:$0xf]  ;;  %v346_v37 = vmul.f32 0.16666667, %v343_v32  ;;  %974 = vmatpush.bf16.msra.mxu3 %v2047_v50 }
  0x16   : > { %1242 = vst.msk [vmem:[#allocation2 + $0x4] sm:$0xf] %vm476_vm0, %v2419_v18  ;;  %v504_v2 = vunpack.c.l.b16 %v487_v30  ;;  %v497_v10 = vld [vmem:[#allocation2 + $0x14] sm:$0x7]  ;;  %vm634_vm13 = vcmask 523264   ;;  %vm3253_vm14 = vcmask 785408  }
  0x17   : > { %v350_v23 = vmul.f32 6.0, %v347_v20  ;;  %v348_v31 = vfloor.f32 %v345_v24  ;;  %v349_v45 = vfloor.f32 %v346_v37  ;;  %v586_v42 = vunpack.c.l.b16 %v497_v10 }
  0x18   : > { %443 = vmatpush.bf16.msra.mxu0 %v2283_v3  ;;  %vm560_vm15 = vsmask.f32 256 }
  0x19   : > { %v2518_v27 = vsub.f32 %v338_v14, %v350_v23  ;;  %v351_v36 = vmul.f32 6.0, %v348_v31  ;;  %v352_v52 = vmul.f32 6.0, %v349_v45 }
  0x1b   : > { %vm356_vm1 = vcmp.lt.f32.partialorder %v2518_v27, 3.5  ;;  %v2533_v44 = vsub.f32 %v339_v19, %v351_v36  ;;  %v2545_v56 = vsub.f32 %v340_v25, %v352_v52  ;;  %v2372_v27 = vld [vmem:[%s3250_s7 + $0x104] sm:$0xf0] }
  0x1c   : > { %444 = vmatpush.bf16.msra.mxu0 %v2282_v4 }
  0x1d   : > { %vm357_vm3 = vcmp.lt.f32.partialorder %v2533_v44, 3.5  ;;  %vm358_vm5 = vcmp.lt.f32.partialorder %v2545_v56, 3.5  ;;  %v1257_v44 = vld [vmem:[#allocation2 + $0x4] sm:$0x8] }
  0x20   : > { %445 = vmatpush.bf16.msra.mxu0 %v2281_v5 }
  0x24   : > { %446 = vmatpush.bf16.msra.mxu0 %v2280_v6 }
  0x28   : > { %447 = vmatpush.bf16.msra.mxu0 %v2279_v7 }
  0x2b   : > { %448 = vmatmul.bf16.vlgmr.msra.gmra.mxu0 %v2278_v8 }
  0x3b   : > { %453 = vmatmul.bf16.gmra.mxu0 %v389_v11 }
  0xa8   : > { %v449_v33 = vpop.f32.mrf.mxu0 }
  0xa9   : > { %v450_v34 = vadd.f32 %v2409_v26, %v449_v33 }
  0xab   : > { %vm458_vm2 = vcmp.ge.f32.partialorder %v450_v34, 0.0  ;;  %v461_v35 = vmul.f32 0.2, %v450_v34 }
  0xad   : > { %v464_v38 = vsel %vm458_vm2, %v450_v34, %v461_v35  ;;  %v546_v34 = vunpack.c.l.b16 %v2520_v29 }
  0xae   : > { %v473_v41 = vsel %vm356_vm1, %v464_v38, 0.0 }
  0xaf   : > { %v479_v43 = vpack.c.bf16 %v473_v41, %v473_v41 }
  0xb0   : > { %v451_v46 = vpop.f32.mrf.mxu0 }
  0xb1   : > { %482 = vst.msk [vmem:[#allocation2 + $0x8] sm:$0xf] %vm476_vm0, %v479_v43  ;;  %v452_v47 = vadd.f32 %v2409_v26, %v451_v46 }
  0xb3   : > { %vm459_vm4 = vcmp.ge.f32.partialorder %v452_v47, 0.0  ;;  %v462_v51 = vmul.f32 0.2, %v452_v47 }
  0xb5   : > { %v465_v53 = vsel %vm459_vm4, %v452_v47, %v462_v51  ;;  %v577_v51 = vunpack.c.l.b16 %v495_v9 }
  0xb6   : > { %v474_v54 = vsel %vm357_vm3, %v465_v53, 0.0 }
  0xb7   : > { %v480_v55 = vpack.c.bf16 %v474_v54, %v474_v54 }
  0xb8   : > { %v454_v57 = vpop.f32.mrf.mxu0  ;;  %v498_v6 = vld [vmem:[#allocation2 + $0x8] sm:$0x8] }
  0xb9   : > { %483 = vst.msk [vmem:[#allocation2 + $0xc] sm:$0xf] %vm476_vm0, %v480_v55  ;;  %v455_v58 = vadd.f32 %v2409_v26, %v454_v57  ;;  %v598_v14 = vunpack.c.l.b16 %v498_v6  ;;  %v496_v48 = vld [vmem:[#allocation2 + $0x8] sm:$0xc] }
  0xba   : > { %v585_v54 = vunpack.c.l.b16 %v496_v48 }
  0xbb   : > { %vm460_vm6 = vcmp.ge.f32.partialorder %v455_v58, 0.0  ;;  %v463_v59 = vmul.f32 0.2, %v455_v58 }
  0xbd   : > { %v466_v60 = vsel %vm460_vm6, %v455_v58, %v463_v59 }
  0xbe   : > { %v475_v61 = vsel %vm358_vm5, %v466_v60, 0.0 }
  0xbf   : > { %v481_v62 = vpack.c.bf16 %v475_v61, %v475_v61 }
  0xc0   : > { %v456_v0 = vpop.f32.mrf.mxu0  ;;  %v2551_v1 = vld [vmem:[#allocation2 + $0x8] sm:$0xff]  }
  0xc1   : > { %484 = vst.msk [vmem:[#allocation2 + $0x10] sm:$0xf] %vm476_vm0, %v481_v62  ;;  %v2377_v3 = vunpack.c.l.b16 %v2551_v1  ;;  %v2378_v7 = vunpack.c.h.b16 %v2551_v1 }
  0xc3   : > { %v512_v4 = vpack.c.b16 %v2377_v3, %v511_v63  ;;  %v2555_v5 = vpack.c.b16 %v2377_v3, %v504_v2  ;;  %v2562_v19 = vpack.c.b16 %v2378_v7, %v598_v14  ;;  %v548_v41 = vpack.c.b16 %v2377_v3, %v546_v34  ;;  %v2301_v14 = vld [vmem:[%s3246_s3 + $0x74] sm:$0xf]  ;;  %v1950_v34 = vld [vmem:[%s3246_s3 + $0x40] sm:$0xf] }
  0xc4   : > { %v587_v55 = vpack.c.b16 %v2378_v7, %v585_v54  ;;  %v2316_v54 = vld [vmem:[%s3246_s3 + $0xe4] sm:$0xf0] }
  0xc5   : > { %v517_v8 = vshll.u32 %v512_v4, 16  ;;  %v515_v24 = vshrl.u32 %v512_v4, 16  ;;  %v625_v26 = vrot.slane %v2562_v19, 3  ;;  %v537_v47 = vrot.slane %v512_v4, 1 }
  0xc6   : > { %v551_v49 = vrot.slane %v548_v41, 3  ;;  %v602_v61 = vshrl.u32 %v2562_v19, 16  ;;  %v605_v62 = vshll.u32 %v2562_v19, 16  ;;  %v590_v63 = vrot.slane %v587_v55, 2  ;;  %v2318_v41 = vld [vmem:[%s3246_s3 + $0xf4] sm:$0xf0] }
  0xc7   : > { %v519_v22 = vrot.slane %v517_v8, 1  ;;  %v2315_v55 = vld [vmem:[%s3246_s3 + $0xe4] sm:$0xf] }
  0xc8   : > { %v492_v11 = vld [vmem:[#allocation2 + $0x10] sm:$0x3]  ;;  %v604_v4 = vrot.slane %v602_v61, 2  ;;  %v607_v6 = vrot.slane %v605_v62, 3  ;;  %v2292_v61 = vld [vmem:[%s3246_s3 + $0x24] sm:$0xf0] }
  0xc9   : > { %v490_v12 = vld [vmem:[#allocation2 + $0x10] sm:$0x1]  ;;  %v534_v15 = vunpack.c.l.b16 %v492_v11  ;;  %v520_v30 = vor.u32 %v519_v22, %v515_v24  ;;  %v2300_v22 = vld [vmem:[%s3246_s3 + $0x64] sm:$0xf0]  ;;  %v2291_v62 = vld [vmem:[%s3246_s3 + $0x24] sm:$0xf] }
  0xca   : > { %v494_v13 = vld [vmem:[#allocation2 + $0x10] sm:$0xff]   ;;  %v507_v16 = vunpack.c.l.b16 %v490_v12  ;;  %v608_v10 = vor.u32 %v607_v6, %v604_v4  ;;  %v2314_v4 = vld [vmem:[%s3246_s3 + $0xd4] sm:$0xf0] }
  0xcb   : > { %v2558_v17 = vunpack.c.l.b16 %v494_v13  ;;  %1249 = vst.msk [vmem:[#allocation2 + $0x14] sm:$0xf] %vm476_vm0, %v2419_v18  ;;  %v535_v20 = vpack.c.b16 %v534_v15, %v2378_v7  ;;  %v626_v28 = vrot.slane %v494_v13, 3  ;;  %v1974_v12 = vld [vmem:[%s3246_s3 + $0x70] sm:$0xf] }
  0xcc   : > { %v2564_v21 = vpack.c.b16 %v507_v16, %v2378_v7  ;;  %v2302_v13 = vld [vmem:[%s3246_s3 + $0x74] sm:$0xf0]  ;;  %v1976_v16 = vld [vmem:[%s3246_s3 + $0x78] sm:$0xf0]  ;;  %v2313_v6 = vld [vmem:[%s3246_s3 + $0xd4] sm:$0xf] }
  0xcd   : > { %v538_v23 = vrot.slane %v535_v20, 1  ;;  %v627_v32 = vsel %vm550_vm7, %v625_v26, %v626_v28  ;;  %v549_v33 = vpack.c.b16 %v2558_v17, %v2378_v7  ;;  %v728_v38 = vshll.u32 %v626_v28, 16  ;;  %v1966_v20 = vld [vmem:[%s3246_s3 + $0x60] sm:$0xf]  ;;  %v1958_v26 = vld [vmem:[%s3246_s3 + $0x50] sm:$0xf] }
  0xce   : > { %v522_v25 = vshll.u32 %v2564_v21, 16  ;;  %v526_v31 = vshrl.u32 %v2564_v21, 16  ;;  %v723_v37 = vshll.u32 %v627_v32, 16  ;;  %v721_v39 = vshrl.u32 %v627_v32, 16 }
  0xcf   : > { %542 = vrot.lane.b32.xlu2 %v538_v23, %s2420_s22  ;;  %v730_v45 = vrot.slane %v728_v38, 1  ;;  %v552_v46 = vrot.slane %v549_v33, 3  ;;  %v539_v50 = vsel %vm536_vm10, %v537_v47, %v538_v23  ;;  %v588_v52 = vpack.c.b16 %v586_v42, %v2558_v17  ;;  %v2299_v23 = vld [vmem:[%s3246_s3 + $0x64] sm:$0xf]  ;;  %v1952_v38 = vld [vmem:[%s3246_s3 + $0x48] sm:$0xf0] }
  0xd0   : > { %v524_v18 = vrot.slane %v522_v25, 1  ;;  %v725_v40 = vrot.slane %v723_v37, 1  ;;  %v578_v57 = vpack.c.b16 %v577_v51, %v2558_v17  ;;  %v738_v7 = vshrl.u32 %v626_v28, 16  ;;  %v1968_v25 = vld [vmem:[%s3246_s3 + $0x68] sm:$0xf0] }
  0xd1   : > { %v553_v53 = vsel %vm550_vm7, %v551_v49, %v552_v46  ;;  %v610_v58 = vshrl.u32 %v588_v52, 16  ;;  %v613_v59 = vshll.u32 %v588_v52, 16  ;;  %v591_v60 = vrot.slane %v588_v52, 2  ;;  %v2298_v28 = vld [vmem:[%s3246_s3 + $0x54] sm:$0xf0] }
  0xd2   : > { %v525_v35 = vsel %vm513_vm8, %v520_v30, %v524_v18  ;;  %v528_v36 = vor.u32 %v526_v31, %v524_v18  ;;  %v726_v43 = vor.u32 %v725_v40, %v721_v39  ;;  %v2595_v9 = vor.u32 %v738_v7, %v730_v45  ;;  %v2297_v18 = vld [vmem:[%s3246_s3 + $0x54] sm:$0xf]  ;;  %v1960_v31 = vld [vmem:[%s3246_s3 + $0x58] sm:$0xf0]  ;;  %v2038_v40 = vld [vmem:[%s3246_s3 + $0xf0] sm:$0xf] }
  0xd3   : > { %529 = vrot.lane.b32.xlu0 %v525_v35, %s2421_s23  ;;  %v612_v0 = vrot.slane %v610_v58, 2  ;;  %v615_v2 = vrot.slane %v613_v59, 3  ;;  %v592_v3 = vsel %vm589_vm11, %v590_v63, %v591_v60  ;;  %v1975_v15 = vor.u32 %v2302_v13, %v1974_v12  ;;  %v2296_v35 = vld [vmem:[%s3246_s3 + $0x44] sm:$0xf0]  ;;  %v2317_v42 = vld [vmem:[%s3246_s3 + $0xf4] sm:$0xf] }
  0xd4   : > { %531 = vrot.lane.b32.xlu1 %v528_v36, %s2421_s23  ;;  %v2577_v29 = vsel %vm513_vm8, %v726_v43, %v730_v45  ;;  %v1979_v19 = vor.u32 %v2301_v14, %v1976_v16  ;;  %v1967_v24 = vor.u32 %v2300_v22, %v1966_v20  ;;  %v1971_v30 = vor.u32 %v2299_v23, %v1968_v25  ;;  %v2295_v36 = vld [vmem:[%s3246_s3 + $0x44] sm:$0xf]  ;;  %v2040_v45 = vld [vmem:[%s3246_s3 + $0xf8] sm:$0xf0]  ;;  %v2294_v47 = vld [vmem:[%s3246_s3 + $0x34] sm:$0xf0] }
  0xd5   : > { %2060 = vmatmul.msk.bf16.vlgmr.msra.gmra.mxu3 %vm628_vm9, %v2577_v29  ;;  %v616_v8 = vor.u32 %v615_v2, %v612_v0  ;;  %931 = vmatpush.bf16.msra.mxu1 %v1975_v15  ;;  %v1959_v32 = vor.u32 %v2298_v28, %v1958_v26  ;;  %v1963_v33 = vor.u32 %v2297_v18, %v1960_v31  ;;  %v1944_v51 = vld [vmem:[%s3246_s3 + $0x38] sm:$0xf0]  ;;  %v2030_v52 = vld [vmem:[%s3246_s3 + $0xe0] sm:$0xf]  ;;  %v1936_v0 = vld [vmem:[%s3246_s3 + $0x28] sm:$0xf0] }
  0xd6   : > { %985 = vmatpush.bf16.msrb.mxu3 %v1979_v19  ;;  %v1951_v37 = vor.u32 %v2296_v35, %v1950_v34  ;;  %v1955_v39 = vor.u32 %v2295_v36, %v1952_v38  ;;  %v2039_v43 = vor.u32 %v2318_v41, %v2038_v40  ;;  %v2043_v48 = vor.u32 %v2317_v42, %v2040_v45  ;;  %v2289_v14 = vld [vmem:[%s3246_s3 + $0x14] sm:$0xf]  ;;  %v1928_v15 = vld [vmem:[%s3246_s3 + $0x18] sm:$0xf0]  ;;  %v2014_v16 = vld [vmem:[%s3246_s3 + $0xc0] sm:$0xf] }
  0xd7   : > { %556 = vrot.lane.b32.xlu2 %v552_v46, %s2422_s24  ;;  %v617_v11 = vsel %vm600_vm12, %v608_v10, %v616_v8  ;;  %v1942_v46 = vld [vmem:[%s3246_s3 + $0x30] sm:$0xf]  ;;  %v2031_v58 = vor.u32 %v2316_v54, %v2030_v52  ;;  %v1939_v2 = vor.u32 %v2291_v62, %v1936_v0  ;;  %v1931_v19 = vor.u32 %v2289_v14, %v1928_v15  ;;  %v2312_v20 = vld [vmem:[%s3246_s3 + $0xc4] sm:$0xf0]  ;;  %v2311_v22 = vld [vmem:[%s3246_s3 + $0xc4] sm:$0xf] }
  0xd8   : > { %v1943_v49 = vor.u32 %v2294_v47, %v1942_v46  ;;  %949 = vmatpush.bf16.msra.mxu2 %v2039_v43  ;;  %1003 = vmatpush.bf16.msrb.mxu0 %v2043_v48  ;;  %v1926_v10 = vld [vmem:[%s3246_s3 + $0x10] sm:$0xf]  ;;  %v2016_v23 = vld [vmem:[%s3246_s3 + $0xc8] sm:$0xf0]  ;;  %v1918_v26 = vld [vmem:[%s3246_s3] sm:$0xf] }
  0xd9   : > { %932 = vmatpush.bf16.msra.mxu1 %v1967_v24  ;;  %v2015_v24 = vor.u32 %v2312_v20, %v2014_v16  ;;  %v2019_v25 = vor.u32 %v2311_v22, %v2016_v23  ;;  %v2288_v28 = vld [vmem:[%s3246_s3 + $0x4] sm:$0xf0]  ;;  %v1920_v31 = vld [vmem:[%s3246_s3 + $0x8] sm:$0xf0]  ;;  %v2309_v35 = vld [vmem:[%s3246_s3 + $0xb4] sm:$0xf] }
  0xda   : > { %986 = vmatpush.bf16.msrb.mxu3 %v1971_v30  ;;  %v2287_v30 = vld [vmem:[%s3246_s3 + $0x4] sm:$0xf]  ;;  %v1919_v18 = vor.u32 %v2288_v28, %v1918_v26  ;;  %v2008_v36 = vld [vmem:[%s3246_s3 + $0xb8] sm:$0xf0]  ;;  %v1998_v42 = vld [vmem:[%s3246_s3 + $0xa0] sm:$0xf] }
  0xdb   : > { %540 = vrot.lane.b32.xlu0 %v539_v50, %s2420_s22  ;;  %v2293_v50 = vld [vmem:[%s3246_s3 + $0x34] sm:$0xf]  ;;  %v1923_v34 = vor.u32 %v2287_v30, %v1920_v31  ;;  %v2011_v40 = vor.u32 %v2309_v35, %v2008_v36  ;;  %v2308_v43 = vld [vmem:[%s3246_s3 + $0xa4] sm:$0xf0]  ;;  %v2307_v45 = vld [vmem:[%s3246_s3 + $0xa4] sm:$0xf] }
  0xdc   : > { %554 = vrot.lane.b32.xlu1 %v553_v53, %s2422_s24  ;;  %v1947_v53 = vor.u32 %v2293_v50, %v1944_v51  ;;  %950 = vmatpush.bf16.msra.mxu2 %v2031_v58  ;;  %v2000_v46 = vld [vmem:[%s3246_s3 + $0xa8] sm:$0xf0]  ;;  %v1999_v47 = vor.u32 %v2308_v43, %v1998_v42  ;;  %v1990_v50 = vld [vmem:[%s3246_s3 + $0x90] sm:$0xf]  ;;  %v2306_v51 = vld [vmem:[%s3246_s3 + $0x94] sm:$0xf0] }
  0xdd   : > { %933 = vmatpush.bf16.msra.mxu1 %v1959_v32  ;;  %v2006_v32 = vld [vmem:[%s3246_s3 + $0xb0] sm:$0xf]  ;;  %v2003_v48 = vor.u32 %v2307_v45, %v2000_v46  ;;  %v2305_v52 = vld [vmem:[%s3246_s3 + $0x94] sm:$0xf]  ;;  %v1992_v54 = vld [vmem:[%s3246_s3 + $0x98] sm:$0xf0] }
  0xde   : > { %987 = vmatpush.bf16.msrb.mxu3 %v1963_v33  ;;  %v2310_v33 = vld [vmem:[%s3246_s3 + $0xb4] sm:$0xf0]  ;;  %v1995_v58 = vor.u32 %v2305_v52, %v1992_v54  ;;  %v562_v16 = vshrl.u32 %v2551_v1, 16 }
  0xdf   : > { %581 = vrot.lane.b32.xlu2 %v578_v57, %s2421_s23  ;;  %v2032_v57 = vld [vmem:[%s3246_s3 + $0xe8] sm:$0xf0]  ;;  %v2007_v38 = vor.u32 %v2310_v33, %v2006_v32 }
  0xe0   : > { %v2035_v59 = vor.u32 %v2315_v55, %v2032_v57  ;;  %v1982_v55 = vld [vmem:[%s3246_s3 + $0x80] sm:$0xf]  ;;  %v2304_v57 = vld [vmem:[%s3246_s3 + $0x84] sm:$0xf0] }
  0xe1   : > { %934 = vmatpush.bf16.msra.mxu1 %v1951_v37  ;;  %v2321_v37 = vld [vmem:[%s3246_s3 + $0x114] sm:$0xf]  ;;  %v1983_v62 = vor.u32 %v2304_v57, %v1982_v55 }
  0xe2   : > { %988 = vmatpush.bf16.msrb.mxu3 %v1955_v39  ;;  %1004 = vmatpush.bf16.msrb.mxu0 %v2035_v59  ;;  %v2056_v39 = vld [vmem:[%s3246_s3 + $0x118] sm:$0xf0]  ;;  %v2303_v59 = vld [vmem:[%s3246_s3 + $0x84] sm:$0xf] }
  0xe3   : > { %579 = vrot.lane.b32.xlu0 %v2551_v1, %s2421_s23  ;;  %v2059_v41 = vor.u32 %v2321_v37, %v2056_v39 }
  0xe4   : > { %593 = vrot.lane.b32.xlu1 %v592_v3, %s2420_s22  ;;  %v2022_v3 = vld [vmem:[%s3246_s3 + $0xd0] sm:$0xf] }
  0xe5   : > { %2061 = vmatmul.msk.bf16.gmra.mxu3 %vm628_vm9, %v2595_v9  ;;  %935 = vmatpush.bf16.msra.mxu1 %v1943_v49  ;;  %v2023_v7 = vor.u32 %v2314_v4, %v2022_v3  ;;  %v2319_v3 = vld [vmem:[%s3246_s3 + $0x104] sm:$0xf]  ;;  %v2048_v4 = vld [vmem:[%s3246_s3 + $0x108] sm:$0xf0] }
  0xe6   : > { %989 = vmatpush.bf16.msrb.mxu3 %v1947_v53  ;;  %v1991_v53 = vor.u32 %v2306_v51, %v1990_v50 }
  0xe7   : > { %620 = vrot.lane.b32.xlu2 %v616_v8, %s2422_s24  ;;  %v2024_v8 = vld [vmem:[%s3246_s3 + $0xd8] sm:$0xf0]  ;;  %951 = vmatpush.bf16.msra.mxu2 %v2023_v7 }
  0xe8   : > { %v2027_v12 = vor.u32 %v2313_v6, %v2024_v8  ;;  %v2051_v6 = vor.u32 %v2319_v3, %v2048_v4  ;;  %v2326_v3 = vld [vmem:[%s3248_s5 + $0x18] sm:$0xff]  ;;  %v2336_v4 = vld [vmem:[%s3248_s5 + $0x68] sm:$0xff] }
  0xea   : > { %990 = vmatpush.bf16.msrb.mxu3 %v1939_v2  ;;  %1005 = vmatpush.bf16.msrb.mxu0 %v2027_v12 }
  0xeb   : > { %618 = vrot.lane.b32.xlu0 %v617_v11, %s2422_s24  ;;  %v2290_v11 = vld [vmem:[%s3246_s3 + $0x14] sm:$0xf0]  ;;  %952 = vmatpush.bf16.msra.mxu2 %v2015_v24 }
  0xec   : > { %595 = vrot.lane.b32.xlu1 %v591_v60, %s2420_s22  ;;  %v1934_v60 = vld [vmem:[%s3246_s3 + $0x20] sm:$0xf]  ;;  %v1927_v13 = vor.u32 %v2290_v11, %v1926_v10  ;;  %v559_v10 = vpack.c.b16 %v2558_v17, %v2558_v17 }
  0xed   : > { %v1935_v63 = vor.u32 %v2292_v61, %v1934_v60  ;;  %v1984_v60 = vld [vmem:[%s3246_s3 + $0x88] sm:$0xf0] }
  0xee   : > { %991 = vmatpush.bf16.msrb.mxu3 %v1931_v19  ;;  %1006 = vmatpush.bf16.msrb.mxu0 %v2019_v25  ;;  %v1987_v0 = vor.u32 %v2303_v59, %v1984_v60  ;;  %v569_v22 = vshrl.u32 %v559_v10, 16  ;;  %v564_v25 = vrot.slane %v562_v16, 7  ;;  %v572_v33 = vshll.u32 %v559_v10, 16  ;;  %v2324_v10 = vld [vmem:[%s3248_s5 + $0x8] sm:$0xff] }
  0xef   : > { %936 = vmatpush.bf16.msra.mxu1 %v1935_v63  ;;  %953 = vmatpush.bf16.msra.mxu2 %v2007_v38 }
  0xf0   : > { %v571_v28 = vrot.slane %v569_v22, 7  ;;  %v2331_v22 = vld [vmem:[%s3248_s5 + $0x40] sm:$0xff] }
  0xf2   : > { %992 = vmatpush.bf16.msrb.mxu3 %v1923_v34  ;;  %1007 = vmatpush.bf16.msrb.mxu0 %v2011_v40  ;;  %v574_v35 = vor.u32 %v572_v33, %v571_v28 }
  0xf3   : > { %937 = vmatpush.bf16.msra.mxu1 %v1927_v13  ;;  %954 = vmatpush.bf16.msra.mxu2 %v1999_v47 }
  0xf4   : > { %v575_v38 = vsel %vm560_vm15, %v564_v25, %v574_v35 }
  0xf6   : > { %1008 = vmatpush.bf16.msrb.mxu0 %v2003_v48 }
  0xf7   : > { %938 = vmatpush.bf16.msra.mxu1 %v1919_v18  ;;  %955 = vmatpush.bf16.msra.mxu2 %v1991_v53  ;;  %v565_v18 = vshll.u32 %v2551_v1, 16 }
  0xf9   : > { %v567_v34 = vor.u32 %v565_v18, %v564_v25 }
  0xfa   : > { %1009 = vmatpush.bf16.msrb.mxu0 %v1995_v58 }
  0xfb   : > { %1027 = vmatpush.bf16.msrb.mxu1 %v2059_v41  ;;  %956 = vmatpush.bf16.msra.mxu2 %v1983_v62  ;;  %v2330_v62 = vld [vmem:[%s3248_s5 + $0x38] sm:$0xff] }
  0xfe   : > { %1010 = vmatpush.bf16.msrb.mxu0 %v1987_v0  ;;  %v2328_v0 = vld [vmem:[%s3248_s5 + $0x28] sm:$0xff] }
  0xff   : > { %1028 = vmatpush.bf16.msrb.mxu1 %v2051_v6  ;;  %1193 = vmatpush.bf16.msrb.mxu2 %v2330_v62  ;;  %v2325_v6 = vld [vmem:[%s3248_s5 + $0x10] sm:$0xff] }
 0x129   : > { %v543_v49 = vpop.permute.xlu2 %542 }
 0x131   : > { %v557_v8 = vpop.permute.xlu2 %556 }
 0x145   : > { %v530_v61 = vpop.permute.xlu0 %529 }
 0x146   : > { %v532_v63 = vpop.permute.xlu1 %531 }
 0x147   : > { %v633_v2 = vsel %vm628_vm9, %v2564_v21, %v532_v63  ;;  %v631_v21 = vsel %vm628_vm9, %v2555_v5, %v530_v61  ;;  %v582_v5 = vpop.permute.xlu2 %581  ;;  %v2329_v63 = vld [vmem:[%s3248_s5 + $0x30] sm:$0xff] }
 0x148   : > { %v638_v7 = vsel %vm634_vm13, %v633_v2, %v543_v49  ;;  %v649_v1 = vsel %vm628_vm9, %v575_v38, %v582_v5  ;;  %1194 = vmatpush.bf16.msrb.mxu2 %v2329_v63  ;;  %v2337_v2 = vld [vmem:[%s3248_s5 + $0x70] sm:$0xff] }
 0x149   : > { %v643_v11 = vsel %vm3253_vm14, %v638_v7, %v557_v8  ;;  %v2335_v7 = vld [vmem:[%s3248_s5 + $0x60] sm:$0xff] }
 0x14a   : > { %v706_v20 = vshll.u32 %v643_v11, 16  ;;  %v732_v53 = vshrl.u32 %v643_v11, 16 }
 0x14c   : > { %v708_v26 = vrot.slane %v706_v20, 1  ;;  %1195 = vmatpush.bf16.msrb.mxu2 %v2328_v0 }
 0x14d   : > { %v541_v12 = vpop.permute.xlu0 %540 }
 0x14e   : > { %v636_v13 = vsel %vm634_vm13, %v631_v21, %v541_v12  ;;  %v555_v14 = vpop.permute.xlu1 %554  ;;  %v734_v57 = vor.u32 %v732_v53, %v708_v26  ;;  %v2334_v21 = vld [vmem:[%s3248_s5 + $0x58] sm:$0xff]  ;;  %v2323_v12 = vld [vmem:[%s3248_s5] sm:$0xff] }
 0x14f   : > { %v641_v15 = vsel %vm3253_vm14, %v636_v13, %v555_v14  ;;  %v621_v43 = vpop.permute.xlu2 %620  ;;  %v2333_v13 = vld [vmem:[%s3248_s5 + $0x50] sm:$0xff] }
 0x150   : > { %v702_v19 = vshll.u32 %v641_v15, 16  ;;  %v700_v23 = vshrl.u32 %v641_v15, 16  ;;  %v2332_v15 = vld [vmem:[%s3248_s5 + $0x48] sm:$0xff] }
 0x152   : > { %v704_v24 = vrot.slane %v702_v19, 1  ;;  %v694_v19 = vld [vmem:[%s3247_s4] sm:$0x3] }
 0x154   : > { %v705_v17 = vor.u32 %v704_v24, %v700_v23  ;;  %v696_v24 = vperm.slane %v694_v19, 0 }
 0x155   : > { %v580_v30 = vpop.permute.xlu0 %579 }
 0x156   : > { %v594_v31 = vpop.permute.xlu1 %593  ;;  %v709_v32 = vsel %vm513_vm8, %v705_v17, %v708_v26  ;;  %v646_v36 = vsel %vm628_vm9, %v567_v34, %v580_v30 }
 0x157   : > { %939 = vmatmul.bf16.vlgmr.msra.gmra.mxu1 %v709_v32  ;;  %993 = vmatmul.bf16.vlgmr.msrb.gmra.mxu3 %v709_v32  ;;  %v651_v39 = vsel %vm634_vm13, %v646_v36, %v594_v31  ;;  %v697_v32 = vperm.slane %v694_v19, 1 }
 0x158   : > { %v2821_v37 = vpop.f32.mrf.mxu3 }
 0x15d   : > { %v619_v40 = vpop.permute.xlu0 %618 }
 0x15e   : > { %v655_v41 = vsel %vm3253_vm14, %v651_v39, %v619_v40  ;;  %v596_v42 = vpop.permute.xlu1 %595 }
 0x15f   : > { %v712_v45 = vshll.u32 %v655_v41, 16  ;;  %v653_v46 = vsel %vm634_vm13, %v649_v1, %v596_v42  ;;  %v710_v48 = vshrl.u32 %v655_v41, 16 }
 0x160   : > { %v657_v47 = vsel %vm3253_vm14, %v653_v46, %v621_v43  ;;  %v2829_v54 = vpop.f32.mrf.mxu3 }
 0x161   : > { %v714_v49 = vrot.slane %v712_v45, 1  ;;  %v716_v50 = vshll.u32 %v657_v47, 16  ;;  %v735_v59 = vshrl.u32 %v657_v47, 16 }
 0x163   : > { %v715_v51 = vor.u32 %v714_v49, %v710_v48  ;;  %v718_v52 = vrot.slane %v716_v50, 1 }
 0x165   : > { %v719_v55 = vsel %vm513_vm8, %v715_v51, %v718_v52  ;;  %v737_v61 = vor.u32 %v735_v59, %v718_v52 }
 0x166   : > { %957 = vmatmul.bf16.vlgmr.msra.gmra.mxu2 %v719_v55  ;;  %1011 = vmatmul.bf16.vlgmr.msrb.gmra.mxu0 %v719_v55 }
 0x167   : > { %944 = vmatmul.bf16.gmra.mxu1 %v734_v57  ;;  %998 = vmatmul.bf16.gmra.mxu3 %v734_v57 }
 0x168   : > { %v2832_v58 = vpop.f32.mrf.mxu3 }
 0x170   : > { %v983_v60 = vpop.f32.mrf.mxu3 }
 0x176   : > { %962 = vmatmul.bf16.gmra.mxu2 %v737_v61  ;;  %1016 = vmatmul.bf16.gmra.mxu0 %v737_v61 }
 0x177   : > { %2062 = vmatmul.msk.bf16.vlgmr.msrb.gmra.mxu1 %vm628_vm9, %v2577_v29  ;;  %v2338_v29 = vld [vmem:[%s3248_s5 + $0x78] sm:$0xff] }
 0x178   : > { %1211 = vmatpush.bf16.msra.mxu3 %v2338_v29 }
 0x17c   : > { %1212 = vmatpush.bf16.msra.mxu3 %v2337_v2 }
 0x180   : > { %1213 = vmatpush.bf16.msra.mxu3 %v2336_v4 }
 0x184   : > { %1214 = vmatpush.bf16.msra.mxu3 %v2335_v7 }
 0x187   : > { %2063 = vmatmul.msk.bf16.gmra.mxu1 %vm628_vm9, %v2595_v9  ;;  %v2327_v9 = vld [vmem:[%s3248_s5 + $0x20] sm:$0xff] }
 0x188   : > { %1196 = vmatpush.bf16.msrb.mxu2 %v2327_v9  ;;  %1215 = vmatpush.bf16.msra.mxu3 %v2334_v21 }
 0x18c   : > { %1197 = vmatpush.bf16.msrb.mxu2 %v2326_v3  ;;  %1216 = vmatpush.bf16.msra.mxu3 %v2333_v13 }
 0x190   : > { %1198 = vmatpush.bf16.msrb.mxu2 %v2325_v6  ;;  %1217 = vmatpush.bf16.msra.mxu3 %v2332_v15 }
 0x194   : > { %1199 = vmatpush.bf16.msrb.mxu2 %v2324_v10  ;;  %1218 = vmatpush.bf16.msra.mxu3 %v2331_v22 }
 0x198   : > { %1200 = vmatpush.bf16.msrb.mxu2 %v2323_v12 }
 0x1d4   : > { %v940_v8 = vpop.f32.mrf.mxu1 }
 0x1d5   : > { %v941_v17 = vadd.f32 %v940_v8, %v696_v24 }
 0x1da   : > { %v994_v11 = vpop.f32.mrf.mxu3 }
 0x1db   : > { %v995_v1 = vadd.f32 %v994_v11, %v697_v32  ;;  %v2410_v11 = vld [vmem:[%s3249_s6] ss:$0 sm:$0xff] }
 0x1dc   : > { %v942_v14 = vpop.f32.mrf.mxu1 }
 0x1dd   : > { %v943_v18 = vadd.f32 %v942_v14, %v696_v24 }
 0x1e2   : > { %v996_v16 = vpop.f32.mrf.mxu3 }
 0x1e3   : > { %v1012_v20 = vpop.f32.mrf.mxu0  ;;  %v997_v47 = vadd.f32 %v996_v16, %v697_v32 }
 0x1e4   : > { %v945_v23 = vpop.f32.mrf.mxu1  ;;  %v1013_v42 = vadd.f32 %v1012_v20, %v995_v1 }
 0x1e5   : > { %v946_v43 = vadd.f32 %v945_v23, %v696_v24 }
 0x1e9   : > { %v958_v25 = vpop.f32.mrf.mxu2 }
 0x1ea   : > { %v999_v26 = vpop.f32.mrf.mxu3  ;;  %v959_v5 = vadd.f32 %v958_v25, %v941_v17  ;;  %v2266_v25 = vld [vmem:[%s3250_s7 + $0x110] sm:$0xf]  ;;  %v2374_v17 = vld [vmem:[%s3250_s7 + $0x114] sm:$0xf0] }
 0x1eb   : > { %v1014_v28 = vpop.f32.mrf.mxu0  ;;  %v1000_v29 = vadd.f32 %v999_v26, %v697_v32 }
 0x1ec   : > { %v947_v30 = vpop.f32.mrf.mxu1  ;;  %v977_v31 = vadd.f32 %v2821_v37, %v959_v5  ;;  %v1015_v51 = vadd.f32 %v1014_v28, %v997_v47  ;;  %v2267_v28 = vor.u32 %v2374_v17, %v2266_v25  ;;  %v2258_v5 = vld [vmem:[%s3250_s7 + $0x100] sm:$0xf] }
 0x1ee   : > { %v1045_v38 = vmul.f32 0.2, %v977_v31  ;;  %vm1039_vm2 = vcmp.ge.f32.partialorder %v977_v31, 0.0  ;;  %1728 = vmatpush.bf16.msra.mxu2 %v2267_v28 }
 0x1f0   : > { %v1051_v45 = vsel %vm1039_vm2, %v977_v31, %v1045_v38 }
 0x1f1   : > { %v960_v33 = vpop.f32.mrf.mxu2 }
 0x1f2   : > { %v961_v34 = vadd.f32 %v960_v33, %v943_v18  ;;  %v1001_v35 = vpop.f32.mrf.mxu3  ;;  %v2259_v18 = vor.u32 %v2372_v27, %v2258_v5 }
 0x1f3   : > { %v1017_v36 = vpop.f32.mrf.mxu0 }
 0x1f4   : > { %v979_v39 = vadd.f32 %v2829_v54, %v961_v34  ;;  %v1030_v40 = vpop.f32.mrf.mxu1  ;;  %v1018_v2 = vadd.f32 %v1017_v36, %v1000_v29  ;;  %1729 = vmatpush.bf16.msra.mxu2 %v2259_v18 }
 0x1f5   : > { %v1031_v48 = vadd.f32 %v1030_v40, %v1013_v42 }
 0x1f6   : > { %vm1041_vm4 = vcmp.ge.f32.partialorder %v979_v39, 0.0  ;;  %v1047_v41 = vmul.f32 0.2, %v979_v39 }
 0x1f7   : > { %v1046_v55 = vmul.f32 0.2, %v1031_v48  ;;  %vm1040_vm6 = vcmp.ge.f32.partialorder %v1031_v48, 0.0 }
 0x1f8   : > { %v1053_v46 = vsel %vm1041_vm4, %v979_v39, %v1047_v41 }
 0x1f9   : > { %v963_v37 = vpop.f32.mrf.mxu2  ;;  %v1057_v49 = vpack.c.bf16 %v1053_v46, %v1051_v45  ;;  %v1052_v60 = vsel %vm1040_vm6, %v1031_v48, %v1046_v55  ;;  %v1259_v46 = vld [vmem:[#allocation2 + $0x14] sm:$0x1] }
 0x1fa   : > { %v964_v50 = vadd.f32 %v963_v37, %v946_v43  ;;  %v1337_v56 = vunpack.c.l.b16 %v1259_v46 }
 0x1fb   : > { %v1019_v52 = vpop.f32.mrf.mxu0  ;;  %1201 = vmatmul.bf16.vlgmr.msrb.gmra.mxu2 %v1057_v49  ;;  %v1308_v49 = vunpack.c.l.b16 %v1257_v44 }
 0x1fc   : > { %v1032_v53 = vpop.f32.mrf.mxu1  ;;  %v982_v57 = vadd.f32 %v2832_v58, %v964_v50  ;;  %v1261_v52 = vld [vmem:[#allocation2 + $0x14] sm:$0x7] }
 0x1fd   : > { %v1033_v54 = vadd.f32 %v1032_v53, %v1015_v51  ;;  %v1255_v51 = vld [vmem:[#allocation2 + $0x4] sm:$0xe] }
 0x1fe   : > { %v1049_v0 = vmul.f32 0.2, %v982_v57  ;;  %vm1043_vm2 = vcmp.ge.f32.partialorder %v982_v57, 0.0 }
 0x1ff   : > { %vm1042_vm14 = vcmp.ge.f32.partialorder %v1033_v54, 0.0  ;;  %v1048_v59 = vmul.f32 0.2, %v1033_v54 }
 0x200   : > { %v1055_v3 = vsel %vm1043_vm2, %v982_v57, %v1049_v0 }
 0x201   : > { %v1054_v61 = vsel %vm1042_vm14, %v1033_v54, %v1048_v59  ;;  %v965_v62 = vpop.f32.mrf.mxu2  ;;  %v1059_v6 = vpack.c.bf16 %v1055_v3, %v1055_v3 }
 0x202   : > { %v1058_v63 = vpack.c.bf16 %v1054_v61, %v1052_v60  ;;  %v1275_v62 = vunpack.c.l.b16 %v1255_v51 }
 0x204   : > { %v1035_v9 = vpop.f32.mrf.mxu1  ;;  %1219 = vmatmul.bf16.vlgmr.msra.gmra.mxu3 %v1058_v63  ;;  %v1346_v63 = vunpack.c.l.b16 %v1261_v52 }
 0x205   : > { %v1036_v4 = vadd.f32 %v1035_v9, %v1018_v2 }
 0x207   : > { %v1050_v7 = vmul.f32 0.2, %v1036_v4  ;;  %vm1044_vm4 = vcmp.ge.f32.partialorder %v1036_v4, 0.0 }
 0x209   : > { %v1056_v58 = vsel %vm1044_vm4, %v1036_v4, %v1050_v7 }
 0x20a   : > { %v1060_v10 = vpack.c.bf16 %v1056_v58, %v1056_v58 }
 0x20b   : > { %1206 = vmatmul.bf16.gmra.mxu2 %v1059_v6 }
 0x20c   : > { %v1037_v8 = vpop.f32.mrf.mxu1 }
 0x214   : > { %1224 = vmatmul.bf16.gmra.mxu3 %v1060_v10 }
 0x27e   : > { %v1202_v21 = vpop.f32.mrf.mxu2 }
 0x27f   : > { %v1203_v12 = vadd.f32 %v2410_v11, %v1202_v21 }
 0x286   : > { %v1204_v13 = vpop.f32.mrf.mxu2 }
 0x287   : > { %v1220_v14 = vpop.f32.mrf.mxu3  ;;  %v1205_v22 = vadd.f32 %v2410_v11, %v1204_v13 }
 0x288   : > { %v1221_v15 = vadd.f32 %v1220_v14, %v1203_v12 }
 0x28a   : > { %vm1229_vm14 = vcmp.ge.f32.partialorder %v1221_v15, 0.0  ;;  %v1232_v16 = vmul.f32 0.2, %v1221_v15 }
 0x28c   : > { %v1235_v19 = vsel %vm1229_vm14, %v1221_v15, %v1232_v16 }
 0x28d   : > { %v1238_v20 = vsel %vm356_vm1, %v1235_v19, 0.0 }
 0x28e   : > { %v1243_v23 = vpack.c.bf16 %v1238_v20, %v1238_v20  ;;  %v1207_v24 = vpop.f32.mrf.mxu2 }
 0x28f   : > { %v1222_v26 = vpop.f32.mrf.mxu3  ;;  %v1208_v34 = vadd.f32 %v2410_v11, %v1207_v24 }
 0x290   : > { %1246 = vst.msk [vmem:[#allocation2 + $0x8] sm:$0xf] %vm476_vm0, %v1243_v23  ;;  %v1223_v30 = vadd.f32 %v1222_v26, %v1205_v22 }
 0x292   : > { %vm1230_vm1 = vcmp.ge.f32.partialorder %v1223_v30, 0.0  ;;  %v1233_v31 = vmul.f32 0.2, %v1223_v30 }
 0x294   : > { %v1236_v32 = vsel %vm1230_vm1, %v1223_v30, %v1233_v31 }
 0x295   : > { %v1239_v33 = vsel %vm357_vm3, %v1236_v32, 0.0 }
 0x296   : > { %v1244_v35 = vpack.c.bf16 %v1239_v33, %v1239_v33  ;;  %v1209_v36 = vpop.f32.mrf.mxu2 }
 0x297   : > { %v1225_v38 = vpop.f32.mrf.mxu3  ;;  %v1262_v47 = vld [vmem:[#allocation2 + $0x8] sm:$0x8] }
 0x298   : > { %1247 = vst.msk [vmem:[#allocation2 + $0xc] sm:$0xf] %vm476_vm0, %v1244_v35  ;;  %v1226_v39 = vadd.f32 %v1225_v38, %v1208_v34  ;;  %v1357_v50 = vunpack.c.l.b16 %v1262_v47  ;;  %v1260_v9 = vld [vmem:[#allocation2 + $0x8] sm:$0xc] }
 0x299   : > { %v1345_v10 = vunpack.c.l.b16 %v1260_v9  ;;  %v2353_v9 = vld [vmem:[%s3250_s7 + $0x74] sm:$0xf] }
 0x29a   : > { %vm1231_vm6 = vcmp.ge.f32.partialorder %v1226_v39, 0.0  ;;  %v1234_v40 = vmul.f32 0.2, %v1226_v39 }
 0x29c   : > { %v1237_v1 = vsel %vm1231_vm6, %v1226_v39, %v1234_v40 }
 0x29d   : > { %v1240_v41 = vsel %vm358_vm5, %v1237_v1, 0.0 }
 0x29e   : > { %v1245_v42 = vpack.c.bf16 %v1240_v41, %v1240_v41 }
 0x29f   : > { %v1227_v43 = vpop.f32.mrf.mxu3  ;;  %v2915_v45 = vld [vmem:[#allocation2 + $0x8] sm:$0xff]  }
 0x2a0   : > { %1248 = vst.msk [vmem:[#allocation2 + $0x10] sm:$0xf] %vm476_vm0, %v1245_v42  ;;  %1339 = vrot.lane.b32.xlu1 %v2915_v45, %s2421_s23  ;;  %v2382_v48 = vunpack.c.h.b16 %v2915_v45  ;;  %v2922_v37 = vunpack.c.l.b16 %v2915_v45  ;;  %v1322_v20 = vshrl.u32 %v2915_v45, 16  ;;  %vm3254_vm0 = vcmask 785408  }
 0x2a1   : > { %vm3255_vm3 = vmmov %vm3254_vm0 }
 0x2a2   : > { %v1310_v59 = vpack.c.b16 %v2922_v37, %v1308_v49  ;;  %v2925_v60 = vpack.c.b16 %v2382_v48, %v1357_v50  ;;  %v1276_v58 = vpack.c.b16 %v2922_v37, %v1275_v62  ;;  %v1347_v19 = vpack.c.b16 %v2382_v48, %v1345_v10  ;;  %v2252_v62 = vld [vmem:[%s3250_s7 + $0xf8] sm:$0xf0]  ;;  %v2352_v10 = vld [vmem:[%s3250_s7 + $0x64] sm:$0xf0]  ;;  %vm3256_vm5 = vmmov %vm3254_vm0 }
 0x2a3   : > { %v2943_v35 = vrot.slane %v1322_v20, 7  ;;  %v2365_v20 = vld [vmem:[%s3250_s7 + $0xd4] sm:$0xf] }
 0x2a4   : > { %v1312_v4 = vrot.slane %v1310_v59, 3  ;;  %v1383_v6 = vrot.slane %v2925_v60, 3  ;;  %v1299_v17 = vrot.slane %v1276_v58, 1  ;;  %v1349_v31 = vrot.slane %v1347_v19, 2 }
 0x2a5   : > { %v1280_v32 = vshll.u32 %v1276_v58, 16  ;;  %v1278_v43 = vshrl.u32 %v1276_v58, 16  ;;  %v1363_v49 = vshll.u32 %v2925_v60, 16  ;;  %v2178_v58 = vld [vmem:[%s3250_s7 + $0x60] sm:$0xf] }
 0x2a7   : > { %v1258_v53 = vld [vmem:[#allocation2 + $0x10] sm:$0xff]   ;;  %v1282_v41 = vrot.slane %v1280_v32, 1  ;;  %v2228_v32 = vld [vmem:[%s3250_s7 + $0xc8] sm:$0xf0] }
 0x2a8   : > { %v1256_v55 = vld [vmem:[#allocation2 + $0x10] sm:$0x3]  ;;  %v1309_v57 = vunpack.c.l.b16 %v1258_v53  ;;  %v1384_v7 = vrot.slane %v1258_v53, 3  ;;  %v1365_v53 = vrot.slane %v1363_v49, 3 }
 0x2a9   : > { %v1254_v54 = vld [vmem:[#allocation2 + $0x10] sm:$0x1]  ;;  %v1297_v61 = vunpack.c.l.b16 %v1256_v55  ;;  %v1283_v47 = vor.u32 %v1282_v41, %v1278_v43  ;;  %v2366_v43 = vld [vmem:[%s3250_s7 + $0xd4] sm:$0xf0] }
 0x2aa   : > { %v1338_v0 = vpack.c.b16 %v1337_v56, %v1309_v57  ;;  %v1311_v29 = vpack.c.b16 %v1309_v57, %v2382_v48  ;;  %v1271_v2 = vunpack.c.l.b16 %v1254_v54  ;;  %v1320_v21 = vpack.c.b16 %v1309_v57, %v1309_v57  ;;  %v2234_v41 = vld [vmem:[%s3250_s7 + $0xd0] sm:$0xf] }
 0x2ab   : > { %v1298_v8 = vpack.c.b16 %v1297_v61, %v2382_v48  ;;  %v1385_v12 = vsel %vm550_vm7, %v1383_v6, %v1384_v7  ;;  %v1348_v13 = vpack.c.b16 %v1346_v63, %v1309_v57  ;;  %v1483_v16 = vshll.u32 %v1384_v7, 16  ;;  %v2369_v61 = vld [vmem:[%s3250_s7 + $0xf4] sm:$0xf]  ;;  %v2186_v63 = vld [vmem:[%s3250_s7 + $0x70] sm:$0xf] }
 0x2ac   : > { %1341 = vrot.lane.b32.xlu2 %v1338_v0, %s2421_s23  ;;  %v1313_v3 = vrot.slane %v1311_v29, 3  ;;  %v2933_v14 = vpack.c.b16 %v1271_v2, %v2382_v48  ;;  %v1478_v15 = vshll.u32 %v1385_v12, 16  ;;  %v1476_v23 = vshrl.u32 %v1385_v12, 16  ;;  %v2354_v29 = vld [vmem:[%s3250_s7 + $0x74] sm:$0xf0] }
 0x2ad   : > { %v1300_v22 = vrot.slane %v1298_v8, 1  ;;  %v1329_v25 = vshrl.u32 %v1320_v21, 16  ;;  %v1350_v26 = vrot.slane %v1348_v13, 2  ;;  %v1485_v27 = vrot.slane %v1483_v16, 1  ;;  %v2188_v2 = vld [vmem:[%s3250_s7 + $0x78] sm:$0xf0] }
 0x2ae   : > { %1317 = vrot.lane.b32.xlu1 %v1313_v3, %s2422_s24  ;;  %v1314_v11 = vsel %vm550_vm7, %v1312_v4, %v1313_v3  ;;  %v1480_v24 = vrot.slane %v1478_v15, 1  ;;  %v1285_v28 = vshll.u32 %v2933_v14, 16  ;;  %v1332_v18 = vshll.u32 %v1320_v21, 16  ;;  %v2367_v6 = vld [vmem:[%s3250_s7 + $0xe4] sm:$0xf]  ;;  %vm3257_vm7 = vmmov %vm3254_vm0 }
 0x2af   : > { %1315 = vrot.lane.b32.xlu0 %v1314_v11, %s2422_s24  ;;  %v1331_v30 = vrot.slane %v1329_v25, 7  ;;  %v1301_v34 = vsel %vm536_vm10, %v1299_v17, %v1300_v22  ;;  %v1351_v38 = vsel %vm589_vm11, %v1349_v31, %v1350_v26  ;;  %v1289_v1 = vshrl.u32 %v2933_v14, 16  ;;  %v2351_v21 = vld [vmem:[%s3250_s7 + $0x64] sm:$0xf]  ;;  %v2180_v12 = vld [vmem:[%s3250_s7 + $0x68] sm:$0xf0] }
 0x2b0   : > { %v1481_v5 = vor.u32 %v1480_v24, %v1476_v23  ;;  %v1287_v39 = vrot.slane %v1285_v28, 1  ;;  %v1368_v44 = vshrl.u32 %v1348_v13, 16  ;;  %v1371_v46 = vshll.u32 %v1348_v13, 16  ;;  %v2250_v13 = vld [vmem:[%s3250_s7 + $0xf0] sm:$0xf] }
 0x2b1   : > { %v1334_v36 = vor.u32 %v1332_v18, %v1331_v30  ;;  %v1360_v48 = vshrl.u32 %v2925_v60, 16  ;;  %v1493_v54 = vshrl.u32 %v1384_v7, 16  ;;  %v2977_v0 = vor.u32 %v2369_v61, %v2252_v62  ;;  %v2244_v7 = vld [vmem:[%s3250_s7 + $0xe8] sm:$0xf0]  ;;  %v2370_v15 = vld [vmem:[%s3250_s7 + $0xf4] sm:$0xf0] }
 0x2b2   : > { %v2940_v33 = vsel %vm513_vm8, %v1481_v5, %v1485_v27  ;;  %v1291_v42 = vor.u32 %v1289_v1, %v1287_v39  ;;  %v1288_v56 = vsel %vm513_vm8, %v1283_v47, %v1287_v39  ;;  %v1370_v50 = vrot.slane %v1368_v44, 2  ;;  %v2170_v23 = vld [vmem:[%s3250_s7 + $0x50] sm:$0xf]  ;;  %v2350_v25 = vld [vmem:[%s3250_s7 + $0x54] sm:$0xf0] }
 0x2b3   : > { %2272 = vmatmul.msk.bf16.vlgmr.msra.gmra.mxu2 %vm628_vm9, %v2940_v33  ;;  %v2952_v40 = vsel %vm560_vm15, %v2943_v35, %v1334_v36  ;;  %v1373_v51 = vrot.slane %v1371_v46, 3  ;;  %v1362_v52 = vrot.slane %v1360_v48, 2  ;;  %v2962_v57 = vor.u32 %v1493_v54, %v1485_v27  ;;  %v2349_v17 = vld [vmem:[%s3250_s7 + $0x54] sm:$0xf]  ;;  %v2242_v27 = vld [vmem:[%s3250_s7 + $0xe0] sm:$0xf] }
 0x2b4   : > { %1304 = vrot.lane.b32.xlu2 %v1300_v22, %s2420_s22  ;;  %v2187_v3 = vor.u32 %v2354_v29, %v2186_v63  ;;  %v2191_v4 = vor.u32 %v2353_v9, %v2188_v2  ;;  %2385 = vmatpush.bf16.msrb.mxu2 %v2977_v0  ;;  %v2995_v8 = vor.u32 %v2367_v6, %v2244_v7  ;;  %v2236_v22 = vld [vmem:[%s3250_s7 + $0xd8] sm:$0xf0]  ;;  %v2368_v30 = vld [vmem:[%s3250_s7 + $0xe4] sm:$0xf0]  ;;  %v2363_v18 = vld [vmem:[%s3250_s7 + $0xc4] sm:$0xf] }
 0x2b5   : > { %v1374_v55 = vor.u32 %v1373_v51, %v1370_v50  ;;  %v1366_v59 = vor.u32 %v1365_v53, %v1362_v52  ;;  %v2179_v11 = vor.u32 %v2352_v10, %v2178_v58  ;;  %v2183_v16 = vor.u32 %v2351_v21, %v2180_v12  ;;  %v2348_v36 = vld [vmem:[%s3250_s7 + $0x44] sm:$0xf0]  ;;  %v2347_v39 = vld [vmem:[%s3250_s7 + $0x44] sm:$0xf]  ;;  %v2164_v1 = vld [vmem:[%s3250_s7 + $0x48] sm:$0xf0] }
 0x2b6   : > { %1302 = vrot.lane.b32.xlu1 %v1301_v34, %s2420_s22  ;;  %1686 = vmatpush.bf16.msra.mxu0 %v2187_v3  ;;  %v2251_v19 = vor.u32 %v2370_v15, %v2250_v13  ;;  %v3025_v24 = vor.u32 %v2365_v20, %v2236_v22  ;;  %v2171_v28 = vor.u32 %v2350_v25, %v2170_v23  ;;  %v2162_v34 = vld [vmem:[%s3250_s7 + $0x40] sm:$0xf]  ;;  %v2361_v44 = vld [vmem:[%s3250_s7 + $0xb4] sm:$0xf]  ;;  %v2220_v46 = vld [vmem:[%s3250_s7 + $0xb8] sm:$0xf0] }
 0x2b7   : > { %1352 = vrot.lane.b32.xlu0 %v1351_v38, %s2420_s22  ;;  %v1375_v60 = vsel %vm600_vm12, %v1366_v59, %v1374_v55  ;;  %1740 = vmatpush.bf16.msrb.mxu3 %v2191_v4  ;;  %v2243_v31 = vor.u32 %v2368_v30, %v2242_v27  ;;  %v3055_v38 = vor.u32 %v2363_v18, %v2228_v32  ;;  %v2154_v49 = vld [vmem:[%s3250_s7 + $0x30] sm:$0xf]  ;;  %v2345_v50 = vld [vmem:[%s3250_s7 + $0x34] sm:$0xf]  ;;  %v2156_v52 = vld [vmem:[%s3250_s7 + $0x38] sm:$0xf0] }
 0x2b8   : > { %2386 = vmatpush.bf16.msrb.mxu2 %v2995_v8  ;;  %1704 = vmatpush.bf16.msra.mxu1 %v2251_v19  ;;  %v2167_v47 = vor.u32 %v2347_v39, %v2164_v1  ;;  %v2235_v48 = vor.u32 %v2366_v43, %v2234_v41  ;;  %v3085_v51 = vor.u32 %v2361_v44, %v2220_v46  ;;  %v2226_v53 = vld [vmem:[%s3250_s7 + $0xc0] sm:$0xf]  ;;  %v2359_v54 = vld [vmem:[%s3250_s7 + $0xa4] sm:$0xf]  ;;  %v2212_v59 = vld [vmem:[%s3250_s7 + $0xa8] sm:$0xf0] }
 0x2b9   : > { %v2159_v61 = vor.u32 %v2345_v50, %v2156_v52  ;;  %v3103_v63 = vor.u32 %v2359_v54, %v2212_v59  ;;  %v2146_v9 = vld [vmem:[%s3250_s7 + $0x20] sm:$0xf]  ;;  %v2344_v2 = vld [vmem:[%s3250_s7 + $0x24] sm:$0xf0]  ;;  %v2343_v3 = vld [vmem:[%s3250_s7 + $0x24] sm:$0xf] }
 0x2ba   : > { %1687 = vmatpush.bf16.msra.mxu0 %v2179_v11  ;;  %v2147_v4 = vor.u32 %v2344_v2, %v2146_v9  ;;  %v2148_v6 = vld [vmem:[%s3250_s7 + $0x28] sm:$0xf0]  ;;  %v2357_v7 = vld [vmem:[%s3250_s7 + $0x94] sm:$0xf]  ;;  %v2204_v58 = vld [vmem:[%s3250_s7 + $0x98] sm:$0xf0] }
 0x2bb   : > { %1741 = vmatpush.bf16.msrb.mxu3 %v2183_v16  ;;  %v2151_v10 = vor.u32 %v2343_v3, %v2148_v6  ;;  %v2218_v21 = vld [vmem:[%s3250_s7 + $0xb0] sm:$0xf]  ;;  %v2362_v11 = vld [vmem:[%s3250_s7 + $0xb4] sm:$0xf0]  ;;  %v3132_v12 = vor.u32 %v2357_v7, %v2204_v58  ;;  %v2341_v19 = vld [vmem:[%s3250_s7 + $0x14] sm:$0xf] }
 0x2bc   : > { %1294 = vrot.lane.b32.xlu2 %v1291_v42, %s2421_s23  ;;  %2387 = vmatpush.bf16.msrb.mxu2 %v3025_v24  ;;  %v2163_v42 = vor.u32 %v2348_v36, %v2162_v34  ;;  %v2219_v13 = vor.u32 %v2362_v11, %v2218_v21  ;;  %v2138_v15 = vld [vmem:[%s3250_s7 + $0x10] sm:$0xf]  ;;  %v2342_v16 = vld [vmem:[%s3250_s7 + $0x14] sm:$0xf0]  ;;  %v2140_v23 = vld [vmem:[%s3250_s7 + $0x18] sm:$0xf0] }
 0x2bd   : > { %1705 = vmatpush.bf16.msra.mxu1 %v2243_v31  ;;  %v2139_v22 = vor.u32 %v2342_v16, %v2138_v15  ;;  %v2210_v25 = vld [vmem:[%s3250_s7 + $0xa0] sm:$0xf]  ;;  %v2196_v27 = vld [vmem:[%s3250_s7 + $0x88] sm:$0xf0]  ;;  %v2340_v31 = vld [vmem:[%s3250_s7 + $0x4] sm:$0xf0] }
 0x2be   : > { %1354 = vrot.lane.b32.xlu1 %v1350_v26, %s2420_s22  ;;  %v2172_v26 = vld [vmem:[%s3250_s7 + $0x58] sm:$0xf0]  ;;  %1688 = vmatpush.bf16.msra.mxu0 %v2171_v28  ;;  %v2130_v30 = vld [vmem:[%s3250_s7] sm:$0xf]  ;;  %v2339_v32 = vld [vmem:[%s3250_s7 + $0x4] sm:$0xf] }
 0x2bf   : > { %1292 = vrot.lane.b32.xlu0 %v1288_v56, %s2421_s23  ;;  %v2175_v5 = vor.u32 %v2349_v17, %v2172_v26  ;;  %v2346_v56 = vld [vmem:[%s3250_s7 + $0x34] sm:$0xf0]  ;;  %v2360_v17 = vld [vmem:[%s3250_s7 + $0xa4] sm:$0xf0]  ;;  %v2143_v26 = vor.u32 %v2341_v19, %v2140_v23  ;;  %v2132_v34 = vld [vmem:[%s3250_s7 + $0x8] sm:$0xf0]  ;;  %v2131_v36 = vor.u32 %v2340_v31, %v2130_v30 }
 0x2c0   : > { %2388 = vmatpush.bf16.msrb.mxu2 %v3055_v38  ;;  %v2211_v28 = vor.u32 %v2360_v17, %v2210_v25  ;;  %v2135_v39 = vor.u32 %v2339_v32, %v2132_v34  ;;  %v2202_v41 = vld [vmem:[%s3250_s7 + $0x90] sm:$0xf]  ;;  %v2194_v44 = vld [vmem:[%s3250_s7 + $0x80] sm:$0xf]  ;;  %v2356_v46 = vld [vmem:[%s3250_s7 + $0x84] sm:$0xf0] }
 0x2c1   : > { %1742 = vmatpush.bf16.msrb.mxu3 %v2175_v5  ;;  %1706 = vmatpush.bf16.msra.mxu1 %v2235_v48  ;;  %v2355_v5 = vld [vmem:[%s3250_s7 + $0x84] sm:$0xf]  ;;  %v2268_v50 = vld [vmem:[%s3250_s7 + $0x118] sm:$0xf0]  ;;  %v1325_v7 = vshll.u32 %v2915_v45, 16 }
 0x2c2   : > { %1689 = vmatpush.bf16.msra.mxu0 %v2163_v42  ;;  %v3164_v18 = vor.u32 %v2355_v5, %v2196_v27  ;;  %v2358_v42 = vld [vmem:[%s3250_s7 + $0x94] sm:$0xf0]  ;;  %v1251_v54 = vld [vmem:[#allocation2 + $0x4] sm:$0xf] }
 0x2c3   : > { %2273 = vmatmul.msk.bf16.gmra.mxu2 %vm628_vm9, %v2962_v57  ;;  %v2203_v43 = vor.u32 %v2358_v42, %v2202_v41  ;;  %v1268_v59 = vunpack.c.l.b16 %v1251_v54  ;;  %v1327_v15 = vor.u32 %v1325_v7, %v2943_v35 }
 0x2c4   : > { %1378 = vrot.lane.b32.xlu2 %v1374_v55, %s2422_s24  ;;  %v2364_v55 = vld [vmem:[%s3250_s7 + $0xc4] sm:$0xf0]  ;;  %2389 = vmatpush.bf16.msrb.mxu2 %v3085_v51 }
 0x2c5   : > { %1743 = vmatpush.bf16.msrb.mxu3 %v2167_v47  ;;  %v2227_v62 = vor.u32 %v2364_v55, %v2226_v53 }
 0x2c7   : > { %1376 = vrot.lane.b32.xlu0 %v1375_v60, %s2422_s24  ;;  %v2155_v60 = vor.u32 %v2346_v56, %v2154_v49  ;;  %1707 = vmatpush.bf16.msra.mxu1 %v2227_v62  ;;  %v2195_v49 = vor.u32 %v2356_v46, %v2194_v44  ;;  %v2373_v56 = vld [vmem:[%s3250_s7 + $0x114] sm:$0xf]  ;;  %v1272_v62 = vpack.c.b16 %v2922_v37, %v1268_v59  ;;  %v2260_v37 = vld [vmem:[%s3250_s7 + $0x108] sm:$0xf0] }
 0x2c8   : > { %2390 = vmatpush.bf16.msrb.mxu2 %v3103_v63  ;;  %v2271_v52 = vor.u32 %v2373_v56, %v2268_v50 }
 0x2c9   : > { %1690 = vmatpush.bf16.msra.mxu0 %v2155_v60  ;;  %1744 = vmatpush.bf16.msrb.mxu3 %v2159_v61 }
 0x2cb   : > { %1708 = vmatpush.bf16.msra.mxu1 %v2219_v13 }
 0x2cc   : > { %2391 = vmatpush.bf16.msrb.mxu2 %v3132_v12 }
 0x2cd   : > { %1691 = vmatpush.bf16.msra.mxu0 %v2147_v4  ;;  %1745 = vmatpush.bf16.msrb.mxu3 %v2151_v10 }
 0x2cf   : > { %1709 = vmatpush.bf16.msra.mxu1 %v2211_v28 }
 0x2d0   : > { %2392 = vmatpush.bf16.msrb.mxu2 %v3164_v18 }
 0x2d1   : > { %1692 = vmatpush.bf16.msra.mxu0 %v2139_v22  ;;  %1746 = vmatpush.bf16.msrb.mxu3 %v2143_v26 }
 0x2d3   : > { %1710 = vmatpush.bf16.msra.mxu1 %v2203_v43 }
 0x2d5   : > { %1693 = vmatpush.bf16.msra.mxu0 %v2131_v36  ;;  %1747 = vmatpush.bf16.msrb.mxu3 %v2135_v39 }
 0x2d7   : > { %1711 = vmatpush.bf16.msra.mxu1 %v2195_v49  ;;  %v1449_v49 = vld [vmem:[%s3251_s8] sm:$0x3] }
 0x2d8   : > { %v1452_v59 = vperm.slane %v1449_v49, 1 }
 0x2d9   : > { %1758 = vmatpush.bf16.msrb.mxu0 %v2977_v0  ;;  %2393 = vmatpush.bf16.msra.mxu3 %v2271_v52 }
 0x2db   : > { %1782 = vmatpush.bf16.msrb.mxu1 %v2271_v52  ;;  %v1451_v52 = vperm.slane %v1449_v49, 0 }
 0x2dd   : > { %1759 = vmatpush.bf16.msrb.mxu0 %v2995_v8 }
 0x2e1   : > { %1760 = vmatpush.bf16.msrb.mxu0 %v3025_v24 }
 0x2e5   : > { %1761 = vmatpush.bf16.msrb.mxu0 %v3055_v38 }
 0x2e9   : > { %1762 = vmatpush.bf16.msrb.mxu0 %v3085_v51 }
 0x2ed   : > { %1763 = vmatpush.bf16.msrb.mxu0 %v3103_v63 }
 0x2f1   : > { %1764 = vmatpush.bf16.msrb.mxu0 %v3132_v12 }
 0x2f5   : > { %1765 = vmatpush.bf16.msrb.mxu0 %v3164_v18 }
 0x306   : > { %v3105_v29 = vpop.permute.xlu2 %1341 }
 0x307   : > { %v1404_v61 = vsel %vm628_vm9, %v2952_v40, %v3105_v29  ;;  %v2371_v40 = vld [vmem:[%s3250_s7 + $0x104] sm:$0xf] }
 0x308   : > { %v2263_v6 = vor.u32 %v2371_v40, %v2260_v37 }
 0x30a   : > { %1783 = vmatpush.bf16.msrb.mxu1 %v2263_v6  ;;  %2394 = vmatpush.bf16.msra.mxu3 %v2263_v6 }
 0x30e   : > { %v1305_v1 = vpop.permute.xlu2 %1304 }
 0x312   : > { %v3143_v20 = vpop.permute.xlu1 %1339 }
 0x313   : > { %v1401_v23 = vsel %vm628_vm9, %v1327_v15, %v3143_v20 }
 0x316   : > { %v1295_v53 = vpop.permute.xlu2 %1294 }
 0x317   : > { %v1390_v60 = vsel %vm628_vm9, %v2933_v14, %v1295_v53 }
 0x318   : > { %v1394_v24 = vsel %vm634_vm13, %v1390_v60, %v1305_v1 }
 0x31e   : > { %v1379_v9 = vpop.permute.xlu2 %1378 }
 0x320   : > { %v1318_v47 = vpop.permute.xlu1 %1317 }
 0x321   : > { %v1316_v48 = vpop.permute.xlu0 %1315  ;;  %v1398_v38 = vsel %vm3254_vm0, %v1394_v24, %v1318_v47 }
 0x322   : > { %v1461_v10 = vshll.u32 %v1398_v38, 16  ;;  %v1487_v32 = vshrl.u32 %v1398_v38, 16 }
 0x324   : > { %v1463_v45 = vrot.slane %v1461_v10, 1 }
 0x326   : > { %v1489_v36 = vor.u32 %v1487_v32, %v1463_v45 }
 0x328   : > { %v1303_v55 = vpop.permute.xlu1 %1302 }
 0x329   : > { %v1353_v0 = vpop.permute.xlu0 %1352 }
 0x32a   : > { %v1406_v25 = vsel %vm634_vm13, %v1401_v23, %v1353_v0 }
 0x330   : > { %v1355_v8 = vpop.permute.xlu1 %1354 }
 0x331   : > { %v1408_v2 = vsel %vm634_vm13, %v1404_v61, %v1355_v8  ;;  %v1293_v3 = vpop.permute.xlu0 %1292 }
 0x332   : > { %v1412_v4 = vsel %vm3255_vm3, %v1408_v2, %v1379_v9  ;;  %v1388_v14 = vsel %vm628_vm9, %v1272_v62, %v1293_v3 }
 0x333   : > { %v1471_v51 = vshll.u32 %v1412_v4, 16  ;;  %v1392_v29 = vsel %vm634_vm13, %v1388_v14, %v1303_v55  ;;  %v1490_v11 = vshrl.u32 %v1412_v4, 16 }
 0x334   : > { %v1396_v58 = vsel %vm3256_vm5, %v1392_v29, %v1316_v48 }
 0x335   : > { %v1473_v21 = vrot.slane %v1471_v51, 1  ;;  %v1457_v13 = vshll.u32 %v1396_v58, 16  ;;  %v1455_v19 = vshrl.u32 %v1396_v58, 16 }
 0x336   : > { %v1731_v63 = vpop.f32.mrf.mxu2 }
 0x337   : > { %v1492_v16 = vor.u32 %v1490_v11, %v1473_v21  ;;  %v1459_v22 = vrot.slane %v1457_v13, 1 }
 0x339   : > { %1771 = vmatmul.bf16.vlgmr.msrb.gmra.mxu2 %v1492_v16  ;;  %v1377_v17 = vpop.permute.xlu0 %1376  ;;  %v1460_v26 = vor.u32 %v1459_v22, %v1455_v19 }
 0x33a   : > { %v1410_v28 = vsel %vm3257_vm7, %v1406_v25, %v1377_v17 }
 0x33b   : > { %v1467_v5 = vshll.u32 %v1410_v28, 16  ;;  %v1464_v35 = vsel %vm513_vm8, %v1460_v26, %v1463_v45  ;;  %v1465_v27 = vshrl.u32 %v1410_v28, 16 }
 0x33c   : > { %1694 = vmatmul.bf16.vlgmr.msra.gmra.mxu0 %v1464_v35  ;;  %1748 = vmatmul.bf16.vlgmr.msrb.gmra.mxu3 %v1464_v35 }
 0x33d   : > { %v1469_v30 = vrot.slane %v1467_v5, 1 }
 0x33e   : > { %v1733_v12 = vpop.f32.mrf.mxu2 }
 0x33f   : > { %v1470_v20 = vor.u32 %v1469_v30, %v1465_v27 }
 0x341   : > { %v1474_v31 = vsel %vm513_vm8, %v1470_v20, %v1473_v21 }
 0x342   : > { %1712 = vmatmul.bf16.vlgmr.msra.gmra.mxu1 %v1474_v31 }
 0x346   : > { %v1736_v34 = vpop.f32.mrf.mxu2 }
 0x34c   : > { %1699 = vmatmul.bf16.gmra.mxu0 %v1489_v36  ;;  %1753 = vmatmul.bf16.gmra.mxu3 %v1489_v36 }
 0x34e   : > { %v1738_v39 = vpop.f32.mrf.mxu2 }
 0x352   : > { %1717 = vmatmul.bf16.gmra.mxu1 %v1492_v16 }
 0x35c   : > { %1766 = vmatmul.bf16.vlgmr.msrb.gmra.mxu0 %v1474_v31  ;;  %2275 = vmatmul.msk.bf16.vlgmr.msra.gmra.mxu3 %vm628_vm9, %v2962_v57 }
 0x362   : > { %2274 = vmatmul.msk.bf16.vlgmr.msrb.gmra.mxu1 %vm628_vm9, %v2940_v33 }
 0x3b9   : > { %v1695_v18 = vpop.f32.mrf.mxu0 }
 0x3ba   : > { %v1696_v53 = vadd.f32 %v1695_v18, %v1451_v52 }
 0x3bc   : > { %v1772_v1 = vpop.f32.mrf.mxu2 }
 0x3bf   : > { %v1713_v41 = vpop.f32.mrf.mxu1  ;;  %v1749_v42 = vpop.f32.mrf.mxu3 }
 0x3c0   : > { %v1714_v33 = vadd.f32 %v1713_v41, %v1696_v53  ;;  %v1750_v9 = vadd.f32 %v1749_v42, %v1452_v59 }
 0x3c1   : > { %v1697_v43 = vpop.f32.mrf.mxu0 }
 0x3c2   : > { %v1732_v62 = vadd.f32 %v1731_v63, %v1714_v33  ;;  %v1698_v2 = vadd.f32 %v1697_v43, %v1451_v52 }
 0x3c4   : > { %v1774_v44 = vpop.f32.mrf.mxu2  ;;  %vm1794_vm8 = vcmp.ge.f32.partialorder %v1732_v62, 0.0  ;;  %v1800_v4 = vmul.f32 0.2, %v1732_v62 }
 0x3c6   : > { %v1806_v21 = vsel %vm1794_vm8, %v1732_v62, %v1800_v4 }
 0x3c7   : > { %v1715_v46 = vpop.f32.mrf.mxu1  ;;  %v1751_v47 = vpop.f32.mrf.mxu3 }
 0x3c8   : > { %v1716_v37 = vadd.f32 %v1715_v46, %v1698_v2  ;;  %v1752_v10 = vadd.f32 %v1751_v47, %v1452_v59 }
 0x3c9   : > { %v1700_v48 = vpop.f32.mrf.mxu0 }
 0x3ca   : > { %v1701_v55 = vadd.f32 %v1700_v48, %v1451_v52  ;;  %v1734_v13 = vadd.f32 %v1733_v12, %v1716_v37 }
 0x3cc   : > { %v1802_v17 = vmul.f32 0.2, %v1734_v13  ;;  %vm1796_vm12 = vcmp.ge.f32.partialorder %v1734_v13, 0.0 }
 0x3ce   : > { %v1808_v5 = vsel %vm1796_vm12, %v1734_v13, %v1802_v17 }
 0x3cf   : > { %v1718_v56 = vpop.f32.mrf.mxu1  ;;  %v1754_v50 = vpop.f32.mrf.mxu3 }
 0x3d0   : > { %v1719_v60 = vadd.f32 %v1718_v56, %v1701_v55  ;;  %v1755_v8 = vadd.f32 %v1754_v50, %v1452_v59 }
 0x3d1   : > { %v1702_v57 = vpop.f32.mrf.mxu0 }
 0x3d2   : > { %v1737_v24 = vadd.f32 %v1736_v34, %v1719_v60  ;;  %v1773_v38 = vadd.f32 %v1772_v1, %v1755_v8 }
 0x3d4   : > { %v1804_v51 = vmul.f32 0.2, %v1737_v24  ;;  %vm1798_vm9 = vcmp.ge.f32.partialorder %v1737_v24, 0.0 }
 0x3d6   : > { %v1810_v16 = vsel %vm1798_vm9, %v1737_v24, %v1804_v51 }
 0x3d7   : > { %v1720_v0 = vpop.f32.mrf.mxu1  ;;  %v1756_v54 = vpop.f32.mrf.mxu3 }
 0x3d9   : > { %v1767_v61 = vpop.f32.mrf.mxu0 }
 0x3da   : > { %v1768_v3 = vadd.f32 %v1767_v61, %v1750_v9 }
 0x3df   : > { %v1785_v14 = vpop.f32.mrf.mxu1  ;;  %v1790_v40 = vpop.f32.mrf.mxu3 }
 0x3e0   : > { %v1786_v29 = vadd.f32 %v1785_v14, %v1768_v3  ;;  %v1791_v6 = vadd.f32 %v1790_v40, %v1773_v38 }
 0x3e1   : > { %v1769_v11 = vpop.f32.mrf.mxu0 }
 0x3e2   : > { %vm1795_vm10 = vcmp.ge.f32.partialorder %v1786_v29, 0.0  ;;  %v1801_v7 = vmul.f32 0.2, %v1786_v29  ;;  %vm1799_vm11 = vcmp.ge.f32.partialorder %v1791_v6, 0.0  ;;  %v1805_v58 = vmul.f32 0.2, %v1791_v6 }
 0x3e3   : > { %v1770_v45 = vadd.f32 %v1769_v11, %v1752_v10 }
 0x3e4   : > { %v1807_v15 = vsel %vm1795_vm10, %v1786_v29, %v1801_v7  ;;  %v1811_v19 = vsel %vm1799_vm11, %v1791_v6, %v1805_v58 }
 0x3e5   : > { %v1812_v22 = vpack.c.bf16 %v1807_v15, %v1806_v21  ;;  %v1814_v23 = vpack.c.bf16 %v1811_v19, %v1810_v16 }
 0x3e7   : > { %1815 = vst [vmem:[%s332_s16] sm:$0xff] %v1812_v22  ;;  %v1787_v25 = vpop.f32.mrf.mxu1  ;;  %v1792_v63 = vpop.f32.mrf.mxu3 }
 0x3e8   : > { %1817 = vst [vmem:[%s332_s16 + $0x10] sm:$0xff] %v1814_v23  ;;  %v1788_v26 = vadd.f32 %v1787_v25, %v1770_v45 }
 0x3ea   : > { %vm1797_vm13 = vcmp.ge.f32.partialorder %v1788_v26, 0.0  ;;  %v1803_v28 = vmul.f32 0.2, %v1788_v26 }
 0x3ec   : > { %v1809_v35 = vsel %vm1797_vm13, %v1788_v26, %v1803_v28 }
 0x3ed   : > { %v1813_v27 = vpack.c.bf16 %v1809_v35, %v1808_v5 }
 0x3ef   : > { %1816 = vst [vmem:[%s332_s16 + $0x8] sm:$0xff] %v1813_v27 }
 0x3f0 PF: > { %s19_s30 = sadd.s32 1, %s2417_s30  }
 0x3f1   : > { %p16_p4 = scmp.ge.s32.totalorder %s19_s30, 4  }
 0x3f3   :  { %18 = sbr.rel (!%p16_p4) target bundleno = 1 (0x1), region = 86 }

// kernel: squeezenet_forward.15
= control target key start
LH: loop header
LB: loop body
LE: loop exit
PB: predicated region body
PF: predicated region fallthrough
CT: control target
= control target key end

     0   :  { %s782_s0 = inlined_call_operand.vmem [shape: bf16[16,512], index: 0, kind: input, shape index: {}]   ;;  %s783_s1 = inlined_call_operand.vmem [shape: bf16[512,128], index: 1, kind: input, shape index: {}]   ;;  %s784_s2 = inlined_call_operand.vmem [shape: f32[1,128], index: 2, kind: input, shape index: {}]   ;;  %s785_s3 = inlined_call_operand.hbm [shape: f32[2,128], index: 3, kind: output, shape index: {}]  }
   0x1   :  { %v580_v0 = vld [vmem:[%s783_s1 + $0x38] sm:$0xff]  ;;  %v579_v4 = vld [vmem:[%s783_s1 + $0x30] sm:$0xff]  ;;  %v578_v8 = vld [vmem:[%s783_s1 + $0x28] sm:$0xff] }
   0x2   :  { %v588_v1 = vld [vmem:[%s783_s1 + $0x78] sm:$0xff]  ;;  %299 = vmatpush.bf16.msra.mxu0 %v580_v0  ;;  %v587_v5 = vld [vmem:[%s783_s1 + $0x70] sm:$0xff]  ;;  %v586_v9 = vld [vmem:[%s783_s1 + $0x68] sm:$0xff] }
   0x3   :  { %v596_v2 = vld [vmem:[%s783_s1 + $0xb8] sm:$0xff]  ;;  %313 = vmatpush.bf16.msra.mxu1 %v588_v1  ;;  %v595_v6 = vld [vmem:[%s783_s1 + $0xb0] sm:$0xff]  ;;  %v594_v10 = vld [vmem:[%s783_s1 + $0xa8] sm:$0xff] }
   0x4   :  { %v604_v3 = vld [vmem:[%s783_s1 + $0xf8] sm:$0xff]  ;;  %327 = vmatpush.bf16.msra.mxu2 %v596_v2  ;;  %v603_v7 = vld [vmem:[%s783_s1 + $0xf0] sm:$0xff]  ;;  %v602_v11 = vld [vmem:[%s783_s1 + $0xe8] sm:$0xff] }
   0x5   :  { %341 = vmatpush.bf16.msra.mxu3 %v604_v3  ;;  %v577_v12 = vld [vmem:[%s783_s1 + $0x20] sm:$0xff]  ;;  %v576_v16 = vld [vmem:[%s783_s1 + $0x18] sm:$0xff] }
   0x6   :  { %300 = vmatpush.bf16.msra.mxu0 %v579_v4  ;;  %v585_v13 = vld [vmem:[%s783_s1 + $0x60] sm:$0xff]  ;;  %v584_v17 = vld [vmem:[%s783_s1 + $0x58] sm:$0xff] }
   0x7   :  { %314 = vmatpush.bf16.msra.mxu1 %v587_v5  ;;  %v593_v14 = vld [vmem:[%s783_s1 + $0xa0] sm:$0xff] }
   0x8   :  { %328 = vmatpush.bf16.msra.mxu2 %v595_v6  ;;  %v601_v15 = vld [vmem:[%s783_s1 + $0xe0] sm:$0xff] }
   0x9   :  { %342 = vmatpush.bf16.msra.mxu3 %v603_v7 }
   0xa   :  { %301 = vmatpush.bf16.msra.mxu0 %v578_v8 }
   0xb   :  { %315 = vmatpush.bf16.msra.mxu1 %v586_v9 }
   0xc   :  { %329 = vmatpush.bf16.msra.mxu2 %v594_v10 }
   0xd   :  { %343 = vmatpush.bf16.msra.mxu3 %v602_v11 }
   0xe   :  { %302 = vmatpush.bf16.msra.mxu0 %v577_v12 }
   0xf   :  { %316 = vmatpush.bf16.msra.mxu1 %v585_v13 }
  0x10   :  { %8 = vsyncpa [#allocation3], 0  ;;  %330 = vmatpush.bf16.msra.mxu2 %v593_v14  ;;  %v592_v18 = vld [vmem:[%s783_s1 + $0x98] sm:$0xff]  ;;  %v575_v20 = vld [vmem:[%s783_s1 + $0x10] sm:$0xff]  ;;  %v361_v44 = vlaneseq  ;;  %v634_v14 = vmov 0.0   ;;  %vm381_vm5 = vcmask 130048  }
  0x11   :  { %344 = vmatpush.bf16.msra.mxu3 %v601_v15  ;;  %v600_v19 = vld [vmem:[%s783_s1 + $0xd8] sm:$0xff]  ;;  %v583_v21 = vld [vmem:[%s783_s1 + $0x50] sm:$0xff]  ;;  %v574_v24 = vld [vmem:[%s783_s1 + $0x8] sm:$0xff]  ;;  %s414_s14 = sshll.u32 %s785_s3, 4  ;;  %s415_s14 = int_to_ptr.hbm [resolvable:$true] %s414_s14 }
  0x12   :  { %303 = vmatpush.bf16.msra.mxu0 %v576_v16  ;;  %v591_v22 = vld [vmem:[%s783_s1 + $0x90] sm:$0xff]  ;;  %v582_v25 = vld [vmem:[%s783_s1 + $0x48] sm:$0xff]  ;;  %v573_v28 = vld [vmem:[%s783_s1] sm:$0xff]  ;;  %v362_v45 = vand.u32 127, %v361_v44  ;;  %v365_v50 = vshrl.u32 %v361_v44, 7 }
  0x13   :  { %317 = vmatpush.bf16.msra.mxu1 %v584_v17  ;;  %v599_v23 = vld [vmem:[%s783_s1 + $0xd0] sm:$0xff]  ;;  %v590_v26 = vld [vmem:[%s783_s1 + $0x88] sm:$0xff]  ;;  %v581_v29 = vld [vmem:[%s783_s1 + $0x40] sm:$0xff] }
  0x14   :  { %331 = vmatpush.bf16.msra.mxu2 %v592_v18  ;;  %v598_v27 = vld [vmem:[%s783_s1 + $0xc8] sm:$0xff]  ;;  %v589_v30 = vld [vmem:[%s783_s1 + $0x80] sm:$0xff]  ;;  %v571_v33 = vld [vmem:[%s782_s0 + $0xc] sm:$0xf0]  ;;  %v363_v46 = vcvt.s32.f32 %v362_v45  ;;  %v366_v55 = vcvt.s32.f32 %v365_v50 }
  0x15   :  { %345 = vmatpush.bf16.msra.mxu3 %v600_v19  ;;  %v597_v31 = vld [vmem:[%s783_s1 + $0xc0] sm:$0xff]  ;;  %v427_v35 = vld [vmem:[%s782_s0 + $0x10] sm:$0xf0]  ;;  %v433_v36 = vld [vmem:[%s782_s0 + $0x8] sm:$0xf] }
  0x16   :  { %304 = vmatpush.bf16.msra.mxu0 %v575_v20  ;;  %v425_v32 = vld [vmem:[%s782_s0] sm:$0xf]  ;;  %v569_v34 = vld [vmem:[%s782_s0 + $0x4] sm:$0xf]  ;;  %v572_v37 = vld [vmem:[%s782_s0 + $0x14] sm:$0xf0] }
  0x17   :  { %318 = vmatpush.bf16.msra.mxu1 %v583_v21  ;;  %v570_v38 = vld [vmem:[%s782_s0 + $0xc] sm:$0xf]  ;;  %v435_v39 = vld [vmem:[%s782_s0 + $0x18] sm:$0xf0]  ;;  %v426_v40 = vor.u32 %v571_v33, %v425_v32  ;;  %v430_v41 = vor.u32 %v569_v34, %v427_v35  ;;  %v434_v42 = vor.u32 %v572_v37, %v433_v36  ;;  %v367_v47 = vadd.f32 0.5, %v363_v46  ;;  %s635_s0 = smov [#allocation2]  }
  0x18   :  { %332 = vmatpush.bf16.msra.mxu2 %v591_v22  ;;  %v438_v43 = vor.u32 %v570_v38, %v435_v39  ;;  %v607_v48 = vld [vmem:[%s784_s2] ss:$0 sm:$0xff]  ;;  %s412_s2 = sshll.u32 %s635_s0, 4  ;;  %s413_s2 = int_to_ptr.vmem [resolvable:$true] %s412_s2 }
  0x19   :  { %346 = vmatpush.bf16.msra.mxu3 %v599_v23  ;;  %v368_v51 = vmul.f32 0.125, %v367_v47  ;;  %v370_v52 = vmul.f32 0.25, %v367_v47 }
  0x1a   :  { %305 = vmatpush.bf16.msra.mxu0 %v574_v24 }
  0x1b   :  { %319 = vmatpush.bf16.msra.mxu1 %v582_v25  ;;  %v369_v56 = vfloor.f32 %v368_v51  ;;  %v371_v57 = vfloor.f32 %v370_v52 }
  0x1c   :  { %333 = vmatpush.bf16.msra.mxu2 %v590_v26 }
  0x1d   :  { %347 = vmatpush.bf16.msra.mxu3 %v598_v27  ;;  %v372_v62 = vmul.f32 4.0, %v371_v57  ;;  %v374_v63 = vsub.f32 %v369_v56, %v366_v55 }
  0x1e   :  { %306 = vmatpush.bf16.msra.mxu0 %v573_v28 }
  0x1f   :  { %320 = vmatpush.bf16.msra.mxu1 %v581_v29  ;;  %v373_v3 = vsub.f32 %v363_v46, %v372_v62  ;;  %v375_v4 = vand.u32 2147483647, %v374_v63 }
  0x20   :  { %334 = vmatpush.bf16.msra.mxu2 %v589_v30 }
  0x21   :  { %348 = vmatpush.bf16.msra.mxu3 %v597_v31  ;;  %307 = vmatmul.bf16.vlgmr.msra.gmra.mxu0 %v426_v40  ;;  %vm376_vm0 = vcmp.lt.f32.partialorder %v375_v4, 0.5  ;;  %vm377_vm1 = vcmp.lt.f32.partialorder %v373_v3, 1.5 }
  0x22   :  { %321 = vmatmul.bf16.vlgmr.msra.gmra.mxu1 %v430_v41  ;;  %vm378_vm3 = vmand %vm376_vm0, %vm377_vm1 }
  0x23   :  { %335 = vmatmul.bf16.vlgmr.msra.gmra.mxu2 %v434_v42  ;;  %v567_v15 = vsel %vm378_vm3, 1.0, %v634_v14 }
  0x24   :  { %349 = vmatmul.bf16.vlgmr.msra.gmra.mxu3 %v438_v43 }
  0x9e   :  { %v308_v49 = vpop.f32.mrf.mxu0 }
  0x9f   :  { %v322_v53 = vpop.f32.mrf.mxu1  ;;  %v309_v54 = vadd.f32 %v607_v48, %v308_v49 }
  0xa1   :  { %v323_v60 = vadd.f32 %v322_v53, %v309_v54 }
  0xa6   :  { %v336_v58 = vpop.f32.mrf.mxu2  ;;  %v310_v61 = vpop.f32.mrf.mxu0 }
  0xa7   :  { %v350_v59 = vpop.f32.mrf.mxu3  ;;  %v311_v0 = vadd.f32 %v607_v48, %v310_v61  ;;  %v337_v1 = vadd.f32 %v336_v58, %v323_v60  ;;  %v324_v2 = vpop.f32.mrf.mxu1 }
  0xa9   :  { %v325_v5 = vadd.f32 %v324_v2, %v311_v0  ;;  %v351_v7 = vadd.f32 %v350_v59, %v337_v1 }
  0xab   :  { %v357_v12 = vmul.f32 0.2, %v351_v7  ;;  %vm355_vm4 = vcmp.ge.f32.partialorder %v351_v7, 0.0 }
  0xad   :  { %v359_v16 = vsel %vm355_vm4, %v351_v7, %v357_v12 }
  0xae   :  { %v338_v6 = vpop.f32.mrf.mxu2 }
  0xaf   :  { %v339_v8 = vadd.f32 %v338_v6, %v325_v5  ;;  %v352_v9 = vpop.f32.mrf.mxu3 }
  0xb1   :  { %v353_v10 = vadd.f32 %v352_v9, %v339_v8 }
  0xb3   :  { %vm356_vm2 = vcmp.ge.f32.partialorder %v353_v10, 0.0  ;;  %v358_v11 = vmul.f32 0.2, %v353_v10 }
  0xb5   :  { %v360_v13 = vsel %vm356_vm2, %v353_v10, %v358_v11 }
  0xb6   :  { %399 = vmatpush.msrb.mxu0 %v360_v13 }
  0xb8   :  { %400 = vmatpush.msrb.mxu0 %v359_v16 }
  0xb9   :  { %568 = vmatmul.msk.f32.vlgmr.msrb.gmra.mxu0 %vm381_vm5, %v567_v15 }
 0x136   :  { %v402_v17 = vpop.f32.mrf.mxu0 }
 0x137   :  { %v405_v18 = vmul.f32 0.25, %v402_v17 }
 0x139   :  { %406 = vst [vmem:[#allocation2] sm:$0x3] %v405_v18 }
 0x13a   :  { %417 = dma.vmem_to_hbm [thread:$0]  %s413_s2, 32, %s415_s14, [#allocation3]  }
 0x13b   :  { %632 = dma.done.wait [#allocation3], 32  }
 0x13c   :  { %633 = vsyncadd [#allocation3], 4294967264 }
 0x13d   :  { %422 = vsyncpa [#allocation3], 1 }

// kernel: squeezenet_forward.13
= control target key start
LH: loop header
LB: loop body
LE: loop exit
PB: predicated region body
PF: predicated region fallthrough
CT: control target
= control target key end

     0   :  { %s3638_s30 = smov 0   ;;  %s4877_s0 = inlined_call_operand.vmem [shape: bf16[2,8,256], index: 0, kind: input, shape index: {}]   ;;  %s4878_s1 = inlined_call_operand.vmem [shape: bf16[256,48], index: 1, kind: input, shape index: {}]   ;;  %s4879_s2 = inlined_call_operand.vmem [shape: f32[1,48], index: 2, kind: input, shape index: {}]   ;;  %s4880_s3 = inlined_call_operand.vmem [shape: bf16[432,384], index: 3, kind: input, shape index: {}]   ;;  %s4881_s4 = inlined_call_operand.vmem [shape: f32[1,384], index: 4, kind: input, shape index: {}]   ;;  %s4882_s5 = inlined_call_operand.vmem [shape: bf16[384,48], index: 5, kind: input, shape index: {}]   ;;  %s4883_s6 = inlined_call_operand.vmem [shape: f32[1,48], index: 6, kind: input, shape index: {}]   ;;  %s4884_s7 = inlined_call_operand.vmem [shape: bf16[432,384], index: 7, kind: input, shape index: {}]   ;;  %s4885_s8 = inlined_call_operand.vmem [shape: f32[1,384], index: 8, kind: input, shape index: {}]   ;;  %s4886_s9 = inlined_call_operand.vmem [shape: bf16[2,8,384], index: 9, kind: output, shape index: {}]  }
   0x1 LB: > { %s2526_s10 = sadd.s32 4294967295, %s3578_s30   ;;  %p2530_p0 = scmp.ge.s32.totalorder %s3578_s30, 1  ;;  %s3578_s30 = sphi %s3638_s30, %s19_s30  }
   0x2   : > { %p287_p1 = scmp.lt.s32.totalorder %s3578_s30, 3 }
   0x4   : > { %p288_p2 = pnand %p2530_p0, %p287_p1 }
   0x5   : > { %p323_p3 = scmp.lt.s32.totalorder (!%p288_p2), %s2526_s10, 1  ;;  %s3581_s13 = smov (!%p288_p2), 112  }
   0x6   : > { %291 = sbr.rel (%p288_p2) target bundleno = 965 (0x3c5), region = 56  ;;  %s3582_s14 = smov (!%p288_p2), 16  }
   0x7   : > { %s3583_s15 = smov (!%p288_p2), 48   ;;  %s3584_s16 = smov (!%p288_p2), 32  }
   0x8   : > { %s3585_s17 = smov (!%p288_p2), 64   ;;  %s3586_s18 = smov (!%p288_p2), 96  }
   0xb   : > { %v3358_v0 = vld [vmem:[%s4878_s1 + $0x38] sm:$0xff]  ;;  %v3357_v2 = vld [vmem:[%s4878_s1 + $0x30] sm:$0xff]  ;;  %v3356_v4 = vld [vmem:[%s4878_s1 + $0x28] sm:$0xff]  ;;  %s4888_s10 = smov (!%p323_p3, %s2526_s10), 1  ;;  %v334_v21 = vlaneseq  ;;  %vm515_vm0 = vcmask 388096   ;;  %v3580_v29 = vmov 0  }
   0xc   : > { %v3366_v1 = vld [vmem:[%s4878_s1 + $0x78] sm:$0xff]  ;;  %483 = vmatpush.bf16.msra.mxu0 %v3358_v0  ;;  %v3365_v3 = vld [vmem:[%s4878_s1 + $0x70] sm:$0xff]  ;;  %v3364_v5 = vld [vmem:[%s4878_s1 + $0x68] sm:$0xff]  ;;  %s3350_s12 = sshll.u32 %s4888_s10, 3  ;;  %520 = vst.msk [vmem:[#allocation2 + $0xc] sm:$0xf] %vm515_vm0, %v3580_v29 }
   0xd   : > { %496 = vmatpush.bf16.msra.mxu1 %v3366_v1  ;;  %v3355_v6 = vld [vmem:[%s4878_s1 + $0x20] sm:$0xff]  ;;  %v3354_v8 = vld [vmem:[%s4878_s1 + $0x18] sm:$0xff]  ;;  %v3353_v10 = vld [vmem:[%s4878_s1 + $0x10] sm:$0xff]  ;;  %s327_s19 = scalar_lea.vmem %s4877_s0, %s3350_s12  ;;  %v335_v22 = vshrl.u32 %v334_v21, 7  ;;  %517 = vst.msk [vmem:[#allocation2 + $0x4] sm:$0xf] %vm515_vm0, %v3580_v29 }
   0xe   : > { %v3363_v7 = vld [vmem:[%s4878_s1 + $0x60] sm:$0xff]  ;;  %v3362_v9 = vld [vmem:[%s4878_s1 + $0x58] sm:$0xff]  ;;  %v3361_v11 = vld [vmem:[%s4878_s1 + $0x50] sm:$0xff]  ;;  %vm604_vm3 = vcmask 392192   ;;  %vm608_vm4 = vcmask 785408   ;;  %vm611_vm5 = vcmask 130048  }
   0xf   : > { %v3352_v12 = vld [vmem:[%s4878_s1 + $0x8] sm:$0xff]  ;;  %v343_v14 = vld [vmem:[%s327_s19] sm:$0xff]  ;;  %v2912_v23 = vld [vmem:[%s4880_s3 + $0x270] sm:$0xf]  ;;  %v336_v28 = vcvt.s32.f32 %v335_v22  ;;  %s3587_s19 = smov 80   ;;  %vm614_vm6 = vcmask 523264  }
  0x10   : > { %484 = vmatpush.bf16.msra.mxu0 %v3357_v2  ;;  %v3360_v13 = vld [vmem:[%s4878_s1 + $0x48] sm:$0xff]  ;;  %v381_v15 = vunpack.c.l.b16 %v343_v14  ;;  %v382_v16 = vunpack.c.h.b16 %v343_v14  ;;  %v3351_v17 = vld [vmem:[%s4878_s1] sm:$0xff]  ;;  %v3446_v24 = vld [vmem:[%s4880_s3 + $0x278] sm:$0xf0]  ;;  %vm617_vm7 = vcmask 916480   ;;  %vm620_vm8 = vcmask 261120  }
  0x11   : > { %497 = vmatpush.bf16.msra.mxu1 %v3365_v3  ;;  %v3359_v18 = vld [vmem:[%s4878_s1 + $0x40] sm:$0xff]  ;;  %v2900_v25 = vld [vmem:[%s4880_s3 + $0x258] sm:$0xf]  ;;  %v2913_v26 = vor.u32 %v3446_v24, %v2912_v23  ;;  %v337_v31 = vadd.f32 0.5, %v336_v28  ;;  %v3440_v41 = vld [vmem:[%s4880_s3 + $0x248] sm:$0xf0] }
  0x12   : > { %v383_v19 = vpack.c.b16 %v381_v15, %v381_v15  ;;  %v384_v20 = vpack.c.b16 %v382_v16, %v382_v16  ;;  %v3443_v27 = vld [vmem:[%s4880_s3 + $0x260] sm:$0xf0]  ;;  %v2888_v40 = vld [vmem:[%s4880_s3 + $0x240] sm:$0xf]  ;;  %v2684_v56 = vld [vmem:[%s4880_s3 + $0xa8] sm:$0xf] }
  0x13   : > { %v2901_v30 = vor.u32 %v3443_v27, %v2900_v25  ;;  %v528_v32 = vld [vmem:[#allocation2 + $0xc] sm:$0x1]  ;;  %v338_v35 = vmul.f32 0.25, %v337_v31  ;;  %v2889_v42 = vor.u32 %v3440_v41, %v2888_v40  ;;  %v3570_v43 = vld [vmem:[%s4879_s2] ss:$0 sm:$0xff]  ;;  %vm623_vm9 = vcmask 654336  }
  0x14   : > { %485 = vmatpush.bf16.msra.mxu0 %v3356_v4  ;;  %v3714_v33 = vld [vmem:[#allocation2 + $0xc] sm:$0x7]  ;;  %v526_v36 = vld [vmem:[#allocation2 + $0x4] sm:$0x8]  ;;  %v3389_v57 = vld [vmem:[%s4880_s3 + $0xb0] sm:$0xf0]  ;;  %v576_v2 = vunpack.c.l.b16 %v528_v32 }
  0x15   : > { %498 = vmatpush.bf16.msra.mxu1 %v3364_v5  ;;  %v3716_v34 = vld [vmem:[#allocation2 + $0xc] sm:$0x3]  ;;  %v3719_v37 = vld [vmem:[#allocation2 + $0x4] sm:$0xc]  ;;  %v339_v39 = vfloor.f32 %v338_v35  ;;  %v2780_v58 = vld [vmem:[%s4880_s3 + $0x168] sm:$0xf]  ;;  %v2685_v59 = vor.u32 %v3389_v57, %v2684_v56  ;;  %v558_v4 = vunpack.c.l.b16 %v526_v36 }
  0x16   : > { %1620 = vst.msk [vmem:[#allocation2 + $0xc] sm:$0xf] %vm515_vm0, %v3580_v29  ;;  %v3721_v38 = vld [vmem:[#allocation2 + $0x4] sm:$0xe]  ;;  %v3413_v60 = vld [vmem:[%s4880_s3 + $0x170] sm:$0xf0]  ;;  %v539_v5 = vunpack.c.l.b16 %v3719_v37 }
  0x17   : > { %1617 = vst.msk [vmem:[#allocation2 + $0x4] sm:$0xf] %vm515_vm0, %v3580_v29  ;;  %v340_v44 = vmul.f32 4.0, %v339_v39  ;;  %v2672_v61 = vld [vmem:[%s4880_s3 + $0x90] sm:$0xf]  ;;  %v2781_v63 = vor.u32 %v3413_v60, %v2780_v58  ;;  %1209 = vmatpush.bf16.msra.mxu2 %v2685_v59  ;;  %s3553_s11 = smul.u32 12, %s4888_s10 }
  0x18   : > { %486 = vmatpush.bf16.msra.mxu0 %v3355_v6  ;;  %v3386_v62 = vld [vmem:[%s4880_s3 + $0x98] sm:$0xf0]  ;;  %v2768_v0 = vld [vmem:[%s4880_s3 + $0x150] sm:$0xf]  ;;  %v601_v6 = vunpack.c.l.b16 %v3714_v33  ;;  %v2756_v16 = vld [vmem:[%s4880_s3 + $0x138] sm:$0xf] }
  0x19   : > { %499 = vmatpush.bf16.msra.mxu1 %v3363_v7  ;;  %v3733_v48 = vsub.f32 %v336_v28, %v340_v44  ;;  %v3410_v1 = vld [vmem:[%s4880_s3 + $0x158] sm:$0xf0]  ;;  %v2673_v3 = vor.u32 %v3386_v62, %v2672_v61  ;;  %1222 = vmatpush.bf16.msra.mxu3 %v2781_v63  ;;  %v2648_v24 = vld [vmem:[%s4880_s3 + $0x60] sm:$0xf]  ;;  %v3380_v25 = vld [vmem:[%s4880_s3 + $0x68] sm:$0xf0]  ;;  %v584_v44 = vunpack.c.l.b16 %v3716_v34  ;;  %s332_s21 = scalar_lea.vmem %s4886_s9, %s3553_s11 }
  0x1a   : > { %v2769_v7 = vor.u32 %v3410_v1, %v2768_v0  ;;  %v2649_v37 = vor.u32 %v3380_v25, %v2648_v24  ;;  %v2744_v61 = vld [vmem:[%s4880_s3 + $0x120] sm:$0xf]  ;;  %v3404_v62 = vld [vmem:[%s4880_s3 + $0x128] sm:$0xf0]  ;;  %v2636_v63 = vld [vmem:[%s4880_s3 + $0x48] sm:$0xf] }
  0x1b   : > { %vm342_vm1 = vcmp.lt.f32.partialorder %v3733_v48, 1.5  ;;  %1210 = vmatpush.bf16.msra.mxu2 %v2673_v3  ;;  %v2745_v0 = vor.u32 %v3404_v62, %v2744_v61  ;;  %v3377_v1 = vld [vmem:[%s4880_s3 + $0x50] sm:$0xf0]  ;;  %v2686_v25 = vld [vmem:[%s4880_s3 + $0xb4] sm:$0xf0] }
  0x1c   : > { %487 = vmatpush.bf16.msra.mxu0 %v3354_v8  ;;  %v2660_v8 = vld [vmem:[%s4880_s3 + $0x78] sm:$0xf]  ;;  %v3401_v3 = vld [vmem:[%s4880_s3 + $0x110] sm:$0xf0]  ;;  %v3491_v48 = vld [vmem:[%s4884_s7 + $0x98] sm:$0xf0] }
  0x1d   : > { %500 = vmatpush.bf16.msra.mxu1 %v3362_v9  ;;  %v3383_v9 = vld [vmem:[%s4880_s3 + $0x80] sm:$0xf0]  ;;  %1223 = vmatpush.bf16.msra.mxu3 %v2769_v7 }
  0x20   : > { %488 = vmatpush.bf16.msra.mxu0 %v3353_v10 }
  0x21   : > { %501 = vmatpush.bf16.msra.mxu1 %v3361_v11 }
  0x24   : > { %489 = vmatpush.bf16.msra.mxu0 %v3352_v12 }
  0x25   : > { %502 = vmatpush.bf16.msra.mxu1 %v3360_v13 }
  0x28   : > { %490 = vmatpush.bf16.msra.mxu0 %v3351_v17  ;;  %v3407_v17 = vld [vmem:[%s4880_s3 + $0x140] sm:$0xf0] }
  0x29   : > { %503 = vmatpush.bf16.msra.mxu1 %v3359_v18  ;;  %v2661_v18 = vor.u32 %v3383_v9, %v2660_v8  ;;  %v2757_v27 = vor.u32 %v3407_v17, %v2756_v16  ;;  %v2720_v9 = vld [vmem:[%s4880_s3 + $0xf0] sm:$0xf]  ;;  %v3395_v16 = vld [vmem:[%s4880_s3 + $0xe0] sm:$0xf0]  ;;  %v2600_v17 = vld [vmem:[%s4880_s3] sm:$0xf] }
  0x2b   : > { %491 = vmatmul.bf16.vlgmr.msra.gmra.mxu0 %v383_v19  ;;  %v535_v19 = vunpack.c.l.b16 %v3721_v38  ;;  %1211 = vmatpush.bf16.msra.mxu2 %v2661_v18  ;;  %v3368_v18 = vld [vmem:[%s4880_s3 + $0x8] sm:$0xf0] }
  0x2c   : > { %504 = vmatmul.bf16.vlgmr.msra.gmra.mxu1 %v384_v20  ;;  %1224 = vmatpush.bf16.msra.mxu3 %v2757_v27  ;;  %v3392_v27 = vld [vmem:[%s4880_s3 + $0xc8] sm:$0xf0] }
  0x2d   : > { %1253 = vmatpush.bf16.msrb.mxu1 %v2913_v26 }
  0x2f   : > { %1212 = vmatpush.bf16.msra.mxu2 %v2649_v37 }
  0x30   : > { %1225 = vmatpush.bf16.msra.mxu3 %v2745_v0  ;;  %v2650_v0 = vld [vmem:[%s4880_s3 + $0x6c] sm:$0xf0] }
  0x31   : > { %1254 = vmatpush.bf16.msrb.mxu1 %v2901_v30 }
  0x35   : > { %1255 = vmatpush.bf16.msrb.mxu1 %v2889_v42 }
  0xa8   : > { %v492_v45 = vpop.f32.mrf.mxu0 }
  0xa9   : > { %v505_v46 = vpop.f32.mrf.mxu1  ;;  %v493_v47 = vadd.f32 %v3570_v43, %v492_v45 }
  0xab   : > { %v506_v49 = vadd.f32 %v505_v46, %v493_v47 }
  0xad   : > { %vm509_vm2 = vcmp.ge.f32.partialorder %v506_v49, 0.0  ;;  %v510_v50 = vmul.f32 0.2, %v506_v49 }
  0xaf   : > { %v511_v51 = vsel %vm509_vm2, %v506_v49, %v510_v50 }
  0xb0   : > { %v514_v52 = vsel %vm342_vm1, %v511_v51, 0.0  ;;  %v494_v53 = vpop.f32.mrf.mxu0 }
  0xb1   : > { %v507_v54 = vpop.f32.mrf.mxu1  ;;  %v518_v55 = vpack.c.bf16 %v514_v52, %v514_v52 }
  0xb3   : > { %519 = vst.msk [vmem:[#allocation2 + $0x8] sm:$0xf] %vm515_vm0, %v518_v55 }
  0xba   : > { %v527_v10 = vld [vmem:[#allocation2 + $0x8] sm:$0xf] }
  0xbb   : > { %v523_v11 = vld [vmem:[#allocation2 + $0x8] sm:$0x3]  ;;  %v531_v12 = vld [vmem:[#allocation2 + $0x8] sm:$0xc]  ;;  %v559_v13 = vunpack.c.l.b16 %v527_v10  ;;  %v3398_v10 = vld [vmem:[%s4880_s3 + $0xf8] sm:$0xf0] }
  0xbc   : > { %v536_v14 = vunpack.c.l.b16 %v523_v11  ;;  %v589_v15 = vunpack.c.l.b16 %v531_v12  ;;  %v529_v31 = vld [vmem:[#allocation2 + $0x8] sm:$0xe]  ;;  %v2721_v11 = vor.u32 %v3398_v10, %v2720_v9  ;;  %v2612_v12 = vld [vmem:[%s4880_s3 + $0x18] sm:$0xf] }
  0xbd   : > { %v577_v20 = vpack.c.b16 %v576_v2, %v559_v13  ;;  %v560_v21 = vpack.c.b16 %v559_v13, %v558_v4  ;;  %v564_v26 = vpack.c.b16 %v559_v13, %v559_v13  ;;  %v525_v36 = vld [vmem:[#allocation2 + $0x8] sm:$0x7]  ;;  %v583_v43 = vunpack.c.l.b16 %v529_v31  ;;  %v3371_v13 = vld [vmem:[%s4880_s3 + $0x20] sm:$0xf0]  ;;  %v2864_v31 = vld [vmem:[%s4880_s3 + $0x210] sm:$0xf] }
  0xbe   : > { %v540_v22 = vpack.c.b16 %v536_v14, %v539_v5  ;;  %v602_v23 = vpack.c.b16 %v601_v6, %v589_v15  ;;  %v3786_v40 = vpack.c.b16 %v536_v14, %v535_v19  ;;  %v551_v49 = vunpack.c.l.b16 %v525_v36  ;;  %v2732_v2 = vld [vmem:[%s4880_s3 + $0x108] sm:$0xf]  ;;  %v3374_v6 = vld [vmem:[%s4880_s3 + $0x38] sm:$0xf0]  ;;  %v2708_v14 = vld [vmem:[%s4880_s3 + $0xd8] sm:$0xf] }
  0xbf   : > { %v578_v28 = vrot.slane %v577_v20, 7  ;;  %v561_v29 = vrot.slane %v560_v21, 2  ;;  %v566_v33 = vshrl.u32 %v564_v26, 16  ;;  %v569_v35 = vshll.u32 %v564_v26, 16  ;;  %v2876_v20 = vld [vmem:[%s4880_s3 + $0x228] sm:$0xf] }
  0xc0   : > { %v544_v30 = vshll.u32 %v540_v22, 16  ;;  %v603_v32 = vrot.slane %v602_v23, 1  ;;  %v542_v38 = vshrl.u32 %v540_v22, 16  ;;  %v585_v53 = vpack.c.b16 %v584_v44, %v583_v43  ;;  %v3437_v21 = vld [vmem:[%s4880_s3 + $0x230] sm:$0xf0] }
  0xc1   : > { %579 = vrot.lane.b32.xlu2 %v578_v28, %s3581_s13  ;;  %562 = vrot.lane.b32.xlu1 %v561_v29, %s3582_s14  ;;  %v568_v46 = vrot.slane %v566_v33, 6  ;;  %v571_v47 = vrot.slane %v569_v35, 7  ;;  %v552_v55 = vpack.c.b16 %v551_v49, %v539_v5  ;;  %v590_v56 = vpack.c.b16 %v584_v44, %v589_v15  ;;  %v2624_v5 = vld [vmem:[%s4880_s3 + $0x30] sm:$0xf]  ;;  %v3388_v22 = vld [vmem:[%s4880_s3 + $0xac] sm:$0xf] }
  0xc2   : > { %v546_v39 = vrot.slane %v544_v30, 1  ;;  %v764_v41 = vshrl.u32 %v603_v32, 16  ;;  %v767_v42 = vshll.u32 %v603_v32, 16  ;;  %v2637_v4 = vor.u32 %v3377_v1, %v2636_v63  ;;  %v2696_v26 = vld [vmem:[%s4880_s3 + $0xc0] sm:$0xf] }
  0xc3   : > { %v572_v54 = vor.u32 %v571_v47, %v568_v46  ;;  %v553_v34 = vrot.slane %v552_v55, 1  ;;  %v594_v57 = vshll.u32 %v590_v56, 16  ;;  %v592_v59 = vshrl.u32 %v590_v56, 16  ;;  %v3412_v29 = vld [vmem:[%s4880_s3 + $0x16c] sm:$0xf] }
  0xc4   : > { %v547_v45 = vor.u32 %v546_v39, %v542_v38  ;;  %v766_v50 = vrot.slane %v764_v41, 1  ;;  %v769_v51 = vrot.slane %v767_v42, 2  ;;  %v2733_v7 = vor.u32 %v3401_v3, %v2732_v2  ;;  %1213 = vmatpush.bf16.msra.mxu2 %v2637_v4  ;;  %v2782_v30 = vld [vmem:[%s4880_s3 + $0x174] sm:$0xf0]  ;;  %v3434_v32 = vld [vmem:[%s4880_s3 + $0x218] sm:$0xf0] }
  0xc5   : > { %v596_v58 = vrot.slane %v594_v57, 1  ;;  %v2625_v8 = vor.u32 %v3374_v6, %v2624_v5  ;;  %v2613_v15 = vor.u32 %v3371_v13, %v2612_v12  ;;  %v2709_v19 = vor.u32 %v3395_v16, %v2708_v14  ;;  %v3385_v33 = vld [vmem:[%s4880_s3 + $0x94] sm:$0xf]  ;;  %v2674_v35 = vld [vmem:[%s4880_s3 + $0x9c] sm:$0xf0] }
  0xc6   : > { %548 = vrot.lane.b32.xlu0 %v547_v45, %s3583_s15  ;;  %v3790_v52 = vor.u32 %v769_v51, %v766_v50  ;;  %1226 = vmatpush.bf16.msra.mxu3 %v2733_v7  ;;  %v2601_v23 = vor.u32 %v3368_v18, %v2600_v17  ;;  %v2877_v24 = vor.u32 %v3437_v21, %v2876_v20  ;;  %v3436_v38 = vld [vmem:[%s4880_s3 + $0x22c] sm:$0xf]  ;;  %v2878_v39 = vld [vmem:[%s4880_s3 + $0x234] sm:$0xf0]  ;;  %v3431_v44 = vld [vmem:[%s4880_s3 + $0x200] sm:$0xf0] }
  0xc7   : > { %v597_v60 = vor.u32 %v596_v58, %v592_v59  ;;  %v2689_v28 = vor.u32 %v3388_v22, %v2686_v25  ;;  %v2697_v36 = vor.u32 %v3392_v27, %v2696_v26  ;;  %v2865_v37 = vor.u32 %v3434_v32, %v2864_v31  ;;  %v2852_v43 = vld [vmem:[%s4880_s3 + $0x1f8] sm:$0xf]  ;;  %v3409_v46 = vld [vmem:[%s4880_s3 + $0x154] sm:$0xf]  ;;  %v2770_v47 = vld [vmem:[%s4880_s3 + $0x15c] sm:$0xf0] }
  0xc8   : > { %2922 = vmatmul.msk.bf16.vlgmr.msrb.gmra.mxu1 %vm604_vm3, %v3790_v52  ;;  %1214 = vmatpush.bf16.msra.mxu2 %v2625_v8  ;;  %v2785_v41 = vor.u32 %v3412_v29, %v2782_v30  ;;  %v2881_v42 = vor.u32 %v3436_v38, %v2878_v39  ;;  %v2677_v45 = vor.u32 %v3385_v33, %v2674_v35  ;;  %v3382_v50 = vld [vmem:[%s4880_s3 + $0x7c] sm:$0xf]  ;;  %v2662_v51 = vld [vmem:[%s4880_s3 + $0x84] sm:$0xf0]  ;;  %v3433_v55 = vld [vmem:[%s4880_s3 + $0x214] sm:$0xf] }
  0xc9   : > { %586 = vrot.lane.b32.xlu2 %v585_v53, %s3584_s16  ;;  %573 = vrot.lane.b32.xlu1 %v572_v54, %s3585_s17  ;;  %v2853_v49 = vor.u32 %v3431_v44, %v2852_v43  ;;  %v2773_v53 = vor.u32 %v3409_v46, %v2770_v47  ;;  %v2665_v54 = vor.u32 %v3382_v50, %v2662_v51  ;;  %v2866_v56 = vld [vmem:[%s4880_s3 + $0x21c] sm:$0xf0]  ;;  %v2758_v58 = vld [vmem:[%s4880_s3 + $0x144] sm:$0xf0] }
  0xca   : > { %1227 = vmatpush.bf16.msra.mxu3 %v2721_v11  ;;  %1235 = vmatpush.bf16.msrb.mxu0 %v2877_v24  ;;  %v2869_v57 = vor.u32 %v3433_v55, %v2866_v56  ;;  %v2840_v59 = vld [vmem:[%s4880_s3 + $0x1e0] sm:$0xf]  ;;  %v3379_v63 = vld [vmem:[%s4880_s3 + $0x64] sm:$0xf]  ;;  %v3430_v2 = vld [vmem:[%s4880_s3 + $0x1fc] sm:$0xf] }
  0xcb   : > { %1287 = vmatpush.bf16.msra.mxu1 %v2881_v42  ;;  %v2653_v1 = vor.u32 %v3379_v63, %v2650_v0  ;;  %v2854_v3 = vld [vmem:[%s4880_s3 + $0x204] sm:$0xf0]  ;;  %v3403_v4 = vld [vmem:[%s4880_s3 + $0x124] sm:$0xf]  ;;  %v2746_v6 = vld [vmem:[%s4880_s3 + $0x12c] sm:$0xf0] }
  0xcc   : > { %1215 = vmatpush.bf16.msra.mxu2 %v2613_v15  ;;  %v2857_v5 = vor.u32 %v3430_v2, %v2854_v3  ;;  %v2828_v7 = vld [vmem:[%s4880_s3 + $0x1c8] sm:$0xf]  ;;  %v3425_v8 = vld [vmem:[%s4880_s3 + $0x1d0] sm:$0xf0]  ;;  %v2749_v9 = vor.u32 %v3403_v4, %v2746_v6  ;;  %v3376_v11 = vld [vmem:[%s4880_s3 + $0x4c] sm:$0xf] }
  0xcd   : > { %v2829_v10 = vor.u32 %v3425_v8, %v2828_v7  ;;  %v2638_v12 = vld [vmem:[%s4880_s3 + $0x54] sm:$0xf0]  ;;  %v3427_v14 = vld [vmem:[%s4880_s3 + $0x1e4] sm:$0xf]  ;;  %v2842_v15 = vld [vmem:[%s4880_s3 + $0x1ec] sm:$0xf0] }
  0xce   : > { %554 = vrot.lane.b32.xlu0 %v553_v34, %s3586_s18  ;;  %1228 = vmatpush.bf16.msra.mxu3 %v2709_v19  ;;  %v3406_v34 = vld [vmem:[%s4880_s3 + $0x13c] sm:$0xf]  ;;  %v2641_v13 = vor.u32 %v3376_v11, %v2638_v12  ;;  %v3400_v16 = vld [vmem:[%s4880_s3 + $0x10c] sm:$0xf]  ;;  %v2845_v17 = vor.u32 %v3427_v14, %v2842_v15  ;;  %v2734_v18 = vld [vmem:[%s4880_s3 + $0x114] sm:$0xf0] }
  0xcf   : > { %1236 = vmatpush.bf16.msrb.mxu0 %v2865_v37  ;;  %v2761_v61 = vor.u32 %v3406_v34, %v2758_v58  ;;  %1288 = vmatpush.bf16.msra.mxu1 %v2869_v57  ;;  %v2816_v19 = vld [vmem:[%s4880_s3 + $0x1b0] sm:$0xf]  ;;  %v3422_v20 = vld [vmem:[%s4880_s3 + $0x1b8] sm:$0xf0]  ;;  %v2737_v21 = vor.u32 %v3400_v16, %v2734_v18  ;;  %v2626_v24 = vld [vmem:[%s4880_s3 + $0x3c] sm:$0xf0] }
  0xd0   : > { %1216 = vmatpush.bf16.msra.mxu2 %v2601_v23  ;;  %v2817_v22 = vor.u32 %v3422_v20, %v2816_v19  ;;  %v3373_v23 = vld [vmem:[%s4880_s3 + $0x34] sm:$0xf]  ;;  %v3424_v26 = vld [vmem:[%s4880_s3 + $0x1cc] sm:$0xf]  ;;  %v2830_v27 = vld [vmem:[%s4880_s3 + $0x1d4] sm:$0xf0] }
  0xd1   : > { %v2629_v25 = vor.u32 %v3373_v23, %v2626_v24  ;;  %v3397_v29 = vld [vmem:[%s4880_s3 + $0xf4] sm:$0xf]  ;;  %v2722_v30 = vld [vmem:[%s4880_s3 + $0xfc] sm:$0xf0]  ;;  %v2804_v32 = vld [vmem:[%s4880_s3 + $0x198] sm:$0xf] }
  0xd2   : > { %1229 = vmatpush.bf16.msra.mxu3 %v2697_v36  ;;  %v2725_v31 = vor.u32 %v3397_v29, %v2722_v30  ;;  %v3419_v33 = vld [vmem:[%s4880_s3 + $0x1a0] sm:$0xf0]  ;;  %v3370_v35 = vld [vmem:[%s4880_s3 + $0x1c] sm:$0xf]  ;;  %v2614_v37 = vld [vmem:[%s4880_s3 + $0x24] sm:$0xf0] }
  0xd3   : > { %1237 = vmatpush.bf16.msrb.mxu0 %v2853_v49  ;;  %1289 = vmatpush.bf16.msra.mxu1 %v2857_v5  ;;  %v2805_v36 = vor.u32 %v3419_v33, %v2804_v32  ;;  %v2617_v38 = vor.u32 %v3370_v35, %v2614_v37  ;;  %v3421_v39 = vld [vmem:[%s4880_s3 + $0x1b4] sm:$0xf]  ;;  %v3394_v42 = vld [vmem:[%s4880_s3 + $0xdc] sm:$0xf]  ;;  %v2710_v44 = vld [vmem:[%s4880_s3 + $0xe4] sm:$0xf0] }
  0xd4   : > { %1261 = vmatpush.bf16.msrb.mxu2 %v2689_v28  ;;  %v2833_v28 = vor.u32 %v3424_v26, %v2830_v27  ;;  %v3416_v46 = vld [vmem:[%s4880_s3 + $0x188] sm:$0xf0]  ;;  %v2713_v47 = vor.u32 %v3394_v42, %v2710_v44  ;;  %v3367_v50 = vld [vmem:[%s4880_s3 + $0x4] sm:$0xf]  ;;  %v2602_v51 = vld [vmem:[%s4880_s3 + $0xc] sm:$0xf0] }
  0xd5   : > { %v2914_v55 = vld [vmem:[%s4880_s3 + $0x27c] sm:$0xf0]  ;;  %v3418_v34 = vld [vmem:[%s4880_s3 + $0x19c] sm:$0xf]  ;;  %v2806_v57 = vld [vmem:[%s4880_s3 + $0x1a4] sm:$0xf0] }
  0xd6   : > { %598 = vrot.lane.b32.xlu0 %v597_v60, %s3587_s19  ;;  %1274 = vmatpush.bf16.msrb.mxu3 %v2785_v41  ;;  %v3428_v60 = vld [vmem:[%s4880_s3 + $0x1e8] sm:$0xf0]  ;;  %v2818_v41 = vld [vmem:[%s4880_s3 + $0x1bc] sm:$0xf0]  ;;  %v2809_v58 = vor.u32 %v3418_v34, %v2806_v57  ;;  %v2902_v63 = vld [vmem:[%s4880_s3 + $0x264] sm:$0xf0] }
  0xd7   : > { %v2841_v62 = vor.u32 %v3428_v60, %v2840_v59  ;;  %1290 = vmatpush.bf16.msra.mxu1 %v2845_v17  ;;  %v2821_v43 = vor.u32 %v3421_v39, %v2818_v41  ;;  %v3391_v59 = vld [vmem:[%s4880_s3 + $0xc4] sm:$0xf]  ;;  %v2698_v60 = vld [vmem:[%s4880_s3 + $0xcc] sm:$0xf0]  ;;  %v2920_v7 = vld [vmem:[%s4880_s3 + $0x278] sm:$0xf] }
  0xd8   : > { %1262 = vmatpush.bf16.msrb.mxu2 %v2677_v45  ;;  %v2792_v45 = vld [vmem:[%s4880_s3 + $0x180] sm:$0xf]  ;;  %v2794_v2 = vld [vmem:[%s4880_s3 + $0x18c] sm:$0xf0]  ;;  %v3439_v4 = vld [vmem:[%s4880_s3 + $0x244] sm:$0xf] }
  0xd9   : > { %1238 = vmatpush.bf16.msrb.mxu0 %v2841_v62  ;;  %v2793_v49 = vor.u32 %v3416_v46, %v2792_v45  ;;  %v3442_v62 = vld [vmem:[%s4880_s3 + $0x25c] sm:$0xf]  ;;  %v2890_v5 = vld [vmem:[%s4880_s3 + $0x24c] sm:$0xf0]  ;;  %v3447_v8 = vld [vmem:[%s4880_s3 + $0x280] sm:$0xf0] }
  0xda   : > { %1275 = vmatpush.bf16.msrb.mxu3 %v2773_v53  ;;  %v3445_v53 = vld [vmem:[%s4880_s3 + $0x274] sm:$0xf]  ;;  %v2905_v0 = vor.u32 %v3442_v62, %v2902_v63  ;;  %v2893_v6 = vor.u32 %v3439_v4, %v2890_v5  ;;  %v2908_v12 = vld [vmem:[%s4880_s3 + $0x260] sm:$0xf]  ;;  %v2896_v16 = vld [vmem:[%s4880_s3 + $0x248] sm:$0xf] }
  0xdb   : > { %1291 = vmatpush.bf16.msra.mxu1 %v2833_v28  ;;  %v2917_v56 = vor.u32 %v3445_v53, %v2914_v55  ;;  %v3441_v17 = vld [vmem:[%s4880_s3 + $0x250] sm:$0xf0]  ;;  %v2692_v27 = vld [vmem:[%s4880_s3 + $0xb0] sm:$0xf]  ;;  %v3414_v35 = vld [vmem:[%s4880_s3 + $0x178] sm:$0xf0] }
  0xdc   : > { %1263 = vmatpush.bf16.msrb.mxu2 %v2665_v54  ;;  %v2605_v54 = vor.u32 %v3367_v50, %v2602_v51  ;;  %v2897_v18 = vor.u32 %v3441_v17, %v2896_v16  ;;  %v2788_v29 = vld [vmem:[%s4880_s3 + $0x170] sm:$0xf]  ;;  %v3387_v44 = vld [vmem:[%s4880_s3 + $0xa0] sm:$0xf0]  ;;  %v2776_v50 = vld [vmem:[%s4880_s3 + $0x158] sm:$0xf] }
  0xdd   : > { %1239 = vmatpush.bf16.msrb.mxu0 %v2829_v10  ;;  %v2921_v10 = vor.u32 %v3447_v8, %v2920_v7  ;;  %v2789_v45 = vor.u32 %v3414_v35, %v2788_v29  ;;  %v3411_v51 = vld [vmem:[%s4880_s3 + $0x160] sm:$0xf0]  ;;  %v2668_v55 = vld [vmem:[%s4880_s3 + $0x80] sm:$0xf]  ;;  %v2872_v7 = vld [vmem:[%s4880_s3 + $0x218] sm:$0xf] }
  0xde   : > { %1276 = vmatpush.bf16.msrb.mxu3 %v2761_v61  ;;  %v2701_v61 = vor.u32 %v3391_v59, %v2698_v60  ;;  %v3438_v59 = vld [vmem:[%s4880_s3 + $0x238] sm:$0xf0]  ;;  %v2777_v60 = vor.u32 %v3411_v51, %v2776_v50  ;;  %v2764_v63 = vld [vmem:[%s4880_s3 + $0x140] sm:$0xf]  ;;  %v3435_v8 = vld [vmem:[%s4880_s3 + $0x220] sm:$0xf0] }
  0xdf   : > { %1292 = vmatpush.bf16.msra.mxu1 %v2821_v43  ;;  %v2680_v43 = vld [vmem:[%s4880_s3 + $0x98] sm:$0xf]  ;;  %v3378_v16 = vld [vmem:[%s4880_s3 + $0x58] sm:$0xf0]  ;;  %v2860_v17 = vld [vmem:[%s4880_s3 + $0x200] sm:$0xf] }
  0xe0   : > { %1264 = vmatpush.bf16.msrb.mxu2 %v2653_v1  ;;  %v3415_v1 = vld [vmem:[%s4880_s3 + $0x184] sm:$0xf]  ;;  %v2620_v35 = vld [vmem:[%s4880_s3 + $0x20] sm:$0xf]  ;;  %v2608_v50 = vld [vmem:[%s4880_s3 + $0x8] sm:$0xf] }
  0xe1   : > { %1240 = vmatpush.bf16.msrb.mxu0 %v2817_v22  ;;  %v2797_v3 = vor.u32 %v3415_v1, %v2794_v2  ;;  %v3369_v51 = vld [vmem:[%s4880_s3 + $0x10] sm:$0xf0] }
  0xe2   : > { %1277 = vmatpush.bf16.msrb.mxu3 %v2749_v9 }
  0xe3   : > { %1293 = vmatpush.bf16.msra.mxu1 %v2809_v58  ;;  %v2884_v58 = vld [vmem:[%s4880_s3 + $0x230] sm:$0xf] }
  0xe4   : > { %1265 = vmatpush.bf16.msrb.mxu2 %v2641_v13  ;;  %v3444_v13 = vld [vmem:[%s4880_s3 + $0x268] sm:$0xf0]  ;;  %v2885_v2 = vor.u32 %v3438_v59, %v2884_v58  ;;  %v2609_v58 = vor.u32 %v3369_v51, %v2608_v50 }
  0xe5   : > { %1241 = vmatpush.bf16.msrb.mxu0 %v2805_v36  ;;  %v2909_v15 = vor.u32 %v3444_v13, %v2908_v12  ;;  %v3455_v12 = vld [vmem:[%s4882_s5 + $0x38] sm:$0xff] }
  0xe6   : > { %1278 = vmatpush.bf16.msrb.mxu3 %v2737_v21 }
  0xe7   : > { %1294 = vmatpush.bf16.msra.mxu1 %v2797_v3  ;;  %v2656_v3 = vld [vmem:[%s4880_s3 + $0x68] sm:$0xf] }
  0xe8   : > { %1266 = vmatpush.bf16.msrb.mxu2 %v2629_v25 }
  0xe9   : > { %1242 = vmatpush.bf16.msrb.mxu0 %v2793_v49 }
  0xea   : > { %1279 = vmatpush.bf16.msrb.mxu3 %v2725_v31 }
  0xeb   : > { %1357 = vmatpush.bf16.msrb.mxu1 %v2921_v10  ;;  %v2752_v10 = vld [vmem:[%s4880_s3 + $0x128] sm:$0xf] }
  0xec   : > { %1267 = vmatpush.bf16.msrb.mxu2 %v2617_v38 }
  0xed   : > { %1305 = vmatpush.bf16.msra.mxu0 %v2917_v56  ;;  %v3384_v56 = vld [vmem:[%s4880_s3 + $0x88] sm:$0xf0] }
  0xee   : > { %1280 = vmatpush.bf16.msrb.mxu3 %v2713_v47  ;;  %v2669_v1 = vor.u32 %v3384_v56, %v2668_v55  ;;  %v3451_v55 = vld [vmem:[%s4882_s5 + $0x18] sm:$0xff] }
  0xef   : > { %1358 = vmatpush.bf16.msrb.mxu1 %v2909_v15  ;;  %v2644_v15 = vld [vmem:[%s4880_s3 + $0x50] sm:$0xf] }
  0xf0   : > { %1268 = vmatpush.bf16.msrb.mxu2 %v2605_v54  ;;  %v2681_v54 = vor.u32 %v3387_v44, %v2680_v43  ;;  %v2716_v44 = vld [vmem:[%s4880_s3 + $0xe0] sm:$0xf] }
  0xf1   : > { %1306 = vmatpush.bf16.msra.mxu0 %v2905_v0  ;;  %v3408_v0 = vld [vmem:[%s4880_s3 + $0x148] sm:$0xf0] }
  0xf2   : > { %1281 = vmatpush.bf16.msrb.mxu3 %v2701_v61 }
  0xf3   : > { %1359 = vmatpush.bf16.msrb.mxu1 %v2897_v18  ;;  %v3432_v18 = vld [vmem:[%s4880_s3 + $0x208] sm:$0xf0] }
  0xf5   : > { %1307 = vmatpush.bf16.msra.mxu0 %v2893_v6  ;;  %v3381_v6 = vld [vmem:[%s4880_s3 + $0x70] sm:$0xf0] }
  0xf6   : > { %v2657_v13 = vor.u32 %v3381_v6, %v2656_v3  ;;  %v3450_v3 = vld [vmem:[%s4882_s5 + $0x10] sm:$0xff]  ;;  %v3460_v6 = vld [vmem:[%s4882_s5 + $0x60] sm:$0xff] }
 0x11b   : > { %v580_v14 = vpop.permute.xlu2 %579 }
 0x123   : > { %v587_v36 = vpop.permute.xlu2 %586 }
 0x124   : > { %v622_v46 = vsel %vm620_vm8, %v580_v14, %v587_v36  ;;  %v3372_v36 = vld [vmem:[%s4880_s3 + $0x28] sm:$0xf0] }
 0x133   : > { %v563_v9 = vpop.permute.xlu1 %562 }
 0x138   : > { %v549_v11 = vpop.permute.xlu0 %548 }
 0x139   : > { %v607_v19 = vsel %vm604_vm3, %v3786_v40, %v549_v11  ;;  %v3390_v40 = vld [vmem:[%s4880_s3 + $0xb8] sm:$0xf0]  ;;  %v3405_v11 = vld [vmem:[%s4880_s3 + $0x130] sm:$0xf0] }
 0x13a   : > { %v2693_v37 = vor.u32 %v3390_v40, %v2692_v27  ;;  %v2848_v27 = vld [vmem:[%s4880_s3 + $0x1e8] sm:$0xf]  ;;  %v3429_v40 = vld [vmem:[%s4880_s3 + $0x1f0] sm:$0xf0] }
 0x13b   : > { %v574_v21 = vpop.permute.xlu1 %573 }
 0x140   : > { %v555_v20 = vpop.permute.xlu0 %554 }
 0x141   : > { %v610_v22 = vsel %vm608_vm4, %v607_v19, %v555_v20  ;;  %v613_v23 = vsel %vm611_vm5, %v555_v20, %v563_v9  ;;  %v2765_v9 = vor.u32 %v3408_v0, %v2764_v63  ;;  %v3454_v19 = vld [vmem:[%s4882_s5 + $0x30] sm:$0xff]  ;;  %v2753_v20 = vor.u32 %v3405_v11, %v2752_v10  ;;  %v2800_v0 = vld [vmem:[%s4880_s3 + $0x188] sm:$0xf] }
 0x142   : > { %v616_v24 = vsel %vm614_vm6, %v613_v23, %v574_v21  ;;  %v742_v25 = vshrl.u32 %v610_v22, 16  ;;  %v745_v26 = vshll.u32 %v610_v22, 16  ;;  %v2740_v21 = vld [vmem:[%s4880_s3 + $0x110] sm:$0xf]  ;;  %v3402_v22 = vld [vmem:[%s4880_s3 + $0x118] sm:$0xf0]  ;;  %v2645_v23 = vor.u32 %v3378_v16, %v2644_v15 }
 0x143   : > { %v619_v28 = vsel %vm617_vm7, %v616_v24, %v580_v14  ;;  %v2873_v14 = vor.u32 %v3435_v8, %v2872_v7  ;;  %v2861_v24 = vor.u32 %v3432_v18, %v2860_v17  ;;  %v2741_v29 = vor.u32 %v3402_v22, %v2740_v21  ;;  %v3471_v7 = vld [vmem:[%s4882_s5 + $0xb8] sm:$0xff]  ;;  %v3470_v10 = vld [vmem:[%s4882_s5 + $0xb0] sm:$0xff]  ;;  %v3457_v11 = vld [vmem:[%s4882_s5 + $0x48] sm:$0xff] }
 0x144   : > { %v744_v30 = vrot.slane %v742_v25, 1  ;;  %v747_v31 = vrot.slane %v745_v26, 2  ;;  %v749_v32 = vshrl.u32 %v619_v28, 16  ;;  %v752_v33 = vshll.u32 %v619_v28, 16  ;;  %v2632_v25 = vld [vmem:[%s4880_s3 + $0x38] sm:$0xf] }
 0x145   : > { %v4098_v38 = vpop.f32.mrf.mxu1  ;;  %v3375_v26 = vld [vmem:[%s4880_s3 + $0x40] sm:$0xf0]  ;;  %v3453_v28 = vld [vmem:[%s4882_s5 + $0x28] sm:$0xff]  ;;  %v3459_v8 = vld [vmem:[%s4882_s5 + $0x58] sm:$0xff] }
 0x146   : > { %v4100_v39 = vor.u32 %v747_v31, %v744_v30  ;;  %v751_v41 = vrot.slane %v749_v32, 1  ;;  %v754_v42 = vrot.slane %v752_v33, 2  ;;  %v2728_v30 = vld [vmem:[%s4880_s3 + $0xf8] sm:$0xf]  ;;  %v3399_v31 = vld [vmem:[%s4880_s3 + $0x100] sm:$0xf0]  ;;  %v2633_v32 = vor.u32 %v3375_v26, %v2632_v25 }
 0x147   : > { %v2849_v33 = vor.u32 %v3429_v40, %v2848_v27  ;;  %v2729_v43 = vor.u32 %v3399_v31, %v2728_v30  ;;  %v3468_v15 = vld [vmem:[%s4882_s5 + $0xa0] sm:$0xff]  ;;  %v3467_v17 = vld [vmem:[%s4882_s5 + $0x98] sm:$0xff]  ;;  %v3466_v25 = vld [vmem:[%s4882_s5 + $0x90] sm:$0xff] }
 0x148   : > { %v599_v47 = vpop.permute.xlu0 %598  ;;  %1217 = vmatmul.bf16.vlgmr.msra.gmra.mxu2 %v4100_v39  ;;  %v4110_v49 = vor.u32 %v754_v42, %v751_v41  ;;  %v3426_v41 = vld [vmem:[%s4880_s3 + $0x1d8] sm:$0xf0]  ;;  %v3452_v42 = vld [vmem:[%s4882_s5 + $0x20] sm:$0xff] }
 0x149   : > { %v625_v53 = vsel %vm623_vm9, %v622_v46, %v599_v47  ;;  %1313 = vmatpush.bf16.msra.mxu2 %v2693_v37  ;;  %v2836_v37 = vld [vmem:[%s4880_s3 + $0x1d0] sm:$0xf]  ;;  %v2621_v46 = vor.u32 %v3372_v36, %v2620_v35  ;;  %v3464_v35 = vld [vmem:[%s4882_s5 + $0x80] sm:$0xff] }
 0x14a   : > { %v756_v34 = vshrl.u32 %v625_v53, 16  ;;  %v759_v57 = vshll.u32 %v625_v53, 16  ;;  %1230 = vmatmul.bf16.vlgmr.msra.gmra.mxu3 %v4110_v49  ;;  %v2837_v47 = vor.u32 %v3426_v41, %v2836_v37  ;;  %v2824_v53 = vld [vmem:[%s4880_s3 + $0x1b8] sm:$0xf] }
 0x14b   : > { %1326 = vmatpush.bf16.msra.mxu3 %v2789_v45  ;;  %v3396_v45 = vld [vmem:[%s4880_s3 + $0xe8] sm:$0xf0] }
 0x14c   : > { %v758_v61 = vrot.slane %v756_v34, 1  ;;  %v761_v62 = vrot.slane %v759_v57, 2  ;;  %v2717_v56 = vor.u32 %v3396_v45, %v2716_v44  ;;  %v2704_v34 = vld [vmem:[%s4880_s3 + $0xc8] sm:$0xf]  ;;  %v3393_v57 = vld [vmem:[%s4880_s3 + $0xd0] sm:$0xf0] }
 0x14d   : > { %1314 = vmatpush.bf16.msra.mxu2 %v2681_v54  ;;  %v1259_v4 = vpop.f32.mrf.mxu1  ;;  %v3423_v54 = vld [vmem:[%s4880_s3 + $0x1c0] sm:$0xf0] }
 0x14e   : > { %v4141_v5 = vor.u32 %v761_v62, %v758_v61  ;;  %v2825_v59 = vor.u32 %v3423_v54, %v2824_v53  ;;  %v3463_v61 = vld [vmem:[%s4882_s5 + $0x78] sm:$0xff]  ;;  %v2705_v62 = vor.u32 %v3393_v57, %v2704_v34  ;;  %v3462_v4 = vld [vmem:[%s4882_s5 + $0x70] sm:$0xff] }
 0x14f   : > { %1327 = vmatpush.bf16.msra.mxu3 %v2777_v60  ;;  %v2812_v60 = vld [vmem:[%s4880_s3 + $0x1a0] sm:$0xf] }
 0x150   : > { %1243 = vmatmul.bf16.vlgmr.msrb.gmra.mxu0 %v4141_v5  ;;  %1295 = vmatmul.bf16.vlgmr.msra.gmra.mxu1 %v4141_v5 }
 0x151   : > { %1315 = vmatpush.bf16.msra.mxu2 %v2669_v1  ;;  %1339 = vmatpush.bf16.msrb.mxu0 %v2885_v2  ;;  %v3417_v1 = vld [vmem:[%s4880_s3 + $0x190] sm:$0xf0] }
 0x152   : > { %1573 = vmatpush.bf16.msra.mxu1 %v3455_v12  ;;  %v2801_v2 = vor.u32 %v3417_v1, %v2800_v0  ;;  %v3469_v12 = vld [vmem:[%s4882_s5 + $0xa8] sm:$0xff] }
 0x153   : > { %1328 = vmatpush.bf16.msra.mxu3 %v2765_v9  ;;  %v3458_v9 = vld [vmem:[%s4882_s5 + $0x50] sm:$0xff] }
 0x155   : > { %1316 = vmatpush.bf16.msra.mxu2 %v2657_v13  ;;  %1340 = vmatpush.bf16.msrb.mxu0 %v2873_v14  ;;  %v734_v13 = vld [vmem:[%s4881_s4] sm:$0x7] }
 0x156   : > { %1574 = vmatpush.bf16.msra.mxu1 %v3454_v19  ;;  %v3456_v14 = vld [vmem:[%s4882_s5 + $0x40] sm:$0xff]  ;;  %v736_v16 = vperm.slane %v734_v13, 0  ;;  %v737_v36 = vperm.slane %v734_v13, 1  ;;  %v738_v34 = vperm.slane %v734_v13, 2  ;;  %v3545_v13 = vld [vmem:[%s4884_s7 + $0x248] sm:$0xf0] }
 0x157   : > { %1329 = vmatpush.bf16.msra.mxu3 %v2753_v20 }
 0x158   : > { %1269 = vmatmul.bf16.vlgmr.msrb.gmra.mxu2 %v4100_v39 }
 0x159   : > { %1317 = vmatpush.bf16.msra.mxu2 %v2645_v23  ;;  %1341 = vmatpush.bf16.msrb.mxu0 %v2861_v24 }
 0x15a   : > { %1282 = vmatmul.bf16.vlgmr.msrb.gmra.mxu3 %v4110_v49  ;;  %1575 = vmatpush.bf16.msra.mxu1 %v3453_v28  ;;  %v3465_v28 = vld [vmem:[%s4882_s5 + $0x88] sm:$0xff] }
 0x15b   : > { %1330 = vmatpush.bf16.msra.mxu3 %v2741_v29 }
 0x15d   : > { %1318 = vmatpush.bf16.msra.mxu2 %v2633_v32  ;;  %1342 = vmatpush.bf16.msrb.mxu0 %v2849_v33 }
 0x15e   : > { %1576 = vmatpush.bf16.msra.mxu1 %v3452_v42 }
 0x15f   : > { %1331 = vmatpush.bf16.msra.mxu3 %v2729_v43 }
 0x160   : > { %2923 = vmatmul.msk.bf16.vlgmr.msra.gmra.mxu0 %vm604_vm3, %v3790_v52  ;;  %2924 = vmatmul.msk.bf16.vlgmr.msrb.gmra.mxu1 %vm604_vm3, %v3790_v52  ;;  %v3420_v52 = vld [vmem:[%s4880_s3 + $0x1a8] sm:$0xf0] }
 0x161   : > { %1319 = vmatpush.bf16.msra.mxu2 %v2621_v46  ;;  %1343 = vmatpush.bf16.msrb.mxu0 %v2837_v47  ;;  %v2813_v63 = vor.u32 %v3420_v52, %v2812_v60 }
 0x162   : > { %1577 = vmatpush.bf16.msra.mxu1 %v3451_v55 }
 0x163   : > { %1332 = vmatpush.bf16.msra.mxu3 %v2717_v56 }
 0x165   : > { %1320 = vmatpush.bf16.msra.mxu2 %v2609_v58  ;;  %1344 = vmatpush.bf16.msrb.mxu0 %v2825_v59 }
 0x166   : > { %1578 = vmatpush.bf16.msra.mxu1 %v3450_v3 }
 0x167   : > { %1333 = vmatpush.bf16.msra.mxu3 %v2705_v62 }
 0x168   : > { %1321 = vmatmul.bf16.vlgmr.msra.gmra.mxu2 %v4100_v39  ;;  %v3449_v39 = vld [vmem:[%s4882_s5 + $0x8] sm:$0xff] }
 0x169   : > { %1586 = vmatpush.bf16.msrb.mxu2 %v3463_v61  ;;  %1345 = vmatpush.bf16.msrb.mxu0 %v2813_v63 }
 0x16a   : > { %1334 = vmatmul.bf16.vlgmr.msra.gmra.mxu3 %v4110_v49  ;;  %v3461_v49 = vld [vmem:[%s4882_s5 + $0x68] sm:$0xff]  ;;  %1579 = vmatpush.bf16.msra.mxu1 %v3449_v39 }
 0x16b   : > { %1599 = vmatpush.bf16.msrb.mxu3 %v3471_v7 }
 0x16d   : > { %1346 = vmatpush.bf16.msrb.mxu0 %v2801_v2  ;;  %1587 = vmatpush.bf16.msrb.mxu2 %v3462_v4 }
 0x16f   : > { %1600 = vmatpush.bf16.msrb.mxu3 %v3470_v10  ;;  %v3548_v10 = vld [vmem:[%s4884_s7 + $0x260] sm:$0xf0] }
 0x170   : > { %1347 = vmatmul.bf16.vlgmr.msrb.gmra.mxu0 %v4141_v5  ;;  %v3448_v5 = vld [vmem:[%s4882_s5] sm:$0xff] }
 0x171   : > { %1588 = vmatpush.bf16.msrb.mxu2 %v3461_v49  ;;  %1580 = vmatpush.bf16.msra.mxu1 %v3448_v5  ;;  %v3335_v5 = vld [vmem:[%s4884_s7 + $0x270] sm:$0xf] }
 0x173   : > { %1601 = vmatpush.bf16.msrb.mxu3 %v3469_v12  ;;  %v3311_v12 = vld [vmem:[%s4884_s7 + $0x240] sm:$0xf] }
 0x175   : > { %1589 = vmatpush.bf16.msrb.mxu2 %v3460_v6  ;;  %v3551_v6 = vld [vmem:[%s4884_s7 + $0x278] sm:$0xf0] }
 0x176   : > { %v3336_v7 = vor.u32 %v3551_v6, %v3335_v5 }
 0x177   : > { %1602 = vmatpush.bf16.msrb.mxu3 %v3468_v15  ;;  %v3312_v15 = vor.u32 %v3545_v13, %v3311_v12 }
 0x179   : > { %1590 = vmatpush.bf16.msrb.mxu2 %v3459_v8 }
 0x17b   : > { %1603 = vmatpush.bf16.msrb.mxu3 %v3467_v17 }
 0x17d   : > { %1591 = vmatpush.bf16.msrb.mxu2 %v3458_v9  ;;  %v3323_v9 = vld [vmem:[%s4884_s7 + $0x258] sm:$0xf] }
 0x17f   : > { %1604 = vmatpush.bf16.msrb.mxu3 %v3466_v25  ;;  %v3107_v25 = vld [vmem:[%s4884_s7 + $0xa8] sm:$0xf] }
 0x181   : > { %1592 = vmatpush.bf16.msrb.mxu2 %v3457_v11  ;;  %v3324_v11 = vor.u32 %v3548_v10, %v3323_v9 }
 0x183   : > { %1605 = vmatpush.bf16.msrb.mxu3 %v3465_v28 }
 0x185   : > { %1593 = vmatpush.bf16.msrb.mxu2 %v3456_v14 }
 0x187   : > { %1606 = vmatpush.bf16.msrb.mxu3 %v3464_v35  ;;  %v1632_v35 = vld [vmem:[#allocation2 + $0xc] sm:$0x7] }
 0x18b   : > { %2346 = vmatpush.bf16.msra.mxu3 %v3336_v7 }
 0x18f   : > { %2347 = vmatpush.bf16.msra.mxu3 %v3324_v11 }
 0x193   : > { %2348 = vmatpush.bf16.msra.mxu3 %v3312_v15 }
 0x1cb   : > { %v1218_v18 = vpop.f32.mrf.mxu2 }
 0x1cc   : > { %v1219_v19 = vadd.f32 %v1218_v18, %v736_v16  ;;  %v3571_v16 = vld [vmem:[%s4883_s6] ss:$0 sm:$0xff] }
 0x1cd   : > { %v1231_v20 = vpop.f32.mrf.mxu3  ;;  %v1244_v21 = vpop.f32.mrf.mxu0 }
 0x1ce   : > { %v1232_v22 = vadd.f32 %v1231_v20, %v1219_v19  ;;  %v1296_v23 = vpop.f32.mrf.mxu1 }
 0x1d0   : > { %v1245_v24 = vadd.f32 %v1244_v21, %v1232_v22 }
 0x1d2   : > { %v1258_v26 = vadd.f32 %v4098_v38, %v1245_v24 }
 0x1d3   : > { %v1220_v27 = vpop.f32.mrf.mxu2 }
 0x1d4   : > { %vm1365_vm10 = vcmp.ge.f32.partialorder %v1258_v26, 0.0  ;;  %v1368_v40 = vmul.f32 0.2, %v1258_v26  ;;  %v3095_v27 = vld [vmem:[%s4884_s7 + $0x90] sm:$0xf] }
 0x1d5   : > { %v1233_v29 = vpop.f32.mrf.mxu3  ;;  %v1246_v30 = vpop.f32.mrf.mxu0 }
 0x1d6   : > { %v1371_v31 = vsel %vm1365_vm10, %v1258_v26, %v1368_v40  ;;  %v1298_v32 = vpop.f32.mrf.mxu1  ;;  %v3494_v26 = vld [vmem:[%s4884_s7 + $0xb0] sm:$0xf0]  ;;  %v3096_v29 = vor.u32 %v3491_v48, %v3095_v27  ;;  %v3083_v30 = vld [vmem:[%s4884_s7 + $0x78] sm:$0xf]  ;;  %v3539_v48 = vld [vmem:[%s4884_s7 + $0x218] sm:$0xf0] }
 0x1d7   : > { %v1374_v33 = vpack.c.bf16 %v1371_v31, %v1371_v31  ;;  %v3108_v28 = vor.u32 %v3494_v26, %v3107_v25  ;;  %v3488_v31 = vld [vmem:[%s4884_s7 + $0x80] sm:$0xf0]  ;;  %v1630_v32 = vld [vmem:[#allocation2 + $0xc] sm:$0x3]  ;;  %v3542_v25 = vld [vmem:[%s4884_s7 + $0x230] sm:$0xf0] }
 0x1d8   : > { %v3059_v26 = vld [vmem:[%s4884_s7 + $0x48] sm:$0xf] }
 0x1d9   : > { %1581 = vmatmul.bf16.vlgmr.msra.gmra.mxu1 %v1374_v33  ;;  %2302 = vmatpush.bf16.msra.mxu0 %v3108_v28  ;;  %v1628_v33 = vld [vmem:[#allocation2 + $0xc] sm:$0x1]  ;;  %v3287_v28 = vld [vmem:[%s4884_s7 + $0x210] sm:$0xf] }
 0x1db   : > { %v1270_v38 = vpop.f32.mrf.mxu2 }
 0x1dc   : > { %v1271_v37 = vadd.f32 %v1270_v38, %v737_v36  ;;  %v1624_v36 = vld [vmem:[#allocation2 + $0x4] sm:$0xc]  ;;  %v3084_v38 = vor.u32 %v3488_v31, %v3083_v30  ;;  %v3047_v30 = vld [vmem:[%s4884_s7 + $0x30] sm:$0xf]  ;;  %v3479_v31 = vld [vmem:[%s4884_s7 + $0x38] sm:$0xf0] }
 0x1dd   : > { %v1283_v41 = vpop.f32.mrf.mxu3  ;;  %v1309_v42 = vpop.f32.mrf.mxu0  ;;  %2303 = vmatpush.bf16.msra.mxu0 %v3096_v29 }
 0x1de   : > { %v1284_v43 = vadd.f32 %v1283_v41, %v1271_v37  ;;  %v1361_v44 = vpop.f32.mrf.mxu1  ;;  %v1684_v37 = vunpack.c.l.b16 %v1630_v32  ;;  %v1676_v41 = vunpack.c.l.b16 %v1628_v33  ;;  %v3203_v32 = vld [vmem:[%s4884_s7 + $0x168] sm:$0xf]  ;;  %v3288_v33 = vor.u32 %v3539_v48, %v3287_v28  ;;  %v3227_v48 = vld [vmem:[%s4884_s7 + $0x198] sm:$0xf] }
 0x1e0   : > { %v1297_v45 = vadd.f32 %v1296_v23, %v1284_v43  ;;  %v3071_v43 = vld [vmem:[%s4884_s7 + $0x60] sm:$0xf] }
 0x1e1   : > { %2304 = vmatpush.bf16.msra.mxu0 %v3084_v38  ;;  %v3205_v38 = vld [vmem:[%s4884_s7 + $0x174] sm:$0xf0] }
 0x1e2   : > { %v1310_v46 = vadd.f32 %v1309_v42, %v1297_v45  ;;  %v1701_v42 = vunpack.c.l.b16 %v1632_v35  ;;  %v3518_v35 = vld [vmem:[%s4884_s7 + $0x170] sm:$0xf0] }
 0x1e3   : > { %v1272_v47 = vpop.f32.mrf.mxu2 }
 0x1e4   : > { %vm1366_vm11 = vcmp.ge.f32.partialorder %v1310_v46, 0.0  ;;  %v1369_v50 = vmul.f32 0.2, %v1310_v46 }
 0x1e5   : > { %v1285_v51 = vpop.f32.mrf.mxu3  ;;  %v1311_v53 = vpop.f32.mrf.mxu0 }
 0x1e6   : > { %v1372_v54 = vsel %vm1366_vm11, %v1310_v46, %v1369_v50  ;;  %v1363_v55 = vpop.f32.mrf.mxu1  ;;  %v1639_v50 = vunpack.c.l.b16 %v1624_v36  ;;  %v3517_v36 = vld [vmem:[%s4884_s7 + $0x16c] sm:$0xf] }
 0x1e7   : > { %v1375_v56 = vpack.c.bf16 %v1372_v54, %v1372_v54 }
 0x1e9   : > { %1594 = vmatmul.bf16.vlgmr.msrb.gmra.mxu2 %v1375_v56 }
 0x1eb   : > { %v1322_v57 = vpop.f32.mrf.mxu2 }
 0x1ec   : > { %v1323_v58 = vadd.f32 %v1322_v57, %v738_v34 }
 0x1ed   : > { %v1335_v59 = vpop.f32.mrf.mxu3  ;;  %v1348_v60 = vpop.f32.mrf.mxu0 }
 0x1ee   : > { %v1336_v52 = vadd.f32 %v1335_v59, %v1323_v58 }
 0x1f0   : > { %v1349_v61 = vadd.f32 %v1348_v60, %v1336_v52 }
 0x1f2   : > { %v1362_v62 = vadd.f32 %v1361_v44, %v1349_v61  ;;  %v3485_v44 = vld [vmem:[%s4884_s7 + $0x68] sm:$0xf0] }
 0x1f3   : > { %v1324_v63 = vpop.f32.mrf.mxu2  ;;  %v3072_v58 = vor.u32 %v3485_v44, %v3071_v43  ;;  %v3275_v43 = vld [vmem:[%s4884_s7 + $0x1f8] sm:$0xf]  ;;  %v3536_v44 = vld [vmem:[%s4884_s7 + $0x200] sm:$0xf0] }
 0x1f4   : > { %vm1367_vm12 = vcmp.ge.f32.partialorder %v1362_v62, 0.0  ;;  %v1370_v0 = vmul.f32 0.2, %v1362_v62 }
 0x1f5   : > { %v1337_v1 = vpop.f32.mrf.mxu3  ;;  %v1350_v2 = vpop.f32.mrf.mxu0  ;;  %2305 = vmatpush.bf16.msra.mxu0 %v3072_v58  ;;  %v3263_v58 = vld [vmem:[%s4884_s7 + $0x1e0] sm:$0xf] }
 0x1f6   : > { %v1373_v3 = vsel %vm1367_vm12, %v1362_v62, %v1370_v0  ;;  %v1626_v2 = vld [vmem:[#allocation2 + $0x4] sm:$0x8] }
 0x1f7   : > { %v1376_v4 = vpack.c.bf16 %v1373_v3, %v1373_v3  ;;  %v1658_v7 = vunpack.c.l.b16 %v1626_v2  ;;  %v3493_v2 = vld [vmem:[%s4884_s7 + $0xac] sm:$0xf] }
 0x1f9   : > { %1607 = vmatmul.bf16.vlgmr.msrb.gmra.mxu3 %v1376_v4 }
 0x256   : > { %v1582_v39 = vpop.f32.mrf.mxu1 }
 0x257   : > { %v1583_v17 = vadd.f32 %v3571_v16, %v1582_v39 }
 0x25e   : > { %v1584_v49 = vpop.f32.mrf.mxu1 }
 0x26c   : > { %v1595_v8 = vpop.f32.mrf.mxu2 }
 0x26d   : > { %v1596_v18 = vadd.f32 %v1595_v8, %v1583_v17 }
 0x274   : > { %v1597_v14 = vpop.f32.mrf.mxu2 }
 0x27c   : > { %v1608_v19 = vpop.f32.mrf.mxu3 }
 0x27d   : > { %v1609_v20 = vadd.f32 %v1608_v19, %v1596_v18 }
 0x27f   : > { %vm1612_vm13 = vcmp.ge.f32.partialorder %v1609_v20, 0.0  ;;  %v1613_v21 = vmul.f32 0.2, %v1609_v20 }
 0x281   : > { %v1614_v22 = vsel %vm1612_vm13, %v1609_v20, %v1613_v21 }
 0x282   : > { %v1615_v23 = vsel %vm342_vm1, %v1614_v22, 0.0 }
 0x283   : > { %v1618_v24 = vpack.c.bf16 %v1615_v23, %v1615_v23 }
 0x284   : > { %v1610_v40 = vpop.f32.mrf.mxu3 }
 0x285   : > { %1619 = vst.msk [vmem:[#allocation2 + $0x8] sm:$0xf] %vm515_vm0, %v1618_v24  ;;  %v3299_v24 = vld [vmem:[%s4884_s7 + $0x228] sm:$0xf]  ;;  %v3482_v40 = vld [vmem:[%s4884_s7 + $0x50] sm:$0xf0] }
 0x286   : > { %v3300_v27 = vor.u32 %v3542_v25, %v3299_v24  ;;  %v3060_v29 = vor.u32 %v3482_v40, %v3059_v26  ;;  %v3487_v24 = vld [vmem:[%s4884_s7 + $0x7c] sm:$0xf]  ;;  %v3085_v25 = vld [vmem:[%s4884_s7 + $0x84] sm:$0xf0]  ;;  %v3505_v26 = vld [vmem:[%s4884_s7 + $0x10c] sm:$0xf] }
 0x287   : > { %v3157_v40 = vld [vmem:[%s4884_s7 + $0x114] sm:$0xf0] }
 0x288   : > { %2328 = vmatpush.bf16.msra.mxu2 %v3300_v27  ;;  %2306 = vmatpush.bf16.msra.mxu0 %v3060_v29  ;;  %v3524_v29 = vld [vmem:[%s4884_s7 + $0x1a0] sm:$0xf0] }
 0x28c   : > { %v1629_v45 = vld [vmem:[#allocation2 + $0x8] sm:$0xe]  ;;  %2329 = vmatpush.bf16.msra.mxu2 %v3288_v33  ;;  %v3143_v33 = vld [vmem:[%s4884_s7 + $0xf0] sm:$0xf] }
 0x28d   : > { %v1627_v46 = vld [vmem:[#allocation2 + $0x8] sm:$0xf]  ;;  %v1683_v51 = vunpack.c.l.b16 %v1629_v45  ;;  %v3035_v45 = vld [vmem:[%s4884_s7 + $0x18] sm:$0xf] }
 0x28e   : > { %v1631_v47 = vld [vmem:[#allocation2 + $0x8] sm:$0xc]  ;;  %v1659_v53 = vunpack.c.l.b16 %v1627_v46  ;;  %v4377_v56 = vld [vmem:[#allocation2 + $0x8] sm:$0x3]  ;;  %v3276_v46 = vor.u32 %v3536_v44, %v3275_v43 }
 0x28f   : > { %v1689_v54 = vunpack.c.l.b16 %v1631_v47  ;;  %v1625_v55 = vld [vmem:[#allocation2 + $0x8] sm:$0x7]  ;;  %v1636_v57 = vunpack.c.l.b16 %v4377_v56  ;;  %v1685_v59 = vpack.c.b16 %v1684_v37, %v1683_v51  ;;  %v3476_v47 = vld [vmem:[%s4884_s7 + $0x20] sm:$0xf0]  ;;  %v3515_v51 = vld [vmem:[%s4884_s7 + $0x158] sm:$0xf0] }
 0x290   : > { %v1651_v34 = vunpack.c.l.b16 %v1625_v55  ;;  %v1677_v60 = vpack.c.b16 %v1676_v41, %v1659_v53  ;;  %v1664_v8 = vpack.c.b16 %v1659_v53, %v1659_v53  ;;  %v1660_v17 = vpack.c.b16 %v1659_v53, %v1658_v7  ;;  %v3514_v55 = vld [vmem:[%s4884_s7 + $0x154] sm:$0xf]  ;;  %2330 = vmatpush.bf16.msra.mxu2 %v3276_v46  ;;  %v3251_v7 = vld [vmem:[%s4884_s7 + $0x1c8] sm:$0xf]  ;;  %v3521_v46 = vld [vmem:[%s4884_s7 + $0x188] sm:$0xf0] }
 0x291   : > { %v1690_v52 = vpack.c.b16 %v1684_v37, %v1689_v54  ;;  %v1702_v61 = vpack.c.b16 %v1701_v42, %v1689_v54  ;;  %v1640_v62 = vpack.c.b16 %v1636_v57, %v1639_v50  ;;  %1686 = vrot.lane.b32.xlu2 %v1685_v59, %s3584_s16  ;;  %v3048_v37 = vor.u32 %v3479_v31, %v3047_v30 }
 0x292   : > { %v1678_v63 = vrot.slane %v1677_v60, 7  ;;  %v1652_v3 = vpack.c.b16 %v1651_v34, %v1639_v50  ;;  %v1666_v18 = vshrl.u32 %v1664_v8, 16  ;;  %v1669_v19 = vshll.u32 %v1664_v8, 16  ;;  %v3191_v50 = vld [vmem:[%s4884_s7 + $0x150] sm:$0xf] }
 0x293   : > { %v1694_v0 = vshll.u32 %v1690_v52, 16  ;;  %v1703_v1 = vrot.slane %v1702_v61, 1  ;;  %v1644_v4 = vshll.u32 %v1640_v62, 16  ;;  %v1692_v39 = vshrl.u32 %v1690_v52, 16  ;;  %2307 = vmatpush.bf16.msra.mxu0 %v3048_v37  ;;  %v3193_v34 = vld [vmem:[%s4884_s7 + $0x15c] sm:$0xf0] }
 0x294   : > { %1679 = vrot.lane.b32.xlu1 %v1678_v63, %s3581_s13  ;;  %v1653_v14 = vrot.slane %v1652_v3, 1  ;;  %v1642_v15 = vshrl.u32 %v1640_v62, 16  ;;  %v1661_v20 = vrot.slane %v1660_v17, 2  ;;  %v1668_v21 = vrot.slane %v1666_v18, 6  ;;  %v3533_v60 = vld [vmem:[%s4884_s7 + $0x1e8] sm:$0xf0] }
 0x295   : > { %v1696_v49 = vrot.slane %v1694_v0, 1  ;;  %v1857_v5 = vshrl.u32 %v1703_v1, 16  ;;  %v1860_v6 = vshll.u32 %v1703_v1, 16  ;;  %v1646_v12 = vrot.slane %v1644_v4, 1  ;;  %v3023_v52 = vld [vmem:[%s4884_s7] sm:$0xf] }
 0x296   : > { %v1671_v22 = vrot.slane %v1669_v19, 7  ;;  %v3204_v41 = vor.u32 %v3518_v35, %v3203_v32  ;;  %v3208_v42 = vor.u32 %v3517_v36, %v3205_v38  ;;  %v3036_v53 = vor.u32 %v3476_v47, %v3035_v45  ;;  %v3473_v61 = vld [vmem:[%s4884_s7 + $0x8] sm:$0xf0]  ;;  %v3179_v0 = vld [vmem:[%s4884_s7 + $0x138] sm:$0xf] }
 0x297   : > { %v1697_v9 = vor.u32 %v1696_v49, %v1692_v39  ;;  %v1859_v10 = vrot.slane %v1857_v5, 1  ;;  %v1862_v11 = vrot.slane %v1860_v6, 2  ;;  %v1647_v16 = vor.u32 %v1646_v12, %v1642_v15  ;;  %v3512_v1 = vld [vmem:[%s4884_s7 + $0x140] sm:$0xf0]  ;;  %v3109_v4 = vld [vmem:[%s4884_s7 + $0xb4] sm:$0xf0] }
 0x298   : > { %v1672_v23 = vor.u32 %v1671_v22, %v1668_v21  ;;  %2315 = vmatpush.bf16.msrb.mxu1 %v3204_v41  ;;  %2367 = vmatpush.bf16.msrb.mxu3 %v3208_v42  ;;  %v3192_v54 = vor.u32 %v3515_v51, %v3191_v50  ;;  %v3196_v59 = vor.u32 %v3514_v55, %v3193_v34  ;;  %v3511_v39 = vld [vmem:[%s4884_s7 + $0x13c] sm:$0xf]  ;;  %v3181_v49 = vld [vmem:[%s4884_s7 + $0x144] sm:$0xf0]  ;;  %v3530_v8 = vld [vmem:[%s4884_s7 + $0x1d0] sm:$0xf0] }
 0x299   : > { %1698 = vrot.lane.b32.xlu0 %v1697_v9, %s3587_s19  ;;  %v4385_v13 = vor.u32 %v1862_v11, %v1859_v10  ;;  %1654 = vrot.lane.b32.xlu2 %v1653_v14, %s3586_s18  ;;  %v3264_v62 = vor.u32 %v3533_v60, %v3263_v58  ;;  %v3024_v63 = vor.u32 %v3473_v61, %v3023_v52  ;;  %v3167_v9 = vld [vmem:[%s4884_s7 + $0x120] sm:$0xf]  ;;  %v3509_v11 = vld [vmem:[%s4884_s7 + $0x128] sm:$0xf0] }
 0x29a   : > { %2308 = vmatpush.bf16.msra.mxu0 %v3036_v53  ;;  %v3180_v3 = vor.u32 %v3512_v1, %v3179_v0  ;;  %v3112_v5 = vor.u32 %v3493_v2, %v3109_v4  ;;  %v3184_v6 = vor.u32 %v3511_v39, %v3181_v49  ;;  %v3252_v10 = vor.u32 %v3530_v8, %v3251_v7  ;;  %v3490_v12 = vld [vmem:[%s4884_s7 + $0x94] sm:$0xf]  ;;  %v3097_v14 = vld [vmem:[%s4884_s7 + $0x9c] sm:$0xf0]  ;;  %v3169_v17 = vld [vmem:[%s4884_s7 + $0x12c] sm:$0xf0] }
 0x29b   : > { %3345 = vmatmul.msk.bf16.vlgmr.msra.gmra.mxu3 %vm604_vm3, %v4385_v13  ;;  %2331 = vmatpush.bf16.msra.mxu2 %v3264_v62  ;;  %v3168_v15 = vor.u32 %v3509_v11, %v3167_v9  ;;  %v3239_v18 = vld [vmem:[%s4884_s7 + $0x1b0] sm:$0xf]  ;;  %v3100_v19 = vor.u32 %v3490_v12, %v3097_v14  ;;  %v3527_v21 = vld [vmem:[%s4884_s7 + $0x1b8] sm:$0xf0]  ;;  %v3155_v22 = vld [vmem:[%s4884_s7 + $0x108] sm:$0xf]  ;;  %v3088_v30 = vor.u32 %v3487_v24, %v3085_v25 }
 0x29c   : > { %1648 = vrot.lane.b32.xlu1 %v1647_v16, %s3583_s15  ;;  %2316 = vmatpush.bf16.msrb.mxu1 %v3192_v54  ;;  %v3508_v16 = vld [vmem:[%s4884_s7 + $0x124] sm:$0xf]  ;;  %v3240_v27 = vor.u32 %v3527_v21, %v3239_v18  ;;  %v3160_v31 = vor.u32 %v3505_v26, %v3157_v40  ;;  %v3228_v32 = vor.u32 %v3524_v29, %v3227_v48  ;;  %v3503_v35 = vld [vmem:[%s4884_s7 + $0xf8] sm:$0xf0]  ;;  %v3073_v37 = vld [vmem:[%s4884_s7 + $0x6c] sm:$0xf0] }
 0x29d   : > { %2368 = vmatpush.bf16.msrb.mxu3 %v3196_v59  ;;  %v3484_v36 = vld [vmem:[%s4884_s7 + $0x64] sm:$0xf]  ;;  %v3144_v38 = vor.u32 %v3503_v35, %v3143_v33  ;;  %v3502_v41 = vld [vmem:[%s4884_s7 + $0xf4] sm:$0xf]  ;;  %v3145_v42 = vld [vmem:[%s4884_s7 + $0xfc] sm:$0xf0] }
 0x29e   : > { %2309 = vmatpush.bf16.msra.mxu0 %v3024_v63  ;;  %v3076_v43 = vor.u32 %v3484_v36, %v3073_v37  ;;  %v3148_v44 = vor.u32 %v3502_v41, %v3145_v42  ;;  %v3215_v45 = vld [vmem:[%s4884_s7 + $0x180] sm:$0xf]  ;;  %v3550_v47 = vld [vmem:[%s4884_s7 + $0x274] sm:$0xf]  ;;  %v3131_v54 = vld [vmem:[%s4884_s7 + $0xd8] sm:$0xf] }
 0x29f   : > { %2332 = vmatpush.bf16.msra.mxu2 %v3252_v10  ;;  %v3216_v50 = vor.u32 %v3521_v46, %v3215_v45  ;;  %v3337_v51 = vld [vmem:[%s4884_s7 + $0x27c] sm:$0xf0]  ;;  %v3500_v55 = vld [vmem:[%s4884_s7 + $0xe0] sm:$0xf0]  ;;  %v3481_v34 = vld [vmem:[%s4884_s7 + $0x4c] sm:$0xf] }
 0x2a0   : > { %2317 = vmatpush.bf16.msrb.mxu1 %v3180_v3  ;;  %v3340_v53 = vor.u32 %v3550_v47, %v3337_v51  ;;  %v3132_v58 = vor.u32 %v3500_v55, %v3131_v54  ;;  %v3061_v59 = vld [vmem:[%s4884_s7 + $0x54] sm:$0xf0]  ;;  %v3499_v60 = vld [vmem:[%s4884_s7 + $0xdc] sm:$0xf]  ;;  %v3133_v52 = vld [vmem:[%s4884_s7 + $0xe4] sm:$0xf0] }
 0x2a1   : > { %1662 = vrot.lane.b32.xlu0 %v1661_v20, %s3582_s14  ;;  %2369 = vmatpush.bf16.msrb.mxu3 %v3184_v6  ;;  %v3172_v20 = vor.u32 %v3508_v16, %v3169_v17  ;;  %v3064_v61 = vor.u32 %v3481_v34, %v3061_v59  ;;  %v3136_v62 = vor.u32 %v3499_v60, %v3133_v52  ;;  %v3547_v63 = vld [vmem:[%s4884_s7 + $0x25c] sm:$0xf]  ;;  %v3325_v0 = vld [vmem:[%s4884_s7 + $0x264] sm:$0xf0]  ;;  %v3119_v2 = vld [vmem:[%s4884_s7 + $0xc0] sm:$0xf] }
 0x2a2   : > { %2354 = vmatpush.bf16.msrb.mxu0 %v3112_v5  ;;  %v3328_v1 = vor.u32 %v3547_v63, %v3325_v0  ;;  %v3497_v3 = vld [vmem:[%s4884_s7 + $0xc8] sm:$0xf0]  ;;  %v3478_v4 = vld [vmem:[%s4884_s7 + $0x34] sm:$0xf]  ;;  %v3049_v49 = vld [vmem:[%s4884_s7 + $0x3c] sm:$0xf0] }
 0x2a3   : > { %2333 = vmatpush.bf16.msra.mxu2 %v3240_v27  ;;  %v3120_v39 = vor.u32 %v3497_v3, %v3119_v2  ;;  %v3496_v5 = vld [vmem:[%s4884_s7 + $0xc4] sm:$0xf]  ;;  %v3121_v6 = vld [vmem:[%s4884_s7 + $0xcc] sm:$0xf0]  ;;  %v3052_v7 = vor.u32 %v3478_v4, %v3049_v49  ;;  %v3541_v9 = vld [vmem:[%s4884_s7 + $0x22c] sm:$0xf] }
 0x2a4   : > { %1673 = vrot.lane.b32.xlu1 %v1672_v23, %s3585_s17  ;;  %v3506_v23 = vld [vmem:[%s4884_s7 + $0x110] sm:$0xf0]  ;;  %2318 = vmatpush.bf16.msrb.mxu1 %v3168_v15  ;;  %v3124_v8 = vor.u32 %v3496_v5, %v3121_v6  ;;  %v3301_v10 = vld [vmem:[%s4884_s7 + $0x234] sm:$0xf0]  ;;  %v3307_v11 = vld [vmem:[%s4884_s7 + $0x230] sm:$0xf] }
 0x2a5   : > { %v3156_v28 = vor.u32 %v3506_v23, %v3155_v22  ;;  %2370 = vmatpush.bf16.msrb.mxu3 %v3172_v20  ;;  %v3304_v12 = vor.u32 %v3541_v9, %v3301_v10  ;;  %v3543_v14 = vld [vmem:[%s4884_s7 + $0x238] sm:$0xf0]  ;;  %v3544_v15 = vld [vmem:[%s4884_s7 + $0x244] sm:$0xf]  ;;  %v3313_v16 = vld [vmem:[%s4884_s7 + $0x24c] sm:$0xf0] }
 0x2a6   : > { %2355 = vmatpush.bf16.msrb.mxu0 %v3100_v19  ;;  %v3308_v17 = vor.u32 %v3543_v14, %v3307_v11  ;;  %v3316_v18 = vor.u32 %v3544_v15, %v3313_v16  ;;  %v3475_v19 = vld [vmem:[%s4884_s7 + $0x1c] sm:$0xf]  ;;  %v3037_v20 = vld [vmem:[%s4884_s7 + $0x24] sm:$0xf0]  ;;  %v3538_v22 = vld [vmem:[%s4884_s7 + $0x214] sm:$0xf] }
 0x2a7   : > { %2334 = vmatpush.bf16.msra.mxu2 %v3228_v32  ;;  %v3040_v21 = vor.u32 %v3475_v19, %v3037_v20  ;;  %v3289_v23 = vld [vmem:[%s4884_s7 + $0x21c] sm:$0xf0]  ;;  %v3295_v25 = vld [vmem:[%s4884_s7 + $0x218] sm:$0xf]  ;;  %v3540_v26 = vld [vmem:[%s4884_s7 + $0x220] sm:$0xf0] }
 0x2a8   : > { %2319 = vmatpush.bf16.msrb.mxu1 %v3156_v28  ;;  %v3292_v24 = vor.u32 %v3538_v22, %v3289_v23  ;;  %v3296_v27 = vor.u32 %v3540_v26, %v3295_v25  ;;  %v3472_v40 = vld [vmem:[%s4884_s7 + $0x4] sm:$0xf]  ;;  %v3025_v28 = vld [vmem:[%s4884_s7 + $0xc] sm:$0xf0]  ;;  %v3535_v29 = vld [vmem:[%s4884_s7 + $0x1fc] sm:$0xf] }
 0x2a9   : > { %2371 = vmatpush.bf16.msrb.mxu3 %v3160_v31  ;;  %v3028_v48 = vor.u32 %v3472_v40, %v3025_v28  ;;  %v3283_v32 = vld [vmem:[%s4884_s7 + $0x200] sm:$0xf]  ;;  %v3537_v33 = vld [vmem:[%s4884_s7 + $0x208] sm:$0xf0]  ;;  %v3532_v36 = vld [vmem:[%s4884_s7 + $0x1e4] sm:$0xf] }
 0x2aa   : > { %2356 = vmatpush.bf16.msrb.mxu0 %v3088_v30  ;;  %v3277_v30 = vld [vmem:[%s4884_s7 + $0x204] sm:$0xf0]  ;;  %v3284_v35 = vor.u32 %v3537_v33, %v3283_v32  ;;  %v3534_v42 = vld [vmem:[%s4884_s7 + $0x1f0] sm:$0xf0]  ;;  %v3253_v45 = vld [vmem:[%s4884_s7 + $0x1d4] sm:$0xf0] }
 0x2ab   : > { %2335 = vmatpush.bf16.msra.mxu2 %v3216_v50  ;;  %v3280_v31 = vor.u32 %v3535_v29, %v3277_v30  ;;  %v3271_v41 = vld [vmem:[%s4884_s7 + $0x1e8] sm:$0xf]  ;;  %v3259_v46 = vld [vmem:[%s4884_s7 + $0x1d0] sm:$0xf]  ;;  %v3531_v47 = vld [vmem:[%s4884_s7 + $0x1d8] sm:$0xf0] }
 0x2ac   : > { %2320 = vmatpush.bf16.msrb.mxu1 %v3144_v38  ;;  %v3265_v38 = vld [vmem:[%s4884_s7 + $0x1ec] sm:$0xf0]  ;;  %v3260_v51 = vor.u32 %v3531_v47, %v3259_v46  ;;  %v3241_v54 = vld [vmem:[%s4884_s7 + $0x1bc] sm:$0xf0]  ;;  %v3247_v34 = vld [vmem:[%s4884_s7 + $0x1b8] sm:$0xf] }
 0x2ad   : > { %2372 = vmatpush.bf16.msrb.mxu3 %v3148_v44  ;;  %v3268_v37 = vor.u32 %v3532_v36, %v3265_v38  ;;  %v3529_v44 = vld [vmem:[%s4884_s7 + $0x1cc] sm:$0xf]  ;;  %v1622_v60 = vld [vmem:[#allocation2 + $0x4] sm:$0xe]  ;;  %v3229_v63 = vld [vmem:[%s4884_s7 + $0x1a4] sm:$0xf0] }
 0x2ae   : > { %2357 = vmatpush.bf16.msrb.mxu0 %v3076_v43  ;;  %v3272_v43 = vor.u32 %v3534_v42, %v3271_v41  ;;  %v3256_v50 = vor.u32 %v3529_v44, %v3253_v45  ;;  %v1635_v0 = vunpack.c.l.b16 %v1622_v60  ;;  %v3525_v2 = vld [vmem:[%s4884_s7 + $0x1a8] sm:$0xf0]  ;;  %v3211_v5 = vld [vmem:[%s4884_s7 + $0x170] sm:$0xf]  ;;  %v3519_v6 = vld [vmem:[%s4884_s7 + $0x178] sm:$0xf0] }
 0x2af   : > { %2398 = vmatpush.bf16.msrb.mxu2 %v3340_v53  ;;  %v3526_v53 = vld [vmem:[%s4884_s7 + $0x1b4] sm:$0xf]  ;;  %v3520_v10 = vld [vmem:[%s4884_s7 + $0x184] sm:$0xf]  ;;  %v3217_v11 = vld [vmem:[%s4884_s7 + $0x18c] sm:$0xf0]  ;;  %v3212_v22 = vor.u32 %v3519_v6, %v3211_v5 }
 0x2b0   : > { %2321 = vmatpush.bf16.msrb.mxu1 %v3132_v58  ;;  %v3528_v58 = vld [vmem:[%s4884_s7 + $0x1c0] sm:$0xf0]  ;;  %v3244_v52 = vor.u32 %v3526_v53, %v3241_v54  ;;  %v3223_v14 = vld [vmem:[%s4884_s7 + $0x188] sm:$0xf]  ;;  %v3522_v19 = vld [vmem:[%s4884_s7 + $0x190] sm:$0xf0] }
 0x2b1   : > { %2373 = vmatpush.bf16.msrb.mxu3 %v3136_v62  ;;  %v3523_v62 = vld [vmem:[%s4884_s7 + $0x19c] sm:$0xf]  ;;  %v3224_v56 = vor.u32 %v3522_v19, %v3223_v14  ;;  %v3516_v25 = vld [vmem:[%s4884_s7 + $0x160] sm:$0xf0]  ;;  %v3115_v40 = vld [vmem:[%s4884_s7 + $0xb0] sm:$0xf] }
 0x2b2   : > { %2358 = vmatpush.bf16.msrb.mxu0 %v3064_v61  ;;  %v3248_v61 = vor.u32 %v3528_v58, %v3247_v34  ;;  %v3495_v28 = vld [vmem:[%s4884_s7 + $0xb8] sm:$0xf0]  ;;  %v3187_v33 = vld [vmem:[%s4884_s7 + $0x140] sm:$0xf]  ;;  %v3103_v38 = vld [vmem:[%s4884_s7 + $0x98] sm:$0xf] }
 0x2b3   : > { %2399 = vmatpush.bf16.msrb.mxu2 %v3328_v1  ;;  %v3235_v1 = vld [vmem:[%s4884_s7 + $0x1a0] sm:$0xf]  ;;  %v3116_v32 = vor.u32 %v3495_v28, %v3115_v40  ;;  %v3175_v47 = vld [vmem:[%s4884_s7 + $0x128] sm:$0xf]  ;;  %v3343_v34 = vld [vmem:[%s4884_s7 + $0x278] sm:$0xf] }
 0x2b4   : > { %2322 = vmatpush.bf16.msrb.mxu1 %v3120_v39  ;;  %v3232_v39 = vor.u32 %v3523_v62, %v3229_v63  ;;  %v3091_v54 = vld [vmem:[%s4884_s7 + $0x80] sm:$0xf]  ;;  %v3552_v58 = vld [vmem:[%s4884_s7 + $0x280] sm:$0xf0]  ;;  %v3163_v62 = vld [vmem:[%s4884_s7 + $0x110] sm:$0xf] }
 0x2b5   : > { %2374 = vmatpush.bf16.msrb.mxu3 %v3124_v8  ;;  %v3546_v14 = vld [vmem:[%s4884_s7 + $0x250] sm:$0xf0]  ;;  %v3501_v19 = vld [vmem:[%s4884_s7 + $0xe8] sm:$0xf0] }
 0x2b6   : > { %2359 = vmatpush.bf16.msrb.mxu0 %v3052_v7  ;;  %v3236_v7 = vor.u32 %v3525_v2, %v3235_v1  ;;  %v3507_v1 = vld [vmem:[%s4884_s7 + $0x118] sm:$0xf0]  ;;  %v3079_v2 = vld [vmem:[%s4884_s7 + $0x68] sm:$0xf] }
 0x2b7   : > { %2400 = vmatpush.bf16.msrb.mxu2 %v3316_v18  ;;  %v3220_v18 = vor.u32 %v3520_v10, %v3217_v11  ;;  %v3164_v5 = vor.u32 %v3507_v1, %v3163_v62  ;;  %v3483_v10 = vld [vmem:[%s4884_s7 + $0x58] sm:$0xf0] }
 0x2b8   : > { %2380 = vmatpush.bf16.msra.mxu1 %v3304_v12  ;;  %v1637_v12 = vpack.c.b16 %v1636_v57, %v1635_v0 }
 0x2b9   : > { %2432 = vmatpush.bf16.msra.mxu3 %v3308_v17 }
 0x2ba   : > { %2360 = vmatpush.bf16.msrb.mxu0 %v3040_v21 }
 0x2bc   : > { %2381 = vmatpush.bf16.msra.mxu1 %v3292_v24  ;;  %v3199_v24 = vld [vmem:[%s4884_s7 + $0x158] sm:$0xf] }
 0x2bd   : > { %2433 = vmatpush.bf16.msra.mxu3 %v3296_v27 }
 0x2be   : > { %2361 = vmatpush.bf16.msrb.mxu0 %v3028_v48 }
 0x2c0   : > { %2382 = vmatpush.bf16.msra.mxu1 %v3280_v31  ;;  %v3200_v31 = vor.u32 %v3516_v25, %v3199_v24  ;;  %v3127_v24 = vld [vmem:[%s4884_s7 + $0xc8] sm:$0xf]  ;;  %v3498_v25 = vld [vmem:[%s4884_s7 + $0xd0] sm:$0xf0] }
 0x2c1   : > { %2434 = vmatpush.bf16.msra.mxu3 %v3284_v35  ;;  %v3513_v35 = vld [vmem:[%s4884_s7 + $0x148] sm:$0xf0]  ;;  %v3128_v40 = vor.u32 %v3498_v25, %v3127_v24 }
 0x2c2   : > { %v3188_v44 = vor.u32 %v3513_v35, %v3187_v33  ;;  %v1827_v33 = vld [vmem:[%s4885_s8] sm:$0x7] }
 0x2c4   : > { %2383 = vmatpush.bf16.msra.mxu1 %v3268_v37  ;;  %v3492_v37 = vld [vmem:[%s4884_s7 + $0xa0] sm:$0xf0] }
 0x2c5   : > { %2435 = vmatpush.bf16.msra.mxu3 %v3272_v43  ;;  %v3104_v46 = vor.u32 %v3492_v37, %v3103_v38  ;;  %v1829_v37 = vperm.slane %v1827_v33, 0 }
 0x2c8   : > { %2384 = vmatpush.bf16.msra.mxu1 %v3256_v50  ;;  %v3510_v50 = vld [vmem:[%s4884_s7 + $0x130] sm:$0xf0] }
 0x2c9   : > { %2436 = vmatpush.bf16.msra.mxu3 %v3260_v51 }
 0x2cc   : > { %2385 = vmatpush.bf16.msra.mxu1 %v3244_v52  ;;  %v3176_v52 = vor.u32 %v3510_v50, %v3175_v47 }
 0x2cd   : > { %2437 = vmatpush.bf16.msra.mxu3 %v3248_v61 }
 0x2d0   : > { %2386 = vmatpush.bf16.msra.mxu1 %v3232_v39  ;;  %v3331_v39 = vld [vmem:[%s4884_s7 + $0x260] sm:$0xf] }
 0x2d1   : > { %2438 = vmatpush.bf16.msra.mxu3 %v3236_v7  ;;  %v3151_v7 = vld [vmem:[%s4884_s7 + $0xf8] sm:$0xf] }
 0x2d4   : > { %2387 = vmatpush.bf16.msra.mxu1 %v3220_v18 }
 0x2d5   : > { %2439 = vmatpush.bf16.msra.mxu3 %v3224_v56 }
 0x2eb   : > { %v1687_v55 = vpop.permute.xlu2 %1686 }
 0x2f3   : > { %v1655_v20 = vpop.permute.xlu2 %1654 }
 0x306   : > { %v4699_v59 = vpop.permute.xlu1 %1679 }
 0x307   : > { %v1716_v3 = vsel %vm620_vm8, %v4699_v59, %v1687_v55  ;;  %v3489_v55 = vld [vmem:[%s4884_s7 + $0x88] sm:$0xf0] }
 0x308   : > { %v3092_v61 = vor.u32 %v3489_v55, %v3091_v54 }
 0x30b   : > { %v1699_v4 = vpop.permute.xlu0 %1698 }
 0x30c   : > { %v1718_v49 = vsel %vm623_vm9, %v1716_v3, %v1699_v4  ;;  %v3486_v3 = vld [vmem:[%s4884_s7 + $0x70] sm:$0xf0]  ;;  %v3344_v4 = vor.u32 %v3552_v58, %v3343_v34 }
 0x30d   : > { %v1849_v8 = vshrl.u32 %v1718_v49, 16  ;;  %v1852_v9 = vshll.u32 %v1718_v49, 16  ;;  %v3549_v49 = vld [vmem:[%s4884_s7 + $0x268] sm:$0xf0]  ;;  %v3080_v6 = vor.u32 %v3486_v3, %v3079_v2 }
 0x30e   : > { %v1649_v17 = vpop.permute.xlu1 %1648  ;;  %v3332_v11 = vor.u32 %v3549_v49, %v3331_v39 }
 0x30f   : > { %v1851_v15 = vrot.slane %v1849_v8, 1  ;;  %v1854_v16 = vrot.slane %v1852_v9, 2  ;;  %v1706_v21 = vsel %vm604_vm3, %v1637_v12, %v1649_v17  ;;  %v3504_v8 = vld [vmem:[%s4884_s7 + $0x100] sm:$0xf0]  ;;  %v3067_v9 = vld [vmem:[%s4884_s7 + $0x50] sm:$0xf] }
 0x310   : > { %v1708_v23 = vsel %vm608_vm4, %v1706_v21, %v1655_v20  ;;  %v3319_v12 = vld [vmem:[%s4884_s7 + $0x248] sm:$0xf]  ;;  %v3139_v17 = vld [vmem:[%s4884_s7 + $0xe0] sm:$0xf]  ;;  %v3480_v21 = vld [vmem:[%s4884_s7 + $0x40] sm:$0xf0] }
 0x311   : > { %v4737_v57 = vor.u32 %v1854_v16, %v1851_v15  ;;  %v1835_v26 = vshrl.u32 %v1708_v23, 16  ;;  %v1838_v27 = vshll.u32 %v1708_v23, 16  ;;  %v3152_v15 = vor.u32 %v3504_v8, %v3151_v7 }
 0x312   : > { %v3068_v16 = vor.u32 %v3483_v10, %v3067_v9  ;;  %v3140_v56 = vor.u32 %v3501_v19, %v3139_v17 }
 0x313   : > { %2336 = vmatmul.bf16.vlgmr.msra.gmra.mxu2 %v4737_v57  ;;  %v1837_v48 = vrot.slane %v1835_v26, 1  ;;  %v1840_v29 = vrot.slane %v1838_v27, 2  ;;  %v1663_v30 = vpop.permute.xlu0 %1662  ;;  %v3043_v26 = vld [vmem:[%s4884_s7 + $0x20] sm:$0xf]  ;;  %v3477_v27 = vld [vmem:[%s4884_s7 + $0x28] sm:$0xf0] }
 0x314   : > { %2419 = vmatpush.bf16.msra.mxu2 %v3212_v22  ;;  %v1710_v41 = vsel %vm611_vm5, %v1655_v20, %v1663_v30  ;;  %v3055_v20 = vld [vmem:[%s4884_s7 + $0x38] sm:$0xf]  ;;  %v3320_v22 = vor.u32 %v3546_v14, %v3319_v12  ;;  %v3044_v28 = vor.u32 %v3477_v27, %v3043_v26 }
 0x315   : > { %v4759_v36 = vor.u32 %v1840_v29, %v1837_v48  ;;  %v3056_v23 = vor.u32 %v3480_v21, %v3055_v20  ;;  %v3031_v48 = vld [vmem:[%s4884_s7 + $0x8] sm:$0xf]  ;;  %v3474_v29 = vld [vmem:[%s4884_s7 + $0x10] sm:$0xf0] }
 0x316   : > { %v1674_v42 = vpop.permute.xlu1 %1673  ;;  %v3032_v30 = vor.u32 %v3474_v29, %v3031_v48 }
 0x317   : > { %v1712_v43 = vsel %vm614_vm6, %v1710_v41, %v1674_v42  ;;  %2310 = vmatmul.bf16.vlgmr.msra.gmra.mxu0 %v4759_v36 }
 0x318   : > { %2420 = vmatpush.bf16.msra.mxu2 %v3200_v31  ;;  %v1714_v45 = vsel %vm617_vm7, %v1712_v43, %v4699_v59  ;;  %2406 = vmatpush.bf16.msra.mxu0 %v3116_v32 }
 0x319   : > { %v1842_v51 = vshrl.u32 %v1714_v45, 16  ;;  %v1845_v53 = vshll.u32 %v1714_v45, 16 }
 0x31b   : > { %v1844_v59 = vrot.slane %v1842_v51, 1  ;;  %v1847_v60 = vrot.slane %v1845_v53, 2 }
 0x31c   : > { %2421 = vmatpush.bf16.msra.mxu2 %v3188_v44  ;;  %2407 = vmatpush.bf16.msra.mxu0 %v3104_v46  ;;  %v1830_v44 = vperm.slane %v1827_v33, 1 }
 0x31d   : > { %v1848_v0 = vor.u32 %v1847_v60, %v1844_v59 }
 0x31e   : > { %v4793_v63 = vpop.f32.mrf.mxu3 }
 0x31f   : > { %2323 = vmatmul.bf16.vlgmr.msrb.gmra.mxu1 %v1848_v0  ;;  %2375 = vmatmul.bf16.vlgmr.msrb.gmra.mxu3 %v1848_v0 }
 0x320   : > { %2422 = vmatpush.bf16.msra.mxu2 %v3176_v52  ;;  %2408 = vmatpush.bf16.msra.mxu0 %v3092_v61  ;;  %v1831_v61 = vperm.slane %v1827_v33, 2 }
 0x321   : > { %2450 = vmatpush.bf16.msrb.mxu1 %v3344_v4 }
 0x323   : > { %3346 = vmatmul.msk.bf16.vlgmr.msrb.gmra.mxu2 %vm604_vm3, %v4385_v13 }
 0x324   : > { %2423 = vmatpush.bf16.msra.mxu2 %v3164_v5  ;;  %2409 = vmatpush.bf16.msra.mxu0 %v3080_v6 }
 0x325   : > { %2451 = vmatpush.bf16.msrb.mxu1 %v3332_v11 }
 0x326   : > { %v2352_v18 = vpop.f32.mrf.mxu3 }
 0x327   : > { %2362 = vmatmul.bf16.vlgmr.msrb.gmra.mxu0 %v4759_v36 }
 0x328   : > { %2424 = vmatpush.bf16.msra.mxu2 %v3152_v15  ;;  %2410 = vmatpush.bf16.msra.mxu0 %v3068_v16 }
 0x329   : > { %2452 = vmatpush.bf16.msrb.mxu1 %v3320_v22 }
 0x32c   : > { %2425 = vmatpush.bf16.msra.mxu2 %v3140_v56  ;;  %2411 = vmatpush.bf16.msra.mxu0 %v3056_v23 }
 0x32f   : > { %2388 = vmatmul.bf16.vlgmr.msra.gmra.mxu1 %v4737_v57  ;;  %2440 = vmatmul.bf16.vlgmr.msra.gmra.mxu3 %v4737_v57 }
 0x330   : > { %2426 = vmatpush.bf16.msra.mxu2 %v3128_v40  ;;  %2412 = vmatpush.bf16.msra.mxu0 %v3044_v28 }
 0x333   : > { %2427 = vmatmul.bf16.vlgmr.msra.gmra.mxu2 %v1848_v0 }
 0x334   : > { %2413 = vmatpush.bf16.msra.mxu0 %v3032_v30 }
 0x337   : > { %2414 = vmatmul.bf16.vlgmr.msra.gmra.mxu0 %v4759_v36 }
 0x33f   : > { %3347 = vmatmul.msk.bf16.vlgmr.msrb.gmra.mxu1 %vm604_vm3, %v4385_v13 }
 0x394   : > { %v2311_v31 = vpop.f32.mrf.mxu0 }
 0x395   : > { %v2312_v41 = vadd.f32 %v2311_v31, %v1829_v37 }
 0x396   : > { %v2337_v32 = vpop.f32.mrf.mxu2 }
 0x39c   : > { %v2313_v35 = vpop.f32.mrf.mxu0  ;;  %v2324_v38 = vpop.f32.mrf.mxu1 }
 0x39d   : > { %v2325_v43 = vadd.f32 %v2324_v38, %v2312_v41 }
 0x39e   : > { %v2339_v57 = vpop.f32.mrf.mxu2 }
 0x39f   : > { %v2338_v47 = vadd.f32 %v2337_v32, %v2325_v43 }
 0x3a1   : > { %v2351_v51 = vadd.f32 %v4793_v63, %v2338_v47 }
 0x3a2   : > { %v2376_v42 = vpop.f32.mrf.mxu3 }
 0x3a3   : > { %v2461_v59 = vmul.f32 0.2, %v2351_v51  ;;  %vm2458_vm14 = vcmp.ge.f32.partialorder %v2351_v51, 0.0 }
 0x3a4   : > { %v2326_v45 = vpop.f32.mrf.mxu1  ;;  %v2363_v36 = vpop.f32.mrf.mxu0 }
 0x3a5   : > { %v2364_v13 = vadd.f32 %v2363_v36, %v1830_v44  ;;  %v2464_v0 = vsel %vm2458_vm14, %v2351_v51, %v2461_v59 }
 0x3a6   : > { %v2402_v46 = vpop.f32.mrf.mxu2 }
 0x3a7   : > { %v2377_v53 = vadd.f32 %v2376_v42, %v2364_v13 }
 0x3aa   : > { %v2378_v50 = vpop.f32.mrf.mxu3 }
 0x3ac   : > { %v2365_v54 = vpop.f32.mrf.mxu0  ;;  %v2389_v55 = vpop.f32.mrf.mxu1 }
 0x3ad   : > { %v2390_v34 = vadd.f32 %v2389_v55, %v2377_v53 }
 0x3ae   : > { %v2404_v58 = vpop.f32.mrf.mxu2 }
 0x3af   : > { %v2403_v60 = vadd.f32 %v2402_v46, %v2390_v34 }
 0x3b1   : > { %vm2459_vm15 = vcmp.ge.f32.partialorder %v2403_v60, 0.0  ;;  %v2462_v52 = vmul.f32 0.2, %v2403_v60 }
 0x3b2   : > { %v2441_v62 = vpop.f32.mrf.mxu3 }
 0x3b3   : > { %v2465_v1 = vsel %vm2459_vm15, %v2403_v60, %v2462_v52 }
 0x3b4   : > { %v2467_v63 = vpack.c.bf16 %v2465_v1, %v2464_v0  ;;  %v2391_v2 = vpop.f32.mrf.mxu1  ;;  %v2415_v3 = vpop.f32.mrf.mxu0 }
 0x3b5   : > { %v2416_v4 = vadd.f32 %v2415_v3, %v1831_v61 }
 0x3b6   : > { %2469 = vst [vmem:[%s332_s21] sm:$0xff] %v2467_v63  ;;  %v2428_v39 = vpop.f32.mrf.mxu2 }
 0x3b7   : > { %v2429_v49 = vadd.f32 %v2428_v39, %v2416_v4 }
 0x3b9   : > { %v2442_v6 = vadd.f32 %v2441_v62, %v2429_v49 }
 0x3ba   : > { %v2443_v5 = vpop.f32.mrf.mxu3 }
 0x3bc   : > { %v2417_v7 = vpop.f32.mrf.mxu0  ;;  %v2454_v8 = vpop.f32.mrf.mxu1 }
 0x3bd   : > { %v2455_v9 = vadd.f32 %v2454_v8, %v2442_v6 }
 0x3be   : > { %v2430_v10 = vpop.f32.mrf.mxu2 }
 0x3bf   : > { %vm2460_vm0 = vcmp.ge.f32.partialorder %v2455_v9, 0.0  ;;  %v2463_v11 = vmul.f32 0.2, %v2455_v9 }
 0x3c1   : > { %v2466_v12 = vsel %vm2460_vm0, %v2455_v9, %v2463_v11 }
 0x3c2   : > { %v2468_v14 = vpack.c.bf16 %v2466_v12, %v2466_v12 }
 0x3c4   : > { %2470 = vst [vmem:[%s332_s21 + $0x8] sm:$0xf] %v2468_v14  ;;  %v2456_v15 = vpop.f32.mrf.mxu1 }
 0x3c5 PF: > { %s19_s30 = sadd.s32 1, %s3578_s30  }
 0x3c6   : > { %p16_p4 = scmp.ge.s32.totalorder %s19_s30, 4  }
 0x3c8   :  { %18 = sbr.rel (!%p16_p4) target bundleno = 1 (0x1), region = 86 }

// kernel: squeezenet_forward.14
= control target key start
LH: loop header
LB: loop body
LE: loop exit
PB: predicated region body
PF: predicated region fallthrough
CT: control target
= control target key end

     0   :  { %s5356_s30 = smov 0   ;;  %s7467_s0 = inlined_call_operand.vmem [shape: bf16[2,8,384], index: 0, kind: input, shape index: {}]   ;;  %s7468_s1 = inlined_call_operand.vmem [shape: bf16[384,64], index: 1, kind: input, shape index: {}]   ;;  %s7469_s2 = inlined_call_operand.vmem [shape: f32[1,64], index: 2, kind: input, shape index: {}]   ;;  %s7470_s3 = inlined_call_operand.vmem [shape: bf16[576,512], index: 3, kind: input, shape index: {}]   ;;  %s7471_s4 = inlined_call_operand.vmem [shape: f32[1,512], index: 4, kind: input, shape index: {}]   ;;  %s7472_s5 = inlined_call_operand.vmem [shape: bf16[512,64], index: 5, kind: input, shape index: {}]   ;;  %s7473_s6 = inlined_call_operand.vmem [shape: f32[1,64], index: 6, kind: input, shape index: {}]   ;;  %s7474_s7 = inlined_call_operand.vmem [shape: bf16[576,512], index: 7, kind: input, shape index: {}]   ;;  %s7475_s8 = inlined_call_operand.vmem [shape: f32[1,512], index: 8, kind: input, shape index: {}]   ;;  %s7476_s9 = inlined_call_operand.vmem [shape: bf16[2,8,512], index: 9, kind: output, shape index: {}]  }
   0x1 LB: > { %s3544_s10 = sadd.s32 4294967295, %s5302_s30   ;;  %p3548_p0 = scmp.ge.s32.totalorder %s5302_s30, 1  ;;  %s5302_s30 = sphi %s5356_s30, %s19_s30  }
   0x2   : > { %p287_p1 = scmp.lt.s32.totalorder %s5302_s30, 3 }
   0x4   : > { %p288_p2 = pnand %p3548_p0, %p287_p1 }
   0x5   : > { %p323_p3 = scmp.lt.s32.totalorder (!%p288_p2), %s3544_s10, 1  ;;  %s5305_s16 = smov (!%p288_p2), 64  }
   0x6   : > { %291 = sbr.rel (%p288_p2) target bundleno = 1074 (0x432), region = 56 }
   0xb   : > { %v4946_v0 = vld [vmem:[%s7468_s1 + $0x38] sm:$0xff]  ;;  %v4945_v3 = vld [vmem:[%s7468_s1 + $0x30] sm:$0xff]  ;;  %v4944_v6 = vld [vmem:[%s7468_s1 + $0x28] sm:$0xff]  ;;  %s7478_s10 = smov (!%p323_p3, %s3544_s10), 1  ;;  %v334_v32 = vlaneseq  ;;  %vm597_vm0 = vcmask 519168   ;;  %v5304_v34 = vmov 0  }
   0xc   : > { %v4954_v1 = vld [vmem:[%s7468_s1 + $0x78] sm:$0xff]  ;;  %552 = vmatpush.bf16.msra.mxu0 %v4946_v0  ;;  %v4953_v4 = vld [vmem:[%s7468_s1 + $0x70] sm:$0xff]  ;;  %v4952_v7 = vld [vmem:[%s7468_s1 + $0x68] sm:$0xff]  ;;  %s5283_s22 = smul.u32 12, %s7478_s10  ;;  %602 = vst.msk [vmem:[#allocation2 + $0xc] sm:$0xf] %vm597_vm0, %v5304_v34 }
   0xd   : > { %v4962_v2 = vld [vmem:[%s7468_s1 + $0xb8] sm:$0xff]  ;;  %565 = vmatpush.bf16.msra.mxu1 %v4954_v1  ;;  %v4961_v5 = vld [vmem:[%s7468_s1 + $0xb0] sm:$0xff]  ;;  %v4960_v8 = vld [vmem:[%s7468_s1 + $0xa8] sm:$0xff]  ;;  %v335_v33 = vshrl.u32 %v334_v32, 7  ;;  %599 = vst.msk [vmem:[#allocation2 + $0x4] sm:$0xf] %vm597_vm0, %v5304_v34 }
   0xe   : > { %578 = vmatpush.bf16.msra.mxu2 %v4962_v2  ;;  %v4943_v9 = vld [vmem:[%s7468_s1 + $0x20] sm:$0xff]  ;;  %v4942_v12 = vld [vmem:[%s7468_s1 + $0x18] sm:$0xff]  ;;  %v4941_v15 = vld [vmem:[%s7468_s1 + $0x10] sm:$0xff]  ;;  %s327_s12 = scalar_lea.vmem %s7467_s0, %s5283_s22  ;;  %vm680_vm3 = vcmask 523264   ;;  %s4938_s15 = sshll.u32 %s7478_s10, 4 }
   0xf   : > { %v4951_v10 = vld [vmem:[%s7468_s1 + $0x60] sm:$0xff]  ;;  %v4950_v13 = vld [vmem:[%s7468_s1 + $0x58] sm:$0xff]  ;;  %v4949_v16 = vld [vmem:[%s7468_s1 + $0x50] sm:$0xff]  ;;  %v336_v35 = vcvt.s32.f32 %v335_v33  ;;  %s7460_s19 = scalar_lea.vmem %s7476_s9, %s4938_s15 }
  0x10   : > { %553 = vmatpush.bf16.msra.mxu0 %v4945_v3  ;;  %v4959_v11 = vld [vmem:[%s7468_s1 + $0xa0] sm:$0xff]  ;;  %v4958_v14 = vld [vmem:[%s7468_s1 + $0x98] sm:$0xff]  ;;  %v4957_v17 = vld [vmem:[%s7468_s1 + $0x90] sm:$0xff] }
  0x11   : > { %566 = vmatpush.bf16.msra.mxu1 %v4953_v4  ;;  %v4940_v18 = vld [vmem:[%s7468_s1 + $0x8] sm:$0xff]  ;;  %v343_v20 = vld [vmem:[%s327_s12] sm:$0xff]  ;;  %v337_v36 = vadd.f32 0.5, %v336_v35  ;;  %v5057_v58 = vld [vmem:[%s7470_s3 + $0x2ec] sm:$0xf0] }
  0x12   : > { %579 = vmatpush.bf16.msra.mxu2 %v4961_v5  ;;  %v4948_v19 = vld [vmem:[%s7468_s1 + $0x48] sm:$0xff]  ;;  %v399_v23 = vunpack.c.l.b16 %v343_v20  ;;  %v400_v24 = vunpack.c.h.b16 %v343_v20  ;;  %v4939_v25 = vld [vmem:[%s7468_s1] sm:$0xff]  ;;  %v5053_v60 = vld [vmem:[%s7470_s3 + $0x2cc] sm:$0xf0] }
  0x13   : > { %v4956_v21 = vld [vmem:[%s7468_s1 + $0x88] sm:$0xff]  ;;  %v4947_v26 = vld [vmem:[%s7468_s1 + $0x40] sm:$0xff]  ;;  %v338_v40 = vmul.f32 0.25, %v337_v36  ;;  %v5089_v1 = vld [vmem:[%s7470_s3 + $0x3ec] sm:$0xf0] }
  0x14   : > { %554 = vmatpush.bf16.msra.mxu0 %v4944_v6  ;;  %v344_v22 = vld [vmem:[%s327_s12 + $0x8] sm:$0xf]  ;;  %v4955_v28 = vld [vmem:[%s7468_s1 + $0x80] sm:$0xff]  ;;  %v402_v29 = vpack.c.b16 %v399_v23, %v399_v23  ;;  %v403_v30 = vpack.c.b16 %v400_v24, %v400_v24  ;;  %v5444_v37 = vld [vmem:[#allocation2 + $0xc] sm:$0x1] }
  0x15   : > { %567 = vmatpush.bf16.msra.mxu1 %v4952_v7  ;;  %v401_v27 = vunpack.c.l.b16 %v344_v22  ;;  %v5446_v38 = vld [vmem:[#allocation2 + $0xc] sm:$0x3]  ;;  %v5294_v41 = vld [vmem:[%s7469_s2] ss:$0 sm:$0xff]  ;;  %v339_v42 = vfloor.f32 %v338_v40  ;;  %v5456_v50 = vld [vmem:[#allocation2 + $0x4] sm:$0xc] }
  0x16   : > { %580 = vmatpush.bf16.msra.mxu2 %v4960_v8  ;;  %v5448_v39 = vld [vmem:[#allocation2 + $0xc] sm:$0x7]  ;;  %v5458_v51 = vld [vmem:[#allocation2 + $0x4] sm:$0x8]  ;;  %v4018_v57 = vld [vmem:[%s7470_s3 + $0x2e0] sm:$0xf]  ;;  %v621_v36 = vunpack.c.l.b16 %v5456_v50 }
  0x17   : > { %v404_v31 = vpack.c.b16 %v401_v27, %v401_v27  ;;  %2206 = vst.msk [vmem:[#allocation2 + $0xc] sm:$0xf] %vm597_vm0, %v5304_v34  ;;  %v340_v46 = vmul.f32 4.0, %v339_v42  ;;  %v5460_v52 = vld [vmem:[#allocation2 + $0x4] sm:$0xe]  ;;  %v4019_v62 = vor.u32 %v5057_v58, %v4018_v57 }
  0x18   : > { %555 = vmatpush.bf16.msra.mxu0 %v4943_v9  ;;  %2203 = vst.msk [vmem:[#allocation2 + $0x4] sm:$0xf] %vm597_vm0, %v5304_v34  ;;  %v4002_v59 = vld [vmem:[%s7470_s3 + $0x2c0] sm:$0xf]  ;;  %v5049_v6 = vld [vmem:[%s7470_s3 + $0x2ac] sm:$0xf0] }
  0x19   : > { %568 = vmatpush.bf16.msra.mxu1 %v4951_v10  ;;  %v5454_v48 = vsub.f32 %v336_v35, %v340_v46  ;;  %v4146_v63 = vld [vmem:[%s7470_s3 + $0x3e0] sm:$0xf]  ;;  %v4003_v4 = vor.u32 %v5053_v60, %v4002_v59  ;;  %v5025_v8 = vld [vmem:[%s7470_s3 + $0x1ec] sm:$0xf0] }
  0x1a   : > { %581 = vmatpush.bf16.msra.mxu2 %v4959_v11  ;;  %v3890_v2 = vld [vmem:[%s7470_s3 + $0x1e0] sm:$0xf]  ;;  %v4147_v7 = vor.u32 %v5089_v1, %v4146_v63  ;;  %v5045_v24 = vld [vmem:[%s7470_s3 + $0x28c] sm:$0xf0] }
  0x1b   : > { %vm342_vm1 = vcmp.lt.f32.partialorder %v5454_v48, 1.5  ;;  %v3986_v5 = vld [vmem:[%s7470_s3 + $0x2a0] sm:$0xf]  ;;  %v3891_v10 = vor.u32 %v5025_v8, %v3890_v2  ;;  %v5077_v34 = vld [vmem:[%s7470_s3 + $0x38c] sm:$0xf0] }
  0x1c   : > { %556 = vmatpush.bf16.msra.mxu0 %v4942_v12  ;;  %v4130_v11 = vld [vmem:[%s7470_s3 + $0x3c0] sm:$0xf]  ;;  %v5085_v12 = vld [vmem:[%s7470_s3 + $0x3cc] sm:$0xf0] }
  0x1d   : > { %569 = vmatpush.bf16.msra.mxu1 %v4950_v13  ;;  %v3874_v13 = vld [vmem:[%s7470_s3 + $0x1c0] sm:$0xf]  ;;  %v4989_v35 = vld [vmem:[%s7470_s3 + $0xcc] sm:$0xf0] }
  0x1e   : > { %582 = vmatpush.bf16.msra.mxu2 %v4958_v14  ;;  %v4131_v14 = vor.u32 %v5085_v12, %v4130_v11  ;;  %v3762_v20 = vld [vmem:[%s7470_s3 + $0xe0] sm:$0xf]  ;;  %v5073_v60 = vld [vmem:[%s7470_s3 + $0x36c] sm:$0xf0] }
  0x1f   : > { %v3858_v22 = vld [vmem:[%s7470_s3 + $0x1a0] sm:$0xf] }
  0x20   : > { %557 = vmatpush.bf16.msra.mxu0 %v4941_v15  ;;  %v5021_v15 = vld [vmem:[%s7470_s3 + $0x1cc] sm:$0xf0]  ;;  %v3970_v23 = vld [vmem:[%s7470_s3 + $0x280] sm:$0xf] }
  0x21   : > { %570 = vmatpush.bf16.msra.mxu1 %v4949_v16  ;;  %v3875_v16 = vor.u32 %v5021_v15, %v3874_v13  ;;  %v5536_v27 = vld [vmem:[%s7470_s3 + $0x260] sm:$0xf]  ;;  %v3971_v40 = vor.u32 %v5045_v24, %v3970_v23  ;;  %v5033_v23 = vld [vmem:[%s7470_s3 + $0x22c] sm:$0xf0] }
  0x22   : > { %583 = vmatpush.bf16.msra.mxu2 %v4957_v17  ;;  %v4114_v17 = vld [vmem:[%s7470_s3 + $0x3a0] sm:$0xf] }
  0x23   : > { %v4098_v33 = vld [vmem:[%s7470_s3 + $0x380] sm:$0xf] }
  0x24   : > { %558 = vmatpush.bf16.msra.mxu0 %v4940_v18  ;;  %v5081_v18 = vld [vmem:[%s7470_s3 + $0x3ac] sm:$0xf0]  ;;  %v4082_v59 = vld [vmem:[%s7470_s3 + $0x360] sm:$0xf] }
  0x25   : > { %571 = vmatpush.bf16.msra.mxu1 %v4948_v19  ;;  %v3987_v19 = vor.u32 %v5049_v6, %v3986_v5  ;;  %v5037_v5 = vld [vmem:[%s7470_s3 + $0x24c] sm:$0xf0]  ;;  %v3714_v6 = vld [vmem:[%s7470_s3 + $0x80] sm:$0xf] }
  0x26   : > { %584 = vmatpush.bf16.msra.mxu2 %v4956_v21  ;;  %v4993_v21 = vld [vmem:[%s7470_s3 + $0xec] sm:$0xf0]  ;;  %v4066_v13 = vld [vmem:[%s7470_s3 + $0x340] sm:$0xf] }
  0x27   : > { %v4566_v48 = vld [vmem:[%s7474_s7 + $0x1a0] sm:$0xf] }
  0x28   : > { %559 = vmatpush.bf16.msra.mxu0 %v4939_v25  ;;  %v3763_v25 = vor.u32 %v4993_v21, %v3762_v20  ;;  %v5005_v20 = vld [vmem:[%s7470_s3 + $0x14c] sm:$0xf0] }
  0x29   : > { %572 = vmatpush.bf16.msra.mxu1 %v4947_v26  ;;  %v5017_v26 = vld [vmem:[%s7470_s3 + $0x1ac] sm:$0xf0] }
  0x2a   : > { %585 = vmatpush.bf16.msra.mxu2 %v4955_v28  ;;  %v4115_v28 = vor.u32 %v5081_v18, %v4114_v17  ;;  %1610 = vmatpush.bf16.msra.mxu3 %v3763_v25  ;;  %v3859_v32 = vor.u32 %v5017_v26, %v3858_v22  ;;  %v3922_v22 = vld [vmem:[%s7470_s3 + $0x220] sm:$0xf]  ;;  %v638_v26 = vunpack.c.l.b16 %v5458_v51 }
  0x2b   : > { %560 = vmatmul.bf16.vlgmr.msra.gmra.mxu0 %v402_v29  ;;  %v3746_v29 = vld [vmem:[%s7470_s3 + $0xc0] sm:$0xf] }
  0x2c   : > { %573 = vmatmul.bf16.vlgmr.msra.gmra.mxu1 %v403_v30  ;;  %1623 = vmatpush.bf16.msrb.mxu0 %v3891_v10  ;;  %v654_v30 = vunpack.c.l.b16 %v5444_v37  ;;  %v677_v37 = vunpack.c.l.b16 %v5448_v39  ;;  %v3747_v42 = vor.u32 %v4989_v35, %v3746_v29  ;;  %v4981_v10 = vld [vmem:[%s7470_s3 + $0x8c] sm:$0xf0]  ;;  %v4050_v51 = vld [vmem:[%s7470_s3 + $0x320] sm:$0xf] }
  0x2d   : > { %586 = vmatmul.bf16.vlgmr.msra.gmra.mxu2 %v404_v31  ;;  %1636 = vmatpush.bf16.msrb.mxu1 %v4019_v62  ;;  %v662_v31 = vunpack.c.l.b16 %v5446_v38  ;;  %v617_v62 = vunpack.c.l.b16 %v5460_v52  ;;  %v3938_v52 = vld [vmem:[%s7470_s3 + $0x240] sm:$0xf]  ;;  %v3715_v15 = vor.u32 %v4981_v10, %v3714_v6  ;;  %v4977_v29 = vld [vmem:[%s7470_s3 + $0x6c] sm:$0xf0]  ;;  %v4004_v6 = vld [vmem:[%s7470_s3 + $0x2d0] sm:$0xf0] }
  0x2e   : > { %1649 = vmatpush.bf16.msrb.mxu2 %v4147_v7  ;;  %1611 = vmatpush.bf16.msra.mxu3 %v3747_v42  ;;  %v3939_v18 = vor.u32 %v5037_v5, %v3938_v52  ;;  %v5029_v42 = vld [vmem:[%s7470_s3 + $0x20c] sm:$0xf0]  ;;  %v5051_v5 = vld [vmem:[%s7470_s3 + $0x2c4] sm:$0xf]  ;;  %v3748_v38 = vld [vmem:[%s7470_s3 + $0xd0] sm:$0xf0] }
  0x2f   : > { %v5047_v10 = vld [vmem:[%s7470_s3 + $0x2a4] sm:$0xf] }
  0x30   : > { %1624 = vmatpush.bf16.msrb.mxu0 %v3875_v16 }
  0x31   : > { %1637 = vmatpush.bf16.msrb.mxu1 %v4003_v4  ;;  %v5009_v4 = vld [vmem:[%s7470_s3 + $0x16c] sm:$0xf0] }
  0x32   : > { %1650 = vmatpush.bf16.msrb.mxu2 %v4131_v14  ;;  %v5069_v14 = vld [vmem:[%s7470_s3 + $0x34c] sm:$0xf0] }
  0x34   : > { %1625 = vmatpush.bf16.msrb.mxu0 %v3859_v32 }
  0x35   : > { %1638 = vmatpush.bf16.msrb.mxu1 %v3987_v19  ;;  %v3810_v19 = vld [vmem:[%s7470_s3 + $0x140] sm:$0xf] }
  0x36   : > { %1651 = vmatpush.bf16.msrb.mxu2 %v4115_v28  ;;  %v3698_v28 = vld [vmem:[%s7470_s3 + $0x60] sm:$0xf]  ;;  %v3811_v32 = vor.u32 %v5005_v20, %v3810_v19  ;;  %v4965_v19 = vld [vmem:[%s7470_s3 + $0xc] sm:$0xf0]  ;;  %v3988_v20 = vld [vmem:[%s7470_s3 + $0x2b0] sm:$0xf0] }
  0x39   : > { %1639 = vmatpush.bf16.msrb.mxu1 %v3971_v40  ;;  %v3794_v40 = vld [vmem:[%s7470_s3 + $0x120] sm:$0xf] }
  0xa8   : > { %v561_v43 = vpop.f32.mrf.mxu0 }
  0xa9   : > { %v574_v44 = vpop.f32.mrf.mxu1  ;;  %v562_v45 = vadd.f32 %v5294_v41, %v561_v43  ;;  %v5041_v41 = vld [vmem:[%s7470_s3 + $0x26c] sm:$0xf0]  ;;  %v3842_v43 = vld [vmem:[%s7470_s3 + $0x180] sm:$0xf] }
  0xaa   : > { %v3955_v57 = vor.u32 %v5041_v41, %v5536_v27  ;;  %v4067_v27 = vor.u32 %v5069_v14, %v4066_v13  ;;  %v5001_v41 = vld [vmem:[%s7470_s3 + $0x12c] sm:$0xf0]  ;;  %v4132_v13 = vld [vmem:[%s7470_s3 + $0x3d0] sm:$0xf0] }
  0xab   : > { %v575_v47 = vadd.f32 %v574_v44, %v562_v45  ;;  %v5013_v44 = vld [vmem:[%s7470_s3 + $0x18c] sm:$0xf0] }
  0xac   : > { %v3843_v58 = vor.u32 %v5013_v44, %v3842_v43  ;;  %1640 = vmatpush.bf16.msrb.mxu1 %v3955_v57  ;;  %v3682_v43 = vld [vmem:[%s7470_s3 + $0x40] sm:$0xf]  ;;  %v4973_v44 = vld [vmem:[%s7470_s3 + $0x4c] sm:$0xf0]  ;;  %v5087_v57 = vld [vmem:[%s7470_s3 + $0x3e4] sm:$0xf] }
  0xae   : > { %1626 = vmatpush.bf16.msrb.mxu0 %v3843_v58  ;;  %v4148_v58 = vld [vmem:[%s7470_s3 + $0x3f0] sm:$0xf0] }
  0xb0   : > { %v587_v49 = vpop.f32.mrf.mxu2  ;;  %v563_v54 = vpop.f32.mrf.mxu0  ;;  %1641 = vmatpush.bf16.msrb.mxu1 %v3939_v18  ;;  %v3650_v18 = vld [vmem:[%s7470_s3] sm:$0xf] }
  0xb1   : > { %v588_v53 = vadd.f32 %v587_v49, %v575_v47  ;;  %v576_v55 = vpop.f32.mrf.mxu1  ;;  %v4099_v54 = vor.u32 %v5077_v34, %v4098_v33  ;;  %v5065_v33 = vld [vmem:[%s7470_s3 + $0x32c] sm:$0xf0]  ;;  %v3699_v34 = vor.u32 %v4977_v29, %v3698_v28  ;;  %v3651_v28 = vor.u32 %v4965_v19, %v3650_v18 }
  0xb2   : > { %v3730_v55 = vld [vmem:[%s7470_s3 + $0xa0] sm:$0xf]  ;;  %v3991_v29 = vor.u32 %v5047_v10, %v3988_v20  ;;  %v5063_v20 = vld [vmem:[%s7470_s3 + $0x324] sm:$0xf] }
  0xb3   : > { %vm591_vm2 = vcmp.ge.f32.partialorder %v588_v53, 0.0  ;;  %v592_v56 = vmul.f32 0.2, %v588_v53  ;;  %1652 = vmatpush.bf16.msrb.mxu2 %v4099_v54  ;;  %v4034_v54 = vld [vmem:[%s7470_s3 + $0x300] sm:$0xf] }
  0xb5   : > { %v593_v61 = vsel %vm591_vm2, %v588_v53, %v592_v56  ;;  %v4985_v56 = vld [vmem:[%s7470_s3 + $0xac] sm:$0xf0] }
  0xb6   : > { %v596_v0 = vsel %vm342_vm1, %v593_v61, 0.0  ;;  %v3731_v61 = vor.u32 %v4985_v56, %v3730_v55  ;;  %v3795_v55 = vor.u32 %v5001_v41, %v3794_v40  ;;  %v5061_v56 = vld [vmem:[%s7470_s3 + $0x30c] sm:$0xf0]  ;;  %v5075_v40 = vld [vmem:[%s7470_s3 + $0x384] sm:$0xf] }
  0xb7   : > { %v600_v3 = vpack.c.bf16 %v596_v0, %v596_v0  ;;  %v4100_v41 = vld [vmem:[%s7470_s3 + $0x390] sm:$0xf0] }
  0xb8   : > { %v589_v9 = vpop.f32.mrf.mxu2  ;;  %1612 = vmatpush.bf16.msra.mxu3 %v3731_v61  ;;  %v3778_v61 = vld [vmem:[%s7470_s3 + $0x100] sm:$0xf] }
  0xb9   : > { %601 = vst.msk [vmem:[#allocation2 + $0x8] sm:$0xf] %vm597_vm0, %v600_v3  ;;  %v3826_v3 = vld [vmem:[%s7470_s3 + $0x160] sm:$0xf]  ;;  %v4083_v9 = vor.u32 %v5073_v60, %v4082_v59  ;;  %v3683_v59 = vor.u32 %v4973_v44, %v3682_v43  ;;  %v5039_v43 = vld [vmem:[%s7470_s3 + $0x264] sm:$0xf] }
  0xba   : > { %v3827_v12 = vor.u32 %v5009_v4, %v3826_v3  ;;  %v3666_v3 = vld [vmem:[%s7470_s3 + $0x20] sm:$0xf]  ;;  %v4969_v4 = vld [vmem:[%s7470_s3 + $0x2c] sm:$0xf0]  ;;  %v3956_v44 = vld [vmem:[%s7470_s3 + $0x270] sm:$0xf0] }
  0xbb   : > { %1653 = vmatpush.bf16.msrb.mxu2 %v4083_v9  ;;  %v3667_v14 = vor.u32 %v4969_v4, %v3666_v3  ;;  %v4178_v3 = vld [vmem:[%s7470_s3 + $0x420] sm:$0xf]  ;;  %v5097_v4 = vld [vmem:[%s7470_s3 + $0x42c] sm:$0xf0] }
  0xbc   : > { %1627 = vmatpush.bf16.msrb.mxu0 %v3827_v12  ;;  %1613 = vmatpush.bf16.msra.mxu3 %v3715_v15  ;;  %v5083_v12 = vld [vmem:[%s7470_s3 + $0x3c4] sm:$0xf] }
  0xbd   : > { %v5019_v15 = vld [vmem:[%s7470_s3 + $0x1c4] sm:$0xf] }
  0xbf   : > { %1654 = vmatpush.bf16.msrb.mxu2 %v4067_v27  ;;  %v4116_v27 = vld [vmem:[%s7470_s3 + $0x3b0] sm:$0xf0] }
  0xc0   : > { %v609_v45 = vld [vmem:[#allocation2 + $0x8] sm:$0xf]  ;;  %1628 = vmatpush.bf16.msrb.mxu0 %v3811_v32  ;;  %1614 = vmatpush.bf16.msra.mxu3 %v3699_v34  ;;  %v5015_v32 = vld [vmem:[%s7470_s3 + $0x1a4] sm:$0xf]  ;;  %v3972_v34 = vld [vmem:[%s7470_s3 + $0x290] sm:$0xf0] }
  0xc1   : > { %v605_v46 = vld [vmem:[#allocation2 + $0x8] sm:$0x3]  ;;  %v613_v47 = vld [vmem:[#allocation2 + $0x8] sm:$0xc]  ;;  %v5563_v49 = vunpack.c.l.b16 %v609_v45 }
  0xc2   : > { %v618_v39 = vunpack.c.l.b16 %v605_v46  ;;  %v665_v53 = vunpack.c.l.b16 %v613_v47  ;;  %v5055_v47 = vld [vmem:[%s7470_s3 + $0x2e4] sm:$0xf] }
  0xc3   : > { %v655_v63 = vpack.c.b16 %v654_v30, %v5563_v49  ;;  %v3906_v30 = vld [vmem:[%s7470_s3 + $0x200] sm:$0xf]  ;;  %v640_v46 = vpack.c.b16 %v5563_v49, %v638_v26  ;;  %v5079_v26 = vld [vmem:[%s7470_s3 + $0x3a4] sm:$0xf] }
  0xc4   : > { %v622_v0 = vpack.c.b16 %v618_v39, %v621_v36  ;;  %v666_v1 = vpack.c.b16 %v662_v31, %v665_v53  ;;  %v5584_v2 = vpack.c.b16 %v677_v37, %v665_v53  ;;  %v5617_v21 = vpack.c.b16 %v618_v39, %v617_v62  ;;  %v4020_v39 = vld [vmem:[%s7470_s3 + $0x2f0] sm:$0xf0]  ;;  %v4997_v62 = vld [vmem:[%s7470_s3 + $0x10c] sm:$0xf0]  ;;  %1629 = vmatpush.bf16.msrb.mxu0 %v3795_v55 }
  0xc5   : > { %v656_v7 = vrot.slane %v655_v63, 7  ;;  %v3923_v37 = vor.u32 %v5033_v23, %v3922_v22  ;;  %v4051_v53 = vor.u32 %v5065_v33, %v4050_v51  ;;  %v3907_v60 = vor.u32 %v5029_v42, %v3906_v30  ;;  %v5023_v63 = vld [vmem:[%s7470_s3 + $0x1e4] sm:$0xf]  ;;  %1615 = vmatpush.bf16.msra.mxu3 %v3683_v59  ;;  %v4210_v22 = vld [vmem:[%s7470_s3 + $0x460] sm:$0xf] }
  0xc6   : > { %v626_v8 = vshll.u32 %v622_v0, 16  ;;  %v670_v11 = vshll.u32 %v666_v1, 16  ;;  %v624_v16 = vshrl.u32 %v622_v0, 16  ;;  %v668_v35 = vshrl.u32 %v666_v1, 16  ;;  %v3892_v1 = vld [vmem:[%s7470_s3 + $0x1f0] sm:$0xf0] }
  0xc7   : > { %657 = vrot.lane.b32.xlu1 %v656_v7, %s5305_s16  ;;  %1642 = vmatpush.bf16.msrb.mxu1 %v3923_v37  ;;  %v4023_v0 = vor.u32 %v5055_v47, %v4020_v39  ;;  %v641_v52 = vrot.slane %v640_v46, 2  ;;  %v4035_v7 = vor.u32 %v5061_v56, %v4034_v54  ;;  %v3779_v9 = vor.u32 %v4997_v62, %v3778_v61  ;;  %v5105_v23 = vld [vmem:[%s7470_s3 + $0x46c] sm:$0xf0]  ;;  %v3860_v51 = vld [vmem:[%s7470_s3 + $0x1b0] sm:$0xf0] }
  0xc8   : > { %v628_v17 = vrot.slane %v626_v8, 1  ;;  %v672_v25 = vrot.slane %v670_v11, 1  ;;  %1655 = vmatpush.bf16.msrb.mxu2 %v4051_v53  ;;  %v4151_v8 = vor.u32 %v5087_v57, %v4148_v58  ;;  %v3895_v11 = vor.u32 %v5023_v63, %v3892_v1  ;;  %v5043_v33 = vld [vmem:[%s7470_s3 + $0x284] sm:$0xf]  ;;  %v3940_v39 = vld [vmem:[%s7470_s3 + $0x250] sm:$0xf0] }
  0xc9   : > { %1630 = vmatpush.bf16.msrb.mxu0 %v3779_v9  ;;  %1616 = vmatpush.bf16.msra.mxu3 %v3667_v14  ;;  %v4211_v30 = vor.u32 %v5105_v23, %v4210_v22  ;;  %v3863_v37 = vor.u32 %v5015_v32, %v3860_v51  ;;  %v3975_v42 = vor.u32 %v5043_v33, %v3972_v34  ;;  %v5035_v47 = vld [vmem:[%s7470_s3 + $0x244] sm:$0xf]  ;;  %v4194_v54 = vld [vmem:[%s7470_s3 + $0x440] sm:$0xf]  ;;  %v5101_v55 = vld [vmem:[%s7470_s3 + $0x44c] sm:$0xf0] }
  0xca   : > { %v629_v24 = vor.u32 %v628_v17, %v624_v16  ;;  %v673_v45 = vor.u32 %v672_v25, %v668_v35  ;;  %v4007_v16 = vor.u32 %v5051_v5, %v4004_v6  ;;  %v3876_v17 = vld [vmem:[%s7470_s3 + $0x1d0] sm:$0xf0]  ;;  %v4119_v35 = vor.u32 %v5079_v26, %v4116_v27  ;;  %v5011_v56 = vld [vmem:[%s7470_s3 + $0x184] sm:$0xf]  ;;  %v4162_v14 = vld [vmem:[%s7470_s3 + $0x400] sm:$0xf] }
  0xcb   : > { %1643 = vmatpush.bf16.msrb.mxu1 %v3907_v60  ;;  %v3879_v25 = vor.u32 %v5019_v15, %v3876_v17  ;;  %v3959_v46 = vor.u32 %v5039_v43, %v3956_v44  ;;  %v3943_v53 = vor.u32 %v5035_v47, %v3940_v39  ;;  %v4195_v57 = vor.u32 %v5101_v55, %v4194_v54  ;;  %v3844_v58 = vld [vmem:[%s7470_s3 + $0x190] sm:$0xf0]  ;;  %v5031_v59 = vld [vmem:[%s7470_s3 + $0x224] sm:$0xf]  ;;  %v5093_v15 = vld [vmem:[%s7470_s3 + $0x40c] sm:$0xf0] }
  0xcc   : > { %630 = vrot.lane.b32.xlu0 %v629_v24, %s5305_s16  ;;  %1656 = vmatpush.bf16.msrb.mxu2 %v4035_v7  ;;  %v4135_v24 = vor.u32 %v5083_v12, %v4132_v13  ;;  %v3924_v60 = vld [vmem:[%s7470_s3 + $0x230] sm:$0xf0]  ;;  %v3847_v61 = vor.u32 %v5011_v56, %v3844_v58  ;;  %v5071_v63 = vld [vmem:[%s7470_s3 + $0x364] sm:$0xf]  ;;  %v4179_v5 = vor.u32 %v5097_v4, %v4178_v3  ;;  %v607_v43 = vld [vmem:[#allocation2 + $0x8] sm:$0x7] }
  0xcd   : > { %1688 = vmatpush.bf16.msra.mxu0 %v3895_v11  ;;  %1617 = vmatpush.bf16.msra.mxu3 %v3651_v28  ;;  %v3927_v62 = vor.u32 %v5031_v59, %v3924_v60  ;;  %v3828_v6 = vld [vmem:[%s7470_s3 + $0x170] sm:$0xf0]  ;;  %v5027_v7 = vld [vmem:[%s7470_s3 + $0x204] sm:$0xf]  ;;  %v4163_v18 = vor.u32 %v5093_v15, %v4162_v14  ;;  %v3898_v47 = vld [vmem:[%s7470_s3 + $0x1e8] sm:$0xf]  ;;  %v633_v54 = vunpack.c.l.b16 %v607_v43 }
  0xce   : > { %v5067_v11 = vld [vmem:[%s7470_s3 + $0x344] sm:$0xf]  ;;  %v4068_v12 = vld [vmem:[%s7470_s3 + $0x350] sm:$0xf0]  ;;  %v5026_v39 = vld [vmem:[%s7470_s3 + $0x1f4] sm:$0xf0] }
  0xcf   : > { %674 = vrot.lane.b32.xlu1 %v673_v45, %s5305_s16  ;;  %1701 = vmatpush.bf16.msra.mxu1 %v4023_v0  ;;  %v4103_v45 = vor.u32 %v5075_v40, %v4100_v41  ;;  %v4084_v0 = vld [vmem:[%s7470_s3 + $0x370] sm:$0xf0]  ;;  %v4071_v13 = vor.u32 %v5067_v11, %v4068_v12  ;;  %v5059_v27 = vld [vmem:[%s7470_s3 + $0x304] sm:$0xf]  ;;  %v3899_v59 = vor.u32 %v5026_v39, %v3898_v47  ;;  %v3882_v60 = vld [vmem:[%s7470_s3 + $0x1c8] sm:$0xf] }
  0xd0   : > { %1714 = vmatpush.bf16.msra.mxu2 %v4151_v8  ;;  %v4087_v1 = vor.u32 %v5071_v63, %v4084_v0  ;;  %v3908_v8 = vld [vmem:[%s7470_s3 + $0x210] sm:$0xf0]  ;;  %v634_v4 = vpack.c.b16 %v633_v54, %v621_v36  ;;  %v3866_v11 = vld [vmem:[%s7470_s3 + $0x1a8] sm:$0xf]  ;;  %v5018_v12 = vld [vmem:[%s7470_s3 + $0x1b4] sm:$0xf0] }
  0xd1   : > { %1689 = vmatpush.bf16.msra.mxu0 %v3879_v25  ;;  %1666 = vmatpush.bf16.msrb.mxu3 %v4211_v30  ;;  %v3911_v10 = vor.u32 %v5027_v7, %v3908_v8  ;;  %v3812_v17 = vld [vmem:[%s7470_s3 + $0x150] sm:$0xf0]  ;;  %v644_v25 = vpack.c.b16 %v5563_v49, %v5563_v49  ;;  %v4995_v49 = vld [vmem:[%s7470_s3 + $0x104] sm:$0xf]  ;;  %v4026_v14 = vld [vmem:[%s7470_s3 + $0x2e8] sm:$0xf] }
  0xd2   : > { %v4052_v22 = vld [vmem:[%s7470_s3 + $0x330] sm:$0xf0]  ;;  %v5058_v15 = vld [vmem:[%s7470_s3 + $0x2f4] sm:$0xf0]  ;;  %v3754_v39 = vld [vmem:[%s7470_s3 + $0xc8] sm:$0xf] }
  0xd3   : > { %1702 = vmatpush.bf16.msra.mxu1 %v4007_v16  ;;  %v5003_v16 = vld [vmem:[%s7470_s3 + $0x144] sm:$0xf]  ;;  %v4055_v23 = vor.u32 %v5063_v20, %v4052_v22  ;;  %v3796_v26 = vld [vmem:[%s7470_s3 + $0x130] sm:$0xf0]  ;;  %v646_v51 = vshrl.u32 %v644_v25, 16  ;;  %v649_v33 = vshll.u32 %v644_v25, 16 }
  0xd4   : > { %642 = vrot.lane.b32.xlu0 %v641_v52, %s5305_s16  ;;  %1715 = vmatpush.bf16.msra.mxu2 %v4135_v24  ;;  %v5007_v52 = vld [vmem:[%s7470_s3 + $0x164] sm:$0xf]  ;;  %v3815_v19 = vor.u32 %v5003_v16, %v3812_v17  ;;  %v4036_v28 = vld [vmem:[%s7470_s3 + $0x310] sm:$0xf0]  ;;  %v3834_v54 = vld [vmem:[%s7470_s3 + $0x168] sm:$0xf] }
  0xd5   : > { %1690 = vmatpush.bf16.msra.mxu0 %v3863_v37  ;;  %1667 = vmatpush.bf16.msrb.mxu3 %v4195_v57  ;;  %v3831_v9 = vor.u32 %v5007_v52, %v3828_v6  ;;  %v4999_v24 = vld [vmem:[%s7470_s3 + $0x124] sm:$0xf]  ;;  %v4039_v30 = vor.u32 %v5059_v27, %v4036_v28  ;;  %v3780_v32 = vld [vmem:[%s7470_s3 + $0x110] sm:$0xf0]  ;;  %v651_v37 = vrot.slane %v649_v33, 7 }
  0xd6   : > { %v3783_v34 = vor.u32 %v4995_v49, %v3780_v32  ;;  %v3732_v25 = vld [vmem:[%s7470_s3 + $0xb0] sm:$0xf0]  ;;  %v3850_v49 = vld [vmem:[%s7470_s3 + $0x188] sm:$0xf]  ;;  %v5014_v32 = vld [vmem:[%s7470_s3 + $0x194] sm:$0xf0] }
  0xd7   : > { %1703 = vmatpush.bf16.msra.mxu1 %v3991_v29  ;;  %v3799_v29 = vor.u32 %v4999_v24, %v3796_v26  ;;  %v4983_v24 = vld [vmem:[%s7470_s3 + $0xa4] sm:$0xf]  ;;  %v3770_v26 = vld [vmem:[%s7470_s3 + $0xe8] sm:$0xf]  ;;  %v5054_v33 = vld [vmem:[%s7470_s3 + $0x2d4] sm:$0xf0] }
  0xd8   : > { %1716 = vmatpush.bf16.msra.mxu2 %v4119_v35  ;;  %v648_v35 = vrot.slane %v646_v51, 6  ;;  %v4010_v51 = vld [vmem:[%s7470_s3 + $0x2c8] sm:$0xf] }
  0xd9   : > { %1691 = vmatpush.bf16.msra.mxu0 %v3847_v61  ;;  %1668 = vmatpush.bf16.msrb.mxu3 %v4179_v5  ;;  %v5022_v61 = vld [vmem:[%s7470_s3 + $0x1d4] sm:$0xf0]  ;;  %v4011_v47 = vor.u32 %v5054_v33, %v4010_v51 }
  0xda   : > { %v652_v40 = vor.u32 %v651_v37, %v648_v35  ;;  %v3883_v8 = vor.u32 %v5022_v61, %v3882_v60  ;;  %v3735_v37 = vor.u32 %v4983_v24, %v3732_v25  ;;  %v3706_v25 = vld [vmem:[%s7470_s3 + $0x68] sm:$0xf] }
  0xdb   : > { %1704 = vmatpush.bf16.msra.mxu1 %v3975_v42  ;;  %v611_v42 = vld [vmem:[#allocation2 + $0x8] sm:$0xe] }
  0xdc   : > { %1717 = vmatpush.bf16.msra.mxu2 %v4103_v45 }
  0xdd   : > { %1692 = vmatpush.bf16.msra.mxu0 %v3831_v9  ;;  %1669 = vmatpush.bf16.msrb.mxu3 %v4163_v18 }
  0xdf   : > { %1705 = vmatpush.bf16.msra.mxu1 %v3959_v46 }
  0xe0   : > { %1718 = vmatpush.bf16.msra.mxu2 %v4087_v1  ;;  %v4991_v1 = vld [vmem:[%s7470_s3 + $0xe4] sm:$0xf] }
  0xe1   : > { %1693 = vmatpush.bf16.msra.mxu0 %v3815_v19  ;;  %v679_v19 = vrot.slane %v5584_v2, 1 }
  0xe3   : > { %1706 = vmatpush.bf16.msra.mxu1 %v3943_v53  ;;  %v661_v53 = vunpack.c.l.b16 %v611_v42  ;;  %v3716_v42 = vld [vmem:[%s7470_s3 + $0x90] sm:$0xf0]  ;;  %v876_v43 = vshrl.u32 %v679_v19, 16 }
  0xe4   : > { %1719 = vmatpush.bf16.msra.mxu2 %v4071_v13  ;;  %v635_v13 = vrot.slane %v634_v4, 1  ;;  %v4986_v4 = vld [vmem:[%s7470_s3 + $0xb4] sm:$0xf0] }
  0xe5   : > { %1694 = vmatpush.bf16.msra.mxu0 %v3799_v29  ;;  %v663_v3 = vpack.c.b16 %v662_v31, %v661_v53  ;;  %v4027_v29 = vor.u32 %v5058_v15, %v4026_v14  ;;  %v4990_v53 = vld [vmem:[%s7470_s3 + $0xd4] sm:$0xf0]  ;;  %v878_v60 = vrot.slane %v876_v43, 1  ;;  %v3802_v14 = vld [vmem:[%s7470_s3 + $0x128] sm:$0xf] }
  0xe6   : > { %v5002_v15 = vld [vmem:[%s7470_s3 + $0x134] sm:$0xf0] }
  0xe7   : > { %1707 = vmatpush.bf16.msra.mxu1 %v3927_v62 }
  0xe8   : > { %1720 = vmatpush.bf16.msra.mxu2 %v4055_v23  ;;  %v3867_v23 = vor.u32 %v5018_v12, %v3866_v11  ;;  %v3722_v12 = vld [vmem:[%s7470_s3 + $0x88] sm:$0xf] }
  0xe9   : > { %1695 = vmatpush.bf16.msra.mxu0 %v3783_v34 }
  0xeb   : > { %1708 = vmatpush.bf16.msra.mxu1 %v3911_v10  ;;  %v4987_v10 = vld [vmem:[%s7470_s3 + $0xc4] sm:$0xf] }
  0xec   : > { %1721 = vmatpush.bf16.msra.mxu2 %v4039_v30  ;;  %v3751_v22 = vor.u32 %v4987_v10, %v3748_v38  ;;  %v4994_v30 = vld [vmem:[%s7470_s3 + $0xf4] sm:$0xf0]  ;;  %v4971_v10 = vld [vmem:[%s7470_s3 + $0x44] sm:$0xf]  ;;  %v3684_v38 = vld [vmem:[%s7470_s3 + $0x50] sm:$0xf0] }
 0x139   : > { %v658_v41 = vpop.permute.xlu1 %657 }
 0x13a   : > { %v689_v44 = vsel %vm680_vm3, %v652_v40, %v658_v41  ;;  %v3771_v40 = vor.u32 %v4994_v30, %v3770_v26  ;;  %v4979_v41 = vld [vmem:[%s7470_s3 + $0x84] sm:$0xf]  ;;  %v4978_v26 = vld [vmem:[%s7470_s3 + $0x74] sm:$0xf0] }
 0x13b   : > { %v861_v45 = vshrl.u32 %v689_v44, 16  ;;  %v864_v46 = vshll.u32 %v689_v44, 16  ;;  %v879_v44 = vshll.u32 %v679_v19, 16  ;;  %v5038_v30 = vld [vmem:[%s7470_s3 + $0x254] sm:$0xf0]  ;;  %v3707_v33 = vor.u32 %v4978_v26, %v3706_v25 }
 0x13c   : > { %v4164_v25 = vld [vmem:[%s7470_s3 + $0x410] sm:$0xf0]  ;;  %v4202_v26 = vld [vmem:[%s7470_s3 + $0x448] sm:$0xf] }
 0x13d   : > { %v863_v55 = vrot.slane %v861_v45, 1  ;;  %v866_v56 = vrot.slane %v864_v46, 2  ;;  %v3851_v46 = vor.u32 %v5014_v32, %v3850_v49  ;;  %v881_v61 = vrot.slane %v879_v44, 2  ;;  %v4992_v49 = vld [vmem:[%s7470_s3 + $0xec] sm:$0xf] }
 0x13e   : > { %v631_v57 = vpop.permute.xlu0 %630  ;;  %v3772_v32 = vld [vmem:[%s7470_s3 + $0xf8] sm:$0xf0]  ;;  %v3930_v44 = vld [vmem:[%s7470_s3 + $0x228] sm:$0xf] }
 0x13f   : > { %v683_v58 = vsel %vm680_vm3, %v5617_v21, %v631_v57  ;;  %v5869_v62 = vor.u32 %v866_v56, %v863_v55  ;;  %v3764_v21 = vld [vmem:[%s7470_s3 + $0xf0] sm:$0xf0]  ;;  %v5010_v55 = vld [vmem:[%s7470_s3 + $0x174] sm:$0xf0]  ;;  %v3994_v56 = vld [vmem:[%s7470_s3 + $0x2a8] sm:$0xf]  ;;  %v3775_v43 = vor.u32 %v4992_v49, %v3772_v32 }
 0x140   : > { %v847_v63 = vshrl.u32 %v683_v58, 16  ;;  %v850_v0 = vshll.u32 %v683_v58, 16  ;;  %v3767_v9 = vor.u32 %v4991_v1, %v3764_v21  ;;  %v5050_v57 = vld [vmem:[%s7470_s3 + $0x2b4] sm:$0xf0]  ;;  %v3719_v58 = vor.u32 %v4979_v41, %v3716_v42  ;;  %v3690_v41 = vld [vmem:[%s7470_s3 + $0x48] sm:$0xf] }
 0x141   : > { %v675_v6 = vpop.permute.xlu1 %674  ;;  %1644 = vmatmul.bf16.vlgmr.msrb.gmra.mxu1 %v5869_v62  ;;  %v3835_v1 = vor.u32 %v5010_v55, %v3834_v54  ;;  %v3995_v21 = vor.u32 %v5050_v57, %v3994_v56  ;;  %v4974_v42 = vld [vmem:[%s7470_s3 + $0x54] sm:$0xf0]  ;;  %v3756_v54 = vld [vmem:[%s7470_s3 + $0xd8] sm:$0xf0]  ;;  %v5016_v49 = vld [vmem:[%s7470_s3 + $0x1ac] sm:$0xf] }
 0x142   : > { %v849_v52 = vrot.slane %v847_v63, 1  ;;  %v852_v5 = vrot.slane %v850_v0, 2  ;;  %v692_v7 = vsel %vm680_vm3, %v663_v3, %v675_v6  ;;  %1753 = vmatpush.bf16.msrb.mxu1 %v3899_v59  ;;  %v3755_v59 = vor.u32 %v4990_v53, %v3754_v39  ;;  %v4975_v63 = vld [vmem:[%s7470_s3 + $0x64] sm:$0xf]  ;;  %v3700_v0 = vld [vmem:[%s7470_s3 + $0x70] sm:$0xf0] }
 0x143   : > { %v868_v31 = vshrl.u32 %v692_v7, 16  ;;  %v871_v36 = vshll.u32 %v692_v7, 16  ;;  %v3738_v3 = vld [vmem:[%s7470_s3 + $0xa8] sm:$0xf]  ;;  %v5046_v7 = vld [vmem:[%s7470_s3 + $0x294] sm:$0xf0]  ;;  %v3691_v56 = vor.u32 %v4974_v42, %v3690_v41 }
 0x144   : > { %v5889_v50 = vor.u32 %v852_v5, %v849_v52  ;;  %v3818_v52 = vld [vmem:[%s7470_s3 + $0x148] sm:$0xf]  ;;  %v5006_v5 = vld [vmem:[%s7470_s3 + $0x154] sm:$0xf0]  ;;  %v4212_v39 = vld [vmem:[%s7470_s3 + $0x470] sm:$0xf0] }
 0x145   : > { %v870_v16 = vrot.slane %v868_v31, 1  ;;  %v873_v17 = vrot.slane %v871_v36, 2  ;;  %v3978_v6 = vld [vmem:[%s7470_s3 + $0x288] sm:$0xf]  ;;  %v5991_v31 = vor.u32 %v881_v61, %v878_v60  ;;  %v3819_v36 = vor.u32 %v5006_v5, %v3818_v52  ;;  %v4988_v53 = vld [vmem:[%s7470_s3 + $0xcc] sm:$0xf] }
 0x146   : > { %v643_v18 = vpop.permute.xlu0 %642  ;;  %1618 = vmatmul.bf16.vlgmr.msra.gmra.mxu3 %v5889_v50  ;;  %1754 = vmatpush.bf16.msrb.mxu1 %v3883_v8  ;;  %v3703_v8 = vor.u32 %v4975_v63, %v3700_v0  ;;  %v3979_v11 = vor.u32 %v5046_v7, %v3978_v6  ;;  %v3759_v61 = vor.u32 %v4988_v53, %v3756_v54  ;;  %v3914_v63 = vld [vmem:[%s7470_s3 + $0x208] sm:$0xf]  ;;  %v5030_v0 = vld [vmem:[%s7470_s3 + $0x214] sm:$0xf0]  ;;  %v5024_v5 = vld [vmem:[%s7470_s3 + $0x1ec] sm:$0xf] }
 0x147   : > { %v686_v20 = vsel %vm680_vm3, %v635_v13, %v643_v18  ;;  %1675 = vmatpush.bf16.msra.mxu3 %v3767_v9  ;;  %v5915_v27 = vor.u32 %v873_v17, %v870_v16  ;;  %v3739_v9 = vor.u32 %v4986_v4, %v3738_v3  ;;  %v4982_v13 = vld [vmem:[%s7470_s3 + $0x94] sm:$0xf0]  ;;  %v3962_v16 = vld [vmem:[%s7470_s3 + $0x268] sm:$0xf]  ;;  %v3687_v18 = vor.u32 %v4971_v10, %v3684_v38  ;;  %v4984_v3 = vld [vmem:[%s7470_s3 + $0xac] sm:$0xf] }
 0x148   : > { %v854_v2 = vshrl.u32 %v686_v20, 16  ;;  %v857_v28 = vshll.u32 %v686_v20, 16  ;;  %v5042_v17 = vld [vmem:[%s7470_s3 + $0x274] sm:$0xf0]  ;;  %v3723_v19 = vor.u32 %v4982_v13, %v3722_v12  ;;  %v4967_v20 = vld [vmem:[%s7470_s3 + $0x24] sm:$0xf]  ;;  %v3915_v7 = vor.u32 %v5030_v0, %v3914_v63 }
 0x149   : > { %1657 = vmatmul.bf16.vlgmr.msrb.gmra.mxu2 %v5915_v27  ;;  %v3963_v24 = vor.u32 %v5042_v17, %v3962_v16  ;;  %v3740_v4 = vld [vmem:[%s7470_s3 + $0xb8] sm:$0xf0]  ;;  %v5106_v12 = vld [vmem:[%s7470_s3 + $0x474] sm:$0xf0]  ;;  %v4138_v53 = vld [vmem:[%s7470_s3 + $0x3c8] sm:$0xf] }
 0x14a   : > { %v856_v34 = vrot.slane %v854_v2, 1  ;;  %v859_v35 = vrot.slane %v857_v28, 2  ;;  %1755 = vmatpush.bf16.msrb.mxu1 %v3867_v23  ;;  %1766 = vmatpush.bf16.msrb.mxu2 %v4027_v29  ;;  %v3803_v23 = vor.u32 %v5002_v15, %v3802_v14  ;;  %v3786_v2 = vld [vmem:[%s7470_s3 + $0x108] sm:$0xf]  ;;  %v4998_v28 = vld [vmem:[%s7470_s3 + $0x114] sm:$0xf0]  ;;  %v3743_v38 = vor.u32 %v4984_v3, %v3740_v4 }
 0x14b   : > { %1676 = vmatpush.bf16.msra.mxu3 %v3751_v22  ;;  %v3668_v22 = vld [vmem:[%s7470_s3 + $0x30] sm:$0xf0]  ;;  %v3946_v29 = vld [vmem:[%s7470_s3 + $0x248] sm:$0xf]  ;;  %v3900_v6 = vld [vmem:[%s7470_s3 + $0x1f8] sm:$0xf0] }
 0x14c   : > { %v5939_v45 = vor.u32 %v859_v35, %v856_v34  ;;  %v3671_v51 = vor.u32 %v4967_v20, %v3668_v22  ;;  %v4963_v34 = vld [vmem:[%s7470_s3 + $0x4] sm:$0xf]  ;;  %v3787_v35 = vor.u32 %v4998_v28, %v3786_v2  ;;  %v3903_v13 = vor.u32 %v5024_v5, %v3900_v6  ;;  %v4180_v14 = vld [vmem:[%s7470_s3 + $0x430] sm:$0xf0]  ;;  %v4980_v15 = vld [vmem:[%s7470_s3 + $0x8c] sm:$0xf] }
 0x14d   : > { %v3724_v16 = vld [vmem:[%s7470_s3 + $0x98] sm:$0xf0]  ;;  %v5091_v22 = vld [vmem:[%s7470_s3 + $0x404] sm:$0xf]  ;;  %v5102_v2 = vld [vmem:[%s7470_s3 + $0x454] sm:$0xf0] }
 0x14e   : > { %1631 = vmatmul.bf16.vlgmr.msrb.gmra.mxu0 %v5939_v45  ;;  %1756 = vmatpush.bf16.msrb.mxu1 %v3851_v46  ;;  %v5034_v46 = vld [vmem:[%s7470_s3 + $0x234] sm:$0xf0]  ;;  %v3868_v32 = vld [vmem:[%s7470_s3 + $0x1b8] sm:$0xf0]  ;;  %v5008_v0 = vld [vmem:[%s7470_s3 + $0x16c] sm:$0xf] }
 0x14f   : > { %1677 = vmatpush.bf16.msra.mxu3 %v3735_v37  ;;  %1740 = vmatpush.bf16.msrb.mxu0 %v3771_v40  ;;  %v3947_v37 = vor.u32 %v5038_v30, %v3946_v29  ;;  %v3652_v40 = vld [vmem:[%s7470_s3 + $0x10] sm:$0xf0]  ;;  %v3931_v57 = vor.u32 %v5034_v46, %v3930_v44  ;;  %v4976_v29 = vld [vmem:[%s7470_s3 + $0x6c] sm:$0xf]  ;;  %v3708_v30 = vld [vmem:[%s7470_s3 + $0x78] sm:$0xf0]  ;;  %v3871_v42 = vor.u32 %v5016_v49, %v3868_v32 }
 0x150   : > { %1767 = vmatpush.bf16.msrb.mxu2 %v4011_v47  ;;  %v5103_v47 = vld [vmem:[%s7470_s3 + $0x464] sm:$0xf]  ;;  %v3655_v55 = vor.u32 %v4963_v34, %v3652_v40  ;;  %v4203_v34 = vor.u32 %v5102_v2, %v4202_v26  ;;  %v4186_v40 = vld [vmem:[%s7470_s3 + $0x428] sm:$0xf]  ;;  %v5098_v41 = vld [vmem:[%s7470_s3 + $0x434] sm:$0xf0] }
 0x151   : > { %1709 = vmatmul.bf16.vlgmr.msra.gmra.mxu1 %v5869_v62  ;;  %v4215_v60 = vor.u32 %v5103_v47, %v4212_v39  ;;  %v4972_v44 = vld [vmem:[%s7470_s3 + $0x4c] sm:$0xf]  ;;  %v3692_v46 = vld [vmem:[%s7470_s3 + $0x58] sm:$0xf0]  ;;  %v5086_v54 = vld [vmem:[%s7470_s3 + $0x3d4] sm:$0xf0] }
 0x152   : > { %1757 = vmatpush.bf16.msrb.mxu1 %v3835_v1  ;;  %v5099_v1 = vld [vmem:[%s7470_s3 + $0x444] sm:$0xf]  ;;  %v5012_v47 = vld [vmem:[%s7470_s3 + $0x18c] sm:$0xf]  ;;  %v3852_v39 = vld [vmem:[%s7470_s3 + $0x198] sm:$0xf0]  ;;  %v4139_v63 = vor.u32 %v5086_v54, %v4138_v53 }
 0x153   : > { %1678 = vmatpush.bf16.msra.mxu3 %v3719_v58  ;;  %1741 = vmatpush.bf16.msrb.mxu0 %v3755_v59  ;;  %v3674_v58 = vld [vmem:[%s7470_s3 + $0x28] sm:$0xf]  ;;  %v4970_v59 = vld [vmem:[%s7470_s3 + $0x34] sm:$0xf0]  ;;  %v3836_v3 = vld [vmem:[%s7470_s3 + $0x178] sm:$0xf0] }
 0x154   : > { %1768 = vmatpush.bf16.msrb.mxu2 %v3995_v21  ;;  %v4196_v21 = vld [vmem:[%s7470_s3 + $0x450] sm:$0xf0]  ;;  %v3675_v52 = vor.u32 %v4970_v59, %v3674_v58  ;;  %v5094_v58 = vld [vmem:[%s7470_s3 + $0x414] sm:$0xf0]  ;;  %v4968_v59 = vld [vmem:[%s7470_s3 + $0x2c] sm:$0xf] }
 0x155   : > { %v4199_v10 = vor.u32 %v5099_v1, %v4196_v21  ;;  %v5088_v1 = vld [vmem:[%s7470_s3 + $0x3ec] sm:$0xf]  ;;  %v4156_v21 = vld [vmem:[%s7470_s3 + $0x3f8] sm:$0xf0]  ;;  %v4122_v4 = vld [vmem:[%s7470_s3 + $0x3a8] sm:$0xf] }
 0x156   : > { %4224 = vmatmul.msk.bf16.vlgmr.msrb.gmra.mxu3 %vm680_vm3, %v5991_v31  ;;  %1758 = vmatpush.bf16.msrb.mxu1 %v3819_v36  ;;  %v5095_v36 = vld [vmem:[%s7470_s3 + $0x424] sm:$0xf]  ;;  %v3804_v26 = vld [vmem:[%s7470_s3 + $0x138] sm:$0xf0]  ;;  %v5072_v54 = vld [vmem:[%s7470_s3 + $0x36c] sm:$0xf] }
 0x157   : > { %1679 = vmatpush.bf16.msra.mxu3 %v3703_v8  ;;  %1742 = vmatpush.bf16.msrb.mxu0 %v3739_v9  ;;  %v3658_v8 = vld [vmem:[%s7470_s3 + $0x8] sm:$0xf]  ;;  %v4966_v9 = vld [vmem:[%s7470_s3 + $0x14] sm:$0xf0]  ;;  %v4204_v49 = vld [vmem:[%s7470_s3 + $0x458] sm:$0xf0] }
 0x158   : > { %1769 = vmatpush.bf16.msrb.mxu2 %v3979_v11  ;;  %v4218_v11 = vld [vmem:[%s7470_s3 + $0x468] sm:$0xf]  ;;  %v3659_v17 = vor.u32 %v4966_v9, %v3658_v8  ;;  %v4964_v8 = vld [vmem:[%s7470_s3 + $0xc] sm:$0xf]  ;;  %v3660_v9 = vld [vmem:[%s7470_s3 + $0x18] sm:$0xf0] }
 0x159   : > { %1722 = vmatmul.bf16.vlgmr.msra.gmra.mxu2 %v5915_v27  ;;  %v4219_v20 = vor.u32 %v5106_v12, %v4218_v11  ;;  %v5084_v11 = vld [vmem:[%s7470_s3 + $0x3cc] sm:$0xf]  ;;  %v4140_v12 = vld [vmem:[%s7470_s3 + $0x3d8] sm:$0xf0] }
 0x15a   : > { %1759 = vmatpush.bf16.msrb.mxu1 %v3803_v23  ;;  %v4183_v23 = vor.u32 %v5095_v36, %v4180_v14  ;;  %v5004_v36 = vld [vmem:[%s7470_s3 + $0x14c] sm:$0xf]  ;;  %v4106_v14 = vld [vmem:[%s7470_s3 + $0x388] sm:$0xf] }
 0x15b   : > { %1680 = vmatpush.bf16.msra.mxu3 %v3687_v18  ;;  %1743 = vmatpush.bf16.msrb.mxu0 %v3723_v19  ;;  %v5020_v18 = vld [vmem:[%s7470_s3 + $0x1cc] sm:$0xf]  ;;  %v3884_v19 = vld [vmem:[%s7470_s3 + $0x1d8] sm:$0xf0] }
 0x15c   : > { %1770 = vmatpush.bf16.msrb.mxu2 %v3963_v24  ;;  %v3727_v24 = vor.u32 %v4980_v15, %v3724_v16  ;;  %v3887_v28 = vor.u32 %v5020_v18, %v3884_v19  ;;  %v5078_v15 = vld [vmem:[%s7470_s3 + $0x394] sm:$0xf0]  ;;  %v5104_v16 = vld [vmem:[%s7470_s3 + $0x46c] sm:$0xf]  ;;  %v3663_v18 = vor.u32 %v4964_v8, %v3660_v9  ;;  %v4143_v19 = vor.u32 %v5084_v11, %v4140_v12  ;;  %v4060_v8 = vld [vmem:[%s7470_s3 + $0x338] sm:$0xf0] }
 0x15d   : > { %v4044_v11 = vld [vmem:[%s7470_s3 + $0x318] sm:$0xf0] }
 0x15e   : > { %1696 = vmatmul.bf16.vlgmr.msra.gmra.mxu0 %v5939_v45  ;;  %1760 = vmatpush.bf16.msrb.mxu1 %v3787_v35  ;;  %v4167_v35 = vor.u32 %v5091_v22, %v4164_v25  ;;  %v4107_v22 = vor.u32 %v5078_v15, %v4106_v14  ;;  %v4124_v25 = vld [vmem:[%s7470_s3 + $0x3b8] sm:$0xf0] }
 0x15f   : > { %1681 = vmatpush.bf16.msra.mxu3 %v3671_v51  ;;  %1744 = vmatpush.bf16.msrb.mxu0 %v3707_v33  ;;  %v4154_v51 = vld [vmem:[%s7470_s3 + $0x3e8] sm:$0xf]  ;;  %v5090_v33 = vld [vmem:[%s7470_s3 + $0x3f4] sm:$0xf0]  ;;  %v3996_v14 = vld [vmem:[%s7470_s3 + $0x2b8] sm:$0xf0] }
 0x160   : > { %1771 = vmatpush.bf16.msrb.mxu2 %v3947_v37  ;;  %v3711_v37 = vor.u32 %v4976_v29, %v3708_v30  ;;  %v5074_v29 = vld [vmem:[%s7470_s3 + $0x374] sm:$0xf0]  ;;  %v5100_v30 = vld [vmem:[%s7470_s3 + $0x44c] sm:$0xf] }
 0x161   : > { %1761 = vmatmul.bf16.vlgmr.msrb.gmra.mxu1 %v5939_v45 }
 0x162   : > { %1805 = vmatpush.bf16.msra.mxu1 %v3775_v43  ;;  %v4155_v43 = vor.u32 %v5090_v33, %v4154_v51 }
 0x163   : > { %1682 = vmatpush.bf16.msra.mxu3 %v3655_v55  ;;  %1745 = vmatpush.bf16.msrb.mxu0 %v3691_v56  ;;  %v4187_v55 = vor.u32 %v5098_v41, %v4186_v40  ;;  %v4170_v56 = vld [vmem:[%s7470_s3 + $0x408] sm:$0xf]  ;;  %v3788_v40 = vld [vmem:[%s7470_s3 + $0x118] sm:$0xf0]  ;;  %v4207_v41 = vor.u32 %v5100_v30, %v4204_v49  ;;  %v5028_v30 = vld [vmem:[%s7470_s3 + $0x20c] sm:$0xf] }
 0x164   : > { %1772 = vmatpush.bf16.msrb.mxu2 %v3931_v57  ;;  %v3695_v57 = vor.u32 %v4972_v44, %v3692_v46  ;;  %v4171_v5 = vor.u32 %v5094_v58, %v4170_v56  ;;  %v5096_v44 = vld [vmem:[%s7470_s3 + $0x42c] sm:$0xf]  ;;  %v4188_v46 = vld [vmem:[%s7470_s3 + $0x438] sm:$0xf0]  ;;  %v4058_v56 = vld [vmem:[%s7470_s3 + $0x328] sm:$0xf] }
 0x165   : > { %v5092_v58 = vld [vmem:[%s7470_s3 + $0x40c] sm:$0xf]  ;;  %v3916_v49 = vld [vmem:[%s7470_s3 + $0x218] sm:$0xf0] }
 0x166   : > { %1806 = vmatpush.bf16.msra.mxu1 %v3759_v61  ;;  %1683 = vmatmul.bf16.vlgmr.msra.gmra.mxu3 %v5889_v50  ;;  %v3855_v61 = vor.u32 %v5012_v47, %v3852_v39 }
 0x167   : > { %1731 = vmatpush.bf16.msrb.mxu3 %v4215_v60  ;;  %1746 = vmatpush.bf16.msrb.mxu0 %v3675_v52  ;;  %v3676_v60 = vld [vmem:[%s7470_s3 + $0x38] sm:$0xf0]  ;;  %v5082_v52 = vld [vmem:[%s7470_s3 + $0x3b4] sm:$0xf0] }
 0x168   : > { %1773 = vmatpush.bf16.msrb.mxu2 %v3915_v7  ;;  %v3679_v6 = vor.u32 %v4968_v59, %v3676_v60  ;;  %v4159_v7 = vor.u32 %v5088_v1, %v4156_v21  ;;  %v4172_v59 = vld [vmem:[%s7470_s3 + $0x418] sm:$0xf0]  ;;  %v4042_v21 = vld [vmem:[%s7470_s3 + $0x308] sm:$0xf] }
 0x169   : > { %v4175_v1 = vor.u32 %v5092_v58, %v4172_v59  ;;  %v5118_v59 = vld [vmem:[%s7472_s5 + $0x58] sm:$0xff] }
 0x16a   : > { %1807 = vmatpush.bf16.msra.mxu1 %v3743_v38  ;;  %v4123_v38 = vor.u32 %v5082_v52, %v4122_v4  ;;  %v5056_v4 = vld [vmem:[%s7470_s3 + $0x2ec] sm:$0xf]  ;;  %v4028_v52 = vld [vmem:[%s7470_s3 + $0x2f8] sm:$0xf0] }
 0x16b   : > { %1732 = vmatpush.bf16.msrb.mxu3 %v4199_v10  ;;  %1747 = vmatpush.bf16.msrb.mxu0 %v3659_v17  ;;  %v3839_v10 = vor.u32 %v5008_v0, %v3836_v3  ;;  %v4220_v17 = vld [vmem:[%s7470_s3 + $0x478] sm:$0xf0]  ;;  %v5062_v3 = vld [vmem:[%s7470_s3 + $0x314] sm:$0xf0]  ;;  %v4031_v9 = vor.u32 %v5056_v4, %v4028_v52 }
 0x16c   : > { %1818 = vmatpush.bf16.msra.mxu2 %v3903_v13  ;;  %v3820_v13 = vld [vmem:[%s7470_s3 + $0x158] sm:$0xf0]  ;;  %v4223_v2 = vor.u32 %v5104_v16, %v4220_v17  ;;  %v5044_v17 = vld [vmem:[%s7470_s3 + $0x28c] sm:$0xf] }
 0x16d   : > { %1774 = vmatmul.bf16.vlgmr.msrb.gmra.mxu2 %v5869_v62  ;;  %v4076_v0 = vld [vmem:[%s7470_s3 + $0x358] sm:$0xf0] }
 0x16e   : > { %1808 = vmatpush.bf16.msra.mxu1 %v3727_v24  ;;  %1748 = vmatmul.bf16.vlgmr.msrb.gmra.mxu0 %v5889_v50  ;;  %v5080_v24 = vld [vmem:[%s7470_s3 + $0x3ac] sm:$0xf] }
 0x16f   : > { %1796 = vmatpush.bf16.msra.mxu0 %v4219_v20  ;;  %1733 = vmatpush.bf16.msrb.mxu3 %v4183_v23  ;;  %v3823_v20 = vor.u32 %v5004_v36, %v3820_v13  ;;  %v5000_v23 = vld [vmem:[%s7470_s3 + $0x12c] sm:$0xf]  ;;  %v4127_v32 = vor.u32 %v5080_v24, %v4124_v25  ;;  %v3948_v24 = vld [vmem:[%s7470_s3 + $0x258] sm:$0xf0] }
 0x170   : > { %1819 = vmatpush.bf16.msra.mxu2 %v3887_v28  ;;  %v4090_v28 = vld [vmem:[%s7470_s3 + $0x368] sm:$0xf]  ;;  %v3807_v51 = vor.u32 %v5000_v23, %v3804_v26  ;;  %v5060_v36 = vld [vmem:[%s7470_s3 + $0x30c] sm:$0xf]  ;;  %v5114_v25 = vld [vmem:[%s7472_s5 + $0x38] sm:$0xff] }
 0x171   : > { %v4091_v33 = vor.u32 %v5074_v29, %v4090_v28  ;;  %v5048_v13 = vld [vmem:[%s7470_s3 + $0x2ac] sm:$0xf]  ;;  %v4047_v15 = vor.u32 %v5060_v36, %v4044_v11  ;;  %v5113_v28 = vld [vmem:[%s7472_s5 + $0x30] sm:$0xff]  ;;  %v5115_v36 = vld [vmem:[%s7472_s5 + $0x40] sm:$0xff] }
 0x172   : > { %1809 = vmatpush.bf16.msra.mxu1 %v3711_v37  ;;  %v4108_v37 = vld [vmem:[%s7470_s3 + $0x398] sm:$0xf0]  ;;  %v3999_v16 = vor.u32 %v5048_v13, %v3996_v14  ;;  %v5036_v23 = vld [vmem:[%s7470_s3 + $0x24c] sm:$0xf]  ;;  %v5129_v11 = vld [vmem:[%s7472_s5 + $0xb0] sm:$0xff] }
 0x173   : > { %1797 = vmatpush.bf16.msra.mxu0 %v4203_v34  ;;  %1734 = vmatpush.bf16.msrb.mxu3 %v4167_v35  ;;  %v4996_v34 = vld [vmem:[%s7470_s3 + $0x10c] sm:$0xf] }
 0x174   : > { %1820 = vmatpush.bf16.msra.mxu2 %v3871_v42  ;;  %v5076_v35 = vld [vmem:[%s7470_s3 + $0x38c] sm:$0xf]  ;;  %v4074_v42 = vld [vmem:[%s7470_s3 + $0x348] sm:$0xf]  ;;  %v3791_v39 = vor.u32 %v4996_v34, %v3788_v40  ;;  %v5110_v34 = vld [vmem:[%s7472_s5 + $0x18] sm:$0xff] }
 0x175   : > { %v4111_v47 = vor.u32 %v5076_v35, %v4108_v37  ;;  %v5032_v26 = vld [vmem:[%s7470_s3 + $0x22c] sm:$0xf]  ;;  %v5109_v35 = vld [vmem:[%s7472_s5 + $0x10] sm:$0xff]  ;;  %v5107_v40 = vld [vmem:[%s7472_s5] sm:$0xff] }
 0x176   : > { %1810 = vmatpush.bf16.msra.mxu1 %v3695_v57  ;;  %4225 = vmatmul.msk.bf16.vlgmr.msrb.gmra.mxu3 %vm680_vm3, %v5991_v31  ;;  %v5066_v57 = vld [vmem:[%s7470_s3 + $0x334] sm:$0xf0]  ;;  %v5128_v14 = vld [vmem:[%s7472_s5 + $0xa8] sm:$0xff] }
 0x177   : > { %1779 = vmatpush.bf16.msra.mxu3 %v4155_v43  ;;  %1798 = vmatpush.bf16.msra.mxu0 %v4187_v55  ;;  %v5070_v43 = vld [vmem:[%s7470_s3 + $0x354] sm:$0xf0]  ;;  %v4191_v55 = vor.u32 %v5096_v44, %v4188_v46 }
 0x178   : > { %1821 = vmatpush.bf16.msra.mxu2 %v3855_v61  ;;  %v4075_v53 = vor.u32 %v5070_v43, %v4074_v42  ;;  %v4059_v61 = vor.u32 %v5066_v57, %v4058_v56  ;;  %v6432_v42 = vld [vmem:[%s7471_s4] sm:$0xf]  ;;  %v5121_v43 = vld [vmem:[%s7472_s5 + $0x70] sm:$0xff] }
 0x179   : > { %v839_v46 = vperm.slane %v6432_v42, 0  ;;  %v5119_v57 = vld [vmem:[%s7472_s5 + $0x60] sm:$0xff] }
 0x17a   : > { %1811 = vmatpush.bf16.msra.mxu1 %v3679_v6  ;;  %v4043_v6 = vor.u32 %v5062_v3, %v4042_v21 }
 0x17b   : > { %1780 = vmatpush.bf16.msra.mxu3 %v4139_v63  ;;  %1799 = vmatpush.bf16.msra.mxu0 %v4171_v5  ;;  %v5068_v63 = vld [vmem:[%s7470_s3 + $0x34c] sm:$0xf] }
 0x17c   : > { %1822 = vmatpush.bf16.msra.mxu2 %v3839_v10  ;;  %v4079_v5 = vor.u32 %v5068_v63, %v4076_v0  ;;  %v5052_v10 = vld [vmem:[%s7470_s3 + $0x2cc] sm:$0xf]  ;;  %v5117_v0 = vld [vmem:[%s7472_s5 + $0x50] sm:$0xff] }
 0x17e   : > { %1812 = vmatpush.bf16.msra.mxu1 %v3663_v18  ;;  %4226 = vmatmul.msk.bf16.vlgmr.msra.gmra.mxu0 %vm680_vm3, %v5991_v31 }
 0x17f   : > { %1844 = vmatpush.bf16.msrb.mxu0 %v4159_v7  ;;  %1781 = vmatpush.bf16.msra.mxu3 %v4123_v38  ;;  %v5064_v7 = vld [vmem:[%s7470_s3 + $0x32c] sm:$0xf] }
 0x180   : > { %1823 = vmatpush.bf16.msra.mxu2 %v3823_v20  ;;  %v4063_v38 = vor.u32 %v5064_v7, %v4060_v8  ;;  %v3964_v20 = vld [vmem:[%s7470_s3 + $0x278] sm:$0xf0] }
 0x181   : > { %1813 = vmatmul.bf16.vlgmr.msra.gmra.mxu1 %v5889_v50  ;;  %v4092_v50 = vld [vmem:[%s7470_s3 + $0x378] sm:$0xf0] }
 0x182   : > { %1861 = vmatpush.bf16.msrb.mxu1 %v4223_v2  ;;  %v4095_v60 = vor.u32 %v5072_v54, %v4092_v50  ;;  %v3932_v2 = vld [vmem:[%s7470_s3 + $0x238] sm:$0xf0]  ;;  %v5120_v54 = vld [vmem:[%s7472_s5 + $0x68] sm:$0xff] }
 0x183   : > { %1845 = vmatpush.bf16.msrb.mxu0 %v4143_v19  ;;  %1782 = vmatpush.bf16.msra.mxu3 %v4107_v22  ;;  %v5040_v19 = vld [vmem:[%s7470_s3 + $0x26c] sm:$0xf]  ;;  %v3935_v29 = vor.u32 %v5032_v26, %v3932_v2 }
 0x184   : > { %1824 = vmatpush.bf16.msra.mxu2 %v3807_v51  ;;  %v3967_v22 = vor.u32 %v5040_v19, %v3964_v20  ;;  %v5112_v51 = vld [vmem:[%s7472_s5 + $0x28] sm:$0xff]  ;;  %v5127_v19 = vld [vmem:[%s7472_s5 + $0xa0] sm:$0xff] }
 0x186   : > { %1862 = vmatpush.bf16.msrb.mxu1 %v4207_v41  ;;  %v5122_v41 = vld [vmem:[%s7472_s5 + $0x78] sm:$0xff] }
 0x187   : > { %1846 = vmatpush.bf16.msrb.mxu0 %v4127_v32  ;;  %1783 = vmatpush.bf16.msra.mxu3 %v4091_v33  ;;  %v3919_v32 = vor.u32 %v5028_v30, %v3916_v49  ;;  %v5111_v33 = vld [vmem:[%s7472_s5 + $0x20] sm:$0xff] }
 0x188   : > { %1825 = vmatpush.bf16.msra.mxu2 %v3791_v39 }
 0x18a   : > { %1863 = vmatpush.bf16.msrb.mxu1 %v4191_v55 }
 0x18b   : > { %1847 = vmatpush.bf16.msrb.mxu0 %v4111_v47  ;;  %1784 = vmatpush.bf16.msra.mxu3 %v4075_v53 }
 0x18c   : > { %1826 = vmatmul.bf16.vlgmr.msra.gmra.mxu2 %v5939_v45  ;;  %v4012_v45 = vld [vmem:[%s7470_s3 + $0x2d8] sm:$0xf0] }
 0x18d   : > { %v4015_v12 = vor.u32 %v5052_v10, %v4012_v45  ;;  %2146 = vmatpush.bf16.msrb.mxu2 %v5114_v25  ;;  %v5130_v10 = vld [vmem:[%s7472_s5 + $0xb8] sm:$0xff]  ;;  %v5125_v25 = vld [vmem:[%s7472_s5 + $0x90] sm:$0xff] }
 0x18e   : > { %1864 = vmatpush.bf16.msrb.mxu1 %v4175_v1 }
 0x18f   : > { %1848 = vmatpush.bf16.msrb.mxu0 %v4095_v60  ;;  %1785 = vmatpush.bf16.msra.mxu3 %v4059_v61 }
 0x191   : > { %4227 = vmatmul.msk.bf16.vlgmr.msrb.gmra.mxu1 %vm680_vm3, %v5991_v31  ;;  %v3980_v31 = vld [vmem:[%s7470_s3 + $0x298] sm:$0xf0]  ;;  %2147 = vmatpush.bf16.msrb.mxu2 %v5113_v28 }
 0x192   : > { %v3983_v18 = vor.u32 %v5044_v17, %v3980_v31 }
 0x193   : > { %1849 = vmatpush.bf16.msrb.mxu0 %v4079_v5  ;;  %1786 = vmatpush.bf16.msra.mxu3 %v4043_v6 }
 0x195   : > { %2148 = vmatpush.bf16.msrb.mxu2 %v5112_v51 }
 0x196   : > { %1787 = vmatmul.bf16.vlgmr.msra.gmra.mxu3 %v5915_v27 }
 0x197   : > { %1831 = vmatpush.bf16.msrb.mxu3 %v4031_v9  ;;  %1850 = vmatpush.bf16.msrb.mxu0 %v4063_v38  ;;  %v5116_v9 = vld [vmem:[%s7472_s5 + $0x48] sm:$0xff] }
 0x199   : > { %2149 = vmatpush.bf16.msrb.mxu2 %v5111_v33 }
 0x19b   : > { %1832 = vmatpush.bf16.msrb.mxu3 %v4015_v12  ;;  %1851 = vmatpush.bf16.msrb.mxu0 %v4047_v15 }
 0x19d   : > { %2150 = vmatpush.bf16.msrb.mxu2 %v5110_v34  ;;  %v5123_v34 = vld [vmem:[%s7472_s5 + $0x80] sm:$0xff] }
 0x19e   : > { %1852 = vmatmul.bf16.vlgmr.msrb.gmra.mxu0 %v5915_v27  ;;  %v3951_v27 = vor.u32 %v5036_v23, %v3948_v24 }
 0x19f   : > { %1833 = vmatpush.bf16.msrb.mxu3 %v3999_v16  ;;  %2172 = vmatpush.bf16.msra.mxu0 %v5130_v10  ;;  %v840_v16 = vperm.slane %v6432_v42, 1 }
 0x1a1   : > { %2151 = vmatpush.bf16.msrb.mxu2 %v5109_v35  ;;  %v5138_v35 = vld [vmem:[%s7472_s5 + $0xf8] sm:$0xff] }
 0x1a2   : > { %2185 = vmatpush.bf16.msra.mxu1 %v5138_v35 }
 0x1a3   : > { %1834 = vmatpush.bf16.msrb.mxu3 %v3983_v18  ;;  %2173 = vmatpush.bf16.msra.mxu0 %v5129_v11 }
 0x1a7   : > { %1835 = vmatpush.bf16.msrb.mxu3 %v3967_v22  ;;  %2174 = vmatpush.bf16.msra.mxu0 %v5128_v14  ;;  %v5126_v22 = vld [vmem:[%s7472_s5 + $0x98] sm:$0xff] }
 0x1ab   : > { %1836 = vmatpush.bf16.msrb.mxu3 %v3951_v27  ;;  %2175 = vmatpush.bf16.msra.mxu0 %v5127_v19 }
 0x1af   : > { %1837 = vmatpush.bf16.msrb.mxu3 %v3935_v29  ;;  %2176 = vmatpush.bf16.msra.mxu0 %v5126_v22 }
 0x1b3   : > { %1838 = vmatpush.bf16.msrb.mxu3 %v3919_v32  ;;  %2177 = vmatpush.bf16.msra.mxu0 %v5125_v25  ;;  %v5124_v32 = vld [vmem:[%s7472_s5 + $0x88] sm:$0xff] }
 0x1b6   : > { %1839 = vmatmul.bf16.vlgmr.msrb.gmra.mxu3 %v5869_v62  ;;  %v5108_v62 = vld [vmem:[%s7472_s5 + $0x8] sm:$0xff] }
 0x1b7   : > { %2152 = vmatpush.bf16.msrb.mxu2 %v5108_v62  ;;  %2159 = vmatpush.bf16.msra.mxu3 %v5122_v41 }
 0x1b8   : > { %2178 = vmatpush.bf16.msra.mxu0 %v5124_v32  ;;  %v5197_v32 = vld [vmem:[%s7474_s7 + $0x1cc] sm:$0xf0] }
 0x1bb   : > { %2153 = vmatpush.bf16.msrb.mxu2 %v5107_v40  ;;  %2160 = vmatpush.bf16.msra.mxu3 %v5121_v43  ;;  %v5137_v40 = vld [vmem:[%s7472_s5 + $0xf0] sm:$0xff] }
 0x1bc   : > { %2179 = vmatpush.bf16.msra.mxu0 %v5123_v34  ;;  %2186 = vmatpush.bf16.msra.mxu1 %v5137_v40  ;;  %v4454_v40 = vld [vmem:[%s7474_s7 + $0xc0] sm:$0xf] }
 0x1be   : > { %v1645_v37 = vpop.f32.mrf.mxu1 }
 0x1bf   : > { %2161 = vmatpush.bf16.msra.mxu3 %v5120_v54 }
 0x1c3   : > { %2162 = vmatpush.bf16.msra.mxu3 %v5119_v57 }
 0x1c6   : > { %v1647_v44 = vpop.f32.mrf.mxu1 }
 0x1c7   : > { %2163 = vmatpush.bf16.msra.mxu3 %v5118_v59  ;;  %v5136_v44 = vld [vmem:[%s7472_s5 + $0xe8] sm:$0xff] }
 0x1c8   : > { %2187 = vmatpush.bf16.msra.mxu1 %v5136_v44 }
 0x1c9   : > { %v1619_v47 = vpop.f32.mrf.mxu3 }
 0x1ca   : > { %v1620_v53 = vadd.f32 %v1619_v47, %v839_v46  ;;  %v841_v47 = vperm.slane %v6432_v42, 2 }
 0x1cb   : > { %v1632_v39 = vpop.f32.mrf.mxu0  ;;  %2164 = vmatpush.bf16.msra.mxu3 %v5117_v0 }
 0x1cc   : > { %v1658_v50 = vpop.f32.mrf.mxu2  ;;  %v1633_v56 = vadd.f32 %v1632_v39, %v1620_v53  ;;  %v5135_v39 = vld [vmem:[%s7472_s5 + $0xe0] sm:$0xff] }
 0x1cd   : > { %2188 = vmatpush.bf16.msra.mxu1 %v5135_v39  ;;  %v5233_v39 = vld [vmem:[%s7474_s7 + $0x2ec] sm:$0xf0] }
 0x1ce   : > { %v1710_v55 = vpop.f32.mrf.mxu1  ;;  %v1646_v61 = vadd.f32 %v1645_v37, %v1633_v56 }
 0x1cf   : > { %2165 = vmatpush.bf16.msra.mxu3 %v5116_v9 }
 0x1d0   : > { %v1659_v21 = vadd.f32 %v1658_v50, %v1646_v61  ;;  %v5134_v50 = vld [vmem:[%s7472_s5 + $0xd8] sm:$0xff] }
 0x1d1   : > { %v1621_v58 = vpop.f32.mrf.mxu3  ;;  %2189 = vmatpush.bf16.msra.mxu1 %v5134_v50  ;;  %v5161_v50 = vld [vmem:[%s7474_s7 + $0xac] sm:$0xf0] }
 0x1d3   : > { %v1634_v60 = vpop.f32.mrf.mxu0  ;;  %2166 = vmatpush.bf16.msra.mxu3 %v5115_v36 }
 0x1d4   : > { %v1660_v63 = vpop.f32.mrf.mxu2 }
 0x1d6   : > { %v1712_v1 = vpop.f32.mrf.mxu1 }
 0x1d7   : > { %v5133_v1 = vld [vmem:[%s7472_s5 + $0xd0] sm:$0xff] }
 0x1d8   : > { %2190 = vmatpush.bf16.msra.mxu1 %v5133_v1 }
 0x1d9   : > { %v1671_v3 = vpop.f32.mrf.mxu3 }
 0x1da   : > { %v1672_v4 = vadd.f32 %v1671_v3, %v1659_v21  ;;  %v5132_v3 = vld [vmem:[%s7472_s5 + $0xc8] sm:$0xff] }
 0x1db   : > { %v1697_v52 = vpop.f32.mrf.mxu0 }
 0x1dc   : > { %vm1870_vm4 = vcmp.ge.f32.partialorder %v1672_v4, 0.0  ;;  %v1874_v5 = vmul.f32 0.2, %v1672_v4  ;;  %v1723_v6 = vpop.f32.mrf.mxu2  ;;  %2191 = vmatpush.bf16.msra.mxu1 %v5132_v3 }
 0x1de   : > { %v1878_v7 = vsel %vm1870_vm4, %v1672_v4, %v1874_v5  ;;  %v1762_v45 = vpop.f32.mrf.mxu1 }
 0x1df   : > { %v1882_v8 = vpack.c.bf16 %v1878_v7, %v1878_v7  ;;  %v5131_v7 = vld [vmem:[%s7472_s5 + $0xc0] sm:$0xff] }
 0x1e0   : > { %2192 = vmatpush.bf16.msra.mxu1 %v5131_v7  ;;  %v5225_v7 = vld [vmem:[%s7474_s7 + $0x2ac] sm:$0xf0] }
 0x1e1   : > { %v1673_v38 = vpop.f32.mrf.mxu3  ;;  %2154 = vmatmul.bf16.vlgmr.msrb.gmra.mxu2 %v1882_v8  ;;  %v842_v8 = vperm.slane %v6432_v42, 3  ;;  %v5295_v42 = vld [vmem:[%s7473_s6] ss:$0 sm:$0xff] }
 0x1e3   : > { %v1699_v12 = vpop.f32.mrf.mxu0 }
 0x1e4   : > { %v1725_v13 = vpop.f32.mrf.mxu2 }
 0x1e6   : > { %v1764_v15 = vpop.f32.mrf.mxu1 }
 0x1e9   : > { %v1684_v17 = vpop.f32.mrf.mxu3 }
 0x1ea   : > { %v1685_v18 = vadd.f32 %v1684_v17, %v840_v16 }
 0x1eb   : > { %v1749_v31 = vpop.f32.mrf.mxu0 }
 0x1ec   : > { %v1698_v23 = vadd.f32 %v1697_v52, %v1685_v18  ;;  %v1750_v53 = vadd.f32 %v1749_v31, %v841_v47 }
 0x1ee   : > { %v1711_v26 = vadd.f32 %v1710_v55, %v1698_v23  ;;  %v1763_v56 = vadd.f32 %v1762_v45, %v1750_v53 }
 0x1f0   : > { %v1775_v20 = vpop.f32.mrf.mxu2  ;;  %v1724_v28 = vadd.f32 %v1723_v6, %v1711_v26 }
 0x1f1   : > { %v1686_v24 = vpop.f32.mrf.mxu3  ;;  %v1776_v57 = vadd.f32 %v1775_v20, %v1763_v56  ;;  %v6555_v56 = vld [vmem:[#allocation2 + $0xc] sm:$0x3] }
 0x1f3   : > { %v1751_v27 = vpop.f32.mrf.mxu0 }
 0x1f8   : > { %v1777_v2 = vpop.f32.mrf.mxu2 }
 0x1f9   : > { %v1736_v29 = vpop.f32.mrf.mxu3  ;;  %v4598_v2 = vld [vmem:[%s7474_s7 + $0x1e0] sm:$0xf] }
 0x1fa   : > { %v1737_v30 = vadd.f32 %v1736_v29, %v1724_v28  ;;  %v5201_v28 = vld [vmem:[%s7474_s7 + $0x1ec] sm:$0xf0]  ;;  %v4582_v29 = vld [vmem:[%s7474_s7 + $0x1c0] sm:$0xf] }
 0x1fb   : > { %v1801_v49 = vpop.f32.mrf.mxu0 }
 0x1fc   : > { %vm1871_vm5 = vcmp.ge.f32.partialorder %v1737_v30, 0.0  ;;  %v1875_v51 = vmul.f32 0.2, %v1737_v30 }
 0x1fe   : > { %v1814_v33 = vpop.f32.mrf.mxu1  ;;  %v1879_v37 = vsel %vm1871_vm5, %v1737_v30, %v1875_v51  ;;  %v4470_v51 = vld [vmem:[%s7474_s7 + $0xe0] sm:$0xf] }
 0x1ff   : > { %v1883_v62 = vpack.c.bf16 %v1879_v37, %v1879_v37  ;;  %v1815_v9 = vadd.f32 %v1814_v33, %v842_v8  ;;  %v5169_v33 = vld [vmem:[%s7474_s7 + $0xec] sm:$0xf0]  ;;  %v4838_v8 = vld [vmem:[%s7474_s7 + $0x3c0] sm:$0xf] }
 0x200   : > { %v4471_v35 = vor.u32 %v5169_v33, %v4470_v51  ;;  %v5181_v51 = vld [vmem:[%s7474_s7 + $0x14c] sm:$0xf0] }
 0x201   : > { %v1738_v41 = vpop.f32.mrf.mxu3  ;;  %2167 = vmatmul.bf16.vlgmr.msra.gmra.mxu3 %v1883_v62  ;;  %v4583_v62 = vor.u32 %v5197_v32, %v4582_v29  ;;  %v2212_v32 = vld [vmem:[#allocation2 + $0x4] sm:$0x8] }
 0x202   : > { %v5165_v41 = vld [vmem:[%s7474_s7 + $0xcc] sm:$0xf0]  ;;  %3213 = vmatpush.bf16.msra.mxu2 %v4471_v35  ;;  %v4806_v35 = vld [vmem:[%s7474_s7 + $0x380] sm:$0xf] }
 0x203   : > { %v1803_v43 = vpop.f32.mrf.mxu0  ;;  %v4455_v47 = vor.u32 %v5165_v41, %v4454_v40  ;;  %v4390_v41 = vld [vmem:[%s7474_s7 + $0x40] sm:$0xf] }
 0x204   : > { %v4726_v43 = vld [vmem:[%s7474_s7 + $0x2e0] sm:$0xf] }
 0x205   : > { %v4727_v53 = vor.u32 %v5233_v39, %v4726_v43  ;;  %v5149_v43 = vld [vmem:[%s7474_s7 + $0x4c] sm:$0xf0] }
 0x206   : > { %v1816_v46 = vpop.f32.mrf.mxu1  ;;  %3214 = vmatpush.bf16.msra.mxu2 %v4455_v47 }
 0x207   : > { %v5193_v46 = vld [vmem:[%s7474_s7 + $0x1ac] sm:$0xf0]  ;;  %3239 = vmatpush.bf16.msrb.mxu0 %v4727_v53 }
 0x20e   : > { %v1866_v55 = vpop.f32.mrf.mxu1 }
 0x20f   : > { %v1827_v54 = vpop.f32.mrf.mxu2 }
 0x210   : > { %v1828_v10 = vadd.f32 %v1827_v54, %v1815_v9  ;;  %v4438_v54 = vld [vmem:[%s7474_s7 + $0xa0] sm:$0xf]  ;;  %v5261_v9 = vld [vmem:[%s7474_s7 + $0x3cc] sm:$0xf0] }
 0x211   : > { %v4439_v3 = vor.u32 %v5161_v50, %v4438_v54  ;;  %v4502_v54 = vld [vmem:[%s7474_s7 + $0x120] sm:$0xf]  ;;  %v5177_v50 = vld [vmem:[%s7474_s7 + $0x12c] sm:$0xf0] }
 0x213   : > { %3215 = vmatpush.bf16.msra.mxu2 %v4439_v3  ;;  %v4374_v3 = vld [vmem:[%s7474_s7 + $0x20] sm:$0xf] }
 0x216   : > { %v1868_v61 = vpop.f32.mrf.mxu1 }
 0x217   : > { %v1829_v58 = vpop.f32.mrf.mxu2  ;;  %v4567_v61 = vor.u32 %v5193_v46, %v4566_v48  ;;  %v4662_v48 = vld [vmem:[%s7474_s7 + $0x260] sm:$0xf]  ;;  %v5217_v46 = vld [vmem:[%s7474_s7 + $0x26c] sm:$0xf0] }
 0x218   : > { %v4710_v58 = vld [vmem:[%s7474_s7 + $0x2c0] sm:$0xf] }
 0x219   : > { %v1788_v59 = vpop.f32.mrf.mxu3 }
 0x21a   : > { %v1789_v60 = vadd.f32 %v1788_v59, %v1776_v57  ;;  %v6557_v57 = vld [vmem:[#allocation2 + $0x4] sm:$0xc]  ;;  %v5229_v59 = vld [vmem:[%s7474_s7 + $0x2cc] sm:$0xf0] }
 0x21b   : > { %v1853_v63 = vpop.f32.mrf.mxu0  ;;  %v4711_v1 = vor.u32 %v5229_v59, %v4710_v58 }
 0x21c   : > { %v1802_v0 = vadd.f32 %v1801_v49, %v1789_v60  ;;  %v4599_v49 = vor.u32 %v5201_v28, %v4598_v2  ;;  %v4854_v60 = vld [vmem:[%s7474_s7 + $0x3e0] sm:$0xf] }
 0x21d   : > { %3240 = vmatpush.bf16.msrb.mxu0 %v4711_v1  ;;  %v2242_v1 = vunpack.c.l.b16 %v2212_v32 }
 0x21e   : > { %vm1872_vm6 = vcmp.ge.f32.partialorder %v1802_v0, 0.0  ;;  %v1876_v21 = vmul.f32 0.2, %v1802_v0  ;;  %3226 = vmatpush.bf16.msrb.mxu3 %v4599_v49  ;;  %v4518_v49 = vld [vmem:[%s7474_s7 + $0x140] sm:$0xf] }
 0x21f   : > { %v4519_v53 = vor.u32 %v5181_v51, %v4518_v49 }
 0x220   : > { %v1880_v4 = vsel %vm1872_vm6, %v1802_v0, %v1876_v21  ;;  %v5189_v0 = vld [vmem:[%s7474_s7 + $0x18c] sm:$0xf0] }
 0x221   : > { %v1884_v52 = vpack.c.bf16 %v1880_v4, %v1880_v4  ;;  %v1790_v5 = vpop.f32.mrf.mxu3  ;;  %v5265_v21 = vld [vmem:[%s7474_s7 + $0x3ec] sm:$0xf0] }
 0x222   : > { %3227 = vmatpush.bf16.msrb.mxu3 %v4583_v62  ;;  %v4855_v4 = vor.u32 %v5265_v21, %v4854_v60  ;;  %v5157_v5 = vld [vmem:[%s7474_s7 + $0x8c] sm:$0xf0]  ;;  %v4391_v60 = vor.u32 %v5149_v43, %v4390_v41  ;;  %v4663_v21 = vor.u32 %v5217_v46, %v4662_v48  ;;  %v4902_v41 = vld [vmem:[%s7474_s7 + $0x440] sm:$0xf]  ;;  %v4600_v48 = vld [vmem:[%s7474_s7 + $0x1f0] sm:$0xf0] }
 0x223   : > { %v1855_v6 = vpop.f32.mrf.mxu0  ;;  %2180 = vmatmul.bf16.vlgmr.msra.gmra.mxu0 %v1884_v52  ;;  %v4422_v52 = vld [vmem:[%s7474_s7 + $0x80] sm:$0xf]  ;;  %v5277_v43 = vld [vmem:[%s7474_s7 + $0x44c] sm:$0xf0] }
 0x224   : > { %v4694_v6 = vld [vmem:[%s7474_s7 + $0x2a0] sm:$0xf]  ;;  %3252 = vmatpush.bf16.msrb.mxu1 %v4855_v4  ;;  %v5145_v4 = vld [vmem:[%s7474_s7 + $0x2c] sm:$0xf0] }
 0x226   : > { %3228 = vmatpush.bf16.msrb.mxu3 %v4567_v61  ;;  %v4790_v61 = vld [vmem:[%s7474_s7 + $0x360] sm:$0xf] }
 0x239   : > { %v1840_v45 = vpop.f32.mrf.mxu3 }
 0x23a   : > { %v1841_v38 = vadd.f32 %v1840_v45, %v1828_v10  ;;  %v4534_v10 = vld [vmem:[%s7474_s7 + $0x160] sm:$0xf]  ;;  %v5185_v45 = vld [vmem:[%s7474_s7 + $0x16c] sm:$0xf0] }
 0x23c   : > { %v1854_v36 = vadd.f32 %v1853_v63, %v1841_v38  ;;  %v4550_v63 = vld [vmem:[%s7474_s7 + $0x180] sm:$0xf]  ;;  %v4839_v38 = vor.u32 %v5261_v9, %v4838_v8  ;;  %v4503_v8 = vor.u32 %v5177_v50, %v4502_v54  ;;  %v4903_v54 = vor.u32 %v5277_v43, %v4902_v41  ;;  %v5139_v43 = vld [vmem:[%s7474_s7 + $0x4] sm:$0xf] }
 0x23d   : > { %v4774_v9 = vld [vmem:[%s7474_s7 + $0x340] sm:$0xf] }
 0x23e   : > { %v1867_v11 = vadd.f32 %v1866_v55, %v1854_v36  ;;  %v2214_v55 = vld [vmem:[#allocation2 + $0xc] sm:$0x1]  ;;  %3253 = vmatpush.bf16.msrb.mxu1 %v4839_v38  ;;  %v5173_v38 = vld [vmem:[%s7474_s7 + $0x10c] sm:$0xf0] }
 0x23f   : > { %v2258_v36 = vunpack.c.l.b16 %v2214_v55 }
 0x240   : > { %vm1873_vm7 = vcmp.ge.f32.partialorder %v1867_v11, 0.0  ;;  %v1877_v12 = vmul.f32 0.2, %v1867_v11 }
 0x241   : > { %v1842_v13 = vpop.f32.mrf.mxu3 }
 0x242   : > { %v1881_v14 = vsel %vm1873_vm7, %v1867_v11, %v1877_v12  ;;  %v2266_v11 = vunpack.c.l.b16 %v6555_v56  ;;  %v2225_v12 = vunpack.c.l.b16 %v6557_v57  ;;  %v4551_v13 = vor.u32 %v5189_v0, %v4550_v63  ;;  %v5249_v63 = vld [vmem:[%s7474_s7 + $0x36c] sm:$0xf0]  ;;  %v4840_v57 = vld [vmem:[%s7474_s7 + $0x3d0] sm:$0xf0] }
 0x243   : > { %v1885_v15 = vpack.c.bf16 %v1881_v14, %v1881_v14  ;;  %v4406_v14 = vld [vmem:[%s7474_s7 + $0x60] sm:$0xf] }
 0x244   : > { %3229 = vmatpush.bf16.msrb.mxu3 %v4551_v13  ;;  %v5167_v13 = vld [vmem:[%s7474_s7 + $0xe4] sm:$0xf] }
 0x245   : > { %2193 = vmatmul.bf16.vlgmr.msra.gmra.mxu1 %v1885_v15  ;;  %v5153_v15 = vld [vmem:[%s7474_s7 + $0x6c] sm:$0xf0] }
 0x246   : > { %v4407_v33 = vor.u32 %v5153_v15, %v4406_v14 }
 0x264   : > { %v2155_v16 = vpop.f32.mrf.mxu2 }
 0x265   : > { %v2156_v22 = vadd.f32 %v5295_v42, %v2155_v16  ;;  %v4678_v16 = vld [vmem:[%s7474_s7 + $0x280] sm:$0xf] }
 0x26c   : > { %v2157_v17 = vpop.f32.mrf.mxu2 }
 0x284   : > { %v2168_v31 = vpop.f32.mrf.mxu3 }
 0x285   : > { %v2169_v23 = vadd.f32 %v2168_v31, %v2156_v22 }
 0x28c   : > { %v2170_v18 = vpop.f32.mrf.mxu3 }
 0x2a0   : > { %v2181_v19 = vpop.f32.mrf.mxu0 }
 0x2a1   : > { %v2182_v24 = vadd.f32 %v2181_v19, %v2169_v23  ;;  %v4423_v19 = vor.u32 %v5157_v5, %v4422_v52  ;;  %v4646_v5 = vld [vmem:[%s7474_s7 + $0x240] sm:$0xf] }
 0x2a3   : > { %3216 = vmatpush.bf16.msra.mxu2 %v4423_v19  ;;  %v5141_v19 = vld [vmem:[%s7474_s7 + $0xc] sm:$0xf0] }
 0x2a7   : > { %3217 = vmatpush.bf16.msra.mxu2 %v4407_v33  ;;  %v5163_v33 = vld [vmem:[%s7474_s7 + $0xc4] sm:$0xf] }
 0x2a8   : > { %v2183_v20 = vpop.f32.mrf.mxu0 }
 0x2a9   : > { %v4695_v20 = vor.u32 %v5225_v7, %v4694_v6  ;;  %v5213_v6 = vld [vmem:[%s7474_s7 + $0x24c] sm:$0xf0]  ;;  %v4791_v7 = vor.u32 %v5249_v63, %v4790_v61  ;;  %v4424_v63 = vld [vmem:[%s7474_s7 + $0x90] sm:$0xf0] }
 0x2aa   : > { %v4647_v15 = vor.u32 %v5213_v6, %v4646_v5  ;;  %v5231_v5 = vld [vmem:[%s7474_s7 + $0x2e4] sm:$0xf] }
 0x2ab   : > { %3241 = vmatpush.bf16.msrb.mxu0 %v4695_v20  ;;  %3218 = vmatpush.bf16.msra.mxu2 %v4391_v60  ;;  %v4630_v20 = vld [vmem:[%s7474_s7 + $0x220] sm:$0xf]  ;;  %v5155_v60 = vld [vmem:[%s7474_s7 + $0x84] sm:$0xf] }
 0x2c2   : > { %v2194_v27 = vpop.f32.mrf.mxu1 }
 0x2c3   : > { %v2195_v25 = vadd.f32 %v2194_v27, %v2182_v24  ;;  %v5221_v24 = vld [vmem:[%s7474_s7 + $0x28c] sm:$0xf0]  ;;  %v4822_v27 = vld [vmem:[%s7474_s7 + $0x3a0] sm:$0xf] }
 0x2c5   : > { %vm2198_vm8 = vcmp.ge.f32.partialorder %v2195_v25, 0.0  ;;  %v2199_v26 = vmul.f32 0.2, %v2195_v25 }
 0x2c7   : > { %v2200_v30 = vsel %vm2198_vm8, %v2195_v25, %v2199_v26  ;;  %v5257_v25 = vld [vmem:[%s7474_s7 + $0x3ac] sm:$0xf0] }
 0x2c8   : > { %v2201_v34 = vsel %vm342_vm1, %v2200_v30, 0.0  ;;  %v4823_v26 = vor.u32 %v5257_v25, %v4822_v27  ;;  %v4535_v30 = vor.u32 %v5185_v45, %v4534_v10  ;;  %v5245_v10 = vld [vmem:[%s7474_s7 + $0x34c] sm:$0xf0]  ;;  %v4486_v45 = vld [vmem:[%s7474_s7 + $0x100] sm:$0xf] }
 0x2c9   : > { %v2204_v37 = vpack.c.bf16 %v2201_v34, %v2201_v34  ;;  %v4679_v34 = vor.u32 %v5221_v24, %v4678_v16  ;;  %v4472_v16 = vld [vmem:[%s7474_s7 + $0xf0] sm:$0xf0]  ;;  %v5209_v24 = vld [vmem:[%s7474_s7 + $0x22c] sm:$0xf0]  ;;  %v4775_v27 = vor.u32 %v5245_v10, %v4774_v9  ;;  %v4918_v25 = vld [vmem:[%s7474_s7 + $0x460] sm:$0xf] }
 0x2ca   : > { %v2196_v44 = vpop.f32.mrf.mxu1  ;;  %3254 = vmatpush.bf16.msrb.mxu1 %v4823_v26  ;;  %3230 = vmatpush.bf16.msrb.mxu3 %v4535_v30  ;;  %v4487_v26 = vor.u32 %v5173_v38, %v4486_v45  ;;  %v4475_v30 = vor.u32 %v5167_v13, %v4472_v16  ;;  %v4631_v51 = vor.u32 %v5209_v24, %v4630_v20  ;;  %v4408_v9 = vld [vmem:[%s7474_s7 + $0x70] sm:$0xf0]  ;;  %v4870_v38 = vld [vmem:[%s7474_s7 + $0x400] sm:$0xf]  ;;  %v5191_v13 = vld [vmem:[%s7474_s7 + $0x1a4] sm:$0xf] }
 0x2cb   : > { %2205 = vst.msk [vmem:[#allocation2 + $0x8] sm:$0xf] %vm597_vm0, %v2204_v37  ;;  %v5253_v37 = vld [vmem:[%s7474_s7 + $0x38c] sm:$0xf0]  ;;  %3242 = vmatpush.bf16.msrb.mxu0 %v4679_v34  ;;  %v4456_v34 = vld [vmem:[%s7474_s7 + $0xd0] sm:$0xf0] }
 0x2cc   : > { %v4807_v55 = vor.u32 %v5253_v37, %v4806_v35  ;;  %v4614_v37 = vld [vmem:[%s7474_s7 + $0x200] sm:$0xf]  ;;  %v4459_v46 = vor.u32 %v5163_v33, %v4456_v34  ;;  %v5227_v16 = vld [vmem:[%s7474_s7 + $0x2c4] sm:$0xf] }
 0x2cd   : > { %v5147_v24 = vld [vmem:[%s7474_s7 + $0x44] sm:$0xf] }
 0x2ce   : > { %3255 = vmatpush.bf16.msrb.mxu1 %v4807_v55  ;;  %3231 = vmatpush.bf16.msrb.mxu3 %v4519_v53  ;;  %v4440_v53 = vld [vmem:[%s7474_s7 + $0xb0] sm:$0xf0]  ;;  %v5183_v34 = vld [vmem:[%s7474_s7 + $0x164] sm:$0xf] }
 0x2cf   : > { %3243 = vmatpush.bf16.msrb.mxu0 %v4663_v21  ;;  %v4427_v21 = vor.u32 %v5155_v60, %v4424_v63  ;;  %v5211_v60 = vld [vmem:[%s7474_s7 + $0x244] sm:$0xf] }
 0x2d2   : > { %v2213_v17 = vld [vmem:[#allocation2 + $0x8] sm:$0xf]  ;;  %3256 = vmatpush.bf16.msrb.mxu1 %v4791_v7  ;;  %3232 = vmatpush.bf16.msrb.mxu3 %v4503_v8  ;;  %v4728_v7 = vld [vmem:[%s7474_s7 + $0x2f0] sm:$0xf0]  ;;  %v5151_v8 = vld [vmem:[%s7474_s7 + $0x64] sm:$0xf] }
 0x2d3   : > { %v6612_v31 = vld [vmem:[#allocation2 + $0x8] sm:$0xc]  ;;  %v6614_v18 = vld [vmem:[#allocation2 + $0x8] sm:$0x3]  ;;  %v6616_v42 = vunpack.c.l.b16 %v2213_v17  ;;  %v4358_v17 = vld [vmem:[%s7474_s7] sm:$0xf]  ;;  %3244 = vmatpush.bf16.msrb.mxu0 %v4647_v15  ;;  %v4731_v10 = vor.u32 %v5231_v5, %v4728_v7  ;;  %v4411_v45 = vor.u32 %v5151_v8, %v4408_v9 }
 0x2d4   : > { %v2269_v22 = vunpack.c.l.b16 %v6612_v31  ;;  %v2222_v23 = vunpack.c.l.b16 %v6614_v18  ;;  %v4359_v32 = vor.u32 %v5141_v19, %v4358_v17  ;;  %v4568_v15 = vld [vmem:[%s7474_s7 + $0x1b0] sm:$0xf0]  ;;  %v5207_v5 = vld [vmem:[%s7474_s7 + $0x224] sm:$0xf] }
 0x2d5   : > { %v2259_v2 = vpack.c.b16 %v2258_v36, %v6616_v42  ;;  %v4375_v36 = vor.u32 %v5145_v4, %v4374_v3  ;;  %v2244_v14 = vpack.c.b16 %v6616_v42, %v2242_v1  ;;  %v5273_v1 = vld [vmem:[%s7474_s7 + $0x42c] sm:$0xf0]  ;;  %v5195_v4 = vld [vmem:[%s7474_s7 + $0x1c4] sm:$0xf]  ;;  %v4712_v17 = vld [vmem:[%s7474_s7 + $0x2d0] sm:$0xf0]  ;;  %v4571_v19 = vor.u32 %v5191_v13, %v4568_v15 }
 0x2d6   : > { %v2270_v28 = vpack.c.b16 %v2266_v11, %v2269_v22  ;;  %v2226_v29 = vpack.c.b16 %v2222_v23, %v2225_v12  ;;  %3257 = vmatpush.bf16.msrb.mxu1 %v4775_v27  ;;  %3233 = vmatpush.bf16.msrb.mxu3 %v4487_v26  ;;  %v4715_v20 = vor.u32 %v5227_v16, %v4712_v17  ;;  %v4392_v27 = vld [vmem:[%s7474_s7 + $0x50] sm:$0xf0]  ;;  %v5203_v13 = vld [vmem:[%s7474_s7 + $0x204] sm:$0xf] }
 0x2d7   : > { %v2260_v62 = vrot.slane %v2259_v2, 7  ;;  %v5281_v2 = vld [vmem:[%s7474_s7 + $0x46c] sm:$0xf0]  ;;  %3219 = vmatpush.bf16.msra.mxu2 %v4375_v36  ;;  %v2245_v49 = vrot.slane %v2244_v14, 2  ;;  %3245 = vmatpush.bf16.msrb.mxu0 %v4631_v51  ;;  %v4552_v26 = vld [vmem:[%s7474_s7 + $0x190] sm:$0xf0] }
 0x2d8   : > { %v2274_v40 = vshll.u32 %v2270_v28, 16  ;;  %v2230_v44 = vshll.u32 %v2226_v29, 16  ;;  %v2272_v47 = vshrl.u32 %v2270_v28, 16  ;;  %v2228_v58 = vshrl.u32 %v2226_v29, 16  ;;  %v4758_v28 = vld [vmem:[%s7474_s7 + $0x320] sm:$0xf] }
 0x2d9   : > { %2261 = vrot.lane.b32.xlu0 %v2260_v62, %s5305_s16  ;;  %v5241_v29 = vld [vmem:[%s7474_s7 + $0x32c] sm:$0xf0]  ;;  %v4919_v35 = vor.u32 %v5281_v2, %v4918_v25  ;;  %v5187_v25 = vld [vmem:[%s7474_s7 + $0x184] sm:$0xf]  ;;  %v4395_v2 = vor.u32 %v5147_v24, %v4392_v27  ;;  %v4376_v51 = vld [vmem:[%s7474_s7 + $0x30] sm:$0xf0] }
 0x2da   : > { %v2276_v39 = vrot.slane %v2274_v40, 1  ;;  %v2232_v59 = vrot.slane %v2230_v44, 1  ;;  %v5205_v62 = vld [vmem:[%s7474_s7 + $0x20c] sm:$0xf0]  ;;  %v4759_v40 = vor.u32 %v5241_v29, %v4758_v28  ;;  %v5199_v44 = vld [vmem:[%s7474_s7 + $0x1e4] sm:$0xf]  ;;  %3278 = vmatpush.bf16.msra.mxu3 %v4475_v30  ;;  %v4555_v28 = vor.u32 %v5187_v25, %v4552_v26 }
 0x2db   : > { %3220 = vmatpush.bf16.msra.mxu2 %v4359_v32  ;;  %v4603_v50 = vor.u32 %v5199_v44, %v4600_v48  ;;  %v5269_v36 = vld [vmem:[%s7474_s7 + $0x40c] sm:$0xf0]  ;;  %v5223_v29 = vld [vmem:[%s7474_s7 + $0x2a4] sm:$0xf]  ;;  %v4696_v30 = vld [vmem:[%s7474_s7 + $0x2b0] sm:$0xf0]  ;;  %v2248_v26 = vpack.c.b16 %v6616_v42, %v6616_v42 }
 0x2dc   : > { %v2277_v0 = vor.u32 %v2276_v39, %v2272_v47  ;;  %v2233_v52 = vor.u32 %v2232_v59, %v2228_v58  ;;  %v4615_v47 = vor.u32 %v5205_v62, %v4614_v37  ;;  %v5159_v39 = vld [vmem:[%s7474_s7 + $0xa4] sm:$0xf]  ;;  %3258 = vmatpush.bf16.msrb.mxu1 %v4759_v40  ;;  %v4742_v58 = vld [vmem:[%s7474_s7 + $0x300] sm:$0xf]  ;;  %v5237_v59 = vld [vmem:[%s7474_s7 + $0x30c] sm:$0xf0]  ;;  %v4871_v14 = vor.u32 %v5269_v36, %v4870_v38 }
 0x2dd   : > { %v4443_v55 = vor.u32 %v5159_v39, %v4440_v53  ;;  %v4743_v61 = vor.u32 %v5237_v59, %v4742_v58  ;;  %v5143_v32 = vld [vmem:[%s7474_s7 + $0x24] sm:$0xf]  ;;  %v4680_v40 = vld [vmem:[%s7474_s7 + $0x290] sm:$0xf0] }
 0x2de   : > { %2278 = vrot.lane.b32.xlu1 %v2277_v0, %s5305_s16  ;;  %2234 = vrot.lane.b32.xlu2 %v2233_v52, %s5305_s16  ;;  %v4886_v0 = vld [vmem:[%s7474_s7 + $0x420] sm:$0xf]  ;;  %v4584_v52 = vld [vmem:[%s7474_s7 + $0x1d0] sm:$0xf0]  ;;  %v4379_v33 = vor.u32 %v5143_v32, %v4376_v51  ;;  %v2250_v32 = vshrl.u32 %v2248_v26, 16  ;;  %v2253_v51 = vshll.u32 %v2248_v26, 16 }
 0x2df   : > { %3269 = vmatpush.bf16.msrb.mxu2 %v4919_v35  ;;  %3279 = vmatpush.bf16.msra.mxu3 %v4459_v46  ;;  %v4887_v3 = vor.u32 %v5273_v1, %v4886_v0  ;;  %v4587_v6 = vor.u32 %v5195_v4, %v4584_v52  ;;  %v4536_v35 = vld [vmem:[%s7474_s7 + $0x170] sm:$0xf0]  ;;  %v5219_v37 = vld [vmem:[%s7474_s7 + $0x284] sm:$0xf]  ;;  %v2211_v1 = vld [vmem:[#allocation2 + $0x8] sm:$0x7] }
 0x2e0   : > { %3246 = vmatpush.bf16.msrb.mxu0 %v4615_v47  ;;  %3259 = vmatpush.bf16.msrb.mxu1 %v4743_v61  ;;  %v4539_v62 = vor.u32 %v5183_v34, %v4536_v35  ;;  %v4683_v41 = vor.u32 %v5219_v37, %v4680_v40  ;;  %v4360_v44 = vld [vmem:[%s7474_s7 + $0x10] sm:$0xf0]  ;;  %v5179_v48 = vld [vmem:[%s7474_s7 + $0x144] sm:$0xf]  ;;  %v2237_v8 = vunpack.c.l.b16 %v2211_v1 }
 0x2e1   : > { %v4520_v46 = vld [vmem:[%s7474_s7 + $0x150] sm:$0xf0]  ;;  %v5215_v47 = vld [vmem:[%s7474_s7 + $0x264] sm:$0xf]  ;;  %v4363_v53 = vor.u32 %v5139_v43, %v4360_v44 }
 0x2e2   : > { %v4664_v39 = vld [vmem:[%s7474_s7 + $0x270] sm:$0xf0]  ;;  %v5175_v58 = vld [vmem:[%s7474_s7 + $0x124] sm:$0xf]  ;;  %v2238_v17 = vpack.c.b16 %v2237_v8, %v2225_v12 }
 0x2e3   : > { %3270 = vmatpush.bf16.msrb.mxu2 %v4903_v54  ;;  %3280 = vmatpush.bf16.msra.mxu3 %v4443_v55  ;;  %v4523_v54 = vor.u32 %v5179_v48, %v4520_v46  ;;  %v4667_v55 = vor.u32 %v5215_v47, %v4664_v39  ;;  %v4504_v59 = vld [vmem:[%s7474_s7 + $0x130] sm:$0xf0]  ;;  %v5171_v4 = vld [vmem:[%s7474_s7 + $0x104] sm:$0xf]  ;;  %v2252_v46 = vrot.slane %v2250_v32, 6  ;;  %v2255_v47 = vrot.slane %v2253_v51, 7 }
 0x2e4   : > { %3291 = vmatpush.bf16.msra.mxu0 %v4603_v50  ;;  %3304 = vmatpush.bf16.msra.mxu1 %v4731_v10  ;;  %v2208_v50 = vld [vmem:[#allocation2 + $0x4] sm:$0xe]  ;;  %v4648_v61 = vld [vmem:[%s7474_s7 + $0x250] sm:$0xf0]  ;;  %v4507_v0 = vor.u32 %v5175_v58, %v4504_v59  ;;  %v2239_v12 = vrot.slane %v2238_v17, 1 }
 0x2e5   : > { %v2221_v63 = vunpack.c.l.b16 %v2208_v50  ;;  %v4488_v52 = vld [vmem:[%s7474_s7 + $0x110] sm:$0xf0]  ;;  %v5279_v35 = vld [vmem:[%s7474_s7 + $0x464] sm:$0xf]  ;;  %v2215_v58 = vld [vmem:[#allocation2 + $0x8] sm:$0xe]  ;;  %v2256_v1 = vor.u32 %v2255_v47, %v2252_v46 }
 0x2e6   : > { %2246 = vrot.lane.b32.xlu2 %v2245_v49, %s5305_s16  ;;  %v4699_v49 = vor.u32 %v5223_v29, %v4696_v30  ;;  %v4491_v9 = vor.u32 %v5171_v4, %v4488_v52  ;;  %v4856_v16 = vld [vmem:[%s7474_s7 + $0x3f0] sm:$0xf0]  ;;  %v5255_v30 = vld [vmem:[%s7474_s7 + $0x3a4] sm:$0xf]  ;;  %v5266_v32 = vld [vmem:[%s7474_s7 + $0x3f4] sm:$0xf0] }
 0x2e7   : > { %3281 = vmatpush.bf16.msra.mxu3 %v4427_v21  ;;  %3271 = vmatpush.bf16.msrb.mxu2 %v4887_v3  ;;  %v4651_v21 = vor.u32 %v5211_v60, %v4648_v61  ;;  %v2218_v3 = vld [vmem:[#allocation2 + $0xc] sm:$0x7]  ;;  %v2223_v7 = vpack.c.b16 %v2222_v23, %v2221_v63  ;;  %v5263_v23 = vld [vmem:[%s7474_s7 + $0x3e4] sm:$0xf]  ;;  %v4920_v37 = vld [vmem:[%s7474_s7 + $0x470] sm:$0xf0] }
 0x2e8   : > { %3292 = vmatpush.bf16.msra.mxu0 %v4587_v6  ;;  %3305 = vmatpush.bf16.msra.mxu1 %v4715_v20  ;;  %v4632_v6 = vld [vmem:[%s7474_s7 + $0x230] sm:$0xf0]  ;;  %v2281_v10 = vunpack.c.l.b16 %v2218_v3  ;;  %v4859_v25 = vor.u32 %v5263_v23, %v4856_v16  ;;  %v4923_v48 = vor.u32 %v5279_v35, %v4920_v37  ;;  %v5251_v39 = vld [vmem:[%s7474_s7 + $0x384] sm:$0xf]  ;;  %v4846_v46 = vld [vmem:[%s7474_s7 + $0x3c8] sm:$0xf] }
 0x2e9   : > { %v4635_v38 = vor.u32 %v5207_v5, %v4632_v6  ;;  %v5275_v50 = vld [vmem:[%s7474_s7 + $0x444] sm:$0xf]  ;;  %v4792_v3 = vld [vmem:[%s7474_s7 + $0x370] sm:$0xf0]  ;;  %v5262_v47 = vld [vmem:[%s7474_s7 + $0x3d4] sm:$0xf0] }
 0x2ea   : > { %v5271_v4 = vld [vmem:[%s7474_s7 + $0x424] sm:$0xf]  ;;  %v4888_v52 = vld [vmem:[%s7474_s7 + $0x430] sm:$0xf0] }
 0x2eb   : > { %3282 = vmatpush.bf16.msra.mxu3 %v4411_v45  ;;  %3272 = vmatpush.bf16.msrb.mxu2 %v4871_v14  ;;  %v4616_v14 = vld [vmem:[%s7474_s7 + $0x210] sm:$0xf0] }
 0x2ec   : > { %3293 = vmatpush.bf16.msra.mxu0 %v4571_v19  ;;  %3306 = vmatpush.bf16.msra.mxu1 %v4699_v49  ;;  %v2282_v19 = vpack.c.b16 %v2281_v10, %v2269_v22  ;;  %v4619_v27 = vor.u32 %v5203_v13, %v4616_v14  ;;  %v4824_v49 = vld [vmem:[%s7474_s7 + $0x3b0] sm:$0xf0]  ;;  %v5170_v13 = vld [vmem:[%s7474_s7 + $0xf4] sm:$0xf0] }
 0x2ed   : > { %v4827_v44 = vor.u32 %v5255_v30, %v4824_v49  ;;  %v4776_v8 = vld [vmem:[%s7474_s7 + $0x350] sm:$0xf0]  ;;  %v4862_v49 = vld [vmem:[%s7474_s7 + $0x3e8] sm:$0xf] }
 0x2ee   : > { %v2283_v31 = vrot.slane %v2282_v19, 1  ;;  %v4872_v23 = vld [vmem:[%s7474_s7 + $0x410] sm:$0xf0] }
 0x2ef   : > { %3283 = vmatpush.bf16.msra.mxu3 %v4395_v2 }
 0x2f0   : > { %3294 = vmatpush.bf16.msra.mxu0 %v4555_v28  ;;  %3307 = vmatpush.bf16.msra.mxu1 %v4683_v41  ;;  %v5259_v28 = vld [vmem:[%s7474_s7 + $0x3c4] sm:$0xf]  ;;  %v2479_v41 = vshrl.u32 %v2283_v31, 16  ;;  %v2482_v43 = vshll.u32 %v2283_v31, 16  ;;  %v4760_v31 = vld [vmem:[%s7474_s7 + $0x330] sm:$0xf0] }
 0x2f1   : > { %v4843_v42 = vor.u32 %v5259_v28, %v4840_v57  ;;  %v4462_v57 = vld [vmem:[%s7474_s7 + $0xc8] sm:$0xf] }
 0x2f2   : > { %v2481_v61 = vrot.slane %v2479_v41, 1  ;;  %v2484_v63 = vrot.slane %v2482_v43, 2  ;;  %v5162_v41 = vld [vmem:[%s7474_s7 + $0xb4] sm:$0xf0]  ;;  %v4863_v43 = vor.u32 %v5266_v32, %v4862_v49  ;;  %v4526_v49 = vld [vmem:[%s7474_s7 + $0x148] sm:$0xf] }
 0x2f3   : > { %3284 = vmatpush.bf16.msra.mxu3 %v4379_v33  ;;  %v5182_v32 = vld [vmem:[%s7474_s7 + $0x154] sm:$0xf0] }
 0x2f4   : > { %3295 = vmatpush.bf16.msra.mxu0 %v4539_v62  ;;  %3308 = vmatpush.bf16.msra.mxu1 %v4667_v55  ;;  %v4904_v55 = vld [vmem:[%s7474_s7 + $0x450] sm:$0xf0] }
 0x2f5   : > { %v4907_v60 = vor.u32 %v5275_v50, %v4904_v55 }
 0x2f7   : > { %3285 = vmatpush.bf16.msra.mxu3 %v4363_v53 }
 0x2f8   : > { %3296 = vmatpush.bf16.msra.mxu0 %v4523_v54  ;;  %3309 = vmatpush.bf16.msra.mxu1 %v4651_v21  ;;  %v4808_v54 = vld [vmem:[%s7474_s7 + $0x390] sm:$0xf0]  ;;  %v2265_v21 = vunpack.c.l.b16 %v2215_v58 }
 0x2f9   : > { %v4811_v59 = vor.u32 %v5251_v39, %v4808_v54  ;;  %v4734_v39 = vld [vmem:[%s7474_s7 + $0x2e8] sm:$0xf]  ;;  %v5234_v54 = vld [vmem:[%s7474_s7 + $0x2f4] sm:$0xf0] }
 0x2fa   : > { %v2267_v14 = vpack.c.b16 %v2266_v11, %v2265_v21  ;;  %v4830_v21 = vld [vmem:[%s7474_s7 + $0x3a8] sm:$0xf] }
 0x2fc   : > { %3297 = vmatpush.bf16.msra.mxu0 %v4507_v0  ;;  %3310 = vmatpush.bf16.msra.mxu1 %v4635_v38  ;;  %v5247_v0 = vld [vmem:[%s7474_s7 + $0x364] sm:$0xf]  ;;  %v4891_v38 = vor.u32 %v5271_v4, %v4888_v52  ;;  %v4718_v4 = vld [vmem:[%s7474_s7 + $0x2c8] sm:$0xf]  ;;  %v5230_v52 = vld [vmem:[%s7474_s7 + $0x2d4] sm:$0xf0] }
 0x300   : > { %3298 = vmatpush.bf16.msra.mxu0 %v4491_v9  ;;  %3311 = vmatpush.bf16.msra.mxu1 %v4619_v27 }
 0x338   : > { %v2235_v45 = vpop.permute.xlu2 %2234 }
 0x339   : > { %v2286_v36 = vsel %vm680_vm3, %v2223_v7, %v2235_v45  ;;  %v5243_v7 = vld [vmem:[%s7474_s7 + $0x344] sm:$0xf]  ;;  %v4795_v45 = vor.u32 %v5247_v0, %v4792_v3  ;;  %v4574_v0 = vld [vmem:[%s7474_s7 + $0x1a8] sm:$0xf]  ;;  %v5258_v3 = vld [vmem:[%s7474_s7 + $0x3b4] sm:$0xf0] }
 0x33a   : > { %v2450_v15 = vshrl.u32 %v2286_v36, 16  ;;  %v2453_v18 = vshll.u32 %v2286_v36, 16  ;;  %v4478_v36 = vld [vmem:[%s7474_s7 + $0xe8] sm:$0xf]  ;;  %v4779_v56 = vor.u32 %v5243_v7, %v4776_v8  ;;  %v5154_v8 = vld [vmem:[%s7474_s7 + $0x74] sm:$0xf0] }
 0x33b   : > { %v4479_v11 = vor.u32 %v5170_v13, %v4478_v36  ;;  %v4414_v7 = vld [vmem:[%s7474_s7 + $0x68] sm:$0xf]  ;;  %v5254_v13 = vld [vmem:[%s7474_s7 + $0x394] sm:$0xf0] }
 0x33c   : > { %v2452_v20 = vrot.slane %v2450_v15, 1  ;;  %v2455_v24 = vrot.slane %v2453_v18, 2  ;;  %v6980_v15 = vor.u32 %v2484_v63, %v2481_v61  ;;  %v5267_v18 = vld [vmem:[%s7474_s7 + $0x404] sm:$0xf]  ;;  %v4847_v61 = vor.u32 %v5262_v47, %v4846_v46  ;;  %v4814_v36 = vld [vmem:[%s7474_s7 + $0x388] sm:$0xf] }
 0x33d   : > { %v4875_v28 = vor.u32 %v5267_v18, %v4872_v23  ;;  %v4735_v63 = vor.u32 %v5234_v54, %v4734_v39  ;;  %v5226_v18 = vld [vmem:[%s7474_s7 + $0x2b4] sm:$0xf0]  ;;  %v4415_v23 = vor.u32 %v5154_v8, %v4414_v7  ;;  %v4766_v39 = vld [vmem:[%s7474_s7 + $0x328] sm:$0xf] }
 0x33e   : > { %v6916_v2 = vor.u32 %v2455_v24, %v2452_v20  ;;  %v5239_v24 = vld [vmem:[%s7474_s7 + $0x324] sm:$0xf]  ;;  %v4926_v54 = vld [vmem:[%s7474_s7 + $0x468] sm:$0xf]  ;;  %v5210_v8 = vld [vmem:[%s7474_s7 + $0x234] sm:$0xf0] }
 0x33f   : > { %v4763_v35 = vor.u32 %v5239_v24, %v4760_v31  ;;  %v5186_v24 = vld [vmem:[%s7474_s7 + $0x174] sm:$0xf0]  ;;  %v4638_v7 = vld [vmem:[%s7474_s7 + $0x228] sm:$0xf] }
 0x340   : > { %v2247_v22 = vpop.permute.xlu2 %2246  ;;  %3221 = vmatmul.bf16.vlgmr.msra.gmra.mxu2 %v6916_v2 }
 0x341   : > { %v2289_v29 = vsel %vm680_vm3, %v2239_v12, %v2247_v22  ;;  %3317 = vmatpush.bf16.msra.mxu2 %v4859_v25  ;;  %v5166_v12 = vld [vmem:[%s7474_s7 + $0xd4] sm:$0xf0]  ;;  %v4606_v22 = vld [vmem:[%s7474_s7 + $0x1e8] sm:$0xf] }
 0x342   : > { %v2457_v33 = vshrl.u32 %v2289_v29, 16  ;;  %v2460_v34 = vshll.u32 %v2289_v29, 16  ;;  %v5202_v29 = vld [vmem:[%s7474_s7 + $0x1f4] sm:$0xf0]  ;;  %v4463_v51 = vor.u32 %v5166_v12, %v4462_v57 }
 0x343   : > { %v4607_v37 = vor.u32 %v5202_v29, %v4606_v22  ;;  %v5222_v57 = vld [vmem:[%s7474_s7 + $0x294] sm:$0xf0]  ;;  %v4382_v22 = vld [vmem:[%s7474_s7 + $0x28] sm:$0xf] }
 0x344   : > { %v2459_v62 = vrot.slane %v2457_v33, 1  ;;  %v2462_v40 = vrot.slane %v2460_v34, 2  ;;  %v5235_v33 = vld [vmem:[%s7474_s7 + $0x304] sm:$0xf]  ;;  %v5146_v29 = vld [vmem:[%s7474_s7 + $0x34] sm:$0xf0] }
 0x345   : > { %3318 = vmatpush.bf16.msra.mxu2 %v4843_v42 }
 0x346   : > { %v6941_v53 = vor.u32 %v2462_v40, %v2459_v62  ;;  %v4744_v62 = vld [vmem:[%s7474_s7 + $0x310] sm:$0xf0]  ;;  %v4446_v40 = vld [vmem:[%s7474_s7 + $0xa8] sm:$0xf] }
 0x347   : > { %v4447_v50 = vor.u32 %v5162_v41, %v4446_v40  ;;  %v4747_v55 = vor.u32 %v5235_v33, %v4744_v62  ;;  %v5246_v33 = vld [vmem:[%s7474_s7 + $0x354] sm:$0xf0]  ;;  %v4383_v62 = vor.u32 %v5146_v29, %v4382_v22  ;;  %v4366_v40 = vld [vmem:[%s7474_s7 + $0x8] sm:$0xf]  ;;  %v4527_v41 = vor.u32 %v5182_v32, %v4526_v49  ;;  %v5160_v49 = vld [vmem:[%s7474_s7 + $0xac] sm:$0xf] }
 0x348   : > { %3234 = vmatmul.bf16.vlgmr.msrb.gmra.mxu3 %v6941_v53  ;;  %v4878_v22 = vld [vmem:[%s7474_s7 + $0x408] sm:$0xf]  ;;  %v5270_v29 = vld [vmem:[%s7474_s7 + $0x414] sm:$0xf0]  ;;  %v5264_v32 = vld [vmem:[%s7474_s7 + $0x3ec] sm:$0xf] }
 0x349   : > { %3319 = vmatpush.bf16.msra.mxu2 %v4827_v44  ;;  %3334 = vmatpush.bf16.msrb.mxu3 %v4923_v48  ;;  %v4590_v44 = vld [vmem:[%s7474_s7 + $0x1c8] sm:$0xf]  ;;  %v5198_v48 = vld [vmem:[%s7474_s7 + $0x1d4] sm:$0xf0] }
 0x34a   : > { %v4591_v58 = vor.u32 %v5198_v48, %v4590_v44  ;;  %v4510_v44 = vld [vmem:[%s7474_s7 + $0x128] sm:$0xf]  ;;  %v5178_v48 = vld [vmem:[%s7474_s7 + $0x134] sm:$0xf0] }
 0x34b   : > { %v2262_v5 = vpop.permute.xlu0 %2261 }
 0x34c   : > { %v2292_v6 = vsel %vm680_vm3, %v2256_v1, %v2262_v5  ;;  %v5194_v1 = vld [vmem:[%s7474_s7 + $0x1b4] sm:$0xf0] }
 0x34d   : > { %v2464_v9 = vshrl.u32 %v2292_v6, 16  ;;  %v2467_v10 = vshll.u32 %v2292_v6, 16  ;;  %3320 = vmatpush.bf16.msra.mxu2 %v4811_v59  ;;  %3335 = vmatpush.bf16.msrb.mxu3 %v4907_v60  ;;  %v4430_v59 = vld [vmem:[%s7474_s7 + $0x88] sm:$0xf]  ;;  %v5158_v60 = vld [vmem:[%s7474_s7 + $0x94] sm:$0xf0]  ;;  %v4575_v6 = vor.u32 %v5194_v1, %v4574_v0 }
 0x34e   : > { %v4431_v5 = vor.u32 %v5158_v60, %v4430_v59  ;;  %v5214_v59 = vld [vmem:[%s7474_s7 + $0x254] sm:$0xf0]  ;;  %v4494_v0 = vld [vmem:[%s7474_s7 + $0x108] sm:$0xf] }
 0x34f   : > { %v2466_v16 = vrot.slane %v2464_v9, 1  ;;  %v2469_v17 = vrot.slane %v2467_v10, 2  ;;  %v4831_v9 = vor.u32 %v5258_v3, %v4830_v21  ;;  %v4719_v10 = vor.u32 %v5230_v52, %v4718_v4  ;;  %v5174_v1 = vld [vmem:[%s7474_s7 + $0x114] sm:$0xf0]  ;;  %v4750_v21 = vld [vmem:[%s7474_s7 + $0x308] sm:$0xf] }
 0x350   : > { %v2279_v19 = vpop.permute.xlu1 %2278  ;;  %4932 = vmatmul.msk.bf16.vlgmr.msrb.gmra.mxu2 %vm680_vm3, %v6980_v15  ;;  %v5238_v52 = vld [vmem:[%s7474_s7 + $0x314] sm:$0xf0] }
 0x351   : > { %v2295_v20 = vsel %vm680_vm3, %v2267_v14, %v2279_v19  ;;  %v6994_v27 = vor.u32 %v2469_v17, %v2466_v16  ;;  %3321 = vmatpush.bf16.msra.mxu2 %v4795_v45  ;;  %3336 = vmatpush.bf16.msrb.mxu3 %v4891_v38  ;;  %v4558_v45 = vld [vmem:[%s7474_s7 + $0x188] sm:$0xf]  ;;  %v5190_v38 = vld [vmem:[%s7474_s7 + $0x194] sm:$0xf0] }
 0x352   : > { %v2471_v25 = vshrl.u32 %v2295_v20, 16  ;;  %v2474_v26 = vshll.u32 %v2295_v20, 16  ;;  %v4702_v14 = vld [vmem:[%s7474_s7 + $0x2a8] sm:$0xf]  ;;  %v4559_v16 = vor.u32 %v5190_v38, %v4558_v45  ;;  %v5150_v19 = vld [vmem:[%s7474_s7 + $0x54] sm:$0xf0]  ;;  %v4815_v20 = vor.u32 %v5254_v13, %v4814_v36 }
 0x353   : > { %3247 = vmatmul.bf16.vlgmr.msrb.gmra.mxu0 %v6994_v27  ;;  %v4398_v17 = vld [vmem:[%s7474_s7 + $0x48] sm:$0xf]  ;;  %v5232_v45 = vld [vmem:[%s7474_s7 + $0x2ec] sm:$0xf]  ;;  %v4736_v38 = vld [vmem:[%s7474_s7 + $0x2f8] sm:$0xf0]  ;;  %v4495_v36 = vor.u32 %v5174_v1, %v4494_v0 }
 0x354   : > { %v2473_v42 = vrot.slane %v2471_v25, 1  ;;  %v2476_v30 = vrot.slane %v2474_v26, 2  ;;  %3343 = vmatpush.bf16.msrb.mxu0 %v4479_v11  ;;  %v4542_v11 = vld [vmem:[%s7474_s7 + $0x168] sm:$0xf]  ;;  %v5250_v26 = vld [vmem:[%s7474_s7 + $0x374] sm:$0xf0]  ;;  %v4399_v12 = vor.u32 %v5150_v19, %v4398_v17  ;;  %v4739_v19 = vor.u32 %v5232_v45, %v4736_v38 }
 0x355   : > { %3322 = vmatpush.bf16.msra.mxu2 %v4779_v56  ;;  %3337 = vmatpush.bf16.msrb.mxu3 %v4875_v28  ;;  %v4703_v56 = vor.u32 %v5226_v18, %v4702_v14  ;;  %v4798_v25 = vld [vmem:[%s7474_s7 + $0x368] sm:$0xf]  ;;  %v4543_v31 = vor.u32 %v5186_v24, %v4542_v11  ;;  %v4751_v14 = vor.u32 %v5238_v52, %v4750_v21  ;;  %v5164_v11 = vld [vmem:[%s7474_s7 + $0xcc] sm:$0xf]  ;;  %v4464_v24 = vld [vmem:[%s7474_s7 + $0xd8] sm:$0xf0] }
 0x356   : > { %v7021_v34 = vor.u32 %v2476_v30, %v2473_v42  ;;  %v4686_v28 = vld [vmem:[%s7474_s7 + $0x288] sm:$0xf]  ;;  %v4799_v42 = vor.u32 %v5250_v26, %v4798_v25  ;;  %v4639_v18 = vor.u32 %v5210_v8, %v4638_v7  ;;  %v5228_v25 = vld [vmem:[%s7474_s7 + $0x2cc] sm:$0xf]  ;;  %v4720_v26 = vld [vmem:[%s7474_s7 + $0x2d8] sm:$0xf0] }
 0x357   : > { %v4687_v30 = vor.u32 %v5222_v57, %v4686_v28  ;;  %v5200_v57 = vld [vmem:[%s7474_s7 + $0x1ec] sm:$0xf]  ;;  %v4672_v7 = vld [vmem:[%s7474_s7 + $0x278] sm:$0xf0] }
 0x358   : > { %3260 = vmatmul.bf16.vlgmr.msrb.gmra.mxu1 %v7021_v34  ;;  %3286 = vmatmul.bf16.vlgmr.msra.gmra.mxu3 %v6916_v2  ;;  %v5152_v21 = vld [vmem:[%s7474_s7 + $0x6c] sm:$0xf] }
 0x359   : > { %3344 = vmatpush.bf16.msrb.mxu0 %v4463_v51  ;;  %3323 = vmatpush.bf16.msra.mxu2 %v4763_v35  ;;  %v4782_v51 = vld [vmem:[%s7474_s7 + $0x348] sm:$0xf]  ;;  %v5188_v8 = vld [vmem:[%s7474_s7 + $0x18c] sm:$0xf] }
 0x35a   : > { %3356 = vmatpush.bf16.msrb.mxu1 %v4607_v37  ;;  %3382 = vmatpush.bf16.msra.mxu3 %v4863_v43  ;;  %v4670_v35 = vld [vmem:[%s7474_s7 + $0x268] sm:$0xf]  ;;  %v5218_v37 = vld [vmem:[%s7474_s7 + $0x274] sm:$0xf0]  ;;  %v4783_v46 = vor.u32 %v5246_v33, %v4782_v51  ;;  %v4864_v51 = vld [vmem:[%s7474_s7 + $0x3f8] sm:$0xf0] }
 0x35b   : > { %v5142_v43 = vld [vmem:[%s7474_s7 + $0x14] sm:$0xf0]  ;;  %v4671_v47 = vor.u32 %v5218_v37, %v4670_v35  ;;  %v4448_v35 = vld [vmem:[%s7474_s7 + $0xb8] sm:$0xf0]  ;;  %v5224_v37 = vld [vmem:[%s7474_s7 + $0x2ac] sm:$0xf] }
 0x35c   : > { %v4367_v60 = vor.u32 %v5142_v43, %v4366_v40  ;;  %v4879_v40 = vor.u32 %v5270_v29, %v4878_v22  ;;  %v4592_v43 = vld [vmem:[%s7474_s7 + $0x1d8] sm:$0xf0]  ;;  %v5180_v29 = vld [vmem:[%s7474_s7 + $0x14c] sm:$0xf] }
 0x35d   : > { %3345 = vmatpush.bf16.msrb.mxu0 %v4447_v50  ;;  %3324 = vmatpush.bf16.msra.mxu2 %v4747_v55  ;;  %v5282_v50 = vld [vmem:[%s7474_s7 + $0x474] sm:$0xf0]  ;;  %v4640_v22 = vld [vmem:[%s7474_s7 + $0x238] sm:$0xf0] }
 0x35e   : > { %3357 = vmatpush.bf16.msrb.mxu1 %v4591_v58  ;;  %3383 = vmatpush.bf16.msra.mxu3 %v4847_v61  ;;  %v5242_v55 = vld [vmem:[%s7474_s7 + $0x334] sm:$0xf0]  ;;  %v4654_v58 = vld [vmem:[%s7474_s7 + $0x248] sm:$0xf]  ;;  %v4511_v61 = vor.u32 %v5178_v48, %v4510_v44  ;;  %v4867_v44 = vor.u32 %v5264_v32, %v4864_v51  ;;  %v4451_v48 = vor.u32 %v5160_v49, %v4448_v35  ;;  %v5140_v49 = vld [vmem:[%s7474_s7 + $0xc] sm:$0xf] }
 0x35f   : > { %v4767_v3 = vor.u32 %v5242_v55, %v4766_v39  ;;  %v4655_v4 = vor.u32 %v5214_v59, %v4654_v58  ;;  %v5260_v39 = vld [vmem:[%s7474_s7 + $0x3cc] sm:$0xf]  ;;  %v4432_v55 = vld [vmem:[%s7474_s7 + $0x98] sm:$0xf0] }
 0x360   : > { %3325 = vmatmul.bf16.vlgmr.msra.gmra.mxu2 %v7021_v34  ;;  %v5220_v58 = vld [vmem:[%s7474_s7 + $0x28c] sm:$0xf]  ;;  %v4688_v59 = vld [vmem:[%s7474_s7 + $0x298] sm:$0xf0] }
 0x361   : > { %3369 = vmatpush.bf16.msrb.mxu2 %v4735_v63  ;;  %3346 = vmatpush.bf16.msrb.mxu0 %v4431_v5  ;;  %v4927_v63 = vor.u32 %v5282_v50, %v4926_v54  ;;  %v4910_v5 = vld [vmem:[%s7474_s7 + $0x448] sm:$0xf]  ;;  %v4848_v54 = vld [vmem:[%s7474_s7 + $0x3d8] sm:$0xf0]  ;;  %v4691_v1 = vor.u32 %v5220_v58, %v4688_v59  ;;  %v5244_v35 = vld [vmem:[%s7474_s7 + $0x34c] sm:$0xf] }
 0x362   : > { %3358 = vmatpush.bf16.msrb.mxu1 %v4575_v6  ;;  %3384 = vmatpush.bf16.msra.mxu3 %v4831_v9  ;;  %v5278_v6 = vld [vmem:[%s7474_s7 + $0x454] sm:$0xf0]  ;;  %v5168_v9 = vld [vmem:[%s7474_s7 + $0xec] sm:$0xf] }
 0x363   : > { %3299 = vmatmul.bf16.vlgmr.msra.gmra.mxu0 %v6941_v53  ;;  %v4911_v13 = vor.u32 %v5278_v6, %v4910_v5  ;;  %v4416_v5 = vld [vmem:[%s7474_s7 + $0x78] sm:$0xf0]  ;;  %v5216_v6 = vld [vmem:[%s7474_s7 + $0x26c] sm:$0xf] }
 0x364   : > { %v4419_v45 = vor.u32 %v5152_v21, %v4416_v5  ;;  %v4675_v38 = vor.u32 %v5216_v6, %v4672_v7  ;;  %v5172_v58 = vld [vmem:[%s7474_s7 + $0x10c] sm:$0xf]  ;;  %v4896_v6 = vld [vmem:[%s7474_s7 + $0x438] sm:$0xf0] }
 0x365   : > { %3370 = vmatpush.bf16.msrb.mxu2 %v4719_v10  ;;  %3347 = vmatpush.bf16.msrb.mxu0 %v4415_v23  ;;  %v4480_v10 = vld [vmem:[%s7474_s7 + $0xf8] sm:$0xf0]  ;;  %v4894_v23 = vld [vmem:[%s7474_s7 + $0x428] sm:$0xf]  ;;  %v5240_v59 = vld [vmem:[%s7474_s7 + $0x32c] sm:$0xf] }
 0x366   : > { %3359 = vmatpush.bf16.msrb.mxu1 %v4559_v16  ;;  %3385 = vmatpush.bf16.msra.mxu3 %v4815_v20  ;;  %v5274_v16 = vld [vmem:[%s7474_s7 + $0x434] sm:$0xf0]  ;;  %v4483_v17 = vor.u32 %v5168_v9, %v4480_v10  ;;  %v4622_v20 = vld [vmem:[%s7474_s7 + $0x208] sm:$0xf]  ;;  %v4560_v9 = vld [vmem:[%s7474_s7 + $0x198] sm:$0xf0] }
 0x367   : > { %v4895_v28 = vor.u32 %v5274_v16, %v4894_v23  ;;  %v4400_v23 = vld [vmem:[%s7474_s7 + $0x58] sm:$0xf0]  ;;  %v5212_v16 = vld [vmem:[%s7474_s7 + $0x24c] sm:$0xf] }
 0x368   : > { %3312 = vmatmul.bf16.vlgmr.msra.gmra.mxu1 %v6994_v27  ;;  %4933 = vmatmul.msk.bf16.vlgmr.msrb.gmra.mxu3 %vm680_vm3, %v6980_v15  ;;  %v5272_v5 = vld [vmem:[%s7474_s7 + $0x42c] sm:$0xf] }
 0x369   : > { %3371 = vmatpush.bf16.msrb.mxu2 %v4703_v56  ;;  %3348 = vmatpush.bf16.msrb.mxu0 %v4399_v12  ;;  %v5206_v56 = vld [vmem:[%s7474_s7 + $0x214] sm:$0xf0]  ;;  %v4608_v12 = vld [vmem:[%s7474_s7 + $0x1f8] sm:$0xf0] }
 0x36a   : > { %3360 = vmatpush.bf16.msrb.mxu1 %v4543_v31  ;;  %3386 = vmatpush.bf16.msra.mxu3 %v4799_v42  ;;  %v4623_v31 = vor.u32 %v5206_v56, %v4622_v20  ;;  %v4467_v42 = vor.u32 %v5164_v11, %v4464_v24  ;;  %v4611_v33 = vor.u32 %v5200_v57, %v4608_v12  ;;  %v4544_v20 = vld [vmem:[%s7474_s7 + $0x178] sm:$0xf0] }
 0x36b   : > { %v4384_v12 = vld [vmem:[%s7474_s7 + $0x38] sm:$0xf0] }
 0x36d   : > { %3372 = vmatpush.bf16.msrb.mxu2 %v4687_v30  ;;  %3349 = vmatpush.bf16.msrb.mxu0 %v4383_v62  ;;  %v4723_v30 = vor.u32 %v5228_v25, %v4720_v26  ;;  %v4704_v62 = vld [vmem:[%s7474_s7 + $0x2b8] sm:$0xf0]  ;;  %v5144_v25 = vld [vmem:[%s7474_s7 + $0x2c] sm:$0xf] }
 0x36e   : > { %3361 = vmatpush.bf16.msrb.mxu1 %v4527_v41  ;;  %3387 = vmatpush.bf16.msra.mxu3 %v4783_v46  ;;  %v5196_v41 = vld [vmem:[%s7474_s7 + $0x1cc] sm:$0xf]  ;;  %v4707_v46 = vor.u32 %v5224_v37, %v4704_v62  ;;  %v4387_v32 = vor.u32 %v5144_v25, %v4384_v12  ;;  %v4784_v37 = vld [vmem:[%s7474_s7 + $0x358] sm:$0xf0] }
 0x36f   : > { %v4595_v50 = vor.u32 %v5196_v41, %v4592_v43  ;;  %v5248_v26 = vld [vmem:[%s7474_s7 + $0x36c] sm:$0xf]  ;;  %v4624_v41 = vld [vmem:[%s7474_s7 + $0x218] sm:$0xf0] }
 0x370   : > { %v5176_v43 = vld [vmem:[%s7474_s7 + $0x12c] sm:$0xf] }
 0x371   : > { %3373 = vmatpush.bf16.msrb.mxu2 %v4671_v47  ;;  %3350 = vmatpush.bf16.msrb.mxu0 %v4367_v60  ;;  %v5156_v47 = vld [vmem:[%s7474_s7 + $0x8c] sm:$0xf] }
 0x372   : > { %3362 = vmatpush.bf16.msrb.mxu1 %v4511_v61  ;;  %3388 = vmatpush.bf16.msra.mxu3 %v4767_v3  ;;  %v5192_v60 = vld [vmem:[%s7474_s7 + $0x1ac] sm:$0xf]  ;;  %v4576_v61 = vld [vmem:[%s7474_s7 + $0x1b8] sm:$0xf0]  ;;  %v4435_v0 = vor.u32 %v5156_v47, %v4432_v55  ;;  %v4787_v47 = vor.u32 %v5244_v35, %v4784_v37 }
 0x373   : > { %v5256_v3 = vld [vmem:[%s7474_s7 + $0x3ac] sm:$0xf]  ;;  %v4579_v52 = vor.u32 %v5192_v60, %v4576_v61  ;;  %v4768_v60 = vld [vmem:[%s7474_s7 + $0x338] sm:$0xf0] }
 0x374   : > { %3351 = vmatmul.bf16.vlgmr.msrb.gmra.mxu0 %v6916_v2  ;;  %v4496_v61 = vld [vmem:[%s7474_s7 + $0x118] sm:$0xf0] }
 0x375   : > { %3399 = vmatpush.bf16.msra.mxu0 %v4927_v63  ;;  %3374 = vmatpush.bf16.msrb.mxu2 %v4655_v4  ;;  %v4851_v63 = vor.u32 %v5260_v39, %v4848_v54  ;;  %v4832_v4 = vld [vmem:[%s7474_s7 + $0x3b8] sm:$0xf0]  ;;  %v4499_v21 = vor.u32 %v5172_v58, %v4496_v61 }
 0x376   : > { %3363 = vmatpush.bf16.msrb.mxu1 %v4495_v36  ;;  %3389 = vmatpush.bf16.msra.mxu3 %v4751_v14  ;;  %v4835_v10 = vor.u32 %v5256_v3, %v4832_v4  ;;  %v5148_v36 = vld [vmem:[%s7474_s7 + $0x4c] sm:$0xf]  ;;  %v4816_v14 = vld [vmem:[%s7474_s7 + $0x398] sm:$0xf0] }
 0x377   : > { %v4403_v11 = vor.u32 %v5148_v36, %v4400_v23  ;;  %v5236_v4 = vld [vmem:[%s7474_s7 + $0x30c] sm:$0xf] }
 0x379   : > { %3400 = vmatpush.bf16.msra.mxu0 %v4911_v13  ;;  %3375 = vmatpush.bf16.msrb.mxu2 %v4639_v18  ;;  %v5252_v13 = vld [vmem:[%s7474_s7 + $0x38c] sm:$0xf]  ;;  %v4563_v18 = vor.u32 %v5188_v8, %v4560_v9  ;;  %v4899_v8 = vor.u32 %v5272_v5, %v4896_v6 }
 0x37a   : > { %3408 = vmatpush.bf16.msra.mxu1 %v4483_v17  ;;  %3434 = vmatpush.bf16.msrb.mxu3 %v4739_v19  ;;  %v4656_v17 = vld [vmem:[%s7474_s7 + $0x258] sm:$0xf0]  ;;  %v5184_v19 = vld [vmem:[%s7474_s7 + $0x16c] sm:$0xf]  ;;  %v4819_v56 = vor.u32 %v5252_v13, %v4816_v14 }
 0x37b   : > { %3364 = vmatmul.bf16.vlgmr.msrb.gmra.mxu1 %v6941_v53  ;;  %3390 = vmatmul.bf16.vlgmr.msra.gmra.mxu3 %v7021_v34  ;;  %v4659_v24 = vor.u32 %v5212_v16, %v4656_v17  ;;  %v4547_v57 = vor.u32 %v5184_v19, %v4544_v20  ;;  %v5268_v9 = vld [vmem:[%s7474_s7 + $0x40c] sm:$0xf] }
 0x37d   : > { %3401 = vmatpush.bf16.msra.mxu0 %v4895_v28  ;;  %3376 = vmatpush.bf16.msrb.mxu2 %v4623_v31  ;;  %v4800_v28 = vld [vmem:[%s7474_s7 + $0x378] sm:$0xf0]  ;;  %v5208_v31 = vld [vmem:[%s7474_s7 + $0x22c] sm:$0xf] }
 0x37e   : > { %3409 = vmatpush.bf16.msra.mxu1 %v4467_v42  ;;  %3435 = vmatpush.bf16.msrb.mxu3 %v4723_v30  ;;  %v4528_v42 = vld [vmem:[%s7474_s7 + $0x158] sm:$0xf0]  ;;  %v4803_v30 = vor.u32 %v5248_v26, %v4800_v28  ;;  %v4643_v51 = vor.u32 %v5208_v31, %v4640_v22 }
 0x37f   : > { %v4531_v62 = vor.u32 %v5180_v29, %v4528_v42 }
 0x380   : > { %3377 = vmatmul.bf16.vlgmr.msrb.gmra.mxu2 %v6994_v27 }
 0x381   : > { %3421 = vmatpush.bf16.msra.mxu2 %v4611_v33  ;;  %3402 = vmatpush.bf16.msra.mxu0 %v4879_v40  ;;  %v4368_v33 = vld [vmem:[%s7474_s7 + $0x18] sm:$0xf0]  ;;  %v5204_v40 = vld [vmem:[%s7474_s7 + $0x20c] sm:$0xf] }
 0x382   : > { %3410 = vmatpush.bf16.msra.mxu1 %v4451_v48  ;;  %3436 = vmatpush.bf16.msrb.mxu3 %v4707_v46  ;;  %v5280_v48 = vld [vmem:[%s7474_s7 + $0x46c] sm:$0xf]  ;;  %v4928_v46 = vld [vmem:[%s7474_s7 + $0x478] sm:$0xf0]  ;;  %v4371_v39 = vor.u32 %v5140_v49, %v4368_v33  ;;  %v4627_v54 = vor.u32 %v5204_v40, %v4624_v41 }
 0x383   : > { %v4931_v55 = vor.u32 %v5280_v48, %v4928_v46 }
 0x384   : > { %4934 = vmatmul.msk.bf16.vlgmr.msra.gmra.mxu0 %vm680_vm3, %v6980_v15 }
 0x385   : > { %3447 = vmatpush.bf16.msrb.mxu0 %v4867_v44  ;;  %3422 = vmatpush.bf16.msra.mxu2 %v4595_v50  ;;  %v4512_v44 = vld [vmem:[%s7474_s7 + $0x138] sm:$0xf0] }
 0x386   : > { %3411 = vmatpush.bf16.msra.mxu1 %v4435_v0  ;;  %3437 = vmatpush.bf16.msrb.mxu3 %v4691_v1  ;;  %v4515_v50 = vor.u32 %v5176_v43, %v4512_v44  ;;  %v4912_v0 = vld [vmem:[%s7474_s7 + $0x458] sm:$0xf0]  ;;  %v4771_v1 = vor.u32 %v5240_v59, %v4768_v60 }
 0x389   : > { %3448 = vmatpush.bf16.msrb.mxu0 %v4851_v63  ;;  %3423 = vmatpush.bf16.msra.mxu2 %v4579_v52  ;;  %v5276_v63 = vld [vmem:[%s7474_s7 + $0x44c] sm:$0xf]  ;;  %v4752_v52 = vld [vmem:[%s7474_s7 + $0x318] sm:$0xf0] }
 0x38a   : > { %3412 = vmatpush.bf16.msra.mxu1 %v4419_v45  ;;  %3438 = vmatpush.bf16.msrb.mxu3 %v4675_v38  ;;  %v4915_v3 = vor.u32 %v5276_v63, %v4912_v0  ;;  %v4755_v7 = vor.u32 %v5236_v4, %v4752_v52 }
 0x38d   : > { %3449 = vmatpush.bf16.msrb.mxu0 %v4835_v10  ;;  %3424 = vmatpush.bf16.msra.mxu2 %v4563_v18  ;;  %v4880_v10 = vld [vmem:[%s7474_s7 + $0x418] sm:$0xf0] }
 0x38e   : > { %3413 = vmatpush.bf16.msra.mxu1 %v4403_v11  ;;  %3439 = vmatpush.bf16.msrb.mxu3 %v4659_v24 }
 0x391   : > { %3450 = vmatpush.bf16.msrb.mxu0 %v4819_v56  ;;  %3425 = vmatpush.bf16.msra.mxu2 %v4547_v57 }
 0x392   : > { %3414 = vmatpush.bf16.msra.mxu1 %v4387_v32  ;;  %3440 = vmatpush.bf16.msrb.mxu3 %v4643_v51 }
 0x395   : > { %3451 = vmatpush.bf16.msrb.mxu0 %v4803_v30  ;;  %3426 = vmatpush.bf16.msra.mxu2 %v4531_v62 }
 0x396   : > { %3415 = vmatpush.bf16.msra.mxu1 %v4371_v39  ;;  %3441 = vmatpush.bf16.msrb.mxu3 %v4627_v54 }
 0x399   : > { %3452 = vmatpush.bf16.msrb.mxu0 %v4787_v47  ;;  %3427 = vmatpush.bf16.msra.mxu2 %v4515_v50 }
 0x39a   : > { %3464 = vmatpush.bf16.msrb.mxu1 %v4931_v55  ;;  %3442 = vmatmul.bf16.vlgmr.msrb.gmra.mxu3 %v6994_v27 }
 0x39b   : > { %3416 = vmatmul.bf16.vlgmr.msra.gmra.mxu1 %v6916_v2  ;;  %v4883_v2 = vor.u32 %v5268_v9, %v4880_v10 }
 0x39d   : > { %3453 = vmatpush.bf16.msrb.mxu0 %v4771_v1  ;;  %3428 = vmatpush.bf16.msra.mxu2 %v4499_v21 }
 0x39e   : > { %3465 = vmatpush.bf16.msrb.mxu1 %v4915_v3 }
 0x3a0   : > { %3429 = vmatmul.bf16.vlgmr.msra.gmra.mxu2 %v6941_v53  ;;  %v2440_v53 = vld [vmem:[%s7475_s8] sm:$0xf] }
 0x3a1   : > { %3454 = vmatpush.bf16.msrb.mxu0 %v4755_v7  ;;  %v2442_v16 = vperm.slane %v2440_v53, 0  ;;  %v2443_v56 = vperm.slane %v2440_v53, 1  ;;  %v2444_v60 = vperm.slane %v2440_v53, 2  ;;  %v2445_v21 = vperm.slane %v2440_v53, 3 }
 0x3a2   : > { %3466 = vmatpush.bf16.msrb.mxu1 %v4899_v8 }
 0x3a4   : > { %3455 = vmatmul.bf16.vlgmr.msrb.gmra.mxu0 %v7021_v34 }
 0x3a6   : > { %3467 = vmatpush.bf16.msrb.mxu1 %v4883_v2 }
 0x3ab   : > { %4935 = vmatmul.msk.bf16.vlgmr.msrb.gmra.mxu1 %vm680_vm3, %v6980_v15 }
 0x3c3   : > { %v3222_v27 = vpop.f32.mrf.mxu2 }
 0x3c4   : > { %v3223_v20 = vadd.f32 %v3222_v27, %v2442_v16 }
 0x3cb   : > { %v3224_v45 = vpop.f32.mrf.mxu2  ;;  %v3235_v38 = vpop.f32.mrf.mxu3 }
 0x3cc   : > { %v3236_v11 = vadd.f32 %v3235_v38, %v3223_v20 }
 0x3d0   : > { %v3248_v36 = vpop.f32.mrf.mxu0 }
 0x3d1   : > { %v3249_v24 = vadd.f32 %v3248_v36, %v3236_v11 }
 0x3d3   : > { %v3237_v13 = vpop.f32.mrf.mxu3  ;;  %v3274_v14 = vpop.f32.mrf.mxu2 }
 0x3d5   : > { %v3261_v18 = vpop.f32.mrf.mxu1 }
 0x3d6   : > { %v3262_v57 = vadd.f32 %v3261_v18, %v3249_v24 }
 0x3d8   : > { %v3250_v23 = vpop.f32.mrf.mxu0  ;;  %v3275_v29 = vadd.f32 %v3274_v14, %v3262_v57 }
 0x3da   : > { %v3477_v51 = vmul.f32 0.2, %v3275_v29  ;;  %vm3473_vm9 = vcmp.ge.f32.partialorder %v3275_v29, 0.0 }
 0x3db   : > { %v3276_v17 = vpop.f32.mrf.mxu2  ;;  %v3287_v19 = vpop.f32.mrf.mxu3 }
 0x3dc   : > { %v3288_v25 = vadd.f32 %v3287_v19, %v2443_v56  ;;  %v3481_v62 = vsel %vm3473_vm9, %v3275_v29, %v3477_v51 }
 0x3dd   : > { %v3263_v34 = vpop.f32.mrf.mxu1 }
 0x3e0   : > { %v3300_v15 = vpop.f32.mrf.mxu0 }
 0x3e1   : > { %v3301_v12 = vadd.f32 %v3300_v15, %v3288_v25 }
 0x3e3   : > { %v3289_v26 = vpop.f32.mrf.mxu3  ;;  %v3326_v28 = vpop.f32.mrf.mxu2 }
 0x3e5   : > { %v3313_v31 = vpop.f32.mrf.mxu1 }
 0x3e6   : > { %v3314_v22 = vadd.f32 %v3313_v31, %v3301_v12 }
 0x3e8   : > { %v3302_v42 = vpop.f32.mrf.mxu0  ;;  %v3327_v30 = vadd.f32 %v3326_v28, %v3314_v22 }
 0x3eb   : > { %v3328_v49 = vpop.f32.mrf.mxu2  ;;  %v3339_v32 = vpop.f32.mrf.mxu3 }
 0x3ec   : > { %v3340_v33 = vadd.f32 %v3339_v32, %v3327_v30 }
 0x3ed   : > { %v3315_v35 = vpop.f32.mrf.mxu1 }
 0x3ee   : > { %vm3474_vm10 = vcmp.ge.f32.partialorder %v3340_v33, 0.0  ;;  %v3478_v37 = vmul.f32 0.2, %v3340_v33 }
 0x3f0   : > { %v3482_v40 = vsel %vm3474_vm10, %v3340_v33, %v3478_v37 }
 0x3f1   : > { %v3352_v41 = vpop.f32.mrf.mxu0  ;;  %v3485_v43 = vpack.c.bf16 %v3482_v40, %v3481_v62 }
 0x3f2   : > { %v3353_v63 = vadd.f32 %v3352_v41, %v2444_v60 }
 0x3f3   : > { %3487 = vst [vmem:[%s7460_s19] sm:$0xff] %v3485_v43  ;;  %v3341_v44 = vpop.f32.mrf.mxu3 }
 0x3f8   : > { %v3365_v48 = vpop.f32.mrf.mxu1 }
 0x3f9   : > { %v3354_v46 = vpop.f32.mrf.mxu0  ;;  %v3366_v0 = vadd.f32 %v3365_v48, %v3353_v63 }
 0x3fe   : > { %v3391_v47 = vpop.f32.mrf.mxu3 }
 0x400   : > { %v3367_v39 = vpop.f32.mrf.mxu1 }
 0x401   : > { %v3404_v50 = vpop.f32.mrf.mxu0 }
 0x403   : > { %v3378_v54 = vpop.f32.mrf.mxu2 }
 0x404   : > { %v3379_v1 = vadd.f32 %v3378_v54, %v3366_v0 }
 0x406   : > { %v3393_v55 = vpop.f32.mrf.mxu3  ;;  %v3392_v5 = vadd.f32 %v3391_v47, %v3379_v1 }
 0x408   : > { %v3405_v9 = vadd.f32 %v3404_v50, %v3392_v5 }
 0x409   : > { %v3406_v59 = vpop.f32.mrf.mxu0 }
 0x40a   : > { %v3479_v36 = vmul.f32 0.2, %v3405_v9  ;;  %vm3475_vm11 = vcmp.ge.f32.partialorder %v3405_v9, 0.0 }
 0x40b   : > { %v3380_v58 = vpop.f32.mrf.mxu2 }
 0x40c   : > { %v3483_v53 = vsel %vm3475_vm11, %v3405_v9, %v3479_v36 }
 0x418   : > { %v3417_v61 = vpop.f32.mrf.mxu1 }
 0x419   : > { %v3418_v6 = vadd.f32 %v3417_v61, %v2445_v21 }
 0x41d   : > { %v3443_v3 = vpop.f32.mrf.mxu3 }
 0x420   : > { %v3419_v4 = vpop.f32.mrf.mxu1 }
 0x421   : > { %v3456_v52 = vpop.f32.mrf.mxu0 }
 0x423   : > { %v3430_v7 = vpop.f32.mrf.mxu2 }
 0x424   : > { %v3431_v8 = vadd.f32 %v3430_v7, %v3418_v6 }
 0x425   : > { %v3445_v2 = vpop.f32.mrf.mxu3 }
 0x426   : > { %v3444_v10 = vadd.f32 %v3443_v3, %v3431_v8 }
 0x428   : > { %v3457_v27 = vadd.f32 %v3456_v52, %v3444_v10  ;;  %v3469_v45 = vpop.f32.mrf.mxu1 }
 0x429   : > { %v3458_v38 = vpop.f32.mrf.mxu0 }
 0x42a   : > { %v3470_v13 = vadd.f32 %v3469_v45, %v3457_v27 }
 0x42b   : > { %v3432_v14 = vpop.f32.mrf.mxu2 }
 0x42c   : > { %vm3476_vm12 = vcmp.ge.f32.partialorder %v3470_v13, 0.0  ;;  %v3480_v18 = vmul.f32 0.2, %v3470_v13 }
 0x42e   : > { %v3484_v23 = vsel %vm3476_vm12, %v3470_v13, %v3480_v18 }
 0x42f   : > { %v3486_v16 = vpack.c.bf16 %v3484_v23, %v3483_v53 }
 0x430   : > { %v3471_v17 = vpop.f32.mrf.mxu1 }
 0x431   : > { %3488 = vst [vmem:[%s7460_s19 + $0x8] sm:$0xff] %v3486_v16 }
 0x432 PF: > { %s19_s30 = sadd.s32 1, %s5302_s30  }
 0x433   : > { %p16_p4 = scmp.ge.s32.totalorder %s19_s30, 4  }
 0x435   :  { %18 = sbr.rel (!%p16_p4) target bundleno = 1 (0x1), region = 86 }

</bundles_post_ra>
